<compile_context>
chip_gen: v5e
topology: v5e:2x2
jax: 0.10.0
libtpu: 0.0.40
codegen_flags: <defaults>
</compile_context>

<pallas_src>
import jax
import jax.numpy as jnp
from jax.experimental import pallas as pl
from jax.experimental.pallas import tpu as pltpu

# ----------------------------- model config -----------------------------
HIDDEN = 256          # bert_hidden_dim (fixed by fc1 in_features)
DENSE = 128           # dense_size
CAT_SIZE = 8          # categorical_features_size (synthetic example)
OUT_FEATURES = 1
OUT_PAD = 128         # lane-dense output slab width; sliced to OUT_FEATURES outside
NUM_LAYERS = 2
NUM_HEADS = 4
HEAD_DIM = HIDDEN // NUM_HEADS
INTERMEDIATE = 512
VOCAB = 100
MAX_POS = 32
BATCH = 2
SEQ = 8


# ----------------------------- fused Pallas kernel -----------------------------
def _layernorm(x, g, b, eps=1e-12):
    mu = jnp.mean(x, axis=-1, keepdims=True)
    var = jnp.mean((x - mu) ** 2, axis=-1, keepdims=True)
    return (x - mu) * jax.lax.rsqrt(var + eps) * g + b


def _fused_forward_kernel(
    emb_ref, maskb_ref, cat_ref,
    emb_g_ref, emb_b_ref,
    wqkv_ref, bqkv_ref, wo_ref, bo_ref, ln1_g_ref, ln1_b_ref,
    wi_ref, bi_ref, wf_ref, bf_ref, ln2_g_ref, ln2_b_ref,
    hw1_ref, hb1_ref, hw2t_ref, hw2c_ref, hb2_ref, hw3_ref, hb3_ref,
    o_ref,
):
    f32 = jnp.float32
    bf16 = jnp.bfloat16
    scale = 1.0 / (HEAD_DIM ** 0.5)

    # Embedding LayerNorm (no zero-residual array; dropout = identity at inference).
    x = _layernorm(emb_ref[...].astype(f32), emb_g_ref[...], emb_b_ref[...])   # [BS, H]

    mask_bias = maskb_ref[...]                                   # [B, S], 0 or -1e9

    for l in range(NUM_LAYERS):                                  # static unroll (2 layers)
        # ---- fused QKV projection: one [BS,H] x [H,3H] MXU matmul (bf16 operands, f32 acc) ----
        qkv = jnp.dot(x.astype(bf16), wqkv_ref[l],
                      preferred_element_type=f32) + bqkv_ref[l]  # [BS, 3H] f32

        # ---- multi-head attention: all batches/heads unrolled inside the kernel ----
        batch_rows = []
        for b in range(BATCH):
            r0, r1 = b * SEQ, (b + 1) * SEQ
            mb = mask_bias[b:b + 1, :]                           # [1, S]
            heads = []
            for h in range(NUM_HEADS):
                c0 = h * HEAD_DIM
                q = qkv[r0:r1, c0:c0 + HEAD_DIM]                                 # [S, Dh]
                k = qkv[r0:r1, HIDDEN + c0:HIDDEN + c0 + HEAD_DIM]               # [S, Dh]
                v = qkv[r0:r1, 2 * HIDDEN + c0:2 * HIDDEN + c0 + HEAD_DIM]       # [S, Dh]
                s = jax.lax.dot_general(q, k, (((1,), (1,)), ((), ())),
                                        preferred_element_type=f32) * scale      # [S, S]
                s = s + mb
                s = s - jnp.max(s, axis=-1, keepdims=True)
                p = jnp.exp(s)
                p = p * pl.reciprocal(jnp.sum(p, axis=-1, keepdims=True), approx=True)
                heads.append(jnp.dot(p, v, preferred_element_type=f32))          # [S, Dh]
            batch_rows.append(jnp.concatenate(heads, axis=1))                    # [S, H]
        ctx = jnp.concatenate(batch_rows, axis=0)                                # [BS, H]

        attn = jnp.dot(ctx.astype(bf16), wo_ref[l],
                       preferred_element_type=f32) + bo_ref[l]
        x = _layernorm(x + attn, ln1_g_ref[l], ln1_b_ref[l])

        # ---- FFN ----
        ffn = jnp.dot(x.astype(bf16), wi_ref[l],
                      preferred_element_type=f32) + bi_ref[l]
        # TODO(synk): tanh-approx GELU; HF/MiniRBT BERT uses exact erf GELU (tiny numeric diff).
        ffn = jax.nn.gelu(ffn, approximate=True)
        ffn = jnp.dot(ffn.astype(bf16), wf_ref[l],
                      preferred_element_type=f32) + bf_ref[l]
        x = _layernorm(x + ffn, ln2_g_ref[l], ln2_b_ref[l])

    # ---- regression head on the [CLS] rows (row b*S of the [BS, H] slab) ----
    cls = jnp.concatenate([x[b * SEQ:b * SEQ + 1, :] for b in range(BATCH)], axis=0)  # [B, H]
    t = jnp.maximum(
        jnp.dot(cls, hw1_ref[...], preferred_element_type=f32) + hb1_ref[...], 0.0)   # [B, DENSE]
    # concat(text, cat) @ W2 == text @ W2t + cat @ W2c  (weight split, no concat needed)
    hcomb = jnp.maximum(
        jnp.dot(t, hw2t_ref[...], preferred_element_type=f32)
        + jnp.dot(cat_ref[...], hw2c_ref[...], preferred_element_type=f32)
        + hb2_ref[...], 0.0)                                                          # [B, 64]
    # Dropout(0.1) is identity at inference.  w3/b3 zero-padded to OUT_PAD lanes -> dense store.
    out = jnp.dot(hcomb, hw3_ref[...], preferred_element_type=f32) + hb3_ref[...]     # [B, OUT_PAD]
    o_ref[...] = out.astype(o_ref.dtype)


# ----------------------------- parameter init -----------------------------
def init_params(key):
    ks = jax.random.split(key, 16)

    def nrm(k, shape):
        return 0.02 * jax.random.normal(k, shape, jnp.float32)

    return {
        "word_emb": nrm(ks[0], (VOCAB, HIDDEN)),
        "pos_emb": nrm(ks[1], (MAX_POS, HIDDEN)),
        "emb_ln_g": jnp.ones((1, HIDDEN), jnp.float32),
        "emb_ln_b": jnp.zeros((1, HIDDEN), jnp.float32),
        # encoder weights stacked along a leading layer axis; big matrices stored in bf16
        "wqkv": nrm(ks[2], (NUM_LAYERS, HIDDEN, 3 * HIDDEN)).astype(jnp.bfloat16),
        "bqkv": jnp.zeros((NUM_LAYERS, 1, 3 * HIDDEN), jnp.float32),
        "wo": nrm(ks[3], (NUM_LAYERS, HIDDEN, HIDDEN)).astype(jnp.bfloat16),
        "bo": jnp.zeros((NUM_LAYERS, 1, HIDDEN), jnp.float32),
        "ln1_g": jnp.ones((NUM_LAYERS, 1, HIDDEN), jnp.float32),
        "ln1_b": jnp.zeros((NUM_LAYERS, 1, HIDDEN), jnp.float32),
        "wi": nrm(ks[4], (NUM_LAYERS, HIDDEN, INTERMEDIATE)).astype(jnp.bfloat16),
        "bi": jnp.zeros((NUM_LAYERS, 1, INTERMEDIATE), jnp.float32),
        "wf": nrm(ks[5], (NUM_LAYERS, INTERMEDIATE, HIDDEN)).astype(jnp.bfloat16),
        "bf": jnp.zeros((NUM_LAYERS, 1, HIDDEN), jnp.float32),
        "ln2_g": jnp.ones((NUM_LAYERS, 1, HIDDEN), jnp.float32),
        "ln2_b": jnp.zeros((NUM_LAYERS, 1, HIDDEN), jnp.float32),
        # MLP head (f32; tiny)
        "hw1": nrm(ks[6], (HIDDEN, DENSE)),
        "hb1": jnp.zeros((1, DENSE), jnp.float32),
        "hw2t": nrm(ks[7], (DENSE, 64)),
        "hw2c": nrm(ks[8], (CAT_SIZE, 64)),
        "hb2": jnp.zeros((1, 64), jnp.float32),
        # final linear zero-padded to OUT_PAD output lanes for a lane-dense store
        "hw3": jnp.pad(nrm(ks[9], (64, OUT_FEATURES)),
                       ((0, 0), (0, OUT_PAD - OUT_FEATURES))),
        "hb3": jnp.zeros((1, OUT_PAD), jnp.float32),
    }


# ----------------------------- forward pass -----------------------------
def bert_duration_regressor_forward(params, input_ids, attention_mask, categorical_features):
    B, S = input_ids.shape
    # Embedding gather is plain-JAX glue; token-type embeddings omitted (segment-0 only).
    # TODO(synk): pretrained 'miniRBT' checkpoint replaced by deterministic synthetic weights.
    emb = (params["word_emb"][input_ids]
           + params["pos_emb"][:S][None, :, :]).reshape(B * S, HIDDEN)
    mask_bias = (1.0 - attention_mask.astype(jnp.float32)) * (-1e9)            # [B, S]

    args = (
        emb, mask_bias, categorical_features.astype(jnp.float32),
        params["emb_ln_g"], params["emb_ln_b"],
        params["wqkv"], params["bqkv"], params["wo"], params["bo"],
        params["ln1_g"], params["ln1_b"],
        params["wi"], params["bi"], params["wf"], params["bf"],
        params["ln2_g"], params["ln2_b"],
        params["hw1"], params["hb1"], params["hw2t"], params["hw2c"],
        params["hb2"], params["hw3"], params["hb3"],
    )
    # No grid: whole arrays are VMEM-resident; one kernel launch for the full forward.
    out_pad = pl.pallas_call(
        _fused_forward_kernel,
        out_shape=jax.ShapeDtypeStruct((B, OUT_PAD), jnp.float32),
        compiler_params=pltpu.CompilerParams(vmem_limit_bytes=32 * 1024 * 1024),
    )(*args)
    return out_pad[:, :OUT_FEATURES]


# ----------------------------- main -----------------------------
if __name__ == "__main__":
    key = jax.random.PRNGKey(0)
    k_param, k_ids, k_cat = jax.random.split(key, 3)

    params = init_params(k_param)

    input_ids = jax.random.randint(k_ids, (BATCH, SEQ), 0, VOCAB, dtype=jnp.int32)
    attention_mask = jnp.array(
        [[1, 1, 1, 1, 1, 1, 1, 1],
         [1, 1, 1, 1, 1, 1, 0, 0]], dtype=jnp.int32)                           # [B, S]
    categorical_features = jax.random.normal(k_cat, (BATCH, CAT_SIZE), jnp.float32)

    fwd = jax.jit(bert_duration_regressor_forward)
    out = jax.block_until_ready(fwd(params, input_ids, attention_mask, categorical_features))

    assert out.shape == (BATCH, OUT_FEATURES) and out.dtype == jnp.float32
    assert bool(jnp.all(jnp.isfinite(out)))
    print("KERNEL_OK")
</pallas_src>

<mosaic_0001>
module attributes {stable_mosaic.version = 11 : i64} {
  func.func @_fused_forward_kernel(%arg0: memref<16x256xf32, #tpu.memory_space<vmem>>, %arg1: memref<2x8xf32, #tpu.memory_space<vmem>>, %arg2: memref<2x8xf32, #tpu.memory_space<vmem>>, %arg3: memref<1x256xf32, #tpu.memory_space<vmem>>, %arg4: memref<1x256xf32, #tpu.memory_space<vmem>>, %arg5: memref<2x256x768xbf16, #tpu.memory_space<vmem>>, %arg6: memref<2x1x768xf32, #tpu.memory_space<vmem>>, %arg7: memref<2x256x256xbf16, #tpu.memory_space<vmem>>, %arg8: memref<2x1x256xf32, #tpu.memory_space<vmem>>, %arg9: memref<2x1x256xf32, #tpu.memory_space<vmem>>, %arg10: memref<2x1x256xf32, #tpu.memory_space<vmem>>, %arg11: memref<2x256x512xbf16, #tpu.memory_space<vmem>>, %arg12: memref<2x1x512xf32, #tpu.memory_space<vmem>>, %arg13: memref<2x512x256xbf16, #tpu.memory_space<vmem>>, %arg14: memref<2x1x256xf32, #tpu.memory_space<vmem>>, %arg15: memref<2x1x256xf32, #tpu.memory_space<vmem>>, %arg16: memref<2x1x256xf32, #tpu.memory_space<vmem>>, %arg17: memref<256x128xf32, #tpu.memory_space<vmem>>, %arg18: memref<1x128xf32, #tpu.memory_space<vmem>>, %arg19: memref<128x64xf32, #tpu.memory_space<vmem>>, %arg20: memref<8x64xf32, #tpu.memory_space<vmem>>, %arg21: memref<1x64xf32, #tpu.memory_space<vmem>>, %arg22: memref<64x128xf32, #tpu.memory_space<vmem>>, %arg23: memref<1x128xf32, #tpu.memory_space<vmem>>, %arg24: memref<2x128xf32, #tpu.memory_space<vmem>>) attributes {dimension_semantics = [], scalar_prefetch = 0 : i64, scratch_operands = 0 : i64, tpu.core_type = #tpu.core_type<tc>} {
    %c0 = arith.constant 0 : index
    %c0_0 = arith.constant 0 : index
    %0 = vector.load %arg0[%c0, %c0_0] : memref<16x256xf32, #tpu.memory_space<vmem>>, vector<16x256xf32>
    %c0_1 = arith.constant 0 : index
    %c0_2 = arith.constant 0 : index
    %1 = vector.load %arg3[%c0_1, %c0_2] : memref<1x256xf32, #tpu.memory_space<vmem>>, vector<1x256xf32>
    %c0_3 = arith.constant 0 : index
    %c0_4 = arith.constant 0 : index
    %2 = vector.load %arg4[%c0_3, %c0_4] : memref<1x256xf32, #tpu.memory_space<vmem>>, vector<1x256xf32>
    %cst = arith.constant dense<0.000000e+00> : vector<16xf32>
    %3 = vector.multi_reduction <add>, %0, %cst [1] : vector<16x256xf32> to vector<16xf32>
    %4 = vector.shape_cast %3 : vector<16xf32> to vector<16x1xf32>
    %cst_5 = arith.constant 2.560000e+02 : f32
    %5 = vector.broadcast %cst_5 : f32 to vector<16x1xf32>
    %6 = arith.divf %4, %5 : vector<16x1xf32>
    %7 = vector.broadcast %6 : vector<16x1xf32> to vector<16x256xf32>
    %8 = arith.subf %0, %7 : vector<16x256xf32>
    %9 = arith.mulf %8, %8 : vector<16x256xf32>
    %cst_6 = arith.constant dense<0.000000e+00> : vector<16xf32>
    %10 = vector.multi_reduction <add>, %9, %cst_6 [1] : vector<16x256xf32> to vector<16xf32>
    %11 = vector.shape_cast %10 : vector<16xf32> to vector<16x1xf32>
    %cst_7 = arith.constant 2.560000e+02 : f32
    %12 = vector.broadcast %cst_7 : f32 to vector<16x1xf32>
    %13 = arith.divf %11, %12 : vector<16x1xf32>
    %14 = vector.broadcast %6 : vector<16x1xf32> to vector<16x256xf32>
    %15 = arith.subf %0, %14 : vector<16x256xf32>
    %cst_8 = arith.constant 9.99999996E-13 : f32
    %16 = vector.broadcast %cst_8 : f32 to vector<16x1xf32>
    %17 = arith.addf %13, %16 : vector<16x1xf32>
    %18 = math.rsqrt %17 : vector<16x1xf32>
    %19 = vector.broadcast %18 : vector<16x1xf32> to vector<16x256xf32>
    %20 = arith.mulf %15, %19 : vector<16x256xf32>
    %21 = vector.broadcast %1 : vector<1x256xf32> to vector<16x256xf32>
    %22 = arith.mulf %20, %21 : vector<16x256xf32>
    %23 = vector.broadcast %2 : vector<1x256xf32> to vector<16x256xf32>
    %24 = arith.addf %22, %23 : vector<16x256xf32>
    %c0_9 = arith.constant 0 : index
    %c0_10 = arith.constant 0 : index
    %25 = vector.load %arg1[%c0_9, %c0_10] : memref<2x8xf32, #tpu.memory_space<vmem>>, vector<2x8xf32>
    %26 = arith.truncf %24 : vector<16x256xf32> to vector<16x256xbf16>
    %c0_11 = arith.constant 0 : index
    %c0_12 = arith.constant 0 : index
    %c0_13 = arith.constant 0 : index
    %27 = vector.load %arg5[%c0_11, %c0_12, %c0_13] : memref<2x256x768xbf16, #tpu.memory_space<vmem>>, vector<1x256x768xbf16>
    %28 = vector.shape_cast %27 : vector<1x256x768xbf16> to vector<256x768xbf16>
    %cst_14 = arith.constant dense<0.000000e+00> : vector<16x768xf32>
    %29 = tpu.matmul %26, %28, %cst_14 {dimension_numbers = #tpu.dot_dimension_numbers<[1], [0], [0], [1], [0, 0, 1, 1], [], []>} : vector<16x256xbf16>, vector<256x768xbf16>, vector<16x768xf32> -> vector<16x768xf32>
    %c0_15 = arith.constant 0 : index
    %c0_16 = arith.constant 0 : index
    %c0_17 = arith.constant 0 : index
    %30 = vector.load %arg6[%c0_15, %c0_16, %c0_17] : memref<2x1x768xf32, #tpu.memory_space<vmem>>, vector<1x1x768xf32>
    %31 = vector.shape_cast %30 : vector<1x1x768xf32> to vector<1x768xf32>
    %32 = vector.broadcast %31 : vector<1x768xf32> to vector<16x768xf32>
    %33 = arith.addf %29, %32 : vector<16x768xf32>
    %34 = vector.extract_strided_slice %25 {offsets = [0, 0], sizes = [1, 8], strides = [1, 1]} : vector<2x8xf32> to vector<1x8xf32>
    %35 = vector.extract_strided_slice %33 {offsets = [0, 0], sizes = [8, 64], strides = [1, 1]} : vector<16x768xf32> to vector<8x64xf32>
    %36 = vector.extract_strided_slice %33 {offsets = [0, 256], sizes = [8, 64], strides = [1, 1]} : vector<16x768xf32> to vector<8x64xf32>
    %37 = vector.extract_strided_slice %33 {offsets = [0, 512], sizes = [8, 64], strides = [1, 1]} : vector<16x768xf32> to vector<8x64xf32>
    %cst_18 = arith.constant dense<0.000000e+00> : vector<8x8xf32>
    %38 = tpu.matmul %35, %36, %cst_18 {dimension_numbers = #tpu.dot_dimension_numbers<[1], [1], [0], [0], [0, 0, 1, 0], [], []>} : vector<8x64xf32>, vector<8x64xf32>, vector<8x8xf32> -> vector<8x8xf32>
    %cst_19 = arith.constant 1.250000e-01 : f32
    %39 = vector.broadcast %cst_19 : f32 to vector<8x8xf32>
    %40 = arith.mulf %38, %39 : vector<8x8xf32>
    %41 = vector.broadcast %34 : vector<1x8xf32> to vector<8x8xf32>
    %42 = arith.addf %40, %41 : vector<8x8xf32>
    %cst_20 = arith.constant dense<0xFF800000> : vector<8xf32>
    %43 = vector.multi_reduction <maximumf>, %42, %cst_20 [1] : vector<8x8xf32> to vector<8xf32>
    %44 = vector.shape_cast %43 : vector<8xf32> to vector<8x1xf32>
    %45 = vector.broadcast %44 : vector<8x1xf32> to vector<8x8xf32>
    %46 = arith.subf %42, %45 : vector<8x8xf32>
    %47 = math.exp %46 : vector<8x8xf32>
    %cst_21 = arith.constant dense<0.000000e+00> : vector<8xf32>
    %48 = vector.multi_reduction <add>, %47, %cst_21 [1] : vector<8x8xf32> to vector<8xf32>
    %49 = vector.shape_cast %48 : vector<8xf32> to vector<8x1xf32>
    %50 = tpu.reciprocal %49 {approx = true} : vector<8x1xf32> -> vector<8x1xf32>
    %51 = vector.broadcast %50 : vector<8x1xf32> to vector<8x8xf32>
    %52 = arith.mulf %47, %51 : vector<8x8xf32>
    %cst_22 = arith.constant dense<0.000000e+00> : vector<8x64xf32>
    %53 = tpu.matmul %52, %37, %cst_22 {dimension_numbers = #tpu.dot_dimension_numbers<[1], [0], [0], [1], [0, 0, 1, 1], [], []>} : vector<8x8xf32>, vector<8x64xf32>, vector<8x64xf32> -> vector<8x64xf32>
    %54 = vector.extract_strided_slice %33 {offsets = [0, 64], sizes = [8, 64], strides = [1, 1]} : vector<16x768xf32> to vector<8x64xf32>
    %55 = vector.extract_strided_slice %33 {offsets = [0, 320], sizes = [8, 64], strides = [1, 1]} : vector<16x768xf32> to vector<8x64xf32>
    %56 = vector.extract_strided_slice %33 {offsets = [0, 576], sizes = [8, 64], strides = [1, 1]} : vector<16x768xf32> to vector<8x64xf32>
    %cst_23 = arith.constant dense<0.000000e+00> : vector<8x8xf32>
    %57 = tpu.matmul %54, %55, %cst_23 {dimension_numbers = #tpu.dot_dimension_numbers<[1], [1], [0], [0], [0, 0, 1, 0], [], []>} : vector<8x64xf32>, vector<8x64xf32>, vector<8x8xf32> -> vector<8x8xf32>
    %cst_24 = arith.constant 1.250000e-01 : f32
    %58 = vector.broadcast %cst_24 : f32 to vector<8x8xf32>
    %59 = arith.mulf %57, %58 : vector<8x8xf32>
    %60 = vector.broadcast %34 : vector<1x8xf32> to vector<8x8xf32>
    %61 = arith.addf %59, %60 : vector<8x8xf32>
    %cst_25 = arith.constant dense<0xFF800000> : vector<8xf32>
    %62 = vector.multi_reduction <maximumf>, %61, %cst_25 [1] : vector<8x8xf32> to vector<8xf32>
    %63 = vector.shape_cast %62 : vector<8xf32> to vector<8x1xf32>
    %64 = vector.broadcast %63 : vector<8x1xf32> to vector<8x8xf32>
    %65 = arith.subf %61, %64 : vector<8x8xf32>
    %66 = math.exp %65 : vector<8x8xf32>
    %cst_26 = arith.constant dense<0.000000e+00> : vector<8xf32>
    %67 = vector.multi_reduction <add>, %66, %cst_26 [1] : vector<8x8xf32> to vector<8xf32>
    %68 = vector.shape_cast %67 : vector<8xf32> to vector<8x1xf32>
    %69 = tpu.reciprocal %68 {approx = true} : vector<8x1xf32> -> vector<8x1xf32>
    %70 = vector.broadcast %69 : vector<8x1xf32> to vector<8x8xf32>
    %71 = arith.mulf %66, %70 : vector<8x8xf32>
    %cst_27 = arith.constant dense<0.000000e+00> : vector<8x64xf32>
    %72 = tpu.matmul %71, %56, %cst_27 {dimension_numbers = #tpu.dot_dimension_numbers<[1], [0], [0], [1], [0, 0, 1, 1], [], []>} : vector<8x8xf32>, vector<8x64xf32>, vector<8x64xf32> -> vector<8x64xf32>
    %73 = vector.extract_strided_slice %33 {offsets = [0, 128], sizes = [8, 64], strides = [1, 1]} : vector<16x768xf32> to vector<8x64xf32>
    %74 = vector.extract_strided_slice %33 {offsets = [0, 384], sizes = [8, 64], strides = [1, 1]} : vector<16x768xf32> to vector<8x64xf32>
    %75 = vector.extract_strided_slice %33 {offsets = [0, 640], sizes = [8, 64], strides = [1, 1]} : vector<16x768xf32> to vector<8x64xf32>
    %cst_28 = arith.constant dense<0.000000e+00> : vector<8x8xf32>
    %76 = tpu.matmul %73, %74, %cst_28 {dimension_numbers = #tpu.dot_dimension_numbers<[1], [1], [0], [0], [0, 0, 1, 0], [], []>} : vector<8x64xf32>, vector<8x64xf32>, vector<8x8xf32> -> vector<8x8xf32>
    %cst_29 = arith.constant 1.250000e-01 : f32
    %77 = vector.broadcast %cst_29 : f32 to vector<8x8xf32>
    %78 = arith.mulf %76, %77 : vector<8x8xf32>
    %79 = vector.broadcast %34 : vector<1x8xf32> to vector<8x8xf32>
    %80 = arith.addf %78, %79 : vector<8x8xf32>
    %cst_30 = arith.constant dense<0xFF800000> : vector<8xf32>
    %81 = vector.multi_reduction <maximumf>, %80, %cst_30 [1] : vector<8x8xf32> to vector<8xf32>
    %82 = vector.shape_cast %81 : vector<8xf32> to vector<8x1xf32>
    %83 = vector.broadcast %82 : vector<8x1xf32> to vector<8x8xf32>
    %84 = arith.subf %80, %83 : vector<8x8xf32>
    %85 = math.exp %84 : vector<8x8xf32>
    %cst_31 = arith.constant dense<0.000000e+00> : vector<8xf32>
    %86 = vector.multi_reduction <add>, %85, %cst_31 [1] : vector<8x8xf32> to vector<8xf32>
    %87 = vector.shape_cast %86 : vector<8xf32> to vector<8x1xf32>
    %88 = tpu.reciprocal %87 {approx = true} : vector<8x1xf32> -> vector<8x1xf32>
    %89 = vector.broadcast %88 : vector<8x1xf32> to vector<8x8xf32>
    %90 = arith.mulf %85, %89 : vector<8x8xf32>
    %cst_32 = arith.constant dense<0.000000e+00> : vector<8x64xf32>
    %91 = tpu.matmul %90, %75, %cst_32 {dimension_numbers = #tpu.dot_dimension_numbers<[1], [0], [0], [1], [0, 0, 1, 1], [], []>} : vector<8x8xf32>, vector<8x64xf32>, vector<8x64xf32> -> vector<8x64xf32>
    %92 = vector.extract_strided_slice %33 {offsets = [0, 192], sizes = [8, 64], strides = [1, 1]} : vector<16x768xf32> to vector<8x64xf32>
    %93 = vector.extract_strided_slice %33 {offsets = [0, 448], sizes = [8, 64], strides = [1, 1]} : vector<16x768xf32> to vector<8x64xf32>
    %94 = vector.extract_strided_slice %33 {offsets = [0, 704], sizes = [8, 64], strides = [1, 1]} : vector<16x768xf32> to vector<8x64xf32>
    %cst_33 = arith.constant dense<0.000000e+00> : vector<8x8xf32>
    %95 = tpu.matmul %92, %93, %cst_33 {dimension_numbers = #tpu.dot_dimension_numbers<[1], [1], [0], [0], [0, 0, 1, 0], [], []>} : vector<8x64xf32>, vector<8x64xf32>, vector<8x8xf32> -> vector<8x8xf32>
    %cst_34 = arith.constant 1.250000e-01 : f32
    %96 = vector.broadcast %cst_34 : f32 to vector<8x8xf32>
    %97 = arith.mulf %95, %96 : vector<8x8xf32>
    %98 = vector.broadcast %34 : vector<1x8xf32> to vector<8x8xf32>
    %99 = arith.addf %97, %98 : vector<8x8xf32>
    %cst_35 = arith.constant dense<0xFF800000> : vector<8xf32>
    %100 = vector.multi_reduction <maximumf>, %99, %cst_35 [1] : vector<8x8xf32> to vector<8xf32>
    %101 = vector.shape_cast %100 : vector<8xf32> to vector<8x1xf32>
    %102 = vector.broadcast %101 : vector<8x1xf32> to vector<8x8xf32>
    %103 = arith.subf %99, %102 : vector<8x8xf32>
    %104 = math.exp %103 : vector<8x8xf32>
    %cst_36 = arith.constant dense<0.000000e+00> : vector<8xf32>
    %105 = vector.multi_reduction <add>, %104, %cst_36 [1] : vector<8x8xf32> to vector<8xf32>
    %106 = vector.shape_cast %105 : vector<8xf32> to vector<8x1xf32>
    %107 = tpu.reciprocal %106 {approx = true} : vector<8x1xf32> -> vector<8x1xf32>
    %108 = vector.broadcast %107 : vector<8x1xf32> to vector<8x8xf32>
    %109 = arith.mulf %104, %108 : vector<8x8xf32>
    %cst_37 = arith.constant dense<0.000000e+00> : vector<8x64xf32>
    %110 = tpu.matmul %109, %94, %cst_37 {dimension_numbers = #tpu.dot_dimension_numbers<[1], [0], [0], [1], [0, 0, 1, 1], [], []>} : vector<8x8xf32>, vector<8x64xf32>, vector<8x64xf32> -> vector<8x64xf32>
    %111 = tpu.concatenate %53, %72, %91, %110 in 1 : vector<8x64xf32>, vector<8x64xf32>, vector<8x64xf32>, vector<8x64xf32> -> vector<8x256xf32>
    %112 = vector.extract_strided_slice %25 {offsets = [1, 0], sizes = [1, 8], strides = [1, 1]} : vector<2x8xf32> to vector<1x8xf32>
    %113 = vector.extract_strided_slice %33 {offsets = [8, 0], sizes = [8, 64], strides = [1, 1]} : vector<16x768xf32> to vector<8x64xf32>
    %114 = vector.extract_strided_slice %33 {offsets = [8, 256], sizes = [8, 64], strides = [1, 1]} : vector<16x768xf32> to vector<8x64xf32>
    %115 = vector.extract_strided_slice %33 {offsets = [8, 512], sizes = [8, 64], strides = [1, 1]} : vector<16x768xf32> to vector<8x64xf32>
    %cst_38 = arith.constant dense<0.000000e+00> : vector<8x8xf32>
    %116 = tpu.matmul %113, %114, %cst_38 {dimension_numbers = #tpu.dot_dimension_numbers<[1], [1], [0], [0], [0, 0, 1, 0], [], []>} : vector<8x64xf32>, vector<8x64xf32>, vector<8x8xf32> -> vector<8x8xf32>
    %cst_39 = arith.constant 1.250000e-01 : f32
    %117 = vector.broadcast %cst_39 : f32 to vector<8x8xf32>
    %118 = arith.mulf %116, %117 : vector<8x8xf32>
    %119 = vector.broadcast %112 : vector<1x8xf32> to vector<8x8xf32>
    %120 = arith.addf %118, %119 : vector<8x8xf32>
    %cst_40 = arith.constant dense<0xFF800000> : vector<8xf32>
    %121 = vector.multi_reduction <maximumf>, %120, %cst_40 [1] : vector<8x8xf32> to vector<8xf32>
    %122 = vector.shape_cast %121 : vector<8xf32> to vector<8x1xf32>
    %123 = vector.broadcast %122 : vector<8x1xf32> to vector<8x8xf32>
    %124 = arith.subf %120, %123 : vector<8x8xf32>
    %125 = math.exp %124 : vector<8x8xf32>
    %cst_41 = arith.constant dense<0.000000e+00> : vector<8xf32>
    %126 = vector.multi_reduction <add>, %125, %cst_41 [1] : vector<8x8xf32> to vector<8xf32>
    %127 = vector.shape_cast %126 : vector<8xf32> to vector<8x1xf32>
    %128 = tpu.reciprocal %127 {approx = true} : vector<8x1xf32> -> vector<8x1xf32>
    %129 = vector.broadcast %128 : vector<8x1xf32> to vector<8x8xf32>
    %130 = arith.mulf %125, %129 : vector<8x8xf32>
    %cst_42 = arith.constant dense<0.000000e+00> : vector<8x64xf32>
    %131 = tpu.matmul %130, %115, %cst_42 {dimension_numbers = #tpu.dot_dimension_numbers<[1], [0], [0], [1], [0, 0, 1, 1], [], []>} : vector<8x8xf32>, vector<8x64xf32>, vector<8x64xf32> -> vector<8x64xf32>
    %132 = vector.extract_strided_slice %33 {offsets = [8, 64], sizes = [8, 64], strides = [1, 1]} : vector<16x768xf32> to vector<8x64xf32>
    %133 = vector.extract_strided_slice %33 {offsets = [8, 320], sizes = [8, 64], strides = [1, 1]} : vector<16x768xf32> to vector<8x64xf32>
    %134 = vector.extract_strided_slice %33 {offsets = [8, 576], sizes = [8, 64], strides = [1, 1]} : vector<16x768xf32> to vector<8x64xf32>
    %cst_43 = arith.constant dense<0.000000e+00> : vector<8x8xf32>
    %135 = tpu.matmul %132, %133, %cst_43 {dimension_numbers = #tpu.dot_dimension_numbers<[1], [1], [0], [0], [0, 0, 1, 0], [], []>} : vector<8x64xf32>, vector<8x64xf32>, vector<8x8xf32> -> vector<8x8xf32>
    %cst_44 = arith.constant 1.250000e-01 : f32
    %136 = vector.broadcast %cst_44 : f32 to vector<8x8xf32>
    %137 = arith.mulf %135, %136 : vector<8x8xf32>
    %138 = vector.broadcast %112 : vector<1x8xf32> to vector<8x8xf32>
    %139 = arith.addf %137, %138 : vector<8x8xf32>
    %cst_45 = arith.constant dense<0xFF800000> : vector<8xf32>
    %140 = vector.multi_reduction <maximumf>, %139, %cst_45 [1] : vector<8x8xf32> to vector<8xf32>
    %141 = vector.shape_cast %140 : vector<8xf32> to vector<8x1xf32>
    %142 = vector.broadcast %141 : vector<8x1xf32> to vector<8x8xf32>
    %143 = arith.subf %139, %142 : vector<8x8xf32>
    %144 = math.exp %143 : vector<8x8xf32>
    %cst_46 = arith.constant dense<0.000000e+00> : vector<8xf32>
    %145 = vector.multi_reduction <add>, %144, %cst_46 [1] : vector<8x8xf32> to vector<8xf32>
    %146 = vector.shape_cast %145 : vector<8xf32> to vector<8x1xf32>
    %147 = tpu.reciprocal %146 {approx = true} : vector<8x1xf32> -> vector<8x1xf32>
    %148 = vector.broadcast %147 : vector<8x1xf32> to vector<8x8xf32>
    %149 = arith.mulf %144, %148 : vector<8x8xf32>
    %cst_47 = arith.constant dense<0.000000e+00> : vector<8x64xf32>
    %150 = tpu.matmul %149, %134, %cst_47 {dimension_numbers = #tpu.dot_dimension_numbers<[1], [0], [0], [1], [0, 0, 1, 1], [], []>} : vector<8x8xf32>, vector<8x64xf32>, vector<8x64xf32> -> vector<8x64xf32>
    %151 = vector.extract_strided_slice %33 {offsets = [8, 128], sizes = [8, 64], strides = [1, 1]} : vector<16x768xf32> to vector<8x64xf32>
    %152 = vector.extract_strided_slice %33 {offsets = [8, 384], sizes = [8, 64], strides = [1, 1]} : vector<16x768xf32> to vector<8x64xf32>
    %153 = vector.extract_strided_slice %33 {offsets = [8, 640], sizes = [8, 64], strides = [1, 1]} : vector<16x768xf32> to vector<8x64xf32>
    %cst_48 = arith.constant dense<0.000000e+00> : vector<8x8xf32>
    %154 = tpu.matmul %151, %152, %cst_48 {dimension_numbers = #tpu.dot_dimension_numbers<[1], [1], [0], [0], [0, 0, 1, 0], [], []>} : vector<8x64xf32>, vector<8x64xf32>, vector<8x8xf32> -> vector<8x8xf32>
    %cst_49 = arith.constant 1.250000e-01 : f32
    %155 = vector.broadcast %cst_49 : f32 to vector<8x8xf32>
    %156 = arith.mulf %154, %155 : vector<8x8xf32>
    %157 = vector.broadcast %112 : vector<1x8xf32> to vector<8x8xf32>
    %158 = arith.addf %156, %157 : vector<8x8xf32>
    %cst_50 = arith.constant dense<0xFF800000> : vector<8xf32>
    %159 = vector.multi_reduction <maximumf>, %158, %cst_50 [1] : vector<8x8xf32> to vector<8xf32>
    %160 = vector.shape_cast %159 : vector<8xf32> to vector<8x1xf32>
    %161 = vector.broadcast %160 : vector<8x1xf32> to vector<8x8xf32>
    %162 = arith.subf %158, %161 : vector<8x8xf32>
    %163 = math.exp %162 : vector<8x8xf32>
    %cst_51 = arith.constant dense<0.000000e+00> : vector<8xf32>
    %164 = vector.multi_reduction <add>, %163, %cst_51 [1] : vector<8x8xf32> to vector<8xf32>
    %165 = vector.shape_cast %164 : vector<8xf32> to vector<8x1xf32>
    %166 = tpu.reciprocal %165 {approx = true} : vector<8x1xf32> -> vector<8x1xf32>
    %167 = vector.broadcast %166 : vector<8x1xf32> to vector<8x8xf32>
    %168 = arith.mulf %163, %167 : vector<8x8xf32>
    %cst_52 = arith.constant dense<0.000000e+00> : vector<8x64xf32>
    %169 = tpu.matmul %168, %153, %cst_52 {dimension_numbers = #tpu.dot_dimension_numbers<[1], [0], [0], [1], [0, 0, 1, 1], [], []>} : vector<8x8xf32>, vector<8x64xf32>, vector<8x64xf32> -> vector<8x64xf32>
    %170 = vector.extract_strided_slice %33 {offsets = [8, 192], sizes = [8, 64], strides = [1, 1]} : vector<16x768xf32> to vector<8x64xf32>
    %171 = vector.extract_strided_slice %33 {offsets = [8, 448], sizes = [8, 64], strides = [1, 1]} : vector<16x768xf32> to vector<8x64xf32>
    %172 = vector.extract_strided_slice %33 {offsets = [8, 704], sizes = [8, 64], strides = [1, 1]} : vector<16x768xf32> to vector<8x64xf32>
    %cst_53 = arith.constant dense<0.000000e+00> : vector<8x8xf32>
    %173 = tpu.matmul %170, %171, %cst_53 {dimension_numbers = #tpu.dot_dimension_numbers<[1], [1], [0], [0], [0, 0, 1, 0], [], []>} : vector<8x64xf32>, vector<8x64xf32>, vector<8x8xf32> -> vector<8x8xf32>
    %cst_54 = arith.constant 1.250000e-01 : f32
    %174 = vector.broadcast %cst_54 : f32 to vector<8x8xf32>
    %175 = arith.mulf %173, %174 : vector<8x8xf32>
    %176 = vector.broadcast %112 : vector<1x8xf32> to vector<8x8xf32>
    %177 = arith.addf %175, %176 : vector<8x8xf32>
    %cst_55 = arith.constant dense<0xFF800000> : vector<8xf32>
    %178 = vector.multi_reduction <maximumf>, %177, %cst_55 [1] : vector<8x8xf32> to vector<8xf32>
    %179 = vector.shape_cast %178 : vector<8xf32> to vector<8x1xf32>
    %180 = vector.broadcast %179 : vector<8x1xf32> to vector<8x8xf32>
    %181 = arith.subf %177, %180 : vector<8x8xf32>
    %182 = math.exp %181 : vector<8x8xf32>
    %cst_56 = arith.constant dense<0.000000e+00> : vector<8xf32>
    %183 = vector.multi_reduction <add>, %182, %cst_56 [1] : vector<8x8xf32> to vector<8xf32>
    %184 = vector.shape_cast %183 : vector<8xf32> to vector<8x1xf32>
    %185 = tpu.reciprocal %184 {approx = true} : vector<8x1xf32> -> vector<8x1xf32>
    %186 = vector.broadcast %185 : vector<8x1xf32> to vector<8x8xf32>
    %187 = arith.mulf %182, %186 : vector<8x8xf32>
    %cst_57 = arith.constant dense<0.000000e+00> : vector<8x64xf32>
    %188 = tpu.matmul %187, %172, %cst_57 {dimension_numbers = #tpu.dot_dimension_numbers<[1], [0], [0], [1], [0, 0, 1, 1], [], []>} : vector<8x8xf32>, vector<8x64xf32>, vector<8x64xf32> -> vector<8x64xf32>
    %189 = tpu.concatenate %131, %150, %169, %188 in 1 : vector<8x64xf32>, vector<8x64xf32>, vector<8x64xf32>, vector<8x64xf32> -> vector<8x256xf32>
    %190 = tpu.concatenate %111, %189 in 0 : vector<8x256xf32>, vector<8x256xf32> -> vector<16x256xf32>
    %191 = arith.truncf %190 : vector<16x256xf32> to vector<16x256xbf16>
    %c0_58 = arith.constant 0 : index
    %c0_59 = arith.constant 0 : index
    %c0_60 = arith.constant 0 : index
    %192 = vector.load %arg7[%c0_58, %c0_59, %c0_60] : memref<2x256x256xbf16, #tpu.memory_space<vmem>>, vector<1x256x256xbf16>
    %193 = vector.shape_cast %192 : vector<1x256x256xbf16> to vector<256x256xbf16>
    %cst_61 = arith.constant dense<0.000000e+00> : vector<16x256xf32>
    %194 = tpu.matmul %191, %193, %cst_61 {dimension_numbers = #tpu.dot_dimension_numbers<[1], [0], [0], [1], [0, 0, 1, 1], [], []>} : vector<16x256xbf16>, vector<256x256xbf16>, vector<16x256xf32> -> vector<16x256xf32>
    %c0_62 = arith.constant 0 : index
    %c0_63 = arith.constant 0 : index
    %c0_64 = arith.constant 0 : index
    %195 = vector.load %arg8[%c0_62, %c0_63, %c0_64] : memref<2x1x256xf32, #tpu.memory_space<vmem>>, vector<1x1x256xf32>
    %196 = vector.shape_cast %195 : vector<1x1x256xf32> to vector<1x256xf32>
    %197 = vector.broadcast %196 : vector<1x256xf32> to vector<16x256xf32>
    %198 = arith.addf %194, %197 : vector<16x256xf32>
    %199 = arith.addf %24, %198 : vector<16x256xf32>
    %c0_65 = arith.constant 0 : index
    %c0_66 = arith.constant 0 : index
    %c0_67 = arith.constant 0 : index
    %200 = vector.load %arg9[%c0_65, %c0_66, %c0_67] : memref<2x1x256xf32, #tpu.memory_space<vmem>>, vector<1x1x256xf32>
    %201 = vector.shape_cast %200 : vector<1x1x256xf32> to vector<1x256xf32>
    %c0_68 = arith.constant 0 : index
    %c0_69 = arith.constant 0 : index
    %c0_70 = arith.constant 0 : index
    %202 = vector.load %arg10[%c0_68, %c0_69, %c0_70] : memref<2x1x256xf32, #tpu.memory_space<vmem>>, vector<1x1x256xf32>
    %203 = vector.shape_cast %202 : vector<1x1x256xf32> to vector<1x256xf32>
    %cst_71 = arith.constant dense<0.000000e+00> : vector<16xf32>
    %204 = vector.multi_reduction <add>, %199, %cst_71 [1] : vector<16x256xf32> to vector<16xf32>
    %205 = vector.shape_cast %204 : vector<16xf32> to vector<16x1xf32>
    %cst_72 = arith.constant 2.560000e+02 : f32
    %206 = vector.broadcast %cst_72 : f32 to vector<16x1xf32>
    %207 = arith.divf %205, %206 : vector<16x1xf32>
    %208 = vector.broadcast %207 : vector<16x1xf32> to vector<16x256xf32>
    %209 = arith.subf %199, %208 : vector<16x256xf32>
    %210 = arith.mulf %209, %209 : vector<16x256xf32>
    %cst_73 = arith.constant dense<0.000000e+00> : vector<16xf32>
    %211 = vector.multi_reduction <add>, %210, %cst_73 [1] : vector<16x256xf32> to vector<16xf32>
    %212 = vector.shape_cast %211 : vector<16xf32> to vector<16x1xf32>
    %cst_74 = arith.constant 2.560000e+02 : f32
    %213 = vector.broadcast %cst_74 : f32 to vector<16x1xf32>
    %214 = arith.divf %212, %213 : vector<16x1xf32>
    %215 = vector.broadcast %207 : vector<16x1xf32> to vector<16x256xf32>
    %216 = arith.subf %199, %215 : vector<16x256xf32>
    %cst_75 = arith.constant 9.99999996E-13 : f32
    %217 = vector.broadcast %cst_75 : f32 to vector<16x1xf32>
    %218 = arith.addf %214, %217 : vector<16x1xf32>
    %219 = math.rsqrt %218 : vector<16x1xf32>
    %220 = vector.broadcast %219 : vector<16x1xf32> to vector<16x256xf32>
    %221 = arith.mulf %216, %220 : vector<16x256xf32>
    %222 = vector.broadcast %201 : vector<1x256xf32> to vector<16x256xf32>
    %223 = arith.mulf %221, %222 : vector<16x256xf32>
    %224 = vector.broadcast %203 : vector<1x256xf32> to vector<16x256xf32>
    %225 = arith.addf %223, %224 : vector<16x256xf32>
    %226 = arith.truncf %225 : vector<16x256xf32> to vector<16x256xbf16>
    %c0_76 = arith.constant 0 : index
    %c0_77 = arith.constant 0 : index
    %c0_78 = arith.constant 0 : index
    %227 = vector.load %arg11[%c0_76, %c0_77, %c0_78] : memref<2x256x512xbf16, #tpu.memory_space<vmem>>, vector<1x256x512xbf16>
    %228 = vector.shape_cast %227 : vector<1x256x512xbf16> to vector<256x512xbf16>
    %cst_79 = arith.constant dense<0.000000e+00> : vector<16x512xf32>
    %229 = tpu.matmul %226, %228, %cst_79 {dimension_numbers = #tpu.dot_dimension_numbers<[1], [0], [0], [1], [0, 0, 1, 1], [], []>} : vector<16x256xbf16>, vector<256x512xbf16>, vector<16x512xf32> -> vector<16x512xf32>
    %c0_80 = arith.constant 0 : index
    %c0_81 = arith.constant 0 : index
    %c0_82 = arith.constant 0 : index
    %230 = vector.load %arg12[%c0_80, %c0_81, %c0_82] : memref<2x1x512xf32, #tpu.memory_space<vmem>>, vector<1x1x512xf32>
    %231 = vector.shape_cast %230 : vector<1x1x512xf32> to vector<1x512xf32>
    %232 = vector.broadcast %231 : vector<1x512xf32> to vector<16x512xf32>
    %233 = arith.addf %229, %232 : vector<16x512xf32>
    %234 = arith.mulf %233, %233 : vector<16x512xf32>
    %235 = arith.mulf %233, %234 : vector<16x512xf32>
    %cst_83 = arith.constant 4.471500e-02 : f32
    %236 = vector.broadcast %cst_83 : f32 to vector<16x512xf32>
    %237 = arith.mulf %236, %235 : vector<16x512xf32>
    %238 = arith.addf %233, %237 : vector<16x512xf32>
    %cst_84 = arith.constant 0.797884583 : f32
    %239 = vector.broadcast %cst_84 : f32 to vector<16x512xf32>
    %240 = arith.mulf %239, %238 : vector<16x512xf32>
    %241 = math.tanh %240 : vector<16x512xf32>
    %cst_85 = arith.constant 1.000000e+00 : f32
    %242 = vector.broadcast %cst_85 : f32 to vector<16x512xf32>
    %243 = arith.addf %242, %241 : vector<16x512xf32>
    %cst_86 = arith.constant 5.000000e-01 : f32
    %244 = vector.broadcast %cst_86 : f32 to vector<16x512xf32>
    %245 = arith.mulf %244, %243 : vector<16x512xf32>
    %246 = arith.mulf %233, %245 : vector<16x512xf32>
    %247 = arith.truncf %246 : vector<16x512xf32> to vector<16x512xbf16>
    %c0_87 = arith.constant 0 : index
    %c0_88 = arith.constant 0 : index
    %c0_89 = arith.constant 0 : index
    %248 = vector.load %arg13[%c0_87, %c0_88, %c0_89] : memref<2x512x256xbf16, #tpu.memory_space<vmem>>, vector<1x512x256xbf16>
    %249 = vector.shape_cast %248 : vector<1x512x256xbf16> to vector<512x256xbf16>
    %cst_90 = arith.constant dense<0.000000e+00> : vector<16x256xf32>
    %250 = tpu.matmul %247, %249, %cst_90 {dimension_numbers = #tpu.dot_dimension_numbers<[1], [0], [0], [1], [0, 0, 1, 1], [], []>} : vector<16x512xbf16>, vector<512x256xbf16>, vector<16x256xf32> -> vector<16x256xf32>
    %c0_91 = arith.constant 0 : index
    %c0_92 = arith.constant 0 : index
    %c0_93 = arith.constant 0 : index
    %251 = vector.load %arg14[%c0_91, %c0_92, %c0_93] : memref<2x1x256xf32, #tpu.memory_space<vmem>>, vector<1x1x256xf32>
    %252 = vector.shape_cast %251 : vector<1x1x256xf32> to vector<1x256xf32>
    %253 = vector.broadcast %252 : vector<1x256xf32> to vector<16x256xf32>
    %254 = arith.addf %250, %253 : vector<16x256xf32>
    %255 = arith.addf %225, %254 : vector<16x256xf32>
    %c0_94 = arith.constant 0 : index
    %c0_95 = arith.constant 0 : index
    %c0_96 = arith.constant 0 : index
    %256 = vector.load %arg15[%c0_94, %c0_95, %c0_96] : memref<2x1x256xf32, #tpu.memory_space<vmem>>, vector<1x1x256xf32>
    %257 = vector.shape_cast %256 : vector<1x1x256xf32> to vector<1x256xf32>
    %c0_97 = arith.constant 0 : index
    %c0_98 = arith.constant 0 : index
    %c0_99 = arith.constant 0 : index
    %258 = vector.load %arg16[%c0_97, %c0_98, %c0_99] : memref<2x1x256xf32, #tpu.memory_space<vmem>>, vector<1x1x256xf32>
    %259 = vector.shape_cast %258 : vector<1x1x256xf32> to vector<1x256xf32>
    %cst_100 = arith.constant dense<0.000000e+00> : vector<16xf32>
    %260 = vector.multi_reduction <add>, %255, %cst_100 [1] : vector<16x256xf32> to vector<16xf32>
    %261 = vector.shape_cast %260 : vector<16xf32> to vector<16x1xf32>
    %cst_101 = arith.constant 2.560000e+02 : f32
    %262 = vector.broadcast %cst_101 : f32 to vector<16x1xf32>
    %263 = arith.divf %261, %262 : vector<16x1xf32>
    %264 = vector.broadcast %263 : vector<16x1xf32> to vector<16x256xf32>
    %265 = arith.subf %255, %264 : vector<16x256xf32>
    %266 = arith.mulf %265, %265 : vector<16x256xf32>
    %cst_102 = arith.constant dense<0.000000e+00> : vector<16xf32>
    %267 = vector.multi_reduction <add>, %266, %cst_102 [1] : vector<16x256xf32> to vector<16xf32>
    %268 = vector.shape_cast %267 : vector<16xf32> to vector<16x1xf32>
    %cst_103 = arith.constant 2.560000e+02 : f32
    %269 = vector.broadcast %cst_103 : f32 to vector<16x1xf32>
    %270 = arith.divf %268, %269 : vector<16x1xf32>
    %271 = vector.broadcast %263 : vector<16x1xf32> to vector<16x256xf32>
    %272 = arith.subf %255, %271 : vector<16x256xf32>
    %cst_104 = arith.constant 9.99999996E-13 : f32
    %273 = vector.broadcast %cst_104 : f32 to vector<16x1xf32>
    %274 = arith.addf %270, %273 : vector<16x1xf32>
    %275 = math.rsqrt %274 : vector<16x1xf32>
    %276 = vector.broadcast %275 : vector<16x1xf32> to vector<16x256xf32>
    %277 = arith.mulf %272, %276 : vector<16x256xf32>
    %278 = vector.broadcast %257 : vector<1x256xf32> to vector<16x256xf32>
    %279 = arith.mulf %277, %278 : vector<16x256xf32>
    %280 = vector.broadcast %259 : vector<1x256xf32> to vector<16x256xf32>
    %281 = arith.addf %279, %280 : vector<16x256xf32>
    %282 = arith.truncf %281 : vector<16x256xf32> to vector<16x256xbf16>
    %c1 = arith.constant 1 : index
    %c0_105 = arith.constant 0 : index
    %c0_106 = arith.constant 0 : index
    %283 = vector.load %arg5[%c1, %c0_105, %c0_106] : memref<2x256x768xbf16, #tpu.memory_space<vmem>>, vector<1x256x768xbf16>
    %284 = vector.shape_cast %283 : vector<1x256x768xbf16> to vector<256x768xbf16>
    %cst_107 = arith.constant dense<0.000000e+00> : vector<16x768xf32>
    %285 = tpu.matmul %282, %284, %cst_107 {dimension_numbers = #tpu.dot_dimension_numbers<[1], [0], [0], [1], [0, 0, 1, 1], [], []>} : vector<16x256xbf16>, vector<256x768xbf16>, vector<16x768xf32> -> vector<16x768xf32>
    %c1_108 = arith.constant 1 : index
    %c0_109 = arith.constant 0 : index
    %c0_110 = arith.constant 0 : index
    %286 = vector.load %arg6[%c1_108, %c0_109, %c0_110] : memref<2x1x768xf32, #tpu.memory_space<vmem>>, vector<1x1x768xf32>
    %287 = vector.shape_cast %286 : vector<1x1x768xf32> to vector<1x768xf32>
    %288 = vector.broadcast %287 : vector<1x768xf32> to vector<16x768xf32>
    %289 = arith.addf %285, %288 : vector<16x768xf32>
    %290 = vector.extract_strided_slice %25 {offsets = [0, 0], sizes = [1, 8], strides = [1, 1]} : vector<2x8xf32> to vector<1x8xf32>
    %291 = vector.extract_strided_slice %289 {offsets = [0, 0], sizes = [8, 64], strides = [1, 1]} : vector<16x768xf32> to vector<8x64xf32>
    %292 = vector.extract_strided_slice %289 {offsets = [0, 256], sizes = [8, 64], strides = [1, 1]} : vector<16x768xf32> to vector<8x64xf32>
    %293 = vector.extract_strided_slice %289 {offsets = [0, 512], sizes = [8, 64], strides = [1, 1]} : vector<16x768xf32> to vector<8x64xf32>
    %cst_111 = arith.constant dense<0.000000e+00> : vector<8x8xf32>
    %294 = tpu.matmul %291, %292, %cst_111 {dimension_numbers = #tpu.dot_dimension_numbers<[1], [1], [0], [0], [0, 0, 1, 0], [], []>} : vector<8x64xf32>, vector<8x64xf32>, vector<8x8xf32> -> vector<8x8xf32>
    %cst_112 = arith.constant 1.250000e-01 : f32
    %295 = vector.broadcast %cst_112 : f32 to vector<8x8xf32>
    %296 = arith.mulf %294, %295 : vector<8x8xf32>
    %297 = vector.broadcast %290 : vector<1x8xf32> to vector<8x8xf32>
    %298 = arith.addf %296, %297 : vector<8x8xf32>
    %cst_113 = arith.constant dense<0xFF800000> : vector<8xf32>
    %299 = vector.multi_reduction <maximumf>, %298, %cst_113 [1] : vector<8x8xf32> to vector<8xf32>
    %300 = vector.shape_cast %299 : vector<8xf32> to vector<8x1xf32>
    %301 = vector.broadcast %300 : vector<8x1xf32> to vector<8x8xf32>
    %302 = arith.subf %298, %301 : vector<8x8xf32>
    %303 = math.exp %302 : vector<8x8xf32>
    %cst_114 = arith.constant dense<0.000000e+00> : vector<8xf32>
    %304 = vector.multi_reduction <add>, %303, %cst_114 [1] : vector<8x8xf32> to vector<8xf32>
    %305 = vector.shape_cast %304 : vector<8xf32> to vector<8x1xf32>
    %306 = tpu.reciprocal %305 {approx = true} : vector<8x1xf32> -> vector<8x1xf32>
    %307 = vector.broadcast %306 : vector<8x1xf32> to vector<8x8xf32>
    %308 = arith.mulf %303, %307 : vector<8x8xf32>
    %cst_115 = arith.constant dense<0.000000e+00> : vector<8x64xf32>
    %309 = tpu.matmul %308, %293, %cst_115 {dimension_numbers = #tpu.dot_dimension_numbers<[1], [0], [0], [1], [0, 0, 1, 1], [], []>} : vector<8x8xf32>, vector<8x64xf32>, vector<8x64xf32> -> vector<8x64xf32>
    %310 = vector.extract_strided_slice %289 {offsets = [0, 64], sizes = [8, 64], strides = [1, 1]} : vector<16x768xf32> to vector<8x64xf32>
    %311 = vector.extract_strided_slice %289 {offsets = [0, 320], sizes = [8, 64], strides = [1, 1]} : vector<16x768xf32> to vector<8x64xf32>
    %312 = vector.extract_strided_slice %289 {offsets = [0, 576], sizes = [8, 64], strides = [1, 1]} : vector<16x768xf32> to vector<8x64xf32>
    %cst_116 = arith.constant dense<0.000000e+00> : vector<8x8xf32>
    %313 = tpu.matmul %310, %311, %cst_116 {dimension_numbers = #tpu.dot_dimension_numbers<[1], [1], [0], [0], [0, 0, 1, 0], [], []>} : vector<8x64xf32>, vector<8x64xf32>, vector<8x8xf32> -> vector<8x8xf32>
    %cst_117 = arith.constant 1.250000e-01 : f32
    %314 = vector.broadcast %cst_117 : f32 to vector<8x8xf32>
    %315 = arith.mulf %313, %314 : vector<8x8xf32>
    %316 = vector.broadcast %290 : vector<1x8xf32> to vector<8x8xf32>
    %317 = arith.addf %315, %316 : vector<8x8xf32>
    %cst_118 = arith.constant dense<0xFF800000> : vector<8xf32>
    %318 = vector.multi_reduction <maximumf>, %317, %cst_118 [1] : vector<8x8xf32> to vector<8xf32>
    %319 = vector.shape_cast %318 : vector<8xf32> to vector<8x1xf32>
    %320 = vector.broadcast %319 : vector<8x1xf32> to vector<8x8xf32>
    %321 = arith.subf %317, %320 : vector<8x8xf32>
    %322 = math.exp %321 : vector<8x8xf32>
    %cst_119 = arith.constant dense<0.000000e+00> : vector<8xf32>
    %323 = vector.multi_reduction <add>, %322, %cst_119 [1] : vector<8x8xf32> to vector<8xf32>
    %324 = vector.shape_cast %323 : vector<8xf32> to vector<8x1xf32>
    %325 = tpu.reciprocal %324 {approx = true} : vector<8x1xf32> -> vector<8x1xf32>
    %326 = vector.broadcast %325 : vector<8x1xf32> to vector<8x8xf32>
    %327 = arith.mulf %322, %326 : vector<8x8xf32>
    %cst_120 = arith.constant dense<0.000000e+00> : vector<8x64xf32>
    %328 = tpu.matmul %327, %312, %cst_120 {dimension_numbers = #tpu.dot_dimension_numbers<[1], [0], [0], [1], [0, 0, 1, 1], [], []>} : vector<8x8xf32>, vector<8x64xf32>, vector<8x64xf32> -> vector<8x64xf32>
    %329 = vector.extract_strided_slice %289 {offsets = [0, 128], sizes = [8, 64], strides = [1, 1]} : vector<16x768xf32> to vector<8x64xf32>
    %330 = vector.extract_strided_slice %289 {offsets = [0, 384], sizes = [8, 64], strides = [1, 1]} : vector<16x768xf32> to vector<8x64xf32>
    %331 = vector.extract_strided_slice %289 {offsets = [0, 640], sizes = [8, 64], strides = [1, 1]} : vector<16x768xf32> to vector<8x64xf32>
    %cst_121 = arith.constant dense<0.000000e+00> : vector<8x8xf32>
    %332 = tpu.matmul %329, %330, %cst_121 {dimension_numbers = #tpu.dot_dimension_numbers<[1], [1], [0], [0], [0, 0, 1, 0], [], []>} : vector<8x64xf32>, vector<8x64xf32>, vector<8x8xf32> -> vector<8x8xf32>
    %cst_122 = arith.constant 1.250000e-01 : f32
    %333 = vector.broadcast %cst_122 : f32 to vector<8x8xf32>
    %334 = arith.mulf %332, %333 : vector<8x8xf32>
    %335 = vector.broadcast %290 : vector<1x8xf32> to vector<8x8xf32>
    %336 = arith.addf %334, %335 : vector<8x8xf32>
    %cst_123 = arith.constant dense<0xFF800000> : vector<8xf32>
    %337 = vector.multi_reduction <maximumf>, %336, %cst_123 [1] : vector<8x8xf32> to vector<8xf32>
    %338 = vector.shape_cast %337 : vector<8xf32> to vector<8x1xf32>
    %339 = vector.broadcast %338 : vector<8x1xf32> to vector<8x8xf32>
    %340 = arith.subf %336, %339 : vector<8x8xf32>
    %341 = math.exp %340 : vector<8x8xf32>
    %cst_124 = arith.constant dense<0.000000e+00> : vector<8xf32>
    %342 = vector.multi_reduction <add>, %341, %cst_124 [1] : vector<8x8xf32> to vector<8xf32>
    %343 = vector.shape_cast %342 : vector<8xf32> to vector<8x1xf32>
    %344 = tpu.reciprocal %343 {approx = true} : vector<8x1xf32> -> vector<8x1xf32>
    %345 = vector.broadcast %344 : vector<8x1xf32> to vector<8x8xf32>
    %346 = arith.mulf %341, %345 : vector<8x8xf32>
    %cst_125 = arith.constant dense<0.000000e+00> : vector<8x64xf32>
    %347 = tpu.matmul %346, %331, %cst_125 {dimension_numbers = #tpu.dot_dimension_numbers<[1], [0], [0], [1], [0, 0, 1, 1], [], []>} : vector<8x8xf32>, vector<8x64xf32>, vector<8x64xf32> -> vector<8x64xf32>
    %348 = vector.extract_strided_slice %289 {offsets = [0, 192], sizes = [8, 64], strides = [1, 1]} : vector<16x768xf32> to vector<8x64xf32>
    %349 = vector.extract_strided_slice %289 {offsets = [0, 448], sizes = [8, 64], strides = [1, 1]} : vector<16x768xf32> to vector<8x64xf32>
    %350 = vector.extract_strided_slice %289 {offsets = [0, 704], sizes = [8, 64], strides = [1, 1]} : vector<16x768xf32> to vector<8x64xf32>
    %cst_126 = arith.constant dense<0.000000e+00> : vector<8x8xf32>
    %351 = tpu.matmul %348, %349, %cst_126 {dimension_numbers = #tpu.dot_dimension_numbers<[1], [1], [0], [0], [0, 0, 1, 0], [], []>} : vector<8x64xf32>, vector<8x64xf32>, vector<8x8xf32> -> vector<8x8xf32>
    %cst_127 = arith.constant 1.250000e-01 : f32
    %352 = vector.broadcast %cst_127 : f32 to vector<8x8xf32>
    %353 = arith.mulf %351, %352 : vector<8x8xf32>
    %354 = vector.broadcast %290 : vector<1x8xf32> to vector<8x8xf32>
    %355 = arith.addf %353, %354 : vector<8x8xf32>
    %cst_128 = arith.constant dense<0xFF800000> : vector<8xf32>
    %356 = vector.multi_reduction <maximumf>, %355, %cst_128 [1] : vector<8x8xf32> to vector<8xf32>
    %357 = vector.shape_cast %356 : vector<8xf32> to vector<8x1xf32>
    %358 = vector.broadcast %357 : vector<8x1xf32> to vector<8x8xf32>
    %359 = arith.subf %355, %358 : vector<8x8xf32>
    %360 = math.exp %359 : vector<8x8xf32>
    %cst_129 = arith.constant dense<0.000000e+00> : vector<8xf32>
    %361 = vector.multi_reduction <add>, %360, %cst_129 [1] : vector<8x8xf32> to vector<8xf32>
    %362 = vector.shape_cast %361 : vector<8xf32> to vector<8x1xf32>
    %363 = tpu.reciprocal %362 {approx = true} : vector<8x1xf32> -> vector<8x1xf32>
    %364 = vector.broadcast %363 : vector<8x1xf32> to vector<8x8xf32>
    %365 = arith.mulf %360, %364 : vector<8x8xf32>
    %cst_130 = arith.constant dense<0.000000e+00> : vector<8x64xf32>
    %366 = tpu.matmul %365, %350, %cst_130 {dimension_numbers = #tpu.dot_dimension_numbers<[1], [0], [0], [1], [0, 0, 1, 1], [], []>} : vector<8x8xf32>, vector<8x64xf32>, vector<8x64xf32> -> vector<8x64xf32>
    %367 = tpu.concatenate %309, %328, %347, %366 in 1 : vector<8x64xf32>, vector<8x64xf32>, vector<8x64xf32>, vector<8x64xf32> -> vector<8x256xf32>
    %368 = vector.extract_strided_slice %25 {offsets = [1, 0], sizes = [1, 8], strides = [1, 1]} : vector<2x8xf32> to vector<1x8xf32>
    %369 = vector.extract_strided_slice %289 {offsets = [8, 0], sizes = [8, 64], strides = [1, 1]} : vector<16x768xf32> to vector<8x64xf32>
    %370 = vector.extract_strided_slice %289 {offsets = [8, 256], sizes = [8, 64], strides = [1, 1]} : vector<16x768xf32> to vector<8x64xf32>
    %371 = vector.extract_strided_slice %289 {offsets = [8, 512], sizes = [8, 64], strides = [1, 1]} : vector<16x768xf32> to vector<8x64xf32>
    %cst_131 = arith.constant dense<0.000000e+00> : vector<8x8xf32>
    %372 = tpu.matmul %369, %370, %cst_131 {dimension_numbers = #tpu.dot_dimension_numbers<[1], [1], [0], [0], [0, 0, 1, 0], [], []>} : vector<8x64xf32>, vector<8x64xf32>, vector<8x8xf32> -> vector<8x8xf32>
    %cst_132 = arith.constant 1.250000e-01 : f32
    %373 = vector.broadcast %cst_132 : f32 to vector<8x8xf32>
    %374 = arith.mulf %372, %373 : vector<8x8xf32>
    %375 = vector.broadcast %368 : vector<1x8xf32> to vector<8x8xf32>
    %376 = arith.addf %374, %375 : vector<8x8xf32>
    %cst_133 = arith.constant dense<0xFF800000> : vector<8xf32>
    %377 = vector.multi_reduction <maximumf>, %376, %cst_133 [1] : vector<8x8xf32> to vector<8xf32>
    %378 = vector.shape_cast %377 : vector<8xf32> to vector<8x1xf32>
    %379 = vector.broadcast %378 : vector<8x1xf32> to vector<8x8xf32>
    %380 = arith.subf %376, %379 : vector<8x8xf32>
    %381 = math.exp %380 : vector<8x8xf32>
    %cst_134 = arith.constant dense<0.000000e+00> : vector<8xf32>
    %382 = vector.multi_reduction <add>, %381, %cst_134 [1] : vector<8x8xf32> to vector<8xf32>
    %383 = vector.shape_cast %382 : vector<8xf32> to vector<8x1xf32>
    %384 = tpu.reciprocal %383 {approx = true} : vector<8x1xf32> -> vector<8x1xf32>
    %385 = vector.broadcast %384 : vector<8x1xf32> to vector<8x8xf32>
    %386 = arith.mulf %381, %385 : vector<8x8xf32>
    %cst_135 = arith.constant dense<0.000000e+00> : vector<8x64xf32>
    %387 = tpu.matmul %386, %371, %cst_135 {dimension_numbers = #tpu.dot_dimension_numbers<[1], [0], [0], [1], [0, 0, 1, 1], [], []>} : vector<8x8xf32>, vector<8x64xf32>, vector<8x64xf32> -> vector<8x64xf32>
    %388 = vector.extract_strided_slice %289 {offsets = [8, 64], sizes = [8, 64], strides = [1, 1]} : vector<16x768xf32> to vector<8x64xf32>
    %389 = vector.extract_strided_slice %289 {offsets = [8, 320], sizes = [8, 64], strides = [1, 1]} : vector<16x768xf32> to vector<8x64xf32>
    %390 = vector.extract_strided_slice %289 {offsets = [8, 576], sizes = [8, 64], strides = [1, 1]} : vector<16x768xf32> to vector<8x64xf32>
    %cst_136 = arith.constant dense<0.000000e+00> : vector<8x8xf32>
    %391 = tpu.matmul %388, %389, %cst_136 {dimension_numbers = #tpu.dot_dimension_numbers<[1], [1], [0], [0], [0, 0, 1, 0], [], []>} : vector<8x64xf32>, vector<8x64xf32>, vector<8x8xf32> -> vector<8x8xf32>
    %cst_137 = arith.constant 1.250000e-01 : f32
    %392 = vector.broadcast %cst_137 : f32 to vector<8x8xf32>
    %393 = arith.mulf %391, %392 : vector<8x8xf32>
    %394 = vector.broadcast %368 : vector<1x8xf32> to vector<8x8xf32>
    %395 = arith.addf %393, %394 : vector<8x8xf32>
    %cst_138 = arith.constant dense<0xFF800000> : vector<8xf32>
    %396 = vector.multi_reduction <maximumf>, %395, %cst_138 [1] : vector<8x8xf32> to vector<8xf32>
    %397 = vector.shape_cast %396 : vector<8xf32> to vector<8x1xf32>
    %398 = vector.broadcast %397 : vector<8x1xf32> to vector<8x8xf32>
    %399 = arith.subf %395, %398 : vector<8x8xf32>
    %400 = math.exp %399 : vector<8x8xf32>
    %cst_139 = arith.constant dense<0.000000e+00> : vector<8xf32>
    %401 = vector.multi_reduction <add>, %400, %cst_139 [1] : vector<8x8xf32> to vector<8xf32>
    %402 = vector.shape_cast %401 : vector<8xf32> to vector<8x1xf32>
    %403 = tpu.reciprocal %402 {approx = true} : vector<8x1xf32> -> vector<8x1xf32>
    %404 = vector.broadcast %403 : vector<8x1xf32> to vector<8x8xf32>
    %405 = arith.mulf %400, %404 : vector<8x8xf32>
    %cst_140 = arith.constant dense<0.000000e+00> : vector<8x64xf32>
    %406 = tpu.matmul %405, %390, %cst_140 {dimension_numbers = #tpu.dot_dimension_numbers<[1], [0], [0], [1], [0, 0, 1, 1], [], []>} : vector<8x8xf32>, vector<8x64xf32>, vector<8x64xf32> -> vector<8x64xf32>
    %407 = vector.extract_strided_slice %289 {offsets = [8, 128], sizes = [8, 64], strides = [1, 1]} : vector<16x768xf32> to vector<8x64xf32>
    %408 = vector.extract_strided_slice %289 {offsets = [8, 384], sizes = [8, 64], strides = [1, 1]} : vector<16x768xf32> to vector<8x64xf32>
    %409 = vector.extract_strided_slice %289 {offsets = [8, 640], sizes = [8, 64], strides = [1, 1]} : vector<16x768xf32> to vector<8x64xf32>
    %cst_141 = arith.constant dense<0.000000e+00> : vector<8x8xf32>
    %410 = tpu.matmul %407, %408, %cst_141 {dimension_numbers = #tpu.dot_dimension_numbers<[1], [1], [0], [0], [0, 0, 1, 0], [], []>} : vector<8x64xf32>, vector<8x64xf32>, vector<8x8xf32> -> vector<8x8xf32>
    %cst_142 = arith.constant 1.250000e-01 : f32
    %411 = vector.broadcast %cst_142 : f32 to vector<8x8xf32>
    %412 = arith.mulf %410, %411 : vector<8x8xf32>
    %413 = vector.broadcast %368 : vector<1x8xf32> to vector<8x8xf32>
    %414 = arith.addf %412, %413 : vector<8x8xf32>
    %cst_143 = arith.constant dense<0xFF800000> : vector<8xf32>
    %415 = vector.multi_reduction <maximumf>, %414, %cst_143 [1] : vector<8x8xf32> to vector<8xf32>
    %416 = vector.shape_cast %415 : vector<8xf32> to vector<8x1xf32>
    %417 = vector.broadcast %416 : vector<8x1xf32> to vector<8x8xf32>
    %418 = arith.subf %414, %417 : vector<8x8xf32>
    %419 = math.exp %418 : vector<8x8xf32>
    %cst_144 = arith.constant dense<0.000000e+00> : vector<8xf32>
    %420 = vector.multi_reduction <add>, %419, %cst_144 [1] : vector<8x8xf32> to vector<8xf32>
    %421 = vector.shape_cast %420 : vector<8xf32> to vector<8x1xf32>
    %422 = tpu.reciprocal %421 {approx = true} : vector<8x1xf32> -> vector<8x1xf32>
    %423 = vector.broadcast %422 : vector<8x1xf32> to vector<8x8xf32>
    %424 = arith.mulf %419, %423 : vector<8x8xf32>
    %cst_145 = arith.constant dense<0.000000e+00> : vector<8x64xf32>
    %425 = tpu.matmul %424, %409, %cst_145 {dimension_numbers = #tpu.dot_dimension_numbers<[1], [0], [0], [1], [0, 0, 1, 1], [], []>} : vector<8x8xf32>, vector<8x64xf32>, vector<8x64xf32> -> vector<8x64xf32>
    %426 = vector.extract_strided_slice %289 {offsets = [8, 192], sizes = [8, 64], strides = [1, 1]} : vector<16x768xf32> to vector<8x64xf32>
    %427 = vector.extract_strided_slice %289 {offsets = [8, 448], sizes = [8, 64], strides = [1, 1]} : vector<16x768xf32> to vector<8x64xf32>
    %428 = vector.extract_strided_slice %289 {offsets = [8, 704], sizes = [8, 64], strides = [1, 1]} : vector<16x768xf32> to vector<8x64xf32>
    %cst_146 = arith.constant dense<0.000000e+00> : vector<8x8xf32>
    %429 = tpu.matmul %426, %427, %cst_146 {dimension_numbers = #tpu.dot_dimension_numbers<[1], [1], [0], [0], [0, 0, 1, 0], [], []>} : vector<8x64xf32>, vector<8x64xf32>, vector<8x8xf32> -> vector<8x8xf32>
    %cst_147 = arith.constant 1.250000e-01 : f32
    %430 = vector.broadcast %cst_147 : f32 to vector<8x8xf32>
    %431 = arith.mulf %429, %430 : vector<8x8xf32>
    %432 = vector.broadcast %368 : vector<1x8xf32> to vector<8x8xf32>
    %433 = arith.addf %431, %432 : vector<8x8xf32>
    %cst_148 = arith.constant dense<0xFF800000> : vector<8xf32>
    %434 = vector.multi_reduction <maximumf>, %433, %cst_148 [1] : vector<8x8xf32> to vector<8xf32>
    %435 = vector.shape_cast %434 : vector<8xf32> to vector<8x1xf32>
    %436 = vector.broadcast %435 : vector<8x1xf32> to vector<8x8xf32>
    %437 = arith.subf %433, %436 : vector<8x8xf32>
    %438 = math.exp %437 : vector<8x8xf32>
    %cst_149 = arith.constant dense<0.000000e+00> : vector<8xf32>
    %439 = vector.multi_reduction <add>, %438, %cst_149 [1] : vector<8x8xf32> to vector<8xf32>
    %440 = vector.shape_cast %439 : vector<8xf32> to vector<8x1xf32>
    %441 = tpu.reciprocal %440 {approx = true} : vector<8x1xf32> -> vector<8x1xf32>
    %442 = vector.broadcast %441 : vector<8x1xf32> to vector<8x8xf32>
    %443 = arith.mulf %438, %442 : vector<8x8xf32>
    %cst_150 = arith.constant dense<0.000000e+00> : vector<8x64xf32>
    %444 = tpu.matmul %443, %428, %cst_150 {dimension_numbers = #tpu.dot_dimension_numbers<[1], [0], [0], [1], [0, 0, 1, 1], [], []>} : vector<8x8xf32>, vector<8x64xf32>, vector<8x64xf32> -> vector<8x64xf32>
    %445 = tpu.concatenate %387, %406, %425, %444 in 1 : vector<8x64xf32>, vector<8x64xf32>, vector<8x64xf32>, vector<8x64xf32> -> vector<8x256xf32>
    %446 = tpu.concatenate %367, %445 in 0 : vector<8x256xf32>, vector<8x256xf32> -> vector<16x256xf32>
    %447 = arith.truncf %446 : vector<16x256xf32> to vector<16x256xbf16>
    %c1_151 = arith.constant 1 : index
    %c0_152 = arith.constant 0 : index
    %c0_153 = arith.constant 0 : index
    %448 = vector.load %arg7[%c1_151, %c0_152, %c0_153] : memref<2x256x256xbf16, #tpu.memory_space<vmem>>, vector<1x256x256xbf16>
    %449 = vector.shape_cast %448 : vector<1x256x256xbf16> to vector<256x256xbf16>
    %cst_154 = arith.constant dense<0.000000e+00> : vector<16x256xf32>
    %450 = tpu.matmul %447, %449, %cst_154 {dimension_numbers = #tpu.dot_dimension_numbers<[1], [0], [0], [1], [0, 0, 1, 1], [], []>} : vector<16x256xbf16>, vector<256x256xbf16>, vector<16x256xf32> -> vector<16x256xf32>
    %c1_155 = arith.constant 1 : index
    %c0_156 = arith.constant 0 : index
    %c0_157 = arith.constant 0 : index
    %451 = vector.load %arg8[%c1_155, %c0_156, %c0_157] : memref<2x1x256xf32, #tpu.memory_space<vmem>>, vector<1x1x256xf32>
    %452 = vector.shape_cast %451 : vector<1x1x256xf32> to vector<1x256xf32>
    %453 = vector.broadcast %452 : vector<1x256xf32> to vector<16x256xf32>
    %454 = arith.addf %450, %453 : vector<16x256xf32>
    %455 = arith.addf %281, %454 : vector<16x256xf32>
    %c1_158 = arith.constant 1 : index
    %c0_159 = arith.constant 0 : index
    %c0_160 = arith.constant 0 : index
    %456 = vector.load %arg9[%c1_158, %c0_159, %c0_160] : memref<2x1x256xf32, #tpu.memory_space<vmem>>, vector<1x1x256xf32>
    %457 = vector.shape_cast %456 : vector<1x1x256xf32> to vector<1x256xf32>
    %c1_161 = arith.constant 1 : index
    %c0_162 = arith.constant 0 : index
    %c0_163 = arith.constant 0 : index
    %458 = vector.load %arg10[%c1_161, %c0_162, %c0_163] : memref<2x1x256xf32, #tpu.memory_space<vmem>>, vector<1x1x256xf32>
    %459 = vector.shape_cast %458 : vector<1x1x256xf32> to vector<1x256xf32>
    %cst_164 = arith.constant dense<0.000000e+00> : vector<16xf32>
    %460 = vector.multi_reduction <add>, %455, %cst_164 [1] : vector<16x256xf32> to vector<16xf32>
    %461 = vector.shape_cast %460 : vector<16xf32> to vector<16x1xf32>
    %cst_165 = arith.constant 2.560000e+02 : f32
    %462 = vector.broadcast %cst_165 : f32 to vector<16x1xf32>
    %463 = arith.divf %461, %462 : vector<16x1xf32>
    %464 = vector.broadcast %463 : vector<16x1xf32> to vector<16x256xf32>
    %465 = arith.subf %455, %464 : vector<16x256xf32>
    %466 = arith.mulf %465, %465 : vector<16x256xf32>
    %cst_166 = arith.constant dense<0.000000e+00> : vector<16xf32>
    %467 = vector.multi_reduction <add>, %466, %cst_166 [1] : vector<16x256xf32> to vector<16xf32>
    %468 = vector.shape_cast %467 : vector<16xf32> to vector<16x1xf32>
    %cst_167 = arith.constant 2.560000e+02 : f32
    %469 = vector.broadcast %cst_167 : f32 to vector<16x1xf32>
    %470 = arith.divf %468, %469 : vector<16x1xf32>
    %471 = vector.broadcast %463 : vector<16x1xf32> to vector<16x256xf32>
    %472 = arith.subf %455, %471 : vector<16x256xf32>
    %cst_168 = arith.constant 9.99999996E-13 : f32
    %473 = vector.broadcast %cst_168 : f32 to vector<16x1xf32>
    %474 = arith.addf %470, %473 : vector<16x1xf32>
    %475 = math.rsqrt %474 : vector<16x1xf32>
    %476 = vector.broadcast %475 : vector<16x1xf32> to vector<16x256xf32>
    %477 = arith.mulf %472, %476 : vector<16x256xf32>
    %478 = vector.broadcast %457 : vector<1x256xf32> to vector<16x256xf32>
    %479 = arith.mulf %477, %478 : vector<16x256xf32>
    %480 = vector.broadcast %459 : vector<1x256xf32> to vector<16x256xf32>
    %481 = arith.addf %479, %480 : vector<16x256xf32>
    %482 = arith.truncf %481 : vector<16x256xf32> to vector<16x256xbf16>
    %c1_169 = arith.constant 1 : index
    %c0_170 = arith.constant 0 : index
    %c0_171 = arith.constant 0 : index
    %483 = vector.load %arg11[%c1_169, %c0_170, %c0_171] : memref<2x256x512xbf16, #tpu.memory_space<vmem>>, vector<1x256x512xbf16>
    %484 = vector.shape_cast %483 : vector<1x256x512xbf16> to vector<256x512xbf16>
    %cst_172 = arith.constant dense<0.000000e+00> : vector<16x512xf32>
    %485 = tpu.matmul %482, %484, %cst_172 {dimension_numbers = #tpu.dot_dimension_numbers<[1], [0], [0], [1], [0, 0, 1, 1], [], []>} : vector<16x256xbf16>, vector<256x512xbf16>, vector<16x512xf32> -> vector<16x512xf32>
    %c1_173 = arith.constant 1 : index
    %c0_174 = arith.constant 0 : index
    %c0_175 = arith.constant 0 : index
    %486 = vector.load %arg12[%c1_173, %c0_174, %c0_175] : memref<2x1x512xf32, #tpu.memory_space<vmem>>, vector<1x1x512xf32>
    %487 = vector.shape_cast %486 : vector<1x1x512xf32> to vector<1x512xf32>
    %488 = vector.broadcast %487 : vector<1x512xf32> to vector<16x512xf32>
    %489 = arith.addf %485, %488 : vector<16x512xf32>
    %490 = arith.mulf %489, %489 : vector<16x512xf32>
    %491 = arith.mulf %489, %490 : vector<16x512xf32>
    %cst_176 = arith.constant 4.471500e-02 : f32
    %492 = vector.broadcast %cst_176 : f32 to vector<16x512xf32>
    %493 = arith.mulf %492, %491 : vector<16x512xf32>
    %494 = arith.addf %489, %493 : vector<16x512xf32>
    %cst_177 = arith.constant 0.797884583 : f32
    %495 = vector.broadcast %cst_177 : f32 to vector<16x512xf32>
    %496 = arith.mulf %495, %494 : vector<16x512xf32>
    %497 = math.tanh %496 : vector<16x512xf32>
    %cst_178 = arith.constant 1.000000e+00 : f32
    %498 = vector.broadcast %cst_178 : f32 to vector<16x512xf32>
    %499 = arith.addf %498, %497 : vector<16x512xf32>
    %cst_179 = arith.constant 5.000000e-01 : f32
    %500 = vector.broadcast %cst_179 : f32 to vector<16x512xf32>
    %501 = arith.mulf %500, %499 : vector<16x512xf32>
    %502 = arith.mulf %489, %501 : vector<16x512xf32>
    %503 = arith.truncf %502 : vector<16x512xf32> to vector<16x512xbf16>
    %c1_180 = arith.constant 1 : index
    %c0_181 = arith.constant 0 : index
    %c0_182 = arith.constant 0 : index
    %504 = vector.load %arg13[%c1_180, %c0_181, %c0_182] : memref<2x512x256xbf16, #tpu.memory_space<vmem>>, vector<1x512x256xbf16>
    %505 = vector.shape_cast %504 : vector<1x512x256xbf16> to vector<512x256xbf16>
    %cst_183 = arith.constant dense<0.000000e+00> : vector<16x256xf32>
    %506 = tpu.matmul %503, %505, %cst_183 {dimension_numbers = #tpu.dot_dimension_numbers<[1], [0], [0], [1], [0, 0, 1, 1], [], []>} : vector<16x512xbf16>, vector<512x256xbf16>, vector<16x256xf32> -> vector<16x256xf32>
    %c1_184 = arith.constant 1 : index
    %c0_185 = arith.constant 0 : index
    %c0_186 = arith.constant 0 : index
    %507 = vector.load %arg14[%c1_184, %c0_185, %c0_186] : memref<2x1x256xf32, #tpu.memory_space<vmem>>, vector<1x1x256xf32>
    %508 = vector.shape_cast %507 : vector<1x1x256xf32> to vector<1x256xf32>
    %509 = vector.broadcast %508 : vector<1x256xf32> to vector<16x256xf32>
    %510 = arith.addf %506, %509 : vector<16x256xf32>
    %511 = arith.addf %481, %510 : vector<16x256xf32>
    %c1_187 = arith.constant 1 : index
    %c0_188 = arith.constant 0 : index
    %c0_189 = arith.constant 0 : index
    %512 = vector.load %arg15[%c1_187, %c0_188, %c0_189] : memref<2x1x256xf32, #tpu.memory_space<vmem>>, vector<1x1x256xf32>
    %513 = vector.shape_cast %512 : vector<1x1x256xf32> to vector<1x256xf32>
    %c1_190 = arith.constant 1 : index
    %c0_191 = arith.constant 0 : index
    %c0_192 = arith.constant 0 : index
    %514 = vector.load %arg16[%c1_190, %c0_191, %c0_192] : memref<2x1x256xf32, #tpu.memory_space<vmem>>, vector<1x1x256xf32>
    %515 = vector.shape_cast %514 : vector<1x1x256xf32> to vector<1x256xf32>
    %cst_193 = arith.constant dense<0.000000e+00> : vector<16xf32>
    %516 = vector.multi_reduction <add>, %511, %cst_193 [1] : vector<16x256xf32> to vector<16xf32>
    %517 = vector.shape_cast %516 : vector<16xf32> to vector<16x1xf32>
    %cst_194 = arith.constant 2.560000e+02 : f32
    %518 = vector.broadcast %cst_194 : f32 to vector<16x1xf32>
    %519 = arith.divf %517, %518 : vector<16x1xf32>
    %520 = vector.broadcast %519 : vector<16x1xf32> to vector<16x256xf32>
    %521 = arith.subf %511, %520 : vector<16x256xf32>
    %522 = arith.mulf %521, %521 : vector<16x256xf32>
    %cst_195 = arith.constant dense<0.000000e+00> : vector<16xf32>
    %523 = vector.multi_reduction <add>, %522, %cst_195 [1] : vector<16x256xf32> to vector<16xf32>
    %524 = vector.shape_cast %523 : vector<16xf32> to vector<16x1xf32>
    %cst_196 = arith.constant 2.560000e+02 : f32
    %525 = vector.broadcast %cst_196 : f32 to vector<16x1xf32>
    %526 = arith.divf %524, %525 : vector<16x1xf32>
    %527 = vector.broadcast %519 : vector<16x1xf32> to vector<16x256xf32>
    %528 = arith.subf %511, %527 : vector<16x256xf32>
    %cst_197 = arith.constant 9.99999996E-13 : f32
    %529 = vector.broadcast %cst_197 : f32 to vector<16x1xf32>
    %530 = arith.addf %526, %529 : vector<16x1xf32>
    %531 = math.rsqrt %530 : vector<16x1xf32>
    %532 = vector.broadcast %531 : vector<16x1xf32> to vector<16x256xf32>
    %533 = arith.mulf %528, %532 : vector<16x256xf32>
    %534 = vector.broadcast %513 : vector<1x256xf32> to vector<16x256xf32>
    %535 = arith.mulf %533, %534 : vector<16x256xf32>
    %536 = vector.broadcast %515 : vector<1x256xf32> to vector<16x256xf32>
    %537 = arith.addf %535, %536 : vector<16x256xf32>
    %538 = vector.extract_strided_slice %537 {offsets = [0, 0], sizes = [1, 256], strides = [1, 1]} : vector<16x256xf32> to vector<1x256xf32>
    %539 = vector.extract_strided_slice %537 {offsets = [8, 0], sizes = [1, 256], strides = [1, 1]} : vector<16x256xf32> to vector<1x256xf32>
    %540 = tpu.concatenate %538, %539 in 0 : vector<1x256xf32>, vector<1x256xf32> -> vector<2x256xf32>
    %c0_198 = arith.constant 0 : index
    %c0_199 = arith.constant 0 : index
    %541 = vector.load %arg17[%c0_198, %c0_199] : memref<256x128xf32, #tpu.memory_space<vmem>>, vector<256x128xf32>
    %cst_200 = arith.constant dense<0.000000e+00> : vector<2x128xf32>
    %542 = tpu.matmul %540, %541, %cst_200 {dimension_numbers = #tpu.dot_dimension_numbers<[1], [0], [0], [1], [0, 0, 1, 1], [], []>} : vector<2x256xf32>, vector<256x128xf32>, vector<2x128xf32> -> vector<2x128xf32>
    %c0_201 = arith.constant 0 : index
    %c0_202 = arith.constant 0 : index
    %543 = vector.load %arg18[%c0_201, %c0_202] : memref<1x128xf32, #tpu.memory_space<vmem>>, vector<1x128xf32>
    %544 = vector.broadcast %543 : vector<1x128xf32> to vector<2x128xf32>
    %545 = arith.addf %542, %544 : vector<2x128xf32>
    %cst_203 = arith.constant 0.000000e+00 : f32
    %546 = vector.broadcast %cst_203 : f32 to vector<2x128xf32>
    %547 = arith.maximumf %545, %546 : vector<2x128xf32>
    %c0_204 = arith.constant 0 : index
    %c0_205 = arith.constant 0 : index
    %548 = vector.load %arg19[%c0_204, %c0_205] : memref<128x64xf32, #tpu.memory_space<vmem>>, vector<128x64xf32>
    %cst_206 = arith.constant dense<0.000000e+00> : vector<2x64xf32>
    %549 = tpu.matmul %547, %548, %cst_206 {dimension_numbers = #tpu.dot_dimension_numbers<[1], [0], [0], [1], [0, 0, 1, 1], [], []>} : vector<2x128xf32>, vector<128x64xf32>, vector<2x64xf32> -> vector<2x64xf32>
    %c0_207 = arith.constant 0 : index
    %c0_208 = arith.constant 0 : index
    %550 = vector.load %arg2[%c0_207, %c0_208] : memref<2x8xf32, #tpu.memory_space<vmem>>, vector<2x8xf32>
    %c0_209 = arith.constant 0 : index
    %c0_210 = arith.constant 0 : index
    %551 = vector.load %arg20[%c0_209, %c0_210] : memref<8x64xf32, #tpu.memory_space<vmem>>, vector<8x64xf32>
    %cst_211 = arith.constant dense<0.000000e+00> : vector<2x64xf32>
    %552 = tpu.matmul %550, %551, %cst_211 {dimension_numbers = #tpu.dot_dimension_numbers<[1], [0], [0], [1], [0, 0, 1, 1], [], []>} : vector<2x8xf32>, vector<8x64xf32>, vector<2x64xf32> -> vector<2x64xf32>
    %553 = arith.addf %549, %552 : vector<2x64xf32>
    %c0_212 = arith.constant 0 : index
    %c0_213 = arith.constant 0 : index
    %554 = vector.load %arg21[%c0_212, %c0_213] : memref<1x64xf32, #tpu.memory_space<vmem>>, vector<1x64xf32>
    %555 = vector.broadcast %554 : vector<1x64xf32> to vector<2x64xf32>
    %556 = arith.addf %553, %555 : vector<2x64xf32>
    %cst_214 = arith.constant 0.000000e+00 : f32
    %557 = vector.broadcast %cst_214 : f32 to vector<2x64xf32>
    %558 = arith.maximumf %556, %557 : vector<2x64xf32>
    %c0_215 = arith.constant 0 : index
    %c0_216 = arith.constant 0 : index
    %559 = vector.load %arg22[%c0_215, %c0_216] : memref<64x128xf32, #tpu.memory_space<vmem>>, vector<64x128xf32>
    %cst_217 = arith.constant dense<0.000000e+00> : vector<2x128xf32>
    %560 = tpu.matmul %558, %559, %cst_217 {dimension_numbers = #tpu.dot_dimension_numbers<[1], [0], [0], [1], [0, 0, 1, 1], [], []>} : vector<2x64xf32>, vector<64x128xf32>, vector<2x128xf32> -> vector<2x128xf32>
    %c0_218 = arith.constant 0 : index
    %c0_219 = arith.constant 0 : index
    %561 = vector.load %arg23[%c0_218, %c0_219] : memref<1x128xf32, #tpu.memory_space<vmem>>, vector<1x128xf32>
    %562 = vector.broadcast %561 : vector<1x128xf32> to vector<2x128xf32>
    %563 = arith.addf %560, %562 : vector<2x128xf32>
    %c0_220 = arith.constant 0 : index
    %c0_221 = arith.constant 0 : index
    %564 = vector.load %arg24[%c0_220, %c0_221] : memref<2x128xf32, #tpu.memory_space<vmem>>, vector<2x128xf32>
    tpu.vector_store %arg24[%c0_220, %c0_221], %563 {strides = array<i32>} : memref<2x128xf32, #tpu.memory_space<vmem>>, vector<2x128xf32>,
    return
  }
}

</mosaic_0001>

<bundles_post_ra>
// kernel: bert_duration_regressor_forward.1
= control target key start
LH: loop header
LB: loop body
LE: loop exit
PB: predicated region body
PF: predicated region fallthrough
CT: control target
= control target key end

     0   :  { %s9934_s0 = inlined_call_operand.vmem [shape: f32[16,256], index: 0, kind: input, shape index: {}]   ;;  %s9935_s1 = inlined_call_operand.vmem [shape: f32[2,8], index: 1, kind: input, shape index: {}]   ;;  %s9936_s2 = inlined_call_operand.vmem [shape: f32[2,8], index: 2, kind: input, shape index: {}]   ;;  %s9937_s3 = inlined_call_operand.vmem [shape: f32[1,256], index: 3, kind: input, shape index: {}]   ;;  %s9938_s4 = inlined_call_operand.vmem [shape: f32[1,256], index: 4, kind: input, shape index: {}]   ;;  %s9939_s5 = inlined_call_operand.hbm [shape: bf16[2,256,768], index: 5, kind: input, shape index: {}]   ;;  %s9940_s6 = inlined_call_operand.vmem [shape: f32[2,1,768], index: 6, kind: input, shape index: {}]   ;;  %s9941_s7 = inlined_call_operand.hbm [shape: bf16[2,256,256], index: 7, kind: input, shape index: {}]   ;;  %s9942_s8 = inlined_call_operand.vmem [shape: f32[2,1,256], index: 8, kind: input, shape index: {}]   ;;  %s9943_s9 = inlined_call_operand.vmem [shape: f32[2,1,256], index: 9, kind: input, shape index: {}]   ;;  %s9944_s10 = inlined_call_operand.vmem [shape: f32[2,1,256], index: 10, kind: input, shape index: {}]   ;;  %s9945_s11 = inlined_call_operand.hbm [shape: bf16[2,256,512], index: 11, kind: input, shape index: {}]   ;;  %s9946_s12 = inlined_call_operand.vmem [shape: f32[2,1,512], index: 12, kind: input, shape index: {}]   ;;  %s9947_s13 = inlined_call_operand.hbm [shape: bf16[2,512,256], index: 13, kind: input, shape index: {}]   ;;  %s9948_s14 = inlined_call_operand.vmem [shape: f32[2,1,256], index: 14, kind: input, shape index: {}]   ;;  %s9949_s15 = inlined_call_operand.vmem [shape: f32[2,1,256], index: 15, kind: input, shape index: {}]   ;;  %s9950_s16 = inlined_call_operand.vmem [shape: f32[2,1,256], index: 16, kind: input, shape index: {}]   ;;  %s9951_s17 = inlined_call_operand.vmem [shape: f32[256,128], index: 17, kind: input, shape index: {}]   ;;  %s9952_s18 = inlined_call_operand.vmem [shape: f32[1,128], index: 18, kind: input, shape index: {}]   ;;  %s9953_s19 = inlined_call_operand.vmem [shape: f32[128,64], index: 19, kind: input, shape index: {}]   ;;  %s9954_s20 = inlined_call_operand.vmem [shape: f32[8,64], index: 20, kind: input, shape index: {}]   ;;  %s9955_s21 = inlined_call_operand.vmem [shape: f32[1,64], index: 21, kind: input, shape index: {}]   ;;  %s9956_s22 = inlined_call_operand.vmem [shape: f32[64,128], index: 22, kind: input, shape index: {}]   ;;  %s9957_s23 = inlined_call_operand.vmem [shape: f32[1,128], index: 23, kind: input, shape index: {}]   ;;  %s9958_s24 = inlined_call_operand.vmem [shape: f32[2,128], index: 24, kind: output, shape index: {}]  }
   0x1   :  { %9962 = sst [smem:[#allocation12_spill]] %s9934_s0 }
   0x2   :  { %9963 = sst [smem:[#allocation13_spill]] %s9935_s1 }
   0x3   :  { %9964 = sst [smem:[#allocation14_spill]] %s9936_s2 }
   0x4   :  { %9965 = sst [smem:[#allocation15_spill]] %s9937_s3 }
   0x5   :  { %9966 = sst [smem:[#allocation16_spill]] %s9938_s4 }
   0x6   :  { %9967 = sst [smem:[#allocation17_spill]] %s9939_s5 }
   0x7   :  { %9968 = sst [smem:[#allocation18_spill]] %s9940_s6 }
   0x8   :  { %9969 = sst [smem:[#allocation19_spill]] %s9941_s7 }
   0x9   :  { %9970 = sst [smem:[#allocation20_spill]] %s9942_s8 }
   0xa   :  { %9971 = sst [smem:[#allocation21_spill]] %s9955_s21 }
   0xb   :  { %9972 = sst [smem:[#allocation22_spill]] %s9957_s23 }
   0xc   :  { %9973 = sst [smem:[#allocation23_spill]] %s9958_s24 }
   0xd   :  { %29 = vsyncpa [#allocation3], 0 }
   0xe   :  { %30 = vsyncpa [#allocation5], 0  ;;  %s9974_s27 = sld [smem:[#allocation19_spill]] }
  0x14   :  { %s61_s28 = sshll.u32 %s9974_s27, 4  ;;  %s62_s28 = int_to_ptr.hbm [resolvable:$true] %s61_s28 }
  0x15   :  { %31 = vsyncpa [#allocation8], 0  ;;  %s8897_s6 = smov [#allocation4]   ;;  %s9975_s7 = sld [smem:[#allocation17_spill]] }
  0x16   :  { %s63_s2 = sshll.u32 %s8897_s6, 4  ;;  %s8898_s3 = smov 128   ;;  %s64_s2 = int_to_ptr.vmem [resolvable:$true] %s63_s2 }
  0x17   :  { %s8899_s25 = smov 8   ;;  %s8900_s8 = smov [#allocation2]  }
  0x18   :  { %69 = dma.hbm_to_vmem [thread:$0]  %s62_s28, 8192, %s64_s2, [#allocation5], %s8898_s3, %s8898_s3, %s8899_s25  }
  0x19   :  { %s48_s4 = sshll.u32 %s8900_s8, 4  ;;  %s8901_s1 = smov 384   ;;  %s49_s4 = int_to_ptr.vmem [resolvable:$true] %s48_s4 }
  0x1a   :  { %s8902_s24 = smov 24   ;;  %s80_s27 = sshll.u32 %s9945_s11, 4  ;;  %s81_s27 = int_to_ptr.hbm [resolvable:$true] %s80_s27 }
  0x1b   :  { %s46_s30 = sshll.u32 %s9975_s7, 4  ;;  %s8903_s6 = smov [#allocation6]   ;;  %s47_s30 = int_to_ptr.hbm [resolvable:$true] %s46_s30 }
  0x1c   :  { %54 = dma.hbm_to_vmem [thread:$0]  %s47_s30, 24576, %s49_s4, [#allocation3], %s8901_s1, %s8901_s1, %s8902_s24  }
  0x1d   :  { %s82_s23 = sshll.u32 %s8903_s6, 4  ;;  %s95_s7 = sshll.u32 %s9947_s13, 4  ;;  %s83_s23 = int_to_ptr.vmem [resolvable:$true] %s82_s23  ;;  %s96_s7 = int_to_ptr.hbm [resolvable:$true] %s95_s7 }
  0x1e   :  { %s8904_s28 = smov 256   ;;  %s8905_s2 = smov 16  }
  0x1f   :  { %88 = dma.hbm_to_vmem [thread:$0]  %s81_s27, 16384, %s83_s23, [#allocation5], %s8904_s28, %s8904_s28, %s8905_s2  }
  0x20   :  { %s8906_s8 = smov [#allocation7]  }
  0x21   :  { %s97_s21 = sshll.u32 %s8906_s8, 4  ;;  %s98_s21 = int_to_ptr.vmem [resolvable:$true] %s97_s21 }
  0x22   :  { %103 = dma.hbm_to_vmem [thread:$0]  %s96_s7, 16384, %s98_s21, [#allocation8], %s8898_s3, %s8898_s3, %s8899_s25  }
  0x23   :  { %8891 = dma.done.wait [#allocation3], 24576  }
  0x24   :  { %8892 = vsyncadd [#allocation3], 4294942720 }
  0x25   :  { %8893 = dma.done.wait [#allocation5], 24576  }
  0x26   :  { %8894 = vsyncadd [#allocation5], 4294942720 }
  0x27   :  { %8895 = dma.done.wait [#allocation8], 16384  }
  0x28   :  { %8896 = vsyncadd [#allocation8], 4294950912  ;;  %s9976_s30 = sld [smem:[#allocation12_spill]]  ;;  %v8907_v6 = vmov 256.0   ;;  %v6184_v10 = vld [vmem:[#allocation2 + $0x150] sm:$0xf] }
  0x29   :  { %8677 = vrcp.f32 %v8907_v6  ;;  %v8165_v11 = vld [vmem:[#allocation2 + $0x164] sm:$0xf0]  ;;  %v6376_v12 = vld [vmem:[#allocation2 + $0x2d0] sm:$0xf]  ;;  %v8162_v15 = vld [vmem:[#allocation2 + $0x154] sm:$0xf] }
  0x2a   :  { %v6185_v13 = vor.u32 %v8165_v11, %v6184_v10  ;;  %v8213_v14 = vld [vmem:[#allocation2 + $0x2e4] sm:$0xf0]  ;;  %v6186_v16 = vld [vmem:[#allocation2 + $0x168] sm:$0xf0]  ;;  %v8210_v19 = vld [vmem:[#allocation2 + $0x2d4] sm:$0xf] }
  0x2b   :  { %v6377_v17 = vor.u32 %v8213_v14, %v6376_v12  ;;  %v6189_v18 = vor.u32 %v8162_v15, %v6186_v16  ;;  %v6378_v20 = vld [vmem:[#allocation2 + $0x2e8] sm:$0xf0]  ;;  %v6160_v21 = vld [vmem:[#allocation2 + $0x120] sm:$0xf]  ;;  %v8159_v23 = vld [vmem:[#allocation2 + $0x134] sm:$0xf0] }
  0x2c   :  { %814 = vmatpush.bf16.msra.mxu0 %v6185_v13  ;;  %v6381_v22 = vor.u32 %v8210_v19, %v6378_v20  ;;  %v6352_v24 = vld [vmem:[#allocation2 + $0x2a0] sm:$0xf]  ;;  %v8207_v25 = vld [vmem:[#allocation2 + $0x2b4] sm:$0xf0]  ;;  %v6161_v26 = vor.u32 %v8159_v23, %v6160_v21  ;;  %v8156_v28 = vld [vmem:[#allocation2 + $0x124] sm:$0xf] }
  0x2d   :  { %828 = vmatpush.bf16.msra.mxu1 %v6377_v17  ;;  %842 = vmatpush.bf16.msra.mxu2 %v6189_v18  ;;  %v6353_v27 = vor.u32 %v8207_v25, %v6352_v24  ;;  %v6162_v29 = vld [vmem:[#allocation2 + $0x138] sm:$0xf0]  ;;  %v8204_v30 = vld [vmem:[#allocation2 + $0x2a4] sm:$0xf]  ;;  %v6136_v34 = vld [vmem:[#allocation2 + $0xf0] sm:$0xf] }
  0x2e   :  { %v9049_v0 = vld [vmem:[%s9976_s30] sm:$0xff]  ;;  %v9054_v1 = vld [vmem:[%s9976_s30 + $0x8] sm:$0xff]  ;;  %v9061_v3 = vld [vmem:[%s9976_s30 + $0x10] sm:$0xff]  ;;  %856 = vmatpush.bf16.msra.mxu3 %v6381_v22  ;;  %v6165_v32 = vor.u32 %v8156_v28, %v6162_v29  ;;  %s9977_s26 = sld [smem:[#allocation15_spill]]  ;;  %s8908_s2 = smov 64   ;;  %vm982_vm7 = vcmask 523264  }
  0x2f   :  { %v146_v2 = vadd.f32 %v9054_v1, %v9049_v0  ;;  %v9066_v4 = vld [vmem:[%s9976_s30 + $0x18] sm:$0xff]  ;;  %v9070_v7 = vpop.eup %8677  ;;  %v8153_v35 = vld [vmem:[#allocation2 + $0x104] sm:$0xf0]  ;;  %v6328_v37 = vld [vmem:[#allocation2 + $0x270] sm:$0xf]  ;;  %s9978_s29 = sld [smem:[#allocation16_spill]] }
  0x30   :  { %v149_v5 = vadd.f32 %v9066_v4, %v9061_v3  ;;  %v153_v8 = vmul.f32 256.0, %v9070_v7  ;;  %v6354_v33 = vld [vmem:[#allocation2 + $0x2b8] sm:$0xf0]  ;;  %v8201_v38 = vld [vmem:[#allocation2 + $0x284] sm:$0xf0]  ;;  %815 = vmatpush.bf16.msra.mxu0 %v6161_v26  ;;  %v6137_v40 = vor.u32 %v8153_v35, %v6136_v34  ;;  %vm157_vm0 = vweird.f32 %v9070_v7  ;;  %s9979_s28 = sld [smem:[#allocation18_spill]] }
  0x31   :  { %147 = vadd.xlane.f32.xlu0 %v146_v2  ;;  %v6357_v36 = vor.u32 %v8204_v30, %v6354_v33  ;;  %v8150_v39 = vld [vmem:[#allocation2 + $0xf4] sm:$0xf]  ;;  %v6138_v41 = vld [vmem:[#allocation2 + $0x108] sm:$0xf0]  ;;  %829 = vmatpush.bf16.msra.mxu1 %v6353_v27  ;;  %v6329_v44 = vor.u32 %v8201_v38, %v6328_v37  ;;  %v6112_v46 = vld [vmem:[#allocation2 + $0xc0] sm:$0xf] }
  0x32   :  { %v154_v9 = vsub.f32 1.0, %v153_v8  ;;  %v8198_v42 = vld [vmem:[#allocation2 + $0x274] sm:$0xf]  ;;  %v6330_v43 = vld [vmem:[#allocation2 + $0x288] sm:$0xf0]  ;;  %843 = vmatpush.bf16.msra.mxu2 %v6165_v32  ;;  %v6141_v45 = vor.u32 %v8150_v39, %v6138_v41  ;;  %s9980_s24 = sld [smem:[#allocation13_spill]] }
  0x33   :  { %v8147_v47 = vld [vmem:[#allocation2 + $0xd4] sm:$0xf0]  ;;  %v6304_v48 = vld [vmem:[#allocation2 + $0x240] sm:$0xf]  ;;  %857 = vmatpush.bf16.msra.mxu3 %v6357_v36  ;;  %v6333_v50 = vor.u32 %v8198_v42, %v6330_v43  ;;  %v8144_v52 = vld [vmem:[#allocation2 + $0xc4] sm:$0xf] }
  0x34   :  { %v155_v31 = vmul.f32 %v9070_v7, %v154_v9  ;;  %v8195_v51 = vld [vmem:[#allocation2 + $0x254] sm:$0xf0]  ;;  %v6114_v53 = vld [vmem:[#allocation2 + $0xd8] sm:$0xf0]  ;;  %v8192_v54 = vld [vmem:[#allocation2 + $0x244] sm:$0xf]  ;;  %816 = vmatpush.bf16.msra.mxu0 %v6137_v40  ;;  %v6113_v56 = vor.u32 %v8147_v47, %v6112_v46 }
  0x35   :  { %v6306_v55 = vld [vmem:[#allocation2 + $0x258] sm:$0xf0]  ;;  %830 = vmatpush.bf16.msra.mxu1 %v6329_v44  ;;  %v6305_v57 = vor.u32 %v8195_v51, %v6304_v48  ;;  %v6117_v58 = vor.u32 %v8144_v52, %v6114_v53  ;;  %v6088_v59 = vld [vmem:[#allocation2 + $0x90] sm:$0xf]  ;;  %v8141_v60 = vld [vmem:[#allocation2 + $0xa4] sm:$0xf0] }
  0x36   :  { %v156_v49 = vadd.f32 %v9070_v7, %v155_v31  ;;  %844 = vmatpush.bf16.msra.mxu2 %v6141_v45  ;;  %v6280_v61 = vld [vmem:[#allocation2 + $0x210] sm:$0xf]  ;;  %v6309_v63 = vor.u32 %v8192_v54, %v6306_v55  ;;  %v8189_v2 = vld [vmem:[#allocation2 + $0x224] sm:$0xf0]  ;;  %v6090_v6 = vld [vmem:[#allocation2 + $0xa8] sm:$0xf0]  ;;  %v6089_v11 = vor.u32 %v8141_v60, %v6088_v59 }
  0x37   :  { %858 = vmatpush.bf16.msra.mxu3 %v6333_v50  ;;  %v8186_v8 = vld [vmem:[#allocation2 + $0x214] sm:$0xf]  ;;  %v6282_v9 = vld [vmem:[#allocation2 + $0x228] sm:$0xf0]  ;;  %v6281_v13 = vor.u32 %v8189_v2, %v6280_v61  ;;  %v6064_v25 = vld [vmem:[#allocation2 + $0x60] sm:$0xf] }
  0x38   :  { %v9077_v62 = vsel %vm157_vm0, %v9070_v7, %v156_v49  ;;  %817 = vmatpush.bf16.msra.mxu0 %v6113_v56  ;;  %v6285_v15 = vor.u32 %v8186_v8, %v6282_v9  ;;  %v8135_v26 = vld [vmem:[#allocation2 + $0x74] sm:$0xf0]  ;;  %v6256_v27 = vld [vmem:[#allocation2 + $0x1e0] sm:$0xf]  ;;  %v8132_v30 = vld [vmem:[#allocation2 + $0x64] sm:$0xf] }
  0x39   :  { %150 = vadd.xlane.f32.xlu0 %v149_v5  ;;  %v8138_v5 = vld [vmem:[#allocation2 + $0x94] sm:$0xf]  ;;  %831 = vmatpush.bf16.msra.mxu1 %v6305_v57  ;;  %v6065_v28 = vor.u32 %v8135_v26, %v6064_v25  ;;  %v8183_v29 = vld [vmem:[#allocation2 + $0x1f4] sm:$0xf0]  ;;  %v6066_v31 = vld [vmem:[#allocation2 + $0x78] sm:$0xf0] }
  0x3a   :  { %845 = vmatpush.bf16.msra.mxu2 %v6117_v58  ;;  %v6093_v14 = vor.u32 %v8138_v5, %v6090_v6  ;;  %v6069_v32 = vor.u32 %v8132_v30, %v6066_v31  ;;  %v8180_v33 = vld [vmem:[#allocation2 + $0x1e4] sm:$0xf]  ;;  %v6040_v35 = vld [vmem:[#allocation2 + $0x30] sm:$0xf]  ;;  %v8129_v36 = vld [vmem:[#allocation2 + $0x44] sm:$0xf0] }
  0x3b   :  { %859 = vmatpush.bf16.msra.mxu3 %v6309_v63  ;;  %v6232_v37 = vld [vmem:[#allocation2 + $0x1b0] sm:$0xf]  ;;  %v6041_v38 = vor.u32 %v8129_v36, %v6040_v35  ;;  %v8177_v39 = vld [vmem:[#allocation2 + $0x1c4] sm:$0xf0]  ;;  %v8126_v40 = vld [vmem:[#allocation2 + $0x34] sm:$0xf] }
  0x3c   :  { %818 = vmatpush.bf16.msra.mxu0 %v6089_v11  ;;  %v6042_v41 = vld [vmem:[#allocation2 + $0x48] sm:$0xf0]  ;;  %v6233_v42 = vor.u32 %v8177_v39, %v6232_v37  ;;  %v8174_v44 = vld [vmem:[#allocation2 + $0x1b4] sm:$0xf]  ;;  %v6016_v47 = vld [vmem:[#allocation2] sm:$0xf] }
  0x3d   :  { %832 = vmatpush.bf16.msra.mxu1 %v6281_v13  ;;  %v6045_v43 = vor.u32 %v8126_v40, %v6042_v41  ;;  %v6234_v45 = vld [vmem:[#allocation2 + $0x1c8] sm:$0xf0]  ;;  %v8123_v48 = vld [vmem:[#allocation2 + $0x14] sm:$0xf0]  ;;  %v6208_v49 = vld [vmem:[#allocation2 + $0x180] sm:$0xf] }
  0x3e   :  { %846 = vmatpush.bf16.msra.mxu2 %v6093_v14  ;;  %v6237_v46 = vor.u32 %v8174_v44, %v6234_v45  ;;  %v6017_v50 = vor.u32 %v8123_v48, %v6016_v47  ;;  %v8171_v51 = vld [vmem:[#allocation2 + $0x194] sm:$0xf0]  ;;  %v8120_v52 = vld [vmem:[#allocation2 + $0x4] sm:$0xf]  ;;  %v6018_v53 = vld [vmem:[#allocation2 + $0x18] sm:$0xf0] }
  0x3f   :  { %860 = vmatpush.bf16.msra.mxu3 %v6285_v15  ;;  %v6209_v54 = vor.u32 %v8171_v51, %v6208_v49  ;;  %v6021_v55 = vor.u32 %v8120_v52, %v6018_v53  ;;  %v8168_v56 = vld [vmem:[#allocation2 + $0x184] sm:$0xf]  ;;  %v6210_v57 = vld [vmem:[#allocation2 + $0x198] sm:$0xf0]  ;;  %v6192_v58 = vld [vmem:[#allocation2 + $0x158] sm:$0xf] }
  0x40   :  { %819 = vmatpush.bf16.msra.mxu0 %v6065_v28  ;;  %v6213_v59 = vor.u32 %v8168_v56, %v6210_v57  ;;  %v8166_v60 = vld [vmem:[#allocation2 + $0x16c] sm:$0xf0]  ;;  %v6384_v61 = vld [vmem:[#allocation2 + $0x2d8] sm:$0xf]  ;;  %v8163_v6 = vld [vmem:[#allocation2 + $0x15c] sm:$0xf] }
  0x41   :  { %v8214_v63 = vld [vmem:[#allocation2 + $0x2ec] sm:$0xf0]  ;;  %v6193_v2 = vor.u32 %v8166_v60, %v6192_v58  ;;  %v6194_v8 = vld [vmem:[#allocation2 + $0x170] sm:$0xf0]  ;;  %v8211_v9 = vld [vmem:[#allocation2 + $0x2dc] sm:$0xf] }
  0x42   :  { %847 = vmatpush.bf16.msra.mxu2 %v6069_v32  ;;  %v6385_v5 = vor.u32 %v8214_v63, %v6384_v61  ;;  %v6386_v11 = vld [vmem:[#allocation2 + $0x2f0] sm:$0xf0]  ;;  %v8160_v13 = vld [vmem:[#allocation2 + $0x13c] sm:$0xf0]  ;;  %v6144_v26 = vld [vmem:[#allocation2 + $0xf8] sm:$0xf] }
  0x43   :  { %v6389_v14 = vor.u32 %v8211_v9, %v6386_v11  ;;  %v6336_v28 = vld [vmem:[#allocation2 + $0x278] sm:$0xf]  ;;  %v8202_v30 = vld [vmem:[#allocation2 + $0x28c] sm:$0xf0]  ;;  %v8151_v31 = vld [vmem:[#allocation2 + $0xfc] sm:$0xf] }
  0x44   :  { %820 = vmatpush.bf16.msra.mxu0 %v6041_v38  ;;  %v6337_v32 = vor.u32 %v8202_v30, %v6336_v28  ;;  %v6120_v36 = vld [vmem:[#allocation2 + $0xc8] sm:$0xf]  ;;  %v8148_v37 = vld [vmem:[#allocation2 + $0xdc] sm:$0xf0]  ;;  %v8145_v41 = vld [vmem:[#allocation2 + $0xcc] sm:$0xf] }
  0x45   :  { %v6312_v38 = vld [vmem:[#allocation2 + $0x248] sm:$0xf]  ;;  %v6121_v39 = vor.u32 %v8148_v37, %v6120_v36  ;;  %v8196_v40 = vld [vmem:[#allocation2 + $0x25c] sm:$0xf0]  ;;  %v8193_v45 = vld [vmem:[#allocation2 + $0x24c] sm:$0xf] }
  0x46   :  { %848 = vmatpush.bf16.msra.mxu2 %v6045_v43  ;;  %v6313_v43 = vor.u32 %v8196_v40, %v6312_v38  ;;  %v6096_v48 = vld [vmem:[#allocation2 + $0x98] sm:$0xf]  ;;  %v8142_v49 = vld [vmem:[#allocation2 + $0xac] sm:$0xf0]  ;;  %v8139_v53 = vld [vmem:[#allocation2 + $0x9c] sm:$0xf] }
  0x47   :  { %v6097_v51 = vor.u32 %v8142_v49, %v6096_v48  ;;  %v8190_v52 = vld [vmem:[#allocation2 + $0x22c] sm:$0xf0]  ;;  %v8187_v57 = vld [vmem:[#allocation2 + $0x21c] sm:$0xf]  ;;  %v6290_v58 = vld [vmem:[#allocation2 + $0x230] sm:$0xf0] }
  0x48   :  { %821 = vmatpush.bf16.msra.mxu0 %v6017_v50  ;;  %v6288_v50 = vld [vmem:[#allocation2 + $0x218] sm:$0xf]  ;;  %v6072_v60 = vld [vmem:[#allocation2 + $0x68] sm:$0xf]  ;;  %v8136_v61 = vld [vmem:[#allocation2 + $0x7c] sm:$0xf0] }
  0x49   :  { %v6264_v63 = vld [vmem:[#allocation2 + $0x1e8] sm:$0xf]  ;;  %v8181_v11 = vld [vmem:[#allocation2 + $0x1ec] sm:$0xf]  ;;  %v6218_v38 = vld [vmem:[#allocation2 + $0x1a0] sm:$0xf0] }
  0x4a   :  { %849 = vmatpush.bf16.msra.mxu2 %v6021_v55  ;;  %v6289_v55 = vor.u32 %v8190_v52, %v6288_v50  ;;  %v6024_v30 = vld [vmem:[#allocation2 + $0x8] sm:$0xf]  ;;  %v8169_v37 = vld [vmem:[#allocation2 + $0x18c] sm:$0xf]  ;;  %v144_v52 = vld [vmem:[%s9977_s26] sm:$0x3] }
  0x4b   :  { %v6221_v40 = vor.u32 %v8169_v37, %v6218_v38  ;;  %v8155_v37 = vld [vmem:[#allocation2 + $0x114] sm:$0xf0]  ;;  %vm1012_vm8 = vcmask 64512   ;;  %s9981_s4 = sld [smem:[#allocation20_spill]] }
  0x4c   :  { %870 = vmatpush.bf16.msrb.mxu0 %v6193_v2  ;;  %v6073_v2 = vor.u32 %v8136_v61, %v6072_v60  ;;  %s9982_s1 = sld [smem:[#allocation14_spill]] }
  0xa4   :  { %v148_v10 = vpop.xlane.xlu0 %147 }
  0xa5   :  { %v159_v12 = vmul.f32 %v9077_v62, %v148_v10  ;;  %v6197_v10 = vor.u32 %v8163_v6, %v6194_v8  ;;  %v8133_v6 = vld [vmem:[#allocation2 + $0x6c] sm:$0xf]  ;;  %v6074_v8 = vld [vmem:[#allocation2 + $0x80] sm:$0xf0] }
  0xa7   :  { %v9081_v7 = vsub.f32 %v9049_v0, %v159_v12  ;;  %v9084_v16 = vsub.f32 %v9054_v1, %v159_v12  ;;  %v6168_v12 = vld [vmem:[#allocation2 + $0x128] sm:$0xf]  ;;  %898 = vmatpush.bf16.msrb.mxu2 %v6197_v10  ;;  %v6077_v10 = vor.u32 %v8133_v6, %v6074_v8 }
  0xa8   :  { %v6169_v15 = vor.u32 %v8160_v13, %v6168_v12  ;;  %v6266_v12 = vld [vmem:[#allocation2 + $0x200] sm:$0xf0] }
  0xa9   :  { %v165_v17 = vmul.f32 %v9081_v7, %v9081_v7  ;;  %v166_v18 = vmul.f32 %v9084_v16, %v9084_v16  ;;  %v6269_v13 = vor.u32 %v8181_v11, %v6266_v12 }
  0xaa   :  { %871 = vmatpush.bf16.msrb.mxu0 %v6169_v15  ;;  %v6048_v15 = vld [vmem:[#allocation2 + $0x38] sm:$0xf] }
  0xab   :  { %v169_v19 = vadd.f32 %v166_v18, %v165_v17  ;;  %v6360_v17 = vld [vmem:[#allocation2 + $0x2a8] sm:$0xf]  ;;  %v8208_v18 = vld [vmem:[#allocation2 + $0x2bc] sm:$0xf0] }
  0xac   :  { %v151_v20 = vpop.xlane.xlu0 %150 }
  0xad   :  { %v160_v21 = vmul.f32 %v9077_v62, %v151_v20  ;;  %170 = vadd.xlane.f32.xlu1 %v169_v19  ;;  %v8157_v19 = vld [vmem:[#allocation2 + $0x12c] sm:$0xf]  ;;  %v6361_v20 = vor.u32 %v8208_v18, %v6360_v17  ;;  %v8130_v17 = vld [vmem:[#allocation2 + $0x4c] sm:$0xf0]  ;;  %v6240_v18 = vld [vmem:[#allocation2 + $0x1b8] sm:$0xf] }
  0xaf   :  { %v9092_v0 = vsub.f32 %v9061_v3, %v160_v21  ;;  %v9095_v1 = vsub.f32 %v9066_v4, %v160_v21  ;;  %v6257_v3 = vor.u32 %v8183_v29, %v6256_v27  ;;  %v6258_v4 = vld [vmem:[#allocation2 + $0x1f8] sm:$0xf0]  ;;  %v6170_v21 = vld [vmem:[#allocation2 + $0x140] sm:$0xf0]  ;;  %v8154_v27 = vld [vmem:[#allocation2 + $0x10c] sm:$0xf0] }
  0xb0   :  { %v6261_v34 = vor.u32 %v8180_v33, %v6258_v4  ;;  %v6145_v29 = vor.u32 %v8154_v27, %v6144_v26  ;;  %v8199_v4 = vld [vmem:[#allocation2 + $0x27c] sm:$0xf]  ;;  %v6242_v27 = vld [vmem:[#allocation2 + $0x1d0] sm:$0xf0] }
  0xb1   :  { %v167_v22 = vmul.f32 %v9092_v0, %v9092_v0  ;;  %v168_v23 = vmul.f32 %v9095_v1, %v9095_v1  ;;  %833 = vmatpush.bf16.msra.mxu1 %v6257_v3  ;;  %v6146_v3 = vld [vmem:[#allocation2 + $0x110] sm:$0xf0]  ;;  %v8175_v26 = vld [vmem:[#allocation2 + $0x1bc] sm:$0xf] }
  0xb2   :  { %861 = vmatpush.bf16.msra.mxu3 %v6261_v34  ;;  %v6149_v33 = vor.u32 %v8151_v31, %v6146_v3  ;;  %v6338_v34 = vld [vmem:[#allocation2 + $0x290] sm:$0xf0]  ;;  %872 = vmatpush.bf16.msrb.mxu0 %v6145_v29  ;;  %v6245_v29 = vor.u32 %v8175_v26, %v6242_v27  ;;  %v8124_v31 = vld [vmem:[#allocation2 + $0x1c] sm:$0xf0]  ;;  %v6216_v3 = vld [vmem:[#allocation2 + $0x188] sm:$0xf] }
  0xb3   :  { %v172_v24 = vadd.f32 %v168_v23, %v167_v22  ;;  %v8205_v22 = vld [vmem:[#allocation2 + $0x2ac] sm:$0xf]  ;;  %v6362_v23 = vld [vmem:[#allocation2 + $0x2c0] sm:$0xf0]  ;;  %v6341_v35 = vor.u32 %v8199_v4, %v6338_v34  ;;  %v6176_v26 = vld [vmem:[#allocation2 + $0x130] sm:$0xf] }
  0xb4   :  { %v6365_v25 = vor.u32 %v8205_v22, %v6362_v23  ;;  %v8127_v22 = vld [vmem:[#allocation2 + $0x3c] sm:$0xf]  ;;  %v6050_v23 = vld [vmem:[#allocation2 + $0x50] sm:$0xf0]  ;;  %v8121_v4 = vld [vmem:[#allocation2 + $0xc] sm:$0xf] }
  0xb5   :  { %173 = vadd.xlane.f32.xlu1 %v172_v24  ;;  %834 = vmatpush.bf16.msra.mxu1 %v6233_v42  ;;  %v6173_v24 = vor.u32 %v8157_v19, %v6170_v21  ;;  %v6122_v42 = vld [vmem:[#allocation2 + $0xe0] sm:$0xf0]  ;;  %v8178_v21 = vld [vmem:[#allocation2 + $0x1cc] sm:$0xf0]  ;;  %v8161_v27 = vld [vmem:[#allocation2 + $0x144] sm:$0xf0] }
  0xb6   :  { %862 = vmatpush.bf16.msra.mxu3 %v6237_v46  ;;  %v6125_v44 = vor.u32 %v8145_v41, %v6122_v42  ;;  %v6314_v46 = vld [vmem:[#allocation2 + $0x260] sm:$0xf0]  ;;  %873 = vmatpush.bf16.msrb.mxu0 %v6121_v39 }
  0xb7   :  { %899 = vmatpush.bf16.msrb.mxu2 %v6173_v24  ;;  %v6317_v47 = vor.u32 %v8193_v45, %v6314_v46  ;;  %v6241_v24 = vor.u32 %v8178_v21, %v6240_v18  ;;  %v6026_v34 = vld [vmem:[#allocation2 + $0x20] sm:$0xf0]  ;;  %v6202_v21 = vld [vmem:[#allocation2 + $0x178] sm:$0xf0] }
  0xb8   :  { %v6029_v36 = vor.u32 %v8121_v4, %v6026_v34  ;;  %v6370_v4 = vld [vmem:[#allocation2 + $0x2c8] sm:$0xf0]  ;;  %v6177_v34 = vor.u32 %v8161_v27, %v6176_v26 }
  0xb9   :  { %835 = vmatpush.bf16.msra.mxu1 %v6209_v54  ;;  %v6098_v54 = vld [vmem:[#allocation2 + $0xb0] sm:$0xf0]  ;;  %v6274_v26 = vld [vmem:[#allocation2 + $0x208] sm:$0xf0] }
  0xba   :  { %863 = vmatpush.bf16.msra.mxu3 %v6213_v59  ;;  %v6101_v56 = vor.u32 %v8139_v53, %v6098_v54  ;;  %v6293_v59 = vor.u32 %v8187_v57, %v6290_v58  ;;  %874 = vmatpush.bf16.msrb.mxu0 %v6097_v51  ;;  %v204_v57 = vperm.slane %v144_v52, 0  ;;  %v205_v58 = vperm.slane %v144_v52, 1  ;;  %v6320_v52 = vld [vmem:[#allocation2 + $0x250] sm:$0xf] }
  0xbb   :  { %900 = vmatpush.bf16.msrb.mxu2 %v6149_v33  ;;  %v8172_v33 = vld [vmem:[#allocation2 + $0x19c] sm:$0xf0] }
  0xbd   :  { %884 = vmatpush.bf16.msrb.mxu1 %v6385_v5  ;;  %v8184_v5 = vld [vmem:[#allocation2 + $0x1fc] sm:$0xf0] }
  0xbe   :  { %912 = vmatpush.bf16.msrb.mxu3 %v6389_v14  ;;  %v6265_v9 = vor.u32 %v8184_v5, %v6264_v63  ;;  %875 = vmatpush.bf16.msrb.mxu0 %v6073_v2 }
  0xbf   :  { %901 = vmatpush.bf16.msrb.mxu2 %v6125_v44 }
  0xc1   :  { %885 = vmatpush.bf16.msrb.mxu1 %v6361_v20  ;;  %v6049_v20 = vor.u32 %v8130_v17, %v6048_v15  ;;  %v6392_v15 = vld [vmem:[#allocation2 + $0x2e0] sm:$0xf]  ;;  %v8164_v17 = vld [vmem:[#allocation2 + $0x164] sm:$0xf] }
  0xc2   :  { %913 = vmatpush.bf16.msrb.mxu3 %v6365_v25  ;;  %v6053_v25 = vor.u32 %v8127_v22, %v6050_v23  ;;  %v8212_v22 = vld [vmem:[#allocation2 + $0x2e4] sm:$0xf] }
  0xc3   :  { %902 = vmatpush.bf16.msrb.mxu2 %v6101_v56  ;;  %876 = vmatpush.bf16.msrb.mxu0 %v6049_v20  ;;  %v145_v56 = vld [vmem:[%s9978_s29] sm:$0x3] }
  0xc4   :  { %v213_v63 = vperm.slane %v145_v56, 0  ;;  %v214_v2 = vperm.slane %v145_v56, 1  ;;  %v8194_v56 = vld [vmem:[#allocation2 + $0x254] sm:$0xf] }
  0xc5   :  { %886 = vmatpush.bf16.msrb.mxu1 %v6337_v32  ;;  %v6025_v32 = vor.u32 %v8124_v31, %v6024_v30  ;;  %v6368_v30 = vld [vmem:[#allocation2 + $0x2b0] sm:$0xf]  ;;  %v8209_v31 = vld [vmem:[#allocation2 + $0x2c4] sm:$0xf0] }
  0xc6   :  { %914 = vmatpush.bf16.msrb.mxu3 %v6341_v35  ;;  %v6217_v35 = vor.u32 %v8172_v33, %v6216_v3  ;;  %v8158_v3 = vld [vmem:[#allocation2 + $0x134] sm:$0xf] }
  0xc7   :  { %903 = vmatpush.bf16.msrb.mxu2 %v6077_v10  ;;  %877 = vmatpush.bf16.msrb.mxu0 %v6025_v32  ;;  %v6178_v32 = vld [vmem:[#allocation2 + $0x148] sm:$0xf0]  ;;  %v8206_v33 = vld [vmem:[#allocation2 + $0x2b4] sm:$0xf] }
  0xc8   :  { %v6181_v38 = vor.u32 %v8158_v3, %v6178_v32  ;;  %v6248_v32 = vld [vmem:[#allocation2 + $0x1c0] sm:$0xf] }
  0xc9   :  { %887 = vmatpush.bf16.msrb.mxu1 %v6313_v43 }
  0xca   :  { %915 = vmatpush.bf16.msrb.mxu3 %v6317_v47 }
  0xcb   :  { %904 = vmatpush.bf16.msrb.mxu2 %v6053_v25 }
  0xcd   :  { %888 = vmatpush.bf16.msrb.mxu1 %v6289_v55 }
  0xce   :  { %916 = vmatpush.bf16.msrb.mxu3 %v6293_v59 }
  0xcf   :  { %905 = vmatpush.bf16.msrb.mxu2 %v6029_v36  ;;  %v6152_v36 = vld [vmem:[#allocation2 + $0x100] sm:$0xf] }
  0xd1   :  { %889 = vmatpush.bf16.msrb.mxu1 %v6265_v9 }
  0xd2   :  { %917 = vmatpush.bf16.msrb.mxu3 %v6269_v13  ;;  %v6200_v13 = vld [vmem:[#allocation2 + $0x160] sm:$0xf] }
  0xd5   :  { %890 = vmatpush.bf16.msrb.mxu1 %v6241_v24 }
  0xd6   :  { %918 = vmatpush.bf16.msrb.mxu3 %v6245_v29 }
  0xd9   :  { %891 = vmatpush.bf16.msrb.mxu1 %v6217_v35  ;;  %v6369_v35 = vor.u32 %v8209_v31, %v6368_v30  ;;  %v8131_v30 = vld [vmem:[#allocation2 + $0x54] sm:$0xf0] }
  0xda   :  { %919 = vmatpush.bf16.msrb.mxu3 %v6221_v40  ;;  %v6344_v40 = vld [vmem:[#allocation2 + $0x280] sm:$0xf] }
 0x120   :  { %v171_v14 = vpop.xlane.xlu1 %170 }
 0x121   :  { %v175_v19 = vmul.f32 %v171_v14, %v9077_v62  ;;  %v8167_v14 = vld [vmem:[#allocation2 + $0x174] sm:$0xf0] }
 0x122   :  { %v6201_v24 = vor.u32 %v8167_v14, %v6200_v13  ;;  %v6080_v14 = vld [vmem:[#allocation2 + $0x70] sm:$0xf] }
 0x123   :  { %v177_v28 = vadd.f32 1e-12, %v175_v19 }
 0x125   :  { %8679 = vrsqrt.f32 %v177_v28  ;;  %vm185_vm2 = vweird.f32 %v177_v28 }
 0x128   :  { %v174_v39 = vpop.xlane.xlu1 %173 }
 0x129   :  { %v176_v41 = vmul.f32 %v174_v39, %v9077_v62  ;;  %v6373_v39 = vor.u32 %v8206_v33, %v6370_v4  ;;  %v8179_v33 = vld [vmem:[#allocation2 + $0x1d4] sm:$0xf0]  ;;  %v8128_v4 = vld [vmem:[#allocation2 + $0x44] sm:$0xf] }
 0x12b   :  { %v8680_v42 = vpop.eup %8679  ;;  %v178_v43 = vadd.f32 1e-12, %v176_v41  ;;  %v8203_v41 = vld [vmem:[#allocation2 + $0x294] sm:$0xf0] }
 0x12c   :  { %v180_v44 = vmul.f32 %v8680_v42, %v177_v28  ;;  %vm186_vm1 = vweird.f32 %v8680_v42  ;;  %v6205_v28 = vor.u32 %v8164_v17, %v6202_v21  ;;  %v6272_v21 = vld [vmem:[#allocation2 + $0x1f0] sm:$0xf] }
 0x12d   :  { %8681 = vrsqrt.f32 %v178_v43  ;;  %vm187_vm3 = vmor %vm185_vm2, %vm186_vm1  ;;  %vm195_vm5 = vweird.f32 %v178_v43 }
 0x12e   :  { %v181_v45 = vmul.f32 %v8680_v42, %v180_v44  ;;  %v8200_v44 = vld [vmem:[#allocation2 + $0x284] sm:$0xf] }
 0x130   :  { %v182_v46 = vmul.f32 0.5, %v181_v45  ;;  %v6346_v45 = vld [vmem:[#allocation2 + $0x298] sm:$0xf0] }
 0x132   :  { %v183_v47 = vsub.f32 1.5, %v182_v46  ;;  %v6153_v46 = vor.u32 %v8155_v37, %v6152_v36  ;;  %v6250_v36 = vld [vmem:[#allocation2 + $0x1d8] sm:$0xf0] }
 0x133   :  { %v8682_v48 = vpop.eup %8681 }
 0x134   :  { %v184_v49 = vmul.f32 %v8680_v42, %v183_v47  ;;  %v190_v50 = vmul.f32 %v8682_v48, %v178_v43  ;;  %vm196_vm4 = vweird.f32 %v8682_v48  ;;  %v6154_v43 = vld [vmem:[#allocation2 + $0x118] sm:$0xf0]  ;;  %v6345_v47 = vor.u32 %v8203_v41, %v6344_v40  ;;  %v8125_v40 = vld [vmem:[#allocation2 + $0x24] sm:$0xf0] }
 0x135   :  { %vm197_vm6 = vmor %vm195_vm5, %vm196_vm4 }
 0x136   :  { %v191_v51 = vmul.f32 %v8682_v48, %v190_v50  ;;  %v188_v53 = vsel %vm187_vm3, %v8680_v42, %v184_v49  ;;  %v8152_v42 = vld [vmem:[#allocation2 + $0x104] sm:$0xf]  ;;  %v8149_v49 = vld [vmem:[#allocation2 + $0xe4] sm:$0xf0] }
 0x137   :  { %v199_v59 = vmul.f32 %v188_v53, %v9081_v7  ;;  %v200_v60 = vmul.f32 %v188_v53, %v9084_v16  ;;  %v8215_v7 = vld [vmem:[#allocation2 + $0x2f4] sm:$0xf0]  ;;  %v6157_v50 = vor.u32 %v8152_v42, %v6154_v43  ;;  %v8197_v53 = vld [vmem:[#allocation2 + $0x264] sm:$0xf0]  ;;  %v6224_v43 = vld [vmem:[#allocation2 + $0x190] sm:$0xf] }
 0x138   :  { %v192_v54 = vmul.f32 0.5, %v191_v51  ;;  %v6393_v25 = vor.u32 %v8215_v7, %v6392_v15  ;;  %v6349_v51 = vor.u32 %v8200_v44, %v6346_v45  ;;  %v8137_v15 = vld [vmem:[#allocation2 + $0x84] sm:$0xf0]  ;;  %v8122_v45 = vld [vmem:[#allocation2 + $0x14] sm:$0xf] }
 0x139   :  { %v208_v6 = vmul.f32 %v204_v57, %v199_v59  ;;  %v209_v8 = vmul.f32 %v205_v58, %v200_v60  ;;  %v6321_v59 = vor.u32 %v8197_v53, %v6320_v52  ;;  %v6104_v60 = vld [vmem:[#allocation2 + $0xa0] sm:$0xf]  ;;  %v6081_v27 = vor.u32 %v8137_v15, %v6080_v14  ;;  %v8173_v44 = vld [vmem:[#allocation2 + $0x1a4] sm:$0xf0] }
 0x13a   :  { %v193_v55 = vsub.f32 1.5, %v192_v54  ;;  %v8146_v54 = vld [vmem:[#allocation2 + $0xd4] sm:$0xf]  ;;  %v9144_v53 = vld [vmem:[%s9979_s28] sm:$0x3f] }
 0x13b   :  { %v9113_v16 = vadd.f32 %v213_v63, %v208_v6  ;;  %v9115_v18 = vadd.f32 %v214_v2, %v209_v8  ;;  %v8191_v6 = vld [vmem:[#allocation2 + $0x234] sm:$0xf0]  ;;  %v8140_v8 = vld [vmem:[#allocation2 + $0xa4] sm:$0xf] }
 0x13c   :  { %v194_v61 = vmul.f32 %v8682_v48, %v193_v55  ;;  %v6130_v55 = vld [vmem:[#allocation2 + $0xe8] sm:$0xf0] }
 0x13e   :  { %v198_v5 = vsel %vm197_vm6, %v8682_v48, %v194_v61  ;;  %v6128_v48 = vld [vmem:[#allocation2 + $0xd0] sm:$0xf]  ;;  %v8143_v61 = vld [vmem:[#allocation2 + $0xb4] sm:$0xf0] }
 0x13f   :  { %v201_v9 = vmul.f32 %v198_v5, %v9092_v0  ;;  %v202_v10 = vmul.f32 %v198_v5, %v9095_v1  ;;  %v6394_v0 = vld [vmem:[#allocation2 + $0x2f8] sm:$0xf0]  ;;  %v6296_v5 = vld [vmem:[#allocation2 + $0x220] sm:$0xf] }
 0x140   :  { %v6397_v29 = vor.u32 %v8212_v22, %v6394_v0  ;;  %v6297_v13 = vor.u32 %v8191_v6, %v6296_v5  ;;  %v8185_v22 = vld [vmem:[#allocation2 + $0x204] sm:$0xf0]  ;;  %v8134_v0 = vld [vmem:[#allocation2 + $0x74] sm:$0xf]  ;;  %v324_v5 = vperm.slane %v9144_v53, 2 }
 0x141   :  { %v210_v11 = vmul.f32 %v204_v57, %v201_v9  ;;  %v211_v12 = vmul.f32 %v205_v58, %v202_v10  ;;  %v6322_v57 = vld [vmem:[#allocation2 + $0x268] sm:$0xf0]  ;;  %v6129_v58 = vor.u32 %v8149_v49, %v6128_v48  ;;  %v6106_v9 = vld [vmem:[#allocation2 + $0xb8] sm:$0xf0]  ;;  %v8188_v10 = vld [vmem:[#allocation2 + $0x224] sm:$0xf] }
 0x142   :  { %v6109_v7 = vor.u32 %v8140_v8, %v6106_v9  ;;  %v6226_v48 = vld [vmem:[#allocation2 + $0x1a8] sm:$0xf0] }
 0x143   :  { %v9117_v19 = vadd.f32 %v213_v63, %v210_v11  ;;  %v9119_v20 = vadd.f32 %v214_v2, %v211_v12  ;;  %v6133_v63 = vor.u32 %v8146_v54, %v6130_v55  ;;  %v6325_v2 = vor.u32 %v8194_v56, %v6322_v57  ;;  %v6298_v11 = vld [vmem:[#allocation2 + $0x238] sm:$0xf0] }
 0x144   :  { %v6105_v12 = vor.u32 %v8143_v61, %v6104_v60  ;;  %v6301_v17 = vor.u32 %v8188_v10, %v6298_v11  ;;  %v322_v54 = vperm.slane %v9144_v53, 0 }
 0x145   :  { %v9123_v1 = vpack.c.bf16 %v9117_v19, %v9113_v16  ;;  %v9127_v23 = vpack.c.bf16 %v9119_v20, %v9115_v18 }
 0x147   :  { %822 = vmatmul.bf16.vlgmr.msra.gmra.mxu0 %v9123_v1  ;;  %836 = vmatmul.bf16.vlgmr.msra.gmra.mxu1 %v9127_v23 }
 0x148   :  { %850 = vmatmul.bf16.vlgmr.msra.gmra.mxu2 %v9123_v1  ;;  %864 = vmatmul.bf16.vlgmr.msra.gmra.mxu3 %v9127_v23 }
 0x149   :  { %926 = vmatpush.bf16.msra.mxu0 %v6201_v24  ;;  %940 = vmatpush.bf16.msra.mxu1 %v6393_v25  ;;  %v6082_v24 = vld [vmem:[#allocation2 + $0x88] sm:$0xf0]  ;;  %v8182_v25 = vld [vmem:[#allocation2 + $0x1f4] sm:$0xf] }
 0x14a   :  { %954 = vmatpush.bf16.msra.mxu2 %v6205_v28  ;;  %968 = vmatpush.bf16.msra.mxu3 %v6397_v29  ;;  %v6273_v28 = vor.u32 %v8185_v22, %v6272_v21  ;;  %v6056_v29 = vld [vmem:[#allocation2 + $0x40] sm:$0xf]  ;;  %v6085_v31 = vor.u32 %v8134_v0, %v6082_v24  ;;  %v6277_v3 = vor.u32 %v8182_v25, %v6274_v26 }
 0x14b   :  { %v6057_v37 = vor.u32 %v8131_v30, %v6056_v29 }
 0x14d   :  { %927 = vmatpush.bf16.msra.mxu0 %v6177_v34  ;;  %941 = vmatpush.bf16.msra.mxu1 %v6369_v35  ;;  %v6058_v34 = vld [vmem:[#allocation2 + $0x58] sm:$0xf0]  ;;  %v8176_v35 = vld [vmem:[#allocation2 + $0x1c4] sm:$0xf] }
 0x14e   :  { %955 = vmatpush.bf16.msra.mxu2 %v6181_v38  ;;  %969 = vmatpush.bf16.msra.mxu3 %v6373_v39  ;;  %v6249_v38 = vor.u32 %v8179_v33, %v6248_v32  ;;  %v6032_v39 = vld [vmem:[#allocation2 + $0x10] sm:$0xf]  ;;  %v6061_v41 = vor.u32 %v8128_v4, %v6058_v34  ;;  %v6253_v42 = vor.u32 %v8176_v35, %v6250_v36  ;;  %v327_v36 = vperm.slane %v9144_v53, 5 }
 0x14f   :  { %v6033_v49 = vor.u32 %v8125_v40, %v6032_v39 }
 0x151   :  { %928 = vmatpush.bf16.msra.mxu0 %v6153_v46  ;;  %942 = vmatpush.bf16.msra.mxu1 %v6345_v47  ;;  %v6034_v46 = vld [vmem:[#allocation2 + $0x28] sm:$0xf0]  ;;  %v8170_v47 = vld [vmem:[#allocation2 + $0x194] sm:$0xf] }
 0x152   :  { %956 = vmatpush.bf16.msra.mxu2 %v6157_v50  ;;  %970 = vmatpush.bf16.msra.mxu3 %v6349_v51  ;;  %v6225_v50 = vor.u32 %v8173_v44, %v6224_v43  ;;  %v6037_v51 = vor.u32 %v8122_v45, %v6034_v46  ;;  %v6229_v52 = vor.u32 %v8170_v47, %v6226_v48 }
 0x155   :  { %929 = vmatpush.bf16.msra.mxu0 %v6129_v58  ;;  %943 = vmatpush.bf16.msra.mxu1 %v6321_v59  ;;  %v323_v59 = vperm.slane %v9144_v53, 1 }
 0x156   :  { %957 = vmatpush.bf16.msra.mxu2 %v6133_v63  ;;  %971 = vmatpush.bf16.msra.mxu3 %v6325_v2 }
 0x157   :  { %878 = vmatmul.bf16.vlgmr.msrb.gmra.mxu0 %v9123_v1  ;;  %892 = vmatmul.bf16.vlgmr.msrb.gmra.mxu1 %v9127_v23 }
 0x158   :  { %906 = vmatmul.bf16.vlgmr.msrb.gmra.mxu2 %v9123_v1  ;;  %920 = vmatmul.bf16.vlgmr.msrb.gmra.mxu3 %v9127_v23 }
 0x159   :  { %930 = vmatpush.bf16.msra.mxu0 %v6105_v12  ;;  %944 = vmatpush.bf16.msra.mxu1 %v6297_v13  ;;  %v325_v13 = vperm.slane %v9144_v53, 3 }
 0x15a   :  { %958 = vmatpush.bf16.msra.mxu2 %v6109_v7  ;;  %972 = vmatpush.bf16.msra.mxu3 %v6301_v17 }
 0x15d   :  { %931 = vmatpush.bf16.msra.mxu0 %v6081_v27  ;;  %945 = vmatpush.bf16.msra.mxu1 %v6273_v28  ;;  %v326_v28 = vperm.slane %v9144_v53, 4 }
 0x15e   :  { %959 = vmatpush.bf16.msra.mxu2 %v6085_v31  ;;  %973 = vmatpush.bf16.msra.mxu3 %v6277_v3 }
 0x161   :  { %932 = vmatpush.bf16.msra.mxu0 %v6057_v37  ;;  %946 = vmatpush.bf16.msra.mxu1 %v6249_v38 }
 0x162   :  { %960 = vmatpush.bf16.msra.mxu2 %v6061_v41  ;;  %974 = vmatpush.bf16.msra.mxu3 %v6253_v42 }
 0x165   :  { %933 = vmatpush.bf16.msra.mxu0 %v6033_v49  ;;  %947 = vmatpush.bf16.msra.mxu1 %v6225_v50 }
 0x166   :  { %961 = vmatpush.bf16.msra.mxu2 %v6037_v51  ;;  %975 = vmatpush.bf16.msra.mxu3 %v6229_v52 }
 0x168   :  { %934 = vmatmul.bf16.vlgmr.msra.gmra.mxu0 %v9123_v1  ;;  %948 = vmatmul.bf16.vlgmr.msra.gmra.mxu1 %v9127_v23 }
 0x169   :  { %962 = vmatmul.bf16.vlgmr.msra.gmra.mxu2 %v9123_v1  ;;  %976 = vmatmul.bf16.vlgmr.msra.gmra.mxu3 %v9127_v23 }
 0x1c4   :  { %v823_v55 = vpop.f32.mrf.mxu0  ;;  %v837_v56 = vpop.f32.mrf.mxu1 }
 0x1c5   :  { %v824_v57 = vadd.f32 %v823_v55, %v322_v54 }
 0x1c7   :  { %v838_v58 = vadd.f32 %v837_v56, %v824_v57 }
 0x1c9   :  { %1047 = vrot.lane.b32.xlu2 %v838_v58, %s8908_s2 }
 0x1cb   :  { %v851_v60 = vpop.f32.mrf.mxu2  ;;  %v865_v1 = vpop.f32.mrf.mxu3 }
 0x1cc   :  { %v852_v61 = vadd.f32 %v851_v60, %v323_v59  ;;  %v825_v23 = vpop.f32.mrf.mxu0  ;;  %v839_v63 = vpop.f32.mrf.mxu1 }
 0x1cd   :  { %v826_v14 = vadd.f32 %v825_v23, %v322_v54  ;;  %v221_v54 = vld [vmem:[%s9980_s24] sm:$0x3] }
 0x1ce   :  { %v866_v2 = vadd.f32 %v865_v1, %v852_v61  ;;  %v9191_v57 = vperm.slane %v221_v54, 0 }
 0x1cf   :  { %v840_v25 = vadd.f32 %v839_v63, %v826_v14 }
 0x1d0   :  { %1177 = vrot.lane.b32.xlu1 %v866_v2, %s8908_s2 }
 0x1d3   :  { %v853_v6 = vpop.f32.mrf.mxu2  ;;  %v867_v8 = vpop.f32.mrf.mxu3 }
 0x1d4   :  { %v879_v9 = vpop.f32.mrf.mxu0  ;;  %v893_v10 = vpop.f32.mrf.mxu1  ;;  %v854_v27 = vadd.f32 %v853_v6, %v323_v59 }
 0x1d5   :  { %v880_v11 = vadd.f32 %v879_v9, %v324_v5 }
 0x1d6   :  { %v868_v32 = vadd.f32 %v867_v8, %v854_v27 }
 0x1d7   :  { %v894_v12 = vadd.f32 %v893_v10, %v880_v11  ;;  %v9202_v11 = vperm.slane %v221_v54, 1 }
 0x1d9   :  { %6398 = vmatpush.xpose.msk.msrb.mxu0 %vm982_vm7, %v894_v12  ;;  %1049 = vrot.lane.b32.xlu2 %v894_v12, %s8908_s2 }
 0x1db   :  { %v907_v15 = vpop.f32.mrf.mxu2  ;;  %v921_v7 = vpop.f32.mrf.mxu3 }
 0x1dc   :  { %v908_v17 = vadd.f32 %v907_v15, %v325_v13  ;;  %v881_v21 = vpop.f32.mrf.mxu0  ;;  %6399 = vmatmul.msk.f32.vlgmr.msrb.gmra.mxu0 %vm982_vm7, %v838_v58  ;;  %v895_v0 = vpop.f32.mrf.mxu1 }
 0x1dd   :  { %v882_v22 = vadd.f32 %v881_v21, %v324_v5 }
 0x1de   :  { %v922_v24 = vadd.f32 %v921_v7, %v908_v17 }
 0x1df   :  { %v896_v26 = vadd.f32 %v895_v0, %v882_v22 }
 0x1e0   :  { %1179 = vrot.lane.b32.xlu0 %v922_v24, %s8908_s2  ;;  %6404 = vmatpush.xpose.msk.msra.mxu0 %vm982_vm7, %v922_v24 }
 0x1e1   :  { %1318 = vrot.lane.b32.xlu2 %v840_v25, %s8908_s2 }
 0x1e3   :  { %v909_v29 = vpop.f32.mrf.mxu2  ;;  %v923_v31 = vpop.f32.mrf.mxu3 }
 0x1e4   :  { %6410 = vmatpush.xpose.msk.msrb.mxu0 %vm982_vm7, %v896_v26  ;;  %v910_v30 = vadd.f32 %v909_v29, %v325_v13 }
 0x1e5   :  { %6405 = vmatmul.msk.f32.vlgmr.msra.gmra.mxu0 %vm982_vm7, %v866_v2  ;;  %v935_v3 = vpop.f32.mrf.mxu0  ;;  %v949_v34 = vpop.f32.mrf.mxu1 }
 0x1e6   :  { %v924_v33 = vadd.f32 %v923_v31, %v910_v30  ;;  %v936_v4 = vadd.f32 %v935_v3, %v326_v28 }
 0x1e8   :  { %v9163_v35 = vadd.f32 %v949_v34, %v936_v4  ;;  %1448 = vrot.lane.b32.xlu0 %v868_v32, %s8908_s2  ;;  %6416 = vmatpush.xpose.msk.msra.mxu0 %vm982_vm7, %v924_v33 }
 0x1e9   :  { %1320 = vrot.lane.b32.xlu2 %v896_v26, %s8908_s2 }
 0x1ea   :  { %1042 = vmatpush.msrb.mxu1 %v9163_v35 }
 0x1ec   :  { %v963_v37 = vpop.f32.mrf.mxu2  ;;  %v977_v39 = vpop.f32.mrf.mxu3 }
 0x1ed   :  { %6411 = vmatmul.msk.f32.vlgmr.msrb.gmra.mxu0 %vm982_vm7, %v840_v25  ;;  %v964_v38 = vadd.f32 %v963_v37, %v327_v36  ;;  %v937_v50 = vpop.f32.mrf.mxu0 }
 0x1ee   :  { %v938_v3 = vadd.f32 %v937_v50, %v326_v28 }
 0x1ef   :  { %v9173_v40 = vadd.f32 %v977_v39, %v964_v38 }
 0x1f1   :  { %v8644_v41 = vpack.i.bf16 %v9173_v40, %v9163_v35  ;;  %1172 = vmatpush.msra.mxu1 %v9173_v40  ;;  %1450 = vrot.lane.b32.xlu2 %v924_v33, %s8908_s2 }
 0x1f4   :  { %v965_v51 = vpop.f32.mrf.mxu2  ;;  %v979_v28 = vpop.f32.mrf.mxu3 }
 0x1f5   :  { %6417 = vmatmul.msk.f32.vlgmr.msra.gmra.mxu0 %vm982_vm7, %v868_v32  ;;  %v951_v32 = vpop.f32.mrf.mxu1  ;;  %v966_v39 = vadd.f32 %v965_v51, %v327_v36 }
 0x1f6   :  { %v9220_v33 = vadd.f32 %v951_v32, %v938_v3 }
 0x1f7   :  { %v9230_v40 = vadd.f32 %v979_v28, %v966_v39 }
 0x223   :  { %v1048_v42 = vpop.permute.xlu2 %1047 }
 0x233   :  { %v1050_v43 = vpop.permute.xlu2 %1049 }
 0x234   :  { %6401 = vmatpush.xpose.msk.msrb.mxu2 %vm982_vm7, %v1050_v43 }
 0x237   :  { %6402 = vmatmul.msk.f32.vlgmr.msrb.gmra.mxu2 %vm982_vm7, %v1048_v42 }
 0x23b   :  { %v1319_v44 = vpop.permute.xlu2 %1318 }
 0x242   :  { %v1178_v47 = vpop.permute.xlu1 %1177 }
 0x243   :  { %v1321_v45 = vpop.permute.xlu2 %1320 }
 0x24b   :  { %v1451_v48 = vpop.permute.xlu2 %1450 }
 0x252   :  { %v1180_v46 = vpop.permute.xlu0 %1179 }
 0x253   :  { %6407 = vmatpush.xpose.msk.msra.mxu2 %vm982_vm7, %v1180_v46 }
 0x256   :  { %6408 = vmatmul.msk.f32.vlgmr.msra.gmra.mxu2 %vm982_vm7, %v1178_v47 }
 0x257   :  { %6413 = vmatpush.xpose.msk.msrb.mxu2 %vm982_vm7, %v1321_v45 }
 0x259   :  { %v1006_v52 = vpop.f32.mrf.mxu0 }
 0x25a   :  { %v1449_v49 = vpop.permute.xlu0 %1448  ;;  %v1009_v6 = vmul.f32 0.125, %v1006_v52 }
 0x25b   :  { %6419 = vmatpush.xpose.msk.msra.mxu2 %vm982_vm7, %v1451_v48 }
 0x25c   :  { %v1011_v12 = vadd.f32 %v9191_v57, %v1009_v6 }
 0x25e   :  { %6414 = vmatmul.msk.f32.vlgmr.msrb.gmra.mxu2 %vm982_vm7, %v1319_v44  ;;  %v1013_v15 = vsel %vm1012_vm8, %v1011_v12, -inf }
 0x262   :  { %v1138_v58 = vpop.f32.mrf.mxu0 }
 0x263   :  { %v1141_v60 = vmul.f32 0.125, %v1138_v58 }
 0x265   :  { %v9196_v61 = vadd.f32 %v1141_v60, %v9191_v57 }
 0x266   :  { %6420 = vmatmul.msk.f32.vlgmr.msra.gmra.mxu2 %vm982_vm7, %v1449_v49 }
 0x267   :  { %v1143_v23 = vsel %vm1012_vm8, %v9196_v61, -inf }
 0x26a   :  { %v1278_v7 = vpop.f32.mrf.mxu0 }
 0x26b   :  { %v1281_v0 = vmul.f32 0.125, %v1278_v7 }
 0x26d   :  { %v1283_v25 = vadd.f32 %v9202_v11, %v1281_v0 }
 0x26f   :  { %v1284_v29 = vsel %vm1012_vm8, %v1283_v25, -inf }
 0x272   :  { %v1409_v26 = vpop.f32.mrf.mxu0 }
 0x273   :  { %v1412_v27 = vmul.f32 0.125, %v1409_v26 }
 0x275   :  { %v1413_v30 = vadd.f32 %v1412_v27, %v9202_v11 }
 0x277   :  { %v1414_v31 = vsel %vm1012_vm8, %v1413_v30, -inf }
 0x2ba   :  { %v1072_v55 = vpop.f32.mrf.mxu2 }
 0x2bb   :  { %v1075_v56 = vmul.f32 0.125, %v1072_v55 }
 0x2bd   :  { %v1076_v59 = vadd.f32 %v1075_v56, %v9191_v57 }
 0x2bf   :  { %v1077_v1 = vsel %vm1012_vm8, %v1076_v59, -inf }
 0x2c0   :  { %1078 = vmax.xlane.f32.xlu2 %v1077_v1 }
 0x2c8   :  { %1144 = vmax.xlane.f32.xlu2 %v1143_v23 }
 0x2d9   :  { %v1202_v63 = vpop.f32.mrf.mxu2 }
 0x2da   :  { %v1205_v2 = vmul.f32 0.125, %v1202_v63 }
 0x2dc   :  { %v1206_v5 = vadd.f32 %v1205_v2, %v9191_v57 }
 0x2de   :  { %v1207_v8 = vsel %vm1012_vm8, %v1206_v5, -inf }
 0x2df   :  { %1208 = vmax.xlane.f32.xlu1 %v1207_v8 }
 0x2e1   :  { %v1343_v9 = vpop.f32.mrf.mxu2 }
 0x2e2   :  { %v1346_v10 = vmul.f32 0.125, %v1343_v9 }
 0x2e4   :  { %v1347_v13 = vadd.f32 %v1346_v10, %v9202_v11 }
 0x2e6   :  { %v1348_v14 = vsel %vm1012_vm8, %v1347_v13, -inf }
 0x2e7   :  { %1349 = vmax.xlane.f32.xlu0 %v1348_v14  ;;  %1014 = vmax.xlane.f32.xlu1 %v1013_v15 }
 0x2e9   :  { %v1473_v17 = vpop.f32.mrf.mxu2 }
 0x2ea   :  { %v1476_v21 = vmul.f32 0.125, %v1473_v17 }
 0x2ec   :  { %v1477_v22 = vadd.f32 %v1476_v21, %v9202_v11 }
 0x2ee   :  { %v1478_v24 = vsel %vm1012_vm8, %v1477_v22, -inf }
 0x2ef   :  { %1479 = vmax.xlane.f32.xlu2 %v1478_v24 }
 0x2f7   :  { %1285 = vmax.xlane.f32.xlu2 %v1284_v29 }
 0x2fb   :  { %8645 = vrot.lane.b32.xlu0 %v8644_v41, %s8908_s2 }
 0x2ff   :  { %1415 = vmax.xlane.f32.xlu2 %v1414_v31 }
 0x317   :  { %1360 = vrot.lane.b32.xlu2 %v9220_v33, %s8908_s2 }
 0x333   :  { %v1079_v4 = vpop.xlane.xlu2 %1078 }
 0x334   :  { %v1080_v34 = vsub.f32 %v1076_v59, %v1079_v4 }
 0x336   :  { %v1081_v37 = vmul.f32 1.442695, %v1080_v34 }
 0x338   :  { %8683 = vpow2.f32 %v1081_v37 }
 0x33b   :  { %v1145_v44 = vpop.xlane.xlu2 %1144 }
 0x33c   :  { %v1146_v59 = vsub.f32 %v9196_v61, %v1145_v44 }
 0x33e   :  { %v9224_v38 = vpop.eup %8683  ;;  %v1147_v6 = vmul.f32 1.442695, %v1146_v59 }
 0x33f   :  { %v1083_v35 = vsel %vm1012_vm8, %v9224_v38, 0.0 }
 0x340   :  { %1084 = vadd.xlane.f32.xlu0 %v1083_v35 }
 0x352   :  { %v1209_v41 = vpop.xlane.xlu1 %1208 }
 0x353   :  { %v1210_v42 = vsub.f32 %v1206_v5, %v1209_v41 }
 0x354   :  { %1490 = vrot.lane.b32.xlu0 %v9230_v40, %s8908_s2 }
 0x355   :  { %v1211_v43 = vmul.f32 1.442695, %v1210_v42 }
 0x357   :  { %8685 = vpow2.f32 %v1211_v43 }
 0x35a   :  { %v1350_v45 = vpop.xlane.xlu0 %1349  ;;  %v1015_v53 = vpop.xlane.xlu1 %1014 }
 0x35b   :  { %v1351_v46 = vsub.f32 %v1347_v13, %v1350_v45  ;;  %v1016_v52 = vsub.f32 %v1011_v12, %v1015_v53 }
 0x35d   :  { %v8686_v47 = vpop.eup %8685  ;;  %v1352_v48 = vmul.f32 1.442695, %v1351_v46  ;;  %v1017_v56 = vmul.f32 1.442695, %v1016_v52  ;;  %v8231_v52 = vld [vmem:[#allocation4 + $0x74] sm:$0xf0] }
 0x35e   :  { %v1213_v49 = vsel %vm1012_vm8, %v8686_v47, 0.0 }
 0x35f   :  { %8687 = vpow2.f32 %v1352_v48  ;;  %1214 = vadd.xlane.f32.xlu1 %v1213_v49 }
 0x362   :  { %v1480_v36 = vpop.xlane.xlu2 %1479 }
 0x363   :  { %v1481_v50 = vsub.f32 %v1477_v22, %v1480_v36 }
 0x365   :  { %v8688_v51 = vpop.eup %8687  ;;  %v1482_v54 = vmul.f32 1.442695, %v1481_v50 }
 0x366   :  { %v1354_v55 = vsel %vm1012_vm8, %v8688_v51, 0.0 }
 0x367   :  { %8689 = vpow2.f32 %v1482_v54  ;;  %1355 = vadd.xlane.f32.xlu1 %v1354_v55  ;;  %v8230_v54 = vld [vmem:[#allocation4 + $0x74] sm:$0xf]  ;;  %v6482_v55 = vld [vmem:[#allocation4 + $0x78] sm:$0xf0] }
 0x368   :  { %8691 = vpow2.f32 %v1017_v56  ;;  %v6472_v56 = vld [vmem:[#allocation4 + $0x60] sm:$0xf]  ;;  %v6485_v59 = vor.u32 %v8230_v54, %v6482_v55  ;;  %v6538_v54 = vld [vmem:[#allocation4 + $0xe8] sm:$0xf0] }
 0x369   :  { %8693 = vpow2.f32 %v1147_v6  ;;  %v8226_v6 = vld [vmem:[#allocation4 + $0x54] sm:$0xf] }
 0x36a   :  { %v1286_v58 = vpop.xlane.xlu2 %1285  ;;  %1754 = vmatpush.bf16.msrb.mxu2 %v6485_v59  ;;  %v8242_v59 = vld [vmem:[#allocation4 + $0xd4] sm:$0xf] }
 0x36b   :  { %v1287_v1 = vsub.f32 %v1283_v25, %v1286_v58  ;;  %v8229_v58 = vld [vmem:[#allocation4 + $0x64] sm:$0xf0] }
 0x36d   :  { %v8690_v60 = vpop.eup %8689  ;;  %v8646_v23 = vpop.permute.xlu0 %8645  ;;  %v1288_v8 = vmul.f32 1.442695, %v1287_v1  ;;  %v6474_v1 = vld [vmem:[#allocation4 + $0x68] sm:$0xf0] }
 0x36e   :  { %v8648_v63 = vunpack.i.h.bf16 %v8646_v23  ;;  %v8647_v2 = vunpack.i.l.bf16 %v8646_v23  ;;  %v1484_v5 = vsel %vm1012_vm8, %v8690_v60, 0.0  ;;  %v8692_v10 = vpop.eup %8691  ;;  %v6473_v23 = vor.u32 %v8229_v58, %v6472_v56  ;;  %v6528_v56 = vld [vmem:[#allocation4 + $0xd0] sm:$0xf]  ;;  %v8243_v58 = vld [vmem:[#allocation4 + $0xd4] sm:$0xf0] }
 0x36f   :  { %1485 = vadd.xlane.f32.xlu1 %v1484_v5  ;;  %8695 = vpow2.f32 %v1288_v8  ;;  %v1019_v61 = vsel %vm1012_vm8, %v8692_v10, 0.0  ;;  %v8694_v14 = vpop.eup %8693  ;;  %v8227_v5 = vld [vmem:[#allocation4 + $0x54] sm:$0xf0]  ;;  %v6466_v8 = vld [vmem:[#allocation4 + $0x58] sm:$0xf0] }
 0x370   :  { %1110 = vmatpush.msrb.mxu3 %v8647_v2  ;;  %v1149_v7 = vsel %vm1012_vm8, %v8694_v14, 0.0  ;;  %v6464_v2 = vld [vmem:[#allocation4 + $0x50] sm:$0xf] }
 0x372   :  { %1240 = vmatpush.msra.mxu3 %v8648_v63  ;;  %v1416_v9 = vpop.xlane.xlu2 %1415 }
 0x373   :  { %v1417_v12 = vsub.f32 %v1413_v30, %v1416_v9 }
 0x375   :  { %v1418_v13 = vmul.f32 1.442695, %v1417_v12  ;;  %v8696_v15 = vpop.eup %8695  ;;  %v6465_v12 = vor.u32 %v8227_v5, %v6464_v2  ;;  %v8241_v2 = vld [vmem:[#allocation4 + $0xc4] sm:$0xf0] }
 0x376   :  { %v1290_v17 = vsel %vm1012_vm8, %v8696_v15, 0.0 }
 0x377   :  { %1020 = vadd.xlane.f32.xlu1 %v1019_v61  ;;  %8697 = vpow2.f32 %v1418_v13  ;;  %v6469_v61 = vor.u32 %v8226_v6, %v6466_v8  ;;  %v6456_v13 = vld [vmem:[#allocation4 + $0x40] sm:$0xf]  ;;  %v8240_v6 = vld [vmem:[#allocation4 + $0xc4] sm:$0xf]  ;;  %v6522_v8 = vld [vmem:[#allocation4 + $0xc8] sm:$0xf0] }
 0x37a   :  { %v1361_v26 = vpop.permute.xlu2 %1360 }
 0x37d   :  { %v8698_v21 = vpop.eup %8697 }
 0x37e   :  { %1150 = vadd.xlane.f32.xlu0 %v1149_v7  ;;  %v1420_v22 = vsel %vm1012_vm8, %v8698_v21, 0.0  ;;  %v6458_v7 = vld [vmem:[#allocation4 + $0x48] sm:$0xf0] }
 0x37f   :  { %1291 = vadd.xlane.f32.xlu1 %v1290_v17 }
 0x387   :  { %1421 = vadd.xlane.f32.xlu1 %v1420_v22  ;;  %v6448_v22 = vld [vmem:[#allocation4 + $0x30] sm:$0xf] }
 0x3b3   :  { %v1085_v0 = vpop.xlane.xlu0 %1084 }
 0x3b4   :  { %8699 = vrcp.f32 %v1085_v0  ;;  %v8223_v0 = vld [vmem:[#allocation4 + $0x34] sm:$0xf0] }
 0x3ba   :  { %v8700_v24 = vpop.eup %8699 }
 0x3bb   :  { %v1087_v25 = vmul.f32 %v8700_v24, %v9224_v38  ;;  %v8222_v24 = vld [vmem:[#allocation4 + $0x34] sm:$0xf] }
 0x3bd   :  { %6403 = vmatmul.msk.f32.vlgmr.msrb.gmra.mxu3 %vm1012_vm8, %v1087_v25  ;;  %v6450_v25 = vld [vmem:[#allocation4 + $0x38] sm:$0xf0] }
 0x3be   :  { %1381 = vmatpush.msrb.mxu3 %v1361_v26  ;;  %v6449_v26 = vor.u32 %v8223_v0, %v6448_v22  ;;  %v8236_v22 = vld [vmem:[#allocation4 + $0xa4] sm:$0xf]  ;;  %v6506_v0 = vld [vmem:[#allocation4 + $0xa8] sm:$0xf0] }
 0x3c6   :  { %v1491_v3 = vpop.permute.xlu0 %1490 }
 0x3d2   :  { %v1215_v27 = vpop.xlane.xlu1 %1214 }
 0x3d3   :  { %8701 = vrcp.f32 %v1215_v27  ;;  %v6453_v27 = vor.u32 %v8222_v24, %v6450_v25 }
 0x3d9   :  { %v8702_v29 = vpop.eup %8701 }
 0x3da   :  { %v1217_v30 = vmul.f32 %v8702_v29, %v8686_v47  ;;  %v1356_v31 = vpop.xlane.xlu1 %1355  ;;  %v6440_v29 = vld [vmem:[#allocation4 + $0x20] sm:$0xf] }
 0x3db   :  { %8703 = vrcp.f32 %v1356_v31  ;;  %v8220_v31 = vld [vmem:[#allocation4 + $0x24] sm:$0xf] }
 0x3dc   :  { %6409 = vmatmul.msk.f32.vlgmr.msra.gmra.mxu3 %vm1012_vm8, %v1217_v30  ;;  %v8221_v30 = vld [vmem:[#allocation4 + $0x24] sm:$0xf0] }
 0x3dd   :  { %1511 = vmatpush.msra.mxu3 %v1491_v3  ;;  %v6442_v3 = vld [vmem:[#allocation4 + $0x28] sm:$0xf0] }
 0x3e1   :  { %v8704_v32 = vpop.eup %8703 }
 0x3e2   :  { %v1358_v4 = vmul.f32 %v8704_v32, %v8688_v51  ;;  %v1486_v34 = vpop.xlane.xlu1 %1485  ;;  %v6480_v51 = vld [vmem:[#allocation4 + $0x70] sm:$0xf]  ;;  %v6441_v32 = vor.u32 %v8221_v30, %v6440_v29  ;;  %v8235_v29 = vld [vmem:[#allocation4 + $0x94] sm:$0xf0]  ;;  %v8234_v30 = vld [vmem:[#allocation4 + $0x94] sm:$0xf] }
 0x3e3   :  { %8705 = vrcp.f32 %v1486_v34  ;;  %v6432_v34 = vld [vmem:[#allocation4 + $0x10] sm:$0xf] }
 0x3e4   :  { %6415 = vmatmul.msk.f32.vlgmr.msrb.gmra.mxu3 %vm1012_vm8, %v1358_v4  ;;  %v6445_v4 = vor.u32 %v8220_v31, %v6442_v3  ;;  %v6498_v31 = vld [vmem:[#allocation4 + $0x98] sm:$0xf0] }
 0x3e9   :  { %v8706_v37 = vpop.eup %8705 }
 0x3ea   :  { %v1488_v38 = vmul.f32 %v8706_v37, %v8690_v60  ;;  %v1021_v35 = vpop.xlane.xlu1 %1020  ;;  %v8228_v60 = vld [vmem:[#allocation4 + $0x64] sm:$0xf]  ;;  %v8219_v37 = vld [vmem:[#allocation4 + $0x14] sm:$0xf0] }
 0x3eb   :  { %8707 = vrcp.f32 %v1021_v35  ;;  %v6477_v63 = vor.u32 %v8228_v60, %v6474_v1  ;;  %v6434_v35 = vld [vmem:[#allocation4 + $0x18] sm:$0xf0]  ;;  %v6529_v1 = vor.u32 %v8243_v58, %v6528_v56 }
 0x3ec   :  { %6421 = vmatmul.msk.f32.vlgmr.msra.gmra.mxu3 %vm1012_vm8, %v1488_v38  ;;  %v8218_v38 = vld [vmem:[#allocation4 + $0x14] sm:$0xf]  ;;  %v6530_v60 = vld [vmem:[#allocation4 + $0xd8] sm:$0xf0] }
 0x3ed   :  { %1755 = vmatpush.bf16.msrb.mxu2 %v6477_v63  ;;  %v6520_v63 = vld [vmem:[#allocation4 + $0xc0] sm:$0xf] }
 0x3f1   :  { %v8708_v39 = vpop.eup %8707  ;;  %v1151_v28 = vpop.xlane.xlu0 %1150  ;;  %1756 = vmatpush.bf16.msrb.mxu2 %v6469_v61  ;;  %v8239_v61 = vld [vmem:[#allocation4 + $0xb4] sm:$0xf0] }
 0x3f2   :  { %v1023_v41 = vmul.f32 %v8708_v39, %v8692_v10  ;;  %8709 = vrcp.f32 %v1151_v28  ;;  %v1292_v42 = vpop.xlane.xlu1 %1291  ;;  %v6433_v39 = vor.u32 %v8219_v37, %v6432_v34  ;;  %v6437_v28 = vor.u32 %v8218_v38, %v6434_v35  ;;  %v6488_v38 = vld [vmem:[#allocation4 + $0x80] sm:$0xf]  ;;  %v8233_v35 = vld [vmem:[#allocation4 + $0x84] sm:$0xf0] }
 0x3f3   :  { %8711 = vrcp.f32 %v1292_v42  ;;  %v8217_v42 = vld [vmem:[#allocation4 + $0x4] sm:$0xf0] }
 0x3f4   :  { %6400 = vmatmul.msk.f32.vlgmr.msrb.gmra.mxu1 %vm1012_vm8, %v1023_v41  ;;  %v6424_v41 = vld [vmem:[#allocation4] sm:$0xf] }
 0x3f5   :  { %1313 = vmatpush.msrb.mxu1 %v9220_v33 }
 0x3f8   :  { %v8710_v43 = vpop.eup %8709 }
 0x3f9   :  { %v1153_v44 = vmul.f32 %v8710_v43, %v8694_v14  ;;  %v8712_v46 = vpop.eup %8711  ;;  %v8225_v14 = vld [vmem:[#allocation4 + $0x44] sm:$0xf0]  ;;  %v8216_v43 = vld [vmem:[#allocation4 + $0x4] sm:$0xf] }
 0x3fa   :  { %v1422_v45 = vpop.xlane.xlu1 %1421  ;;  %v1294_v47 = vmul.f32 %v8712_v46, %v8696_v15  ;;  %v8224_v15 = vld [vmem:[#allocation4 + $0x44] sm:$0xf]  ;;  %v6457_v17 = vor.u32 %v8225_v14, %v6456_v13  ;;  %v8238_v13 = vld [vmem:[#allocation4 + $0xb4] sm:$0xf]  ;;  %v6514_v14 = vld [vmem:[#allocation4 + $0xb8] sm:$0xf0] }
 0x3fb   :  { %8713 = vrcp.f32 %v1422_v45  ;;  %v6426_v45 = vld [vmem:[#allocation4 + $0x8] sm:$0xf0] }
 0x3fc   :  { %6406 = vmatmul.msk.f32.vlgmr.msra.gmra.mxu1 %vm1012_vm8, %v1153_v44  ;;  %v6425_v44 = vor.u32 %v8217_v42, %v6424_v41  ;;  %v6429_v46 = vor.u32 %v8216_v43, %v6426_v45  ;;  %v6489_v41 = vor.u32 %v8233_v35, %v6488_v38  ;;  %v6490_v42 = vld [vmem:[#allocation4 + $0x88] sm:$0xf0]  ;;  %v6650_v38 = vld [vmem:[#allocation6 + $0xd0] sm:$0xf0]  ;;  %v8304_v35 = vld [vmem:[#allocation6 + $0x1c4] sm:$0xf] }
 0x3fd   :  { %1443 = vmatpush.msra.mxu1 %v9230_v40  ;;  %v6481_v40 = vor.u32 %v8231_v52, %v6480_v51  ;;  %v8244_v52 = vld [vmem:[#allocation4 + $0xe4] sm:$0xf] }
 0x3fe   :  { %v6541_v55 = vor.u32 %v8244_v52, %v6538_v54 }
 0x3ff   :  { %1726 = vmatpush.bf16.msrb.mxu0 %v6481_v40 }
 0x401   :  { %v8714_v48 = vpop.eup %8713 }
 0x402   :  { %v1424_v49 = vmul.f32 %v8714_v48, %v8698_v21  ;;  %v6461_v21 = vor.u32 %v8224_v15, %v6458_v7  ;;  %v8247_v48 = vld [vmem:[#allocation4 + $0xf4] sm:$0xf0]  ;;  %v6517_v7 = vor.u32 %v8238_v13, %v6514_v14 }
 0x403   :  { %1727 = vmatpush.bf16.msrb.mxu0 %v6473_v23  ;;  %v6533_v23 = vor.u32 %v8242_v59, %v6530_v60 }
 0x404   :  { %6412 = vmatmul.msk.f32.vlgmr.msrb.gmra.mxu1 %vm1012_vm8, %v1294_v47  ;;  %1757 = vmatpush.bf16.msrb.mxu2 %v6461_v21  ;;  %v6544_v47 = vld [vmem:[#allocation4 + $0xf0] sm:$0xf]  ;;  %v8237_v21 = vld [vmem:[#allocation4 + $0xa4] sm:$0xf0] }
 0x407   :  { %1728 = vmatpush.bf16.msrb.mxu0 %v6465_v12  ;;  %v6512_v12 = vld [vmem:[#allocation4 + $0xb0] sm:$0xf] }
 0x408   :  { %1758 = vmatpush.bf16.msrb.mxu2 %v6453_v27  ;;  %v6513_v15 = vor.u32 %v8239_v61, %v6512_v12  ;;  %v6496_v27 = vld [vmem:[#allocation4 + $0x90] sm:$0xf] }
 0x409   :  { %v6497_v3 = vor.u32 %v8235_v29, %v6496_v27  ;;  %v8308_v29 = vld [vmem:[#allocation6 + $0x1e4] sm:$0xf] }
 0x40b   :  { %1729 = vmatpush.bf16.msrb.mxu0 %v6457_v17  ;;  %v6504_v17 = vld [vmem:[#allocation4 + $0xa0] sm:$0xf] }
 0x40c   :  { %6418 = vmatmul.msk.f32.vlgmr.msra.gmra.mxu1 %vm1012_vm8, %v1424_v49  ;;  %1759 = vmatpush.bf16.msrb.mxu2 %v6445_v4  ;;  %v8246_v49 = vld [vmem:[#allocation4 + $0xf4] sm:$0xf]  ;;  %v6505_v25 = vor.u32 %v8237_v21, %v6504_v17  ;;  %v6664_v21 = vld [vmem:[#allocation6 + $0xe0] sm:$0xf] }
 0x40f   :  { %1730 = vmatpush.bf16.msrb.mxu0 %v6449_v26  ;;  %v6509_v26 = vor.u32 %v8236_v22, %v6506_v0  ;;  %v8278_v22 = vld [vmem:[#allocation6 + $0xec] sm:$0xf0] }
 0x410   :  { %1760 = vmatpush.bf16.msrb.mxu2 %v6437_v28  ;;  %v6665_v0 = vor.u32 %v8278_v22, %v6664_v21  ;;  %v6600_v22 = vld [vmem:[#allocation6 + $0x60] sm:$0xf] }
 0x413   :  { %1731 = vmatpush.bf16.msrb.mxu0 %v6441_v32  ;;  %v6501_v32 = vor.u32 %v8234_v30, %v6498_v31  ;;  %v6794_v30 = vld [vmem:[#allocation6 + $0x1f0] sm:$0xf0]  ;;  %v6648_v31 = vld [vmem:[#allocation6 + $0xc0] sm:$0xf] }
 0x414   :  { %1761 = vmatpush.bf16.msrb.mxu2 %v6429_v46 }
 0x417   :  { %1732 = vmatpush.bf16.msrb.mxu0 %v6433_v39  ;;  %v8232_v39 = vld [vmem:[#allocation4 + $0x84] sm:$0xf] }
 0x418   :  { %v6493_v45 = vor.u32 %v8232_v39, %v6490_v42 }
 0x41b   :  { %1733 = vmatpush.bf16.msrb.mxu0 %v6425_v44 }
 0x41f   :  { %2252 = vmatpush.bf16.msra.mxu0 %v6665_v0  ;;  %v6728_v0 = vld [vmem:[#allocation6 + $0x160] sm:$0xf] }
 0x440   :  { %v1112_v53 = vpop.f32.mrf.mxu3 }
 0x45f   :  { %v1242_v36 = vpop.f32.mrf.mxu3 }
 0x467   :  { %v1383_v33 = vpop.f32.mrf.mxu3 }
 0x468   :  { %v8649_v50 = vpack.i.bf16 %v1383_v33, %v1112_v53  ;;  %v6545_v53 = vor.u32 %v8247_v48, %v6544_v47  ;;  %v6536_v33 = vld [vmem:[#allocation4 + $0xe0] sm:$0xf] }
 0x46a   :  { %8650 = vrot.lane.b32.xlu2 %v8649_v50, %s8908_s2  ;;  %v8245_v50 = vld [vmem:[#allocation4 + $0xe4] sm:$0xf0]  ;;  %1740 = vmatpush.bf16.msrb.mxu1 %v6545_v53 }
 0x46b   :  { %v6537_v40 = vor.u32 %v8245_v50, %v6536_v33 }
 0x46e   :  { %1741 = vmatpush.bf16.msrb.mxu1 %v6537_v40 }
 0x46f   :  { %v1513_v9 = vpop.f32.mrf.mxu3 }
 0x470   :  { %v8654_v10 = vpack.i.bf16 %v1513_v9, %v1242_v36  ;;  %v6546_v36 = vld [vmem:[#allocation4 + $0xf8] sm:$0xf0]  ;;  %v6521_v9 = vor.u32 %v8241_v2, %v6520_v63 }
 0x471   :  { %v6549_v51 = vor.u32 %v8246_v49, %v6546_v36  ;;  %v1044_v5 = vpop.f32.mrf.mxu1 }
 0x472   :  { %8655 = vrot.lane.b32.xlu1 %v8654_v10, %s8908_s2  ;;  %1742 = vmatpush.bf16.msrb.mxu1 %v6529_v1  ;;  %v6525_v10 = vor.u32 %v8240_v6, %v6522_v8 }
 0x473   :  { %1768 = vmatpush.bf16.msrb.mxu3 %v6549_v51  ;;  %v1560_v51 = vld [vmem:[%s9981_s4] sm:$0x3] }
 0x474   :  { %v1562_v54 = vperm.slane %v1560_v51, 0  ;;  %v1563_v56 = vperm.slane %v1560_v51, 1 }
 0x476   :  { %1743 = vmatpush.bf16.msrb.mxu1 %v6521_v9 }
 0x477   :  { %1769 = vmatpush.bf16.msrb.mxu3 %v6541_v55 }
 0x479   :  { %v1174_v24 = vpop.f32.mrf.mxu1 }
 0x47a   :  { %1744 = vmatpush.bf16.msrb.mxu1 %v6513_v15 }
 0x47b   :  { %1770 = vmatpush.bf16.msrb.mxu3 %v6533_v23 }
 0x47e   :  { %1745 = vmatpush.bf16.msrb.mxu1 %v6505_v25  ;;  %v6666_v25 = vld [vmem:[#allocation6 + $0xf0] sm:$0xf0] }
 0x47f   :  { %1771 = vmatpush.bf16.msrb.mxu3 %v6525_v10 }
 0x481   :  { %v1315_v28 = vpop.f32.mrf.mxu1 }
 0x482   :  { %1746 = vmatpush.bf16.msrb.mxu1 %v6497_v3  ;;  %v6797_v3 = vor.u32 %v8308_v29, %v6794_v30  ;;  %v8292_v30 = vld [vmem:[#allocation6 + $0x164] sm:$0xf] }
 0x483   :  { %1772 = vmatpush.bf16.msrb.mxu3 %v6517_v7 }
 0x486   :  { %1747 = vmatpush.bf16.msrb.mxu1 %v6489_v41 }
 0x487   :  { %1773 = vmatpush.bf16.msrb.mxu3 %v6509_v26 }
 0x489   :  { %v1445_v53 = vpop.f32.mrf.mxu1 }
 0x48b   :  { %1774 = vmatpush.bf16.msrb.mxu3 %v6501_v32  ;;  %v8274_v32 = vld [vmem:[#allocation6 + $0xcc] sm:$0xf0] }
 0x48f   :  { %1775 = vmatpush.bf16.msrb.mxu3 %v6493_v45 }
 0x493   :  { %2294 = vmatpush.bf16.msra.mxu3 %v6797_v3 }
 0x4c4   :  { %v8651_v4 = vpop.permute.xlu2 %8650 }
 0x4c5   :  { %v8653_v34 = vunpack.i.h.bf16 %v8651_v4  ;;  %v8652_v37 = vunpack.i.l.bf16 %v8651_v4  ;;  %v8306_v4 = vld [vmem:[#allocation6 + $0x1cc] sm:$0xf0] }
 0x4c7   :  { %v1253_v43 = vsel %vm982_vm7, %v1044_v5, %v8652_v37  ;;  %v1524_v44 = vsel %vm982_vm7, %v1315_v28, %v8653_v34  ;;  %v8272_v37 = vld [vmem:[#allocation6 + $0xc4] sm:$0xf]  ;;  %v6778_v28 = vld [vmem:[#allocation6 + $0x1d0] sm:$0xf0] }
 0x4c8   :  { %v1526_v46 = vpack.c.bf16 %v1524_v44, %v1253_v43  ;;  %v6653_v39 = vor.u32 %v8272_v37, %v6650_v38  ;;  %v6781_v41 = vor.u32 %v8304_v35, %v6778_v28  ;;  %v8256_v37 = vld [vmem:[#allocation6 + $0x44] sm:$0xf]  ;;  %v6586_v38 = vld [vmem:[#allocation6 + $0x50] sm:$0xf0] }
 0x4c9   :  { %v8288_v28 = vld [vmem:[#allocation6 + $0x144] sm:$0xf] }
 0x4ca   :  { %1734 = vmatmul.bf16.vlgmr.msrb.gmra.mxu0 %v1526_v46  ;;  %1762 = vmatmul.bf16.vlgmr.msrb.gmra.mxu2 %v1526_v46 }
 0x4cb   :  { %2295 = vmatpush.bf16.msra.mxu3 %v6781_v41  ;;  %v6714_v41 = vld [vmem:[#allocation6 + $0x150] sm:$0xf0] }
 0x4e4   :  { %v8656_v47 = vpop.permute.xlu1 %8655 }
 0x4e5   :  { %v8658_v48 = vunpack.i.h.bf16 %v8656_v47  ;;  %v8657_v49 = vunpack.i.l.bf16 %v8656_v47 }
 0x4e7   :  { %v1525_v36 = vsel %vm982_vm7, %v1445_v53, %v8658_v48  ;;  %v1254_v33 = vsel %vm982_vm7, %v1174_v24, %v8657_v49  ;;  %v8276_v24 = vld [vmem:[#allocation6 + $0xe4] sm:$0xf] }
 0x4e8   :  { %v1527_v50 = vpack.c.bf16 %v1525_v36, %v1254_v33  ;;  %v6669_v27 = vor.u32 %v8276_v24, %v6666_v25  ;;  %v8294_v24 = vld [vmem:[#allocation6 + $0x16c] sm:$0xf0]  ;;  %v8260_v25 = vld [vmem:[#allocation6 + $0x64] sm:$0xf] }
 0x4ea   :  { %1748 = vmatmul.bf16.vlgmr.msrb.gmra.mxu1 %v1527_v50  ;;  %1776 = vmatmul.bf16.vlgmr.msrb.gmra.mxu3 %v1527_v50 }
 0x4eb   :  { %2280 = vmatpush.bf16.msra.mxu2 %v6669_v27  ;;  %v6729_v27 = vor.u32 %v8294_v24, %v6728_v0  ;;  %v6656_v0 = vld [vmem:[#allocation6 + $0xc8] sm:$0xf] }
 0x4ef   :  { %2281 = vmatpush.bf16.msra.mxu2 %v6653_v39  ;;  %v6589_v39 = vor.u32 %v8256_v37, %v6586_v38  ;;  %v6768_v37 = vld [vmem:[#allocation6 + $0x1a8] sm:$0xf] }
 0x547   :  { %v1735_v52 = vpop.f32.mrf.mxu0 }
 0x548   :  { %v1736_v58 = vadd.f32 %v1735_v52, %v1562_v54 }
 0x54d   :  { %v1763_v40 = vpop.f32.mrf.mxu2 }
 0x54e   :  { %v1764_v59 = vadd.f32 %v1763_v40, %v1563_v56  ;;  %v8270_v40 = vld [vmem:[#allocation6 + $0xac] sm:$0xf0] }
 0x54f   :  { %v1737_v63 = vpop.f32.mrf.mxu0 }
 0x550   :  { %v1738_v9 = vadd.f32 %v1737_v63, %v1562_v54  ;;  %v6632_v54 = vld [vmem:[#allocation6 + $0xa0] sm:$0xf]  ;;  %v8300_v63 = vld [vmem:[#allocation6 + $0x1a4] sm:$0xf] }
 0x555   :  { %v1765_v6 = vpop.f32.mrf.mxu2 }
 0x556   :  { %v1766_v12 = vadd.f32 %v1765_v6, %v1563_v56  ;;  %v6633_v56 = vor.u32 %v8270_v40, %v6632_v54  ;;  %v6616_v6 = vld [vmem:[#allocation6 + $0x80] sm:$0xf]  ;;  %v8284_v54 = vld [vmem:[#allocation6 + $0x124] sm:$0xf]  ;;  %v6698_v40 = vld [vmem:[#allocation6 + $0x130] sm:$0xf0] }
 0x567   :  { %v1749_v55 = vpop.f32.mrf.mxu1 }
 0x568   :  { %v1750_v60 = vadd.f32 %v1749_v55, %v1736_v58  ;;  %v6760_v55 = vld [vmem:[#allocation6 + $0x1a0] sm:$0xf]  ;;  %v8302_v58 = vld [vmem:[#allocation6 + $0x1ac] sm:$0xf0] }
 0x56a   :  { %v1782_v2 = vadd.f32 %v1750_v60, %v9113_v16  ;;  %v6792_v16 = vld [vmem:[#allocation6 + $0x1e0] sm:$0xf]  ;;  %v6634_v60 = vld [vmem:[#allocation6 + $0xb0] sm:$0xf0] }
 0x56d   :  { %v1777_v1 = vpop.f32.mrf.mxu3 }
 0x56e   :  { %v1778_v23 = vadd.f32 %v1777_v1, %v1764_v59  ;;  %v8268_v59 = vld [vmem:[#allocation6 + $0xa4] sm:$0xf]  ;;  %v6761_v1 = vor.u32 %v8302_v58, %v6760_v55  ;;  %v6701_v55 = vor.u32 %v8284_v54, %v6698_v40  ;;  %v8250_v58 = vld [vmem:[#allocation6 + $0xc] sm:$0xf0]  ;;  %v8265_v54 = vld [vmem:[#allocation6 + $0x8c] sm:$0xf] }
 0x56f   :  { %v1751_v8 = vpop.f32.mrf.mxu1  ;;  %v6626_v40 = vld [vmem:[#allocation6 + $0x98] sm:$0xf0] }
 0x570   :  { %v1783_v5 = vadd.f32 %v1778_v23, %v9115_v18  ;;  %v1752_v61 = vadd.f32 %v1751_v8, %v1738_v9  ;;  %v8310_v18 = vld [vmem:[#allocation6 + $0x1ec] sm:$0xf0]  ;;  %v6637_v23 = vor.u32 %v8268_v59, %v6634_v60  ;;  %v6744_v9 = vld [vmem:[#allocation6 + $0x180] sm:$0xf] }
 0x571   :  { %v6793_v26 = vor.u32 %v8310_v18, %v6792_v16  ;;  %v8266_v8 = vld [vmem:[#allocation6 + $0x8c] sm:$0xf0]  ;;  %v6680_v59 = vld [vmem:[#allocation6 + $0x100] sm:$0xf] }
 0x572   :  { %v1788_v10 = vadd.f32 %v1783_v5, %v1782_v2  ;;  %v1784_v15 = vadd.f32 %v1752_v61, %v9117_v19  ;;  %v6776_v19 = vld [vmem:[#allocation6 + $0x1c0] sm:$0xf]  ;;  %2282 = vmatpush.bf16.msra.mxu2 %v6637_v23  ;;  %v8264_v61 = vld [vmem:[#allocation6 + $0x84] sm:$0xf]  ;;  %v8262_v16 = vld [vmem:[#allocation6 + $0x6c] sm:$0xf0] }
 0x573   :  { %2266 = vmatpush.bf16.msra.mxu1 %v6793_v26  ;;  %v6777_v34 = vor.u32 %v8306_v4, %v6776_v19  ;;  %v6601_v18 = vor.u32 %v8262_v16, %v6600_v22  ;;  %v6602_v26 = vld [vmem:[#allocation6 + $0x70] sm:$0xf0]  ;;  %v8258_v19 = vld [vmem:[#allocation6 + $0x4c] sm:$0xf0]  ;;  %v6712_v4 = vld [vmem:[#allocation6 + $0x140] sm:$0xf] }
 0x574   :  { %1789 = vadd.xlane.f32.xlu2 %v1788_v10  ;;  %v6617_v10 = vor.u32 %v8266_v8, %v6616_v6  ;;  %v6605_v29 = vor.u32 %v8260_v25, %v6602_v26  ;;  %v8248_v23 = vld [vmem:[#allocation6 + $0x4] sm:$0xf]  ;;  %v6682_v8 = vld [vmem:[#allocation6 + $0x110] sm:$0xf0]  ;;  %v6802_v16 = vld [vmem:[#allocation6 + $0x1f8] sm:$0xf0] }
 0x575   :  { %v1779_v13 = vpop.f32.mrf.mxu3  ;;  %v8280_v6 = vld [vmem:[#allocation6 + $0x104] sm:$0xf]  ;;  %v6784_v26 = vld [vmem:[#allocation6 + $0x1c8] sm:$0xf] }
 0x576   :  { %v1780_v14 = vadd.f32 %v1779_v13, %v1766_v12  ;;  %v8298_v12 = vld [vmem:[#allocation6 + $0x18c] sm:$0xf0]  ;;  %v6618_v13 = vld [vmem:[#allocation6 + $0x90] sm:$0xf0] }
 0x577   :  { %2267 = vmatpush.bf16.msra.mxu1 %v6777_v34  ;;  %v8290_v34 = vld [vmem:[#allocation6 + $0x14c] sm:$0xf0] }
 0x578   :  { %v1785_v7 = vadd.f32 %v1780_v14, %v9119_v20  ;;  %v6649_v20 = vor.u32 %v8274_v32, %v6648_v31  ;;  %v6745_v14 = vor.u32 %v8298_v12, %v6744_v9  ;;  %v6730_v31 = vld [vmem:[#allocation6 + $0x170] sm:$0xf0]  ;;  %v6584_v32 = vld [vmem:[#allocation6 + $0x40] sm:$0xf]  ;;  %v6713_v35 = vor.u32 %v8290_v34, %v6712_v4  ;;  %v6672_v9 = vld [vmem:[#allocation6 + $0xe8] sm:$0xf] }
 0x579   :  { %v6733_v3 = vor.u32 %v8292_v30, %v6730_v31  ;;  %v8279_v12 = vld [vmem:[#allocation6 + $0xf4] sm:$0xf0]  ;;  %v6658_v31 = vld [vmem:[#allocation6 + $0xd8] sm:$0xf0] }
 0x57a   :  { %v1791_v17 = vadd.f32 %v1785_v7, %v1784_v15  ;;  %2253 = vmatpush.bf16.msra.mxu0 %v6649_v20  ;;  %v6585_v20 = vor.u32 %v8258_v19, %v6584_v32  ;;  %v6786_v32 = vld [vmem:[#allocation6 + $0x1d8] sm:$0xf0]  ;;  %v8271_v34 = vld [vmem:[#allocation6 + $0xb4] sm:$0xf0] }
 0x57b   :  { %2268 = vmatpush.bf16.msra.mxu1 %v6761_v1  ;;  %v8282_v1 = vld [vmem:[#allocation6 + $0x10c] sm:$0xf0] }
 0x57c   :  { %1792 = vadd.xlane.f32.xlu0 %v1791_v17  ;;  %v6746_v17 = vld [vmem:[#allocation6 + $0x190] sm:$0xf0] }
 0x57e   :  { %2254 = vmatpush.bf16.msra.mxu0 %v6633_v56  ;;  %v6552_v56 = vld [vmem:[#allocation6] sm:$0xf] }
 0x57f   :  { %2269 = vmatpush.bf16.msra.mxu1 %v6745_v14  ;;  %v6553_v60 = vor.u32 %v8250_v58, %v6552_v56  ;;  %v6673_v14 = vor.u32 %v8279_v12, %v6672_v9  ;;  %v8261_v9 = vld [vmem:[#allocation6 + $0x6c] sm:$0xf] }
 0x582   :  { %2255 = vmatpush.bf16.msra.mxu0 %v6617_v10  ;;  %v6685_v10 = vor.u32 %v8280_v6, %v6682_v8  ;;  %v8295_v8 = vld [vmem:[#allocation6 + $0x174] sm:$0xf0] }
 0x583   :  { %2270 = vmatpush.bf16.msra.mxu1 %v6729_v27  ;;  %v8307_v27 = vld [vmem:[#allocation6 + $0x1d4] sm:$0xf0] }
 0x584   :  { %v6785_v30 = vor.u32 %v8307_v27, %v6784_v26 }
 0x586   :  { %2256 = vmatpush.bf16.msra.mxu0 %v6601_v18  ;;  %v8275_v18 = vld [vmem:[#allocation6 + $0xd4] sm:$0xf0] }
 0x587   :  { %2271 = vmatpush.bf16.msra.mxu1 %v6713_v35  ;;  %v6657_v25 = vor.u32 %v8275_v18, %v6656_v0  ;;  %v8303_v35 = vld [vmem:[#allocation6 + $0x1b4] sm:$0xf0]  ;;  %v8257_v18 = vld [vmem:[#allocation6 + $0x4c] sm:$0xf] }
 0x588   :  { %v8291_v0 = vld [vmem:[#allocation6 + $0x154] sm:$0xf0] }
 0x58a   :  { %2257 = vmatpush.bf16.msra.mxu0 %v6585_v20  ;;  %v6640_v20 = vld [vmem:[#allocation6 + $0xa8] sm:$0xf] }
 0x58b   :  { %v6641_v38 = vor.u32 %v8271_v34, %v6640_v20  ;;  %v6704_v20 = vld [vmem:[#allocation6 + $0x128] sm:$0xf]  ;;  %v8287_v34 = vld [vmem:[#allocation6 + $0x134] sm:$0xf0] }
 0x5e7   :  { %v1790_v42 = vpop.xlane.xlu2 %1789 }
 0x5e8   :  { %v1794_v43 = vmul.f32 %v1790_v42, %v9077_v62  ;;  %v6717_v42 = vor.u32 %v8288_v28, %v6714_v41  ;;  %v6642_v28 = vld [vmem:[#allocation6 + $0xb8] sm:$0xf0] }
 0x5ea   :  { %v9267_v44 = vsub.f32 %v1782_v2, %v1794_v43  ;;  %v9269_v45 = vsub.f32 %v1783_v5, %v1794_v43  ;;  %v6762_v2 = vld [vmem:[#allocation6 + $0x1b0] sm:$0xf0]  ;;  %v6568_v43 = vld [vmem:[#allocation6 + $0x20] sm:$0xf] }
 0x5eb   :  { %v6765_v5 = vor.u32 %v8300_v63, %v6762_v2  ;;  %v6554_v63 = vld [vmem:[#allocation6 + $0x10] sm:$0xf0]  ;;  %v6681_v2 = vor.u32 %v8282_v1, %v6680_v59  ;;  %v6629_v1 = vor.u32 %v8265_v54, %v6626_v40  ;;  %v6562_v54 = vld [vmem:[#allocation6 + $0x18] sm:$0xf0] }
 0x5ec   :  { %v1800_v46 = vmul.f32 %v9267_v44, %v9267_v44  ;;  %v1801_v47 = vmul.f32 %v9269_v45, %v9269_v45 }
 0x5ed   :  { %2296 = vmatpush.bf16.msra.mxu3 %v6765_v5  ;;  %v6557_v5 = vor.u32 %v8248_v23, %v6554_v63  ;;  %v6608_v63 = vld [vmem:[#allocation6 + $0x68] sm:$0xf] }
 0x5ee   :  { %v1804_v48 = vadd.f32 %v1801_v47, %v1800_v46  ;;  %v8254_v46 = vld [vmem:[#allocation6 + $0x2c] sm:$0xf0]  ;;  %v6696_v47 = vld [vmem:[#allocation6 + $0x120] sm:$0xf] }
 0x5ef   :  { %v1793_v49 = vpop.xlane.xlu0 %1792 }
 0x5f0   :  { %v1795_v53 = vmul.f32 %v1793_v49, %v9077_v62  ;;  %1805 = vadd.xlane.f32.xlu1 %v1804_v48  ;;  %v6569_v48 = vor.u32 %v8254_v46, %v6568_v43  ;;  %v8286_v49 = vld [vmem:[#allocation6 + $0x12c] sm:$0xf0]  ;;  %v8301_v46 = vld [vmem:[#allocation6 + $0x1ac] sm:$0xf] }
 0x5f2   :  { %v9276_v36 = vsub.f32 %v1784_v15, %v1795_v53  ;;  %v9278_v33 = vsub.f32 %v1785_v7, %v1795_v53  ;;  %v6621_v15 = vor.u32 %v8264_v61, %v6618_v13  ;;  %v8296_v7 = vld [vmem:[#allocation6 + $0x184] sm:$0xf]  ;;  %2258 = vmatpush.bf16.msra.mxu0 %v6569_v48  ;;  %v6800_v61 = vld [vmem:[#allocation6 + $0x1e8] sm:$0xf]  ;;  %v8311_v13 = vld [vmem:[#allocation6 + $0x1f4] sm:$0xf0] }
 0x5f3   :  { %v6749_v21 = vor.u32 %v8296_v7, %v6746_v17  ;;  %v8252_v53 = vld [vmem:[#allocation6 + $0x24] sm:$0xf]  ;;  %v8277_v7 = vld [vmem:[#allocation6 + $0xec] sm:$0xf]  ;;  %v6674_v17 = vld [vmem:[#allocation6 + $0xf8] sm:$0xf0] }
 0x5f4   :  { %v1802_v50 = vmul.f32 %v9276_v36, %v9276_v36  ;;  %v1803_v51 = vmul.f32 %v9278_v33, %v9278_v33  ;;  %2283 = vmatpush.bf16.msra.mxu2 %v6621_v15  ;;  %v6801_v15 = vor.u32 %v8311_v13, %v6800_v61  ;;  %v6677_v22 = vor.u32 %v8277_v7, %v6674_v17  ;;  %v6624_v48 = vld [vmem:[#allocation6 + $0x88] sm:$0xf] }
 0x5f5   :  { %2297 = vmatpush.bf16.msra.mxu3 %v6749_v21  ;;  %v8309_v21 = vld [vmem:[#allocation6 + $0x1ec] sm:$0xf]  ;;  %v6592_v7 = vld [vmem:[#allocation6 + $0x48] sm:$0xf] }
 0x5f6   :  { %v1807_v52 = vadd.f32 %v1803_v51, %v1802_v50  ;;  %v6570_v50 = vld [vmem:[#allocation6 + $0x30] sm:$0xf0]  ;;  %v6697_v51 = vor.u32 %v8286_v49, %v6696_v47  ;;  %2259 = vmatpush.bf16.msra.mxu0 %v6553_v60  ;;  %v6805_v24 = vor.u32 %v8309_v21, %v6802_v16  ;;  %v6770_v47 = vld [vmem:[#allocation6 + $0x1b8] sm:$0xf0]  ;;  %v6720_v16 = vld [vmem:[#allocation6 + $0x148] sm:$0xf] }
 0x5f7   :  { %v6754_v60 = vld [vmem:[#allocation6 + $0x198] sm:$0xf0] }
 0x5f8   :  { %1808 = vadd.xlane.f32.xlu0 %v1807_v52  ;;  %2284 = vmatpush.bf16.msra.mxu2 %v6605_v29  ;;  %v6573_v52 = vor.u32 %v8252_v53, %v6570_v50  ;;  %v8273_v29 = vld [vmem:[#allocation6 + $0xcc] sm:$0xf]  ;;  %v6773_v53 = vor.u32 %v8301_v46, %v6770_v47  ;;  %v8267_v50 = vld [vmem:[#allocation6 + $0x94] sm:$0xf0]  ;;  %v6560_v46 = vld [vmem:[#allocation6 + $0x8] sm:$0xf] }
 0x5f9   :  { %2298 = vmatpush.bf16.msra.mxu3 %v6733_v3  ;;  %2272 = vmatpush.bf16.msra.mxu1 %v6697_v51  ;;  %v8305_v3 = vld [vmem:[#allocation6 + $0x1cc] sm:$0xf]  ;;  %v6661_v19 = vor.u32 %v8273_v29, %v6658_v31  ;;  %v6752_v51 = vld [vmem:[#allocation6 + $0x188] sm:$0xf]  ;;  %v6625_v58 = vor.u32 %v8267_v50, %v6624_v48  ;;  %v6722_v31 = vld [vmem:[#allocation6 + $0x158] sm:$0xf0] }
 0x5fa   :  { %2308 = vmatpush.bf16.msrb.mxu0 %v6673_v14  ;;  %v6789_v4 = vor.u32 %v8305_v3, %v6786_v32  ;;  %v8293_v14 = vld [vmem:[#allocation6 + $0x16c] sm:$0xf]  ;;  %v6576_v3 = vld [vmem:[#allocation6 + $0x28] sm:$0xf]  ;;  %v8251_v47 = vld [vmem:[#allocation6 + $0x14] sm:$0xf0] }
 0x5fb   :  { %v8283_v50 = vld [vmem:[#allocation6 + $0x114] sm:$0xf0] }
 0x5fc   :  { %2285 = vmatpush.bf16.msra.mxu2 %v6589_v39  ;;  %v8269_v39 = vld [vmem:[#allocation6 + $0xac] sm:$0xf] }
 0x5fd   :  { %2299 = vmatpush.bf16.msra.mxu3 %v6717_v42  ;;  %2273 = vmatpush.bf16.msra.mxu1 %v6681_v2  ;;  %v6769_v42 = vor.u32 %v8303_v35, %v6768_v37  ;;  %v6645_v43 = vor.u32 %v8269_v39, %v6642_v28  ;;  %v8263_v2 = vld [vmem:[#allocation6 + $0x74] sm:$0xf0]  ;;  %v6578_v35 = vld [vmem:[#allocation6 + $0x38] sm:$0xf0]  ;;  %v8285_v28 = vld [vmem:[#allocation6 + $0x12c] sm:$0xf] }
 0x5fe   :  { %2309 = vmatpush.bf16.msrb.mxu0 %v6657_v25  ;;  %v6609_v6 = vor.u32 %v8263_v2, %v6608_v63  ;;  %v8289_v25 = vld [vmem:[#allocation6 + $0x14c] sm:$0xf] }
 0x5ff   :  { %v6725_v37 = vor.u32 %v8289_v25, %v6722_v31  ;;  %v6864_v25 = vld [vmem:[#allocation7 + $0x70] sm:$0xf] }
 0x600   :  { %2286 = vmatpush.bf16.msra.mxu2 %v6573_v52  ;;  %v8299_v52 = vld [vmem:[#allocation6 + $0x194] sm:$0xf0] }
 0x601   :  { %2300 = vmatpush.bf16.msra.mxu3 %v6701_v55  ;;  %2322 = vmatpush.bf16.msrb.mxu1 %v6801_v15  ;;  %v8297_v55 = vld [vmem:[#allocation6 + $0x18c] sm:$0xf]  ;;  %v6753_v59 = vor.u32 %v8299_v52, %v6752_v51  ;;  %v6738_v15 = vld [vmem:[#allocation6 + $0x178] sm:$0xf0] }
 0x602   :  { %2310 = vmatpush.bf16.msrb.mxu0 %v6641_v38  ;;  %v6757_v23 = vor.u32 %v8297_v55, %v6754_v60  ;;  %v6741_v21 = vor.u32 %v8293_v14, %v6738_v15  ;;  %v8253_v38 = vld [vmem:[#allocation6 + $0x2c] sm:$0xf]  ;;  %v6561_v60 = vor.u32 %v8251_v47, %v6560_v46  ;;  %v8321_v46 = vld [vmem:[#allocation7 + $0x44] sm:$0xf0] }
 0x603   :  { %v8249_v52 = vld [vmem:[#allocation6 + $0xc] sm:$0xf] }
 0x604   :  { %2287 = vmatpush.bf16.msra.mxu2 %v6557_v5  ;;  %v6736_v5 = vld [vmem:[#allocation6 + $0x168] sm:$0xf]  ;;  %v8281_v55 = vld [vmem:[#allocation6 + $0x10c] sm:$0xf]  ;;  %v6565_v2 = vor.u32 %v8249_v52, %v6562_v54  ;;  %v6992_v52 = vld [vmem:[#allocation7 + $0x170] sm:$0xf] }
 0x605   :  { %2301 = vmatpush.bf16.msra.mxu3 %v6685_v10  ;;  %2323 = vmatpush.bf16.msrb.mxu1 %v6785_v30  ;;  %v6610_v10 = vld [vmem:[#allocation6 + $0x78] sm:$0xf0]  ;;  %v6737_v61 = vor.u32 %v8295_v8, %v6736_v5  ;;  %v6721_v30 = vor.u32 %v8291_v0, %v6720_v16 }
 0x606   :  { %2311 = vmatpush.bf16.msrb.mxu0 %v6625_v58  ;;  %v6613_v13 = vor.u32 %v8261_v9, %v6610_v10  ;;  %v6690_v58 = vld [vmem:[#allocation6 + $0x118] sm:$0xf0]  ;;  %v1786_v10 = vld [vmem:[%s9943_s9] sm:$0x3] }
 0x607   :  { %v6693_v5 = vor.u32 %v8281_v55, %v6690_v58  ;;  %v1839_v14 = vperm.slane %v1786_v10, 0  ;;  %v1840_v15 = vperm.slane %v1786_v10, 1  ;;  %v6904_v58 = vld [vmem:[#allocation7 + $0xc0] sm:$0xf]  ;;  %v7056_v10 = vld [vmem:[#allocation7 + $0x1f0] sm:$0xf] }
 0x608   :  { %2336 = vmatpush.bf16.msrb.mxu2 %v6677_v22  ;;  %v8259_v22 = vld [vmem:[#allocation6 + $0x54] sm:$0xf0] }
 0x609   :  { %2350 = vmatpush.bf16.msrb.mxu3 %v6805_v24  ;;  %2324 = vmatpush.bf16.msrb.mxu1 %v6769_v42  ;;  %v6594_v24 = vld [vmem:[#allocation6 + $0x58] sm:$0xf0]  ;;  %v6593_v29 = vor.u32 %v8259_v22, %v6592_v7 }
 0x60a   :  { %2312 = vmatpush.bf16.msrb.mxu0 %v6609_v6 }
 0x60c   :  { %2337 = vmatpush.bf16.msrb.mxu2 %v6661_v19  ;;  %v6597_v19 = vor.u32 %v8257_v18, %v6594_v24 }
 0x60d   :  { %2351 = vmatpush.bf16.msrb.mxu3 %v6789_v4  ;;  %2325 = vmatpush.bf16.msrb.mxu1 %v6753_v59  ;;  %v8255_v4 = vld [vmem:[#allocation6 + $0x34] sm:$0xf0] }
 0x60e   :  { %2313 = vmatpush.bf16.msrb.mxu0 %v6593_v29  ;;  %v6577_v42 = vor.u32 %v8255_v4, %v6576_v3 }
 0x610   :  { %2338 = vmatpush.bf16.msrb.mxu2 %v6645_v43  ;;  %v6705_v43 = vor.u32 %v8287_v34, %v6704_v20  ;;  %v6928_v20 = vld [vmem:[#allocation7 + $0xf0] sm:$0xf]  ;;  %v8343_v34 = vld [vmem:[#allocation7 + $0xf4] sm:$0xf0] }
 0x611   :  { %2352 = vmatpush.bf16.msrb.mxu3 %v6773_v53  ;;  %2326 = vmatpush.bf16.msrb.mxu1 %v6737_v61  ;;  %v6688_v53 = vld [vmem:[#allocation6 + $0x108] sm:$0xf] }
 0x612   :  { %2314 = vmatpush.bf16.msrb.mxu0 %v6577_v42 }
 0x614   :  { %2339 = vmatpush.bf16.msrb.mxu2 %v6629_v1  ;;  %v6689_v1 = vor.u32 %v8283_v50, %v6688_v53  ;;  %v6832_v50 = vld [vmem:[#allocation7 + $0x30] sm:$0xf] }
 0x615   :  { %2353 = vmatpush.bf16.msrb.mxu3 %v6757_v23  ;;  %2327 = vmatpush.bf16.msrb.mxu1 %v6721_v30 }
 0x616   :  { %2315 = vmatpush.bf16.msrb.mxu0 %v6561_v60 }
 0x618   :  { %2340 = vmatpush.bf16.msrb.mxu2 %v6613_v13 }
 0x619   :  { %2354 = vmatpush.bf16.msrb.mxu3 %v6741_v21  ;;  %2328 = vmatpush.bf16.msrb.mxu1 %v6705_v43  ;;  %v6840_v43 = vld [vmem:[#allocation7 + $0x40] sm:$0xf] }
 0x61a   :  { %v6841_v47 = vor.u32 %v8321_v46, %v6840_v43  ;;  %v8324_v46 = vld [vmem:[#allocation7 + $0x64] sm:$0xf] }
 0x61c   :  { %2341 = vmatpush.bf16.msrb.mxu2 %v6597_v19  ;;  %v8325_v19 = vld [vmem:[#allocation7 + $0x64] sm:$0xf0] }
 0x61d   :  { %2355 = vmatpush.bf16.msrb.mxu3 %v6725_v37  ;;  %2329 = vmatpush.bf16.msrb.mxu1 %v6689_v1  ;;  %v6929_v37 = vor.u32 %v8343_v34, %v6928_v20  ;;  %v6824_v1 = vld [vmem:[#allocation7 + $0x20] sm:$0xf]  ;;  %v6880_v20 = vld [vmem:[#allocation7 + $0x90] sm:$0xf]  ;;  %v8331_v34 = vld [vmem:[#allocation7 + $0x94] sm:$0xf0] }
 0x663   :  { %v1806_v41 = vpop.xlane.xlu1 %1805 }
 0x664   :  { %v1810_v49 = vmul.f32 %v1806_v41, %v9077_v62  ;;  %v6706_v41 = vld [vmem:[#allocation6 + $0x138] sm:$0xf0] }
 0x665   :  { %v6709_v51 = vor.u32 %v8285_v28, %v6706_v41  ;;  %v6920_v28 = vld [vmem:[#allocation7 + $0xe0] sm:$0xf]  ;;  %v8341_v41 = vld [vmem:[#allocation7 + $0xe4] sm:$0xf0] }
 0x666   :  { %v9285_v56 = vadd.f32 1e-12, %v1810_v49  ;;  %v6581_v49 = vor.u32 %v8253_v38, %v6578_v35  ;;  %v6848_v38 = vld [vmem:[#allocation7 + $0x50] sm:$0xf]  ;;  %v8323_v35 = vld [vmem:[#allocation7 + $0x54] sm:$0xf0]  ;;  %v6921_v42 = vor.u32 %v8341_v41, %v6920_v28 }
 0x667   :  { %2356 = vmatpush.bf16.msrb.mxu3 %v6709_v51  ;;  %v8319_v51 = vld [vmem:[#allocation7 + $0x34] sm:$0xf0]  ;;  %v6960_v28 = vld [vmem:[#allocation7 + $0x130] sm:$0xf] }
 0x668   :  { %8715 = vrsqrt.f32 %v9285_v56  ;;  %2342 = vmatpush.bf16.msrb.mxu2 %v6581_v49  ;;  %vm1820_vm10 = vweird.f32 %v9285_v56  ;;  %v8339_v49 = vld [vmem:[#allocation7 + $0xd4] sm:$0xf0]  ;;  %v6833_v54 = vor.u32 %v8319_v51, %v6832_v50  ;;  %v7032_v50 = vld [vmem:[#allocation7 + $0x1c0] sm:$0xf] }
 0x669   :  { %v8351_v41 = vld [vmem:[#allocation7 + $0x134] sm:$0xf0] }
 0x66a   :  { %v6961_v43 = vor.u32 %v8351_v41, %v6960_v28 }
 0x66b   :  { %v1809_v12 = vpop.xlane.xlu0 %1808  ;;  %2357 = vmatpush.bf16.msrb.mxu3 %v6693_v5  ;;  %v8357_v5 = vld [vmem:[#allocation7 + $0x164] sm:$0xf0] }
 0x66c   :  { %v1811_v17 = vmul.f32 %v1809_v12, %v9077_v62  ;;  %2343 = vmatpush.bf16.msrb.mxu2 %v6565_v2 }
 0x66e   :  { %v8716_v26 = vpop.eup %8715  ;;  %v9289_v27 = vadd.f32 1e-12, %v1811_v17 }
 0x66f   :  { %v1815_v32 = vmul.f32 %v8716_v26, %v9285_v56  ;;  %vm1821_vm9 = vweird.f32 %v8716_v26  ;;  %v1787_v56 = vld [vmem:[%s9944_s10] sm:$0x3] }
 0x670   :  { %8717 = vrsqrt.f32 %v9289_v27  ;;  %vm1822_vm11 = vmor %vm1820_vm10, %vm1821_vm9  ;;  %vm1830_vm13 = vweird.f32 %v9289_v27  ;;  %v1848_v21 = vperm.slane %v1787_v56, 0  ;;  %v1849_v22 = vperm.slane %v1787_v56, 1  ;;  %v6816_v56 = vld [vmem:[#allocation7 + $0x10] sm:$0xf] }
 0x671   :  { %v1816_v39 = vmul.f32 %v8716_v26, %v1815_v32  ;;  %v6856_v32 = vld [vmem:[#allocation7 + $0x60] sm:$0xf] }
 0x672   :  { %v6857_v4 = vor.u32 %v8325_v19, %v6856_v32  ;;  %v6866_v32 = vld [vmem:[#allocation7 + $0x78] sm:$0xf0] }
 0x673   :  { %v1817_v48 = vmul.f32 0.5, %v1816_v39  ;;  %v6849_v39 = vor.u32 %v8323_v35, %v6848_v38  ;;  %v7040_v38 = vld [vmem:[#allocation7 + $0x1d0] sm:$0xf]  ;;  %v8371_v35 = vld [vmem:[#allocation7 + $0x1d4] sm:$0xf0] }
 0x675   :  { %v1818_v40 = vsub.f32 1.5, %v1817_v48  ;;  %v6912_v48 = vld [vmem:[#allocation7 + $0xd0] sm:$0xf] }
 0x676   :  { %v8718_v59 = vpop.eup %8717  ;;  %v6913_v53 = vor.u32 %v8339_v49, %v6912_v48  ;;  %v6872_v49 = vld [vmem:[#allocation7 + $0x80] sm:$0xf] }
 0x677   :  { %v1819_v23 = vmul.f32 %v8716_v26, %v1818_v40  ;;  %v1825_v63 = vmul.f32 %v8718_v59, %v9289_v27  ;;  %vm1831_vm12 = vweird.f32 %v8718_v59  ;;  %v8359_v40 = vld [vmem:[#allocation7 + $0x174] sm:$0xf0] }
 0x678   :  { %vm1832_vm14 = vmor %vm1830_vm13, %vm1831_vm12  ;;  %v6993_v55 = vor.u32 %v8359_v40, %v6992_v52  ;;  %v8369_v52 = vld [vmem:[#allocation7 + $0x1c4] sm:$0xf0]  ;;  %v6930_v40 = vld [vmem:[#allocation7 + $0xf8] sm:$0xf0] }
 0x679   :  { %v1826_v6 = vmul.f32 %v8718_v59, %v1825_v63  ;;  %v1823_v8 = vsel %vm1822_vm11, %v8716_v26, %v1819_v23  ;;  %v8327_v26 = vld [vmem:[#allocation7 + $0x74] sm:$0xf0]  ;;  %v8317_v23 = vld [vmem:[#allocation7 + $0x24] sm:$0xf0]  ;;  %v6984_v63 = vld [vmem:[#allocation7 + $0x160] sm:$0xf] }
 0x67a   :  { %v1834_v61 = vmul.f32 %v1823_v8, %v9267_v44  ;;  %v1835_v13 = vmul.f32 %v1823_v8, %v9269_v45  ;;  %v6825_v2 = vor.u32 %v8317_v23, %v6824_v1  ;;  %v6896_v8 = vld [vmem:[#allocation7 + $0xb0] sm:$0xf] }
 0x67b   :  { %v1827_v9 = vmul.f32 0.5, %v1826_v6  ;;  %v6985_v6 = vor.u32 %v8357_v5, %v6984_v63  ;;  %v8322_v63 = vld [vmem:[#allocation7 + $0x54] sm:$0xf] }
 0x67c   :  { %v1843_v44 = vmul.f32 %v1839_v14, %v1834_v61  ;;  %v1844_v18 = vmul.f32 %v1840_v15, %v1835_v13  ;;  %v8375_v61 = vld [vmem:[#allocation7 + $0x1f4] sm:$0xf0] }
 0x67d   :  { %v1828_v12 = vsub.f32 1.5, %v1827_v9  ;;  %v8335_v9 = vld [vmem:[#allocation7 + $0xb4] sm:$0xf0]  ;;  %v7057_v13 = vor.u32 %v8375_v61, %v7056_v10  ;;  %v8340_v10 = vld [vmem:[#allocation7 + $0xe4] sm:$0xf] }
 0x67e   :  { %v9306_v29 = vadd.f32 %v1848_v21, %v1843_v44  ;;  %v9310_v31 = vadd.f32 %v1849_v22, %v1844_v18  ;;  %v8373_v18 = vld [vmem:[#allocation7 + $0x1e4] sm:$0xf0] }
 0x67f   :  { %v1829_v7 = vmul.f32 %v8718_v59, %v1828_v12  ;;  %v6897_v12 = vor.u32 %v8335_v9, %v6896_v8  ;;  %v8367_v8 = vld [vmem:[#allocation7 + $0x1b4] sm:$0xf0] }
 0x681   :  { %v1833_v17 = vsel %vm1832_vm14, %v8718_v59, %v1829_v7  ;;  %v8337_v59 = vld [vmem:[#allocation7 + $0xc4] sm:$0xf0]  ;;  %v6976_v7 = vld [vmem:[#allocation7 + $0x150] sm:$0xf] }
 0x682   :  { %v1836_v16 = vmul.f32 %v1833_v17, %v9276_v36  ;;  %v1837_v0 = vmul.f32 %v1833_v17, %v9278_v33  ;;  %v6865_v33 = vor.u32 %v8327_v26, %v6864_v25  ;;  %v6905_v60 = vor.u32 %v8337_v59, %v6904_v58  ;;  %v8355_v17 = vld [vmem:[#allocation7 + $0x154] sm:$0xf0]  ;;  %v8313_v25 = vld [vmem:[#allocation7 + $0x4] sm:$0xf0]  ;;  %v6968_v26 = vld [vmem:[#allocation7 + $0x140] sm:$0xf] }
 0x683   :  { %v6952_v59 = vld [vmem:[#allocation7 + $0x120] sm:$0xf] }
 0x684   :  { %v1845_v45 = vmul.f32 %v1839_v14, %v1836_v16  ;;  %v1846_v24 = vmul.f32 %v1840_v15, %v1837_v0  ;;  %v8315_v14 = vld [vmem:[#allocation7 + $0x14] sm:$0xf0]  ;;  %v8333_v16 = vld [vmem:[#allocation7 + $0xa4] sm:$0xf0]  ;;  %v7048_v0 = vld [vmem:[#allocation7 + $0x1e0] sm:$0xf] }
 0x685   :  { %v6817_v15 = vor.u32 %v8315_v14, %v6816_v56  ;;  %v6944_v14 = vld [vmem:[#allocation7 + $0x110] sm:$0xf] }
 0x686   :  { %v9308_v30 = vadd.f32 %v1848_v21, %v1845_v45  ;;  %v9312_v27 = vadd.f32 %v1849_v22, %v1846_v24  ;;  %v6977_v21 = vor.u32 %v8355_v17, %v6976_v7  ;;  %v6888_v22 = vld [vmem:[#allocation7 + $0xa0] sm:$0xf]  ;;  %v7049_v45 = vor.u32 %v8373_v18, %v7048_v0 }
 0x687   :  { %v6889_v44 = vor.u32 %v8333_v16, %v6888_v22  ;;  %v6808_v24 = vld [vmem:[#allocation7] sm:$0xf]  ;;  %v6842_v22 = vld [vmem:[#allocation7 + $0x48] sm:$0xf0] }
 0x688   :  { %v1856_v3 = vpack.c.bf16 %v9308_v30, %v9306_v29  ;;  %v1857_v36 = vpack.c.bf16 %v9312_v27, %v9310_v31  ;;  %v7016_v0 = vld [vmem:[#allocation7 + $0x1a0] sm:$0xf] }
 0x68a   :  { %2260 = vmatmul.bf16.vlgmr.msra.gmra.mxu0 %v1856_v3  ;;  %2274 = vmatmul.bf16.vlgmr.msra.gmra.mxu1 %v1857_v36 }
 0x68b   :  { %2288 = vmatmul.bf16.vlgmr.msra.gmra.mxu2 %v1856_v3  ;;  %2302 = vmatmul.bf16.vlgmr.msra.gmra.mxu3 %v1857_v36 }
 0x68c   :  { %2830 = vmatpush.bf16.msra.mxu0 %v6865_v33  ;;  %2844 = vmatpush.bf16.msra.mxu1 %v6929_v37  ;;  %v8326_v33 = vld [vmem:[#allocation7 + $0x74] sm:$0xf]  ;;  %v6881_v37 = vor.u32 %v8331_v34, %v6880_v20  ;;  %v6834_v20 = vld [vmem:[#allocation7 + $0x38] sm:$0xf0] }
 0x68d   :  { %2858 = vmatpush.bf16.msra.mxu2 %v6993_v55  ;;  %2872 = vmatpush.bf16.msra.mxu3 %v7057_v13  ;;  %v7033_v55 = vor.u32 %v8369_v52, %v7032_v50  ;;  %v8358_v34 = vld [vmem:[#allocation7 + $0x174] sm:$0xf] }
 0x690   :  { %2831 = vmatpush.bf16.msra.mxu0 %v6857_v4  ;;  %2845 = vmatpush.bf16.msra.mxu1 %v6921_v42  ;;  %v6869_v4 = vor.u32 %v8326_v33, %v6866_v32  ;;  %v9321_v42 = vld [vmem:[%s9946_s12] sm:$0xf]  ;;  %v8345_v33 = vld [vmem:[#allocation7 + $0x104] sm:$0xf0] }
 0x691   :  { %2859 = vmatpush.bf16.msra.mxu2 %v6985_v6  ;;  %2873 = vmatpush.bf16.msra.mxu3 %v7049_v45  ;;  %v1924_v1 = vperm.slane %v9321_v42, 0  ;;  %v7024_v6 = vld [vmem:[#allocation7 + $0x1b0] sm:$0xf] }
 0x692   :  { %v7025_v9 = vor.u32 %v8367_v8, %v7024_v6 }
 0x694   :  { %2832 = vmatpush.bf16.msra.mxu0 %v6849_v39  ;;  %2846 = vmatpush.bf16.msra.mxu1 %v6913_v53  ;;  %v7041_v39 = vor.u32 %v8371_v35, %v7040_v38  ;;  %v8329_v53 = vld [vmem:[#allocation7 + $0x84] sm:$0xf0]  ;;  %v6994_v38 = vld [vmem:[#allocation7 + $0x178] sm:$0xf0]  ;;  %v7008_v35 = vld [vmem:[#allocation7 + $0x190] sm:$0xf] }
 0x695   :  { %2860 = vmatpush.bf16.msra.mxu2 %v6977_v21  ;;  %v6873_v51 = vor.u32 %v8329_v53, %v6872_v49  ;;  %v8320_v21 = vld [vmem:[#allocation7 + $0x44] sm:$0xf]  ;;  %v6906_v49 = vld [vmem:[#allocation7 + $0xc8] sm:$0xf0] }
 0x696   :  { %2874 = vmatpush.bf16.msra.mxu3 %v7041_v39  ;;  %v6845_v16 = vor.u32 %v8320_v21, %v6842_v22  ;;  %v8363_v39 = vld [vmem:[#allocation7 + $0x194] sm:$0xf0]  ;;  %v8314_v22 = vld [vmem:[#allocation7 + $0x14] sm:$0xf] }
 0x698   :  { %2833 = vmatpush.bf16.msra.mxu0 %v6841_v47  ;;  %2847 = vmatpush.bf16.msra.mxu1 %v6905_v60  ;;  %v6858_v47 = vld [vmem:[#allocation7 + $0x68] sm:$0xf0]  ;;  %v8349_v60 = vld [vmem:[#allocation7 + $0x124] sm:$0xf0] }
 0x699   :  { %v6861_v48 = vor.u32 %v8324_v46, %v6858_v47  ;;  %v6953_v23 = vor.u32 %v8349_v60, %v6952_v59  ;;  %v6997_v46 = vor.u32 %v8358_v34, %v6994_v38  ;;  %v7009_v47 = vor.u32 %v8363_v39, %v7008_v35 }
 0x69a   :  { %2316 = vmatmul.bf16.vlgmr.msrb.gmra.mxu0 %v1856_v3  ;;  %2330 = vmatmul.bf16.vlgmr.msrb.gmra.mxu1 %v1857_v36  ;;  %v1927_v35 = vperm.slane %v9321_v42, 3 }
 0x69b   :  { %2344 = vmatmul.bf16.vlgmr.msrb.gmra.mxu2 %v1856_v3  ;;  %2358 = vmatmul.bf16.vlgmr.msrb.gmra.mxu3 %v1857_v36  ;;  %v6809_v3 = vor.u32 %v8313_v25, %v6808_v24  ;;  %v8353_v36 = vld [vmem:[#allocation7 + $0x144] sm:$0xf0]  ;;  %v8338_v24 = vld [vmem:[#allocation7 + $0xd4] sm:$0xf]  ;;  %v6914_v25 = vld [vmem:[#allocation7 + $0xd8] sm:$0xf0] }
 0x69c   :  { %2834 = vmatpush.bf16.msra.mxu0 %v6833_v54  ;;  %2848 = vmatpush.bf16.msra.mxu1 %v6897_v12  ;;  %v6969_v19 = vor.u32 %v8353_v36, %v6968_v26  ;;  %v8342_v54 = vld [vmem:[#allocation7 + $0xf4] sm:$0xf]  ;;  %v6922_v12 = vld [vmem:[#allocation7 + $0xe8] sm:$0xf0]  ;;  %v1925_v26 = vperm.slane %v9321_v42, 1 }
 0x69d   :  { %v6933_v58 = vor.u32 %v8342_v54, %v6930_v40  ;;  %2875 = vmatpush.bf16.msra.mxu3 %v7033_v55  ;;  %v6925_v56 = vor.u32 %v8340_v10, %v6922_v12  ;;  %v6936_v36 = vld [vmem:[#allocation7 + $0x100] sm:$0xf]  ;;  %v8316_v55 = vld [vmem:[#allocation7 + $0x24] sm:$0xf]  ;;  %v8334_v10 = vld [vmem:[#allocation7 + $0xb4] sm:$0xf] }
 0x69e   :  { %2861 = vmatpush.bf16.msra.mxu2 %v6969_v19  ;;  %v6937_v19 = vor.u32 %v8345_v33, %v6936_v36  ;;  %v6898_v12 = vld [vmem:[#allocation7 + $0xb8] sm:$0xf0] }
 0x6a0   :  { %2835 = vmatpush.bf16.msra.mxu0 %v6825_v2  ;;  %2849 = vmatpush.bf16.msra.mxu1 %v6889_v44  ;;  %v6850_v2 = vld [vmem:[#allocation7 + $0x58] sm:$0xf0]  ;;  %v8365_v44 = vld [vmem:[#allocation7 + $0x1a4] sm:$0xf0] }
 0x6a1   :  { %v6853_v5 = vor.u32 %v8322_v63, %v6850_v2  ;;  %2876 = vmatpush.bf16.msra.mxu3 %v7025_v9  ;;  %v7017_v45 = vor.u32 %v8365_v44, %v7016_v0  ;;  %v6986_v63 = vld [vmem:[#allocation7 + $0x168] sm:$0xf0]  ;;  %v7000_v2 = vld [vmem:[#allocation7 + $0x180] sm:$0xf]  ;;  %v8361_v9 = vld [vmem:[#allocation7 + $0x184] sm:$0xf0] }
 0x6a2   :  { %2862 = vmatpush.bf16.msra.mxu2 %v6961_v43 }
 0x6a4   :  { %2836 = vmatpush.bf16.msra.mxu0 %v6817_v15  ;;  %2850 = vmatpush.bf16.msra.mxu1 %v6881_v37  ;;  %v8347_v15 = vld [vmem:[#allocation7 + $0x114] sm:$0xf0] }
 0x6a5   :  { %v6945_v17 = vor.u32 %v8347_v15, %v6944_v14  ;;  %2877 = vmatpush.bf16.msra.mxu3 %v7017_v45  ;;  %v8374_v14 = vld [vmem:[#allocation7 + $0x1f4] sm:$0xf]  ;;  %v7058_v15 = vld [vmem:[#allocation7 + $0x1f8] sm:$0xf0] }
 0x6a6   :  { %2863 = vmatpush.bf16.msra.mxu2 %v6953_v23  ;;  %v8356_v23 = vld [vmem:[#allocation7 + $0x164] sm:$0xf]  ;;  %v7061_v21 = vor.u32 %v8374_v14, %v7058_v15  ;;  %v8354_v45 = vld [vmem:[#allocation7 + $0x154] sm:$0xf]  ;;  %v6874_v15 = vld [vmem:[#allocation7 + $0x88] sm:$0xf0] }
 0x6a7   :  { %v6989_v8 = vor.u32 %v8356_v23, %v6986_v63  ;;  %v7042_v23 = vld [vmem:[#allocation7 + $0x1d8] sm:$0xf0]  ;;  %v8328_v14 = vld [vmem:[#allocation7 + $0x84] sm:$0xf] }
 0x6a8   :  { %2837 = vmatpush.bf16.msra.mxu0 %v6809_v3  ;;  %2851 = vmatpush.bf16.msra.mxu1 %v6873_v51  ;;  %v6917_v3 = vor.u32 %v8338_v24, %v6914_v25  ;;  %v6978_v24 = vld [vmem:[#allocation7 + $0x158] sm:$0xf0] }
 0x6a9   :  { %2878 = vmatpush.bf16.msra.mxu3 %v7009_v47  ;;  %v6981_v33 = vor.u32 %v8354_v45, %v6978_v24  ;;  %v8312_v47 = vld [vmem:[#allocation7 + $0x4] sm:$0xf] }
 0x6aa   :  { %2864 = vmatpush.bf16.msra.mxu2 %v6945_v17  ;;  %v8348_v45 = vld [vmem:[#allocation7 + $0x124] sm:$0xf] }
 0x6ac   :  { %2886 = vmatpush.bf16.msrb.mxu0 %v6869_v4  ;;  %2900 = vmatpush.bf16.msrb.mxu1 %v6933_v58  ;;  %v8318_v4 = vld [vmem:[#allocation7 + $0x34] sm:$0xf]  ;;  %v6826_v58 = vld [vmem:[#allocation7 + $0x28] sm:$0xf0] }
 0x6ad   :  { %v6837_v37 = vor.u32 %v8318_v4, %v6834_v20  ;;  %v6829_v60 = vor.u32 %v8316_v55, %v6826_v58  ;;  %v8372_v4 = vld [vmem:[#allocation7 + $0x1e4] sm:$0xf]  ;;  %v6882_v58 = vld [vmem:[#allocation7 + $0x98] sm:$0xf0] }
 0x6ae   :  { %2865 = vmatpush.bf16.msra.mxu2 %v6937_v19  ;;  %v6890_v19 = vld [vmem:[#allocation7 + $0xa8] sm:$0xf0] }
 0x6b0   :  { %2887 = vmatpush.bf16.msrb.mxu0 %v6861_v48  ;;  %2901 = vmatpush.bf16.msrb.mxu1 %v6925_v56  ;;  %v8336_v48 = vld [vmem:[#allocation7 + $0xc4] sm:$0xf]  ;;  %v6901_v56 = vor.u32 %v8334_v10, %v6898_v12  ;;  %v8350_v12 = vld [vmem:[#allocation7 + $0x134] sm:$0xf] }
 0x6b1   :  { %v6909_v52 = vor.u32 %v8336_v48, %v6906_v49  ;;  %v6810_v48 = vld [vmem:[#allocation7 + $0x8] sm:$0xf0] }
 0x6b2   :  { %2914 = vmatpush.bf16.msrb.mxu2 %v6997_v46 }
 0x6b4   :  { %2888 = vmatpush.bf16.msrb.mxu0 %v6853_v5  ;;  %2902 = vmatpush.bf16.msrb.mxu1 %v6917_v3 }
 0x6b6   :  { %2915 = vmatpush.bf16.msrb.mxu2 %v6989_v8 }
 0x6b8   :  { %2889 = vmatpush.bf16.msrb.mxu0 %v6845_v16  ;;  %2903 = vmatpush.bf16.msrb.mxu1 %v6909_v52  ;;  %v6818_v16 = vld [vmem:[#allocation7 + $0x18] sm:$0xf0]  ;;  %v8330_v52 = vld [vmem:[#allocation7 + $0x94] sm:$0xf] }
 0x6b9   :  { %v6821_v44 = vor.u32 %v8314_v22, %v6818_v16  ;;  %v6877_v16 = vor.u32 %v8328_v14, %v6874_v15 }
 0x6ba   :  { %2916 = vmatpush.bf16.msrb.mxu2 %v6981_v33  ;;  %v6954_v33 = vld [vmem:[#allocation7 + $0x128] sm:$0xf0] }
 0x6bc   :  { %2890 = vmatpush.bf16.msrb.mxu0 %v6837_v37  ;;  %2904 = vmatpush.bf16.msrb.mxu1 %v6901_v56 }
 0x6c0   :  { %2891 = vmatpush.bf16.msrb.mxu0 %v6829_v60  ;;  %v8370_v60 = vld [vmem:[#allocation7 + $0x1d4] sm:$0xf] }
 0x6c1   :  { %v7045_v8 = vor.u32 %v8370_v60, %v7042_v23  ;;  %v8364_v60 = vld [vmem:[#allocation7 + $0x1a4] sm:$0xf] }
 0x6c4   :  { %2892 = vmatpush.bf16.msrb.mxu0 %v6821_v44  ;;  %v7034_v44 = vld [vmem:[#allocation7 + $0x1c8] sm:$0xf0] }
 0x707   :  { %v2261_v61 = vpop.f32.mrf.mxu0  ;;  %v2275_v13 = vpop.f32.mrf.mxu1 }
 0x708   :  { %v2262_v7 = vadd.f32 %v2261_v61, %v1924_v1  ;;  %v1926_v61 = vperm.slane %v9321_v42, 2 }
 0x70a   :  { %v9326_v18 = vadd.f32 %v2275_v13, %v2262_v7  ;;  %v7001_v13 = vor.u32 %v8361_v9, %v7000_v2 }
 0x70c   :  { %v2364_v32 = vmul.f32 %v9326_v18, %v9326_v18  ;;  %2879 = vmatpush.bf16.msra.mxu3 %v7001_v13 }
 0x70e   :  { %v2372_v28 = vmul.f32 %v2364_v32, %v9326_v18  ;;  %v2289_v41 = vpop.f32.mrf.mxu2  ;;  %v2303_v43 = vpop.f32.mrf.mxu3  ;;  %v8332_v32 = vld [vmem:[#allocation7 + $0xa4] sm:$0xf] }
 0x70f   :  { %v2290_v53 = vadd.f32 %v2289_v41, %v1925_v26  ;;  %v2263_v50 = vpop.f32.mrf.mxu0  ;;  %v2277_v51 = vpop.f32.mrf.mxu1  ;;  %v6893_v39 = vor.u32 %v8332_v32, %v6890_v19 }
 0x710   :  { %v2380_v54 = vmul.f32 0.044715, %v2372_v28  ;;  %v2264_v40 = vadd.f32 %v2263_v50, %v1924_v1  ;;  %2928 = vmatpush.bf16.msrb.mxu3 %v7061_v21  ;;  %v7050_v28 = vld [vmem:[#allocation7 + $0x1e8] sm:$0xf0]  ;;  %v8352_v50 = vld [vmem:[#allocation7 + $0x144] sm:$0xf] }
 0x711   :  { %v9336_v59 = vadd.f32 %v2303_v43, %v2290_v53  ;;  %v7053_v46 = vor.u32 %v8372_v4, %v7050_v28  ;;  %2905 = vmatpush.bf16.msrb.mxu1 %v6893_v39  ;;  %v6957_v4 = vor.u32 %v8348_v45, %v6954_v33 }
 0x712   :  { %v2388_v5 = vadd.f32 %v2380_v54, %v9326_v18  ;;  %v9339_v6 = vadd.f32 %v2277_v51, %v2264_v40  ;;  %v6970_v51 = vld [vmem:[#allocation7 + $0x148] sm:$0xf0] }
 0x713   :  { %v2365_v1 = vmul.f32 %v9336_v59, %v9336_v59  ;;  %v6973_v55 = vor.u32 %v8352_v50, %v6970_v51  ;;  %v8346_v51 = vld [vmem:[#allocation7 + $0x114] sm:$0xf] }
 0x714   :  { %v2396_v7 = vmul.f32 0.7978846, %v2388_v5  ;;  %v2368_v17 = vmul.f32 %v9339_v6, %v9339_v6  ;;  %2929 = vmatpush.bf16.msrb.mxu3 %v7053_v46  ;;  %v6885_v5 = vor.u32 %v8330_v52, %v6882_v58  ;;  %v6946_v58 = vld [vmem:[#allocation7 + $0x118] sm:$0xf0] }
 0x715   :  { %v2373_v0 = vmul.f32 %v2365_v1, %v9336_v59  ;;  %2917 = vmatpush.bf16.msrb.mxu2 %v6973_v55  ;;  %v6962_v1 = vld [vmem:[#allocation7 + $0x138] sm:$0xf0] }
 0x716   :  { %v2376_v25 = vmul.f32 %v2368_v17, %v9339_v6  ;;  %v2291_v3 = vpop.f32.mrf.mxu2  ;;  %v2305_v36 = vpop.f32.mrf.mxu3  ;;  %8719 = vtanh.f32 %v2396_v7  ;;  %2906 = vmatpush.bf16.msrb.mxu1 %v6885_v5  ;;  %v6965_v56 = vor.u32 %v8350_v12, %v6962_v1  ;;  %v6949_v5 = vor.u32 %v8346_v51, %v6946_v58 }
 0x717   :  { %v2381_v20 = vmul.f32 0.044715, %v2373_v0  ;;  %v2292_v34 = vadd.f32 %v2291_v3, %v1925_v26  ;;  %v2317_v37 = vpop.f32.mrf.mxu0  ;;  %v2331_v38 = vpop.f32.mrf.mxu1  ;;  %v6813_v26 = vor.u32 %v8312_v47, %v6810_v48  ;;  %v8368_v0 = vld [vmem:[#allocation7 + $0x1c4] sm:$0xf] }
 0x718   :  { %v2384_v41 = vmul.f32 0.044715, %v2376_v25  ;;  %v2318_v43 = vadd.f32 %v2317_v37, %v1926_v61  ;;  %2930 = vmatpush.bf16.msrb.mxu3 %v7045_v8  ;;  %v7018_v8 = vld [vmem:[#allocation7 + $0x1a8] sm:$0xf0] }
 0x719   :  { %v2389_v49 = vadd.f32 %v2381_v20, %v9336_v59  ;;  %v9354_v53 = vadd.f32 %v2305_v36, %v2292_v34  ;;  %2893 = vmatpush.bf16.msrb.mxu0 %v6813_v26  ;;  %v7037_v36 = vor.u32 %v8368_v0, %v7034_v44  ;;  %2918 = vmatpush.bf16.msrb.mxu2 %v6965_v56  ;;  %v6938_v56 = vld [vmem:[#allocation7 + $0x108] sm:$0xf0] }
 0x71a   :  { %v2392_v54 = vadd.f32 %v2384_v41, %v9339_v6  ;;  %v9357_v40 = vadd.f32 %v2331_v38, %v2318_v43  ;;  %2907 = vmatpush.bf16.msrb.mxu1 %v6877_v16  ;;  %v8366_v41 = vld [vmem:[#allocation7 + $0x1b4] sm:$0xf]  ;;  %v7026_v43 = vld [vmem:[#allocation7 + $0x1b8] sm:$0xf0] }
 0x71b   :  { %v2397_v63 = vmul.f32 0.7978846, %v2389_v49  ;;  %v2369_v2 = vmul.f32 %v9354_v53, %v9354_v53  ;;  %v7029_v48 = vor.u32 %v8366_v41, %v7026_v43 }
 0x71c   :  { %v2400_v9 = vmul.f32 0.7978846, %v2392_v54  ;;  %v2366_v10 = vmul.f32 %v9357_v40, %v9357_v40  ;;  %v8720_v7 = vpop.eup %8719  ;;  %2931 = vmatpush.bf16.msrb.mxu3 %v7037_v36 }
 0x71d   :  { %8721 = vtanh.f32 %v2397_v63  ;;  %v2377_v13 = vmul.f32 %v2369_v2, %v9354_v53  ;;  %v2412_v20 = vadd.f32 1.0, %v8720_v7  ;;  %2919 = vmatpush.bf16.msrb.mxu2 %v6957_v4  ;;  %v7002_v4 = vld [vmem:[#allocation7 + $0x188] sm:$0xf0] }
 0x71e   :  { %8723 = vtanh.f32 %v2400_v9  ;;  %v2374_v17 = vmul.f32 %v2366_v10, %v9357_v40  ;;  %v2345_v21 = vpop.f32.mrf.mxu2  ;;  %v2359_v22 = vpop.f32.mrf.mxu3  ;;  %v8344_v9 = vld [vmem:[#allocation7 + $0x104] sm:$0xf] }
 0x71f   :  { %v2385_v24 = vmul.f32 0.044715, %v2377_v13  ;;  %v2346_v25 = vadd.f32 %v2345_v21, %v1927_v35  ;;  %v2319_v3 = vpop.f32.mrf.mxu0  ;;  %v2333_v38 = vpop.f32.mrf.mxu1  ;;  %v2420_v52 = vmul.f32 0.5, %v2412_v20  ;;  %v7021_v13 = vor.u32 %v8364_v60, %v7018_v8  ;;  %v7010_v21 = vld [vmem:[#allocation7 + $0x198] sm:$0xf0] }
 0x720   :  { %v2382_v32 = vmul.f32 0.044715, %v2374_v17  ;;  %v2320_v19 = vadd.f32 %v2319_v3, %v1926_v61  ;;  %2932 = vmatpush.bf16.msrb.mxu3 %v7029_v48  ;;  %v6941_v7 = vor.u32 %v8344_v9, %v6938_v56  ;;  %v8362_v17 = vld [vmem:[#allocation7 + $0x194] sm:$0xf] }
 0x721   :  { %v2393_v34 = vadd.f32 %v2385_v24, %v9354_v53  ;;  %v9370_v37 = vadd.f32 %v2359_v22, %v2346_v25  ;;  %2920 = vmatpush.bf16.msrb.mxu2 %v6949_v5  ;;  %v2428_v22 = vmul.f32 %v2420_v52, %v9326_v18  ;;  %v8360_v18 = vld [vmem:[#allocation7 + $0x184] sm:$0xf] }
 0x722   :  { %v2390_v39 = vadd.f32 %v2382_v32, %v9357_v40  ;;  %v9373_v28 = vadd.f32 %v2333_v38, %v2320_v19 }
 0x723   :  { %v8722_v46 = vpop.eup %8721  ;;  %v2401_v47 = vmul.f32 0.7978846, %v2393_v34  ;;  %v2367_v61 = vmul.f32 %v9370_v37, %v9370_v37 }
 0x724   :  { %v8724_v49 = vpop.eup %8723  ;;  %v2398_v26 = vmul.f32 0.7978846, %v2390_v39  ;;  %v2370_v50 = vmul.f32 %v9373_v28, %v9373_v28  ;;  %v2413_v23 = vadd.f32 1.0, %v8722_v46  ;;  %2933 = vmatpush.bf16.msrb.mxu3 %v7021_v13  ;;  %v2504_v13 = vld [vmem:[%s9948_s14] sm:$0x3] }
 0x725   :  { %8725 = vtanh.f32 %v2401_v47  ;;  %v2375_v54 = vmul.f32 %v2367_v61, %v9370_v37  ;;  %v2416_v55 = vadd.f32 1.0, %v8724_v49  ;;  %2921 = vmatpush.bf16.msrb.mxu2 %v6941_v7  ;;  %v2506_v56 = vperm.slane %v2504_v13, 0 }
 0x726   :  { %v2378_v63 = vmul.f32 %v2370_v50, %v9373_v28  ;;  %v2347_v2 = vpop.f32.mrf.mxu2  ;;  %8727 = vtanh.f32 %v2398_v26  ;;  %v2361_v15 = vpop.f32.mrf.mxu3  ;;  %v2421_v36 = vmul.f32 0.5, %v2413_v23 }
 0x727   :  { %v2383_v10 = vmul.f32 0.044715, %v2375_v54  ;;  %v2348_v12 = vadd.f32 %v2347_v2, %v1927_v35  ;;  %v2424_v1 = vmul.f32 0.5, %v2416_v55  ;;  %v7013_v35 = vor.u32 %v8362_v17, %v7010_v21 }
 0x728   :  { %v2386_v14 = vmul.f32 0.044715, %v2378_v63  ;;  %v2429_v39 = vmul.f32 %v2421_v36, %v9336_v59 }
 0x729   :  { %v2391_v16 = vadd.f32 %v2383_v10, %v9370_v37  ;;  %v2362_v0 = vadd.f32 %v2361_v15, %v2348_v12  ;;  %v2432_v44 = vmul.f32 %v2424_v1, %v9339_v6  ;;  %2934 = vmatpush.bf16.msrb.mxu3 %v7013_v35  ;;  %v7005_v6 = vor.u32 %v8360_v18, %v7002_v4 }
 0x72a   :  { %v2394_v42 = vadd.f32 %v2386_v14, %v9373_v28 }
 0x72b   :  { %v8726_v45 = vpop.eup %8725  ;;  %v2399_v24 = vmul.f32 0.7978846, %v2391_v16  ;;  %v2371_v25 = vmul.f32 %v2362_v0, %v2362_v0  ;;  %v2436_v3 = vpack.c.bf16 %v2432_v44, %v2428_v22 }
 0x72c   :  { %v2402_v33 = vmul.f32 0.7978846, %v2394_v42  ;;  %v2417_v32 = vadd.f32 1.0, %v8726_v45  ;;  %v8728_v20 = vpop.eup %8727 }
 0x72d   :  { %v2379_v19 = vmul.f32 %v2371_v25, %v2362_v0  ;;  %2838 = vmatmul.bf16.vlgmr.msra.gmra.mxu0 %v2436_v3  ;;  %v2414_v43 = vadd.f32 1.0, %v8728_v20  ;;  %2935 = vmatpush.bf16.msrb.mxu3 %v7005_v6 }
 0x72e   :  { %8729 = vtanh.f32 %v2402_v33  ;;  %v2425_v34 = vmul.f32 0.5, %v2417_v32 }
 0x72f   :  { %8731 = vtanh.f32 %v2399_v24  ;;  %v2387_v38 = vmul.f32 0.044715, %v2379_v19  ;;  %v2422_v26 = vmul.f32 0.5, %v2414_v43 }
 0x730   :  { %v2433_v41 = vmul.f32 %v2425_v34, %v9354_v53 }
 0x731   :  { %v2395_v46 = vadd.f32 %v2387_v38, %v2362_v0  ;;  %v2430_v54 = vmul.f32 %v2422_v26, %v9357_v40  ;;  %v8469_v26 = vld [vmem:[#allocation2 + $0x5e4] sm:$0xf0] }
 0x732   :  { %v2437_v47 = vpack.c.bf16 %v2433_v41, %v2429_v39 }
 0x733   :  { %v2403_v61 = vmul.f32 0.7978846, %v2395_v46 }
 0x734   :  { %v8730_v48 = vpop.eup %8729  ;;  %2852 = vmatmul.bf16.vlgmr.msra.gmra.mxu1 %v2437_v47 }
 0x735   :  { %v8732_v49 = vpop.eup %8731  ;;  %8733 = vtanh.f32 %v2403_v61  ;;  %v2418_v50 = vadd.f32 1.0, %v8730_v48  ;;  %v8421_v61 = vld [vmem:[#allocation2 + $0x464] sm:$0xf0]  ;;  %v7425_v48 = vld [vmem:[#allocation2 + $0x5d0] sm:$0xf] }
 0x736   :  { %v2415_v52 = vadd.f32 1.0, %v8732_v49 }
 0x737   :  { %v2426_v51 = vmul.f32 0.5, %v2418_v50  ;;  %v8418_v50 = vld [vmem:[#allocation2 + $0x454] sm:$0xf] }
 0x738   :  { %v2423_v53 = vmul.f32 0.5, %v2415_v52  ;;  %v7426_v52 = vor.u32 %v8469_v26, %v7425_v48 }
 0x739   :  { %v2434_v55 = vmul.f32 %v2426_v51, %v9373_v28  ;;  %v7235_v51 = vld [vmem:[#allocation2 + $0x468] sm:$0xf0] }
 0x73a   :  { %v2431_v63 = vmul.f32 %v2423_v53, %v9370_v37  ;;  %v2507_v37 = vperm.slane %v2504_v13, 1  ;;  %v7401_v53 = vld [vmem:[#allocation2 + $0x5a0] sm:$0xf]  ;;  %3624 = vmatpush.bf16.msra.mxu1 %v7426_v52  ;;  %v8457_v13 = vld [vmem:[#allocation2 + $0x584] sm:$0xf0] }
 0x73b   :  { %v8734_v59 = vpop.eup %8733  ;;  %v2438_v58 = vpack.c.bf16 %v2434_v55, %v2430_v54  ;;  %v7238_v54 = vor.u32 %v8418_v50, %v7235_v51  ;;  %v8466_v55 = vld [vmem:[#allocation2 + $0x5d4] sm:$0xf] }
 0x73c   :  { %v2419_v60 = vadd.f32 1.0, %v8734_v59  ;;  %v7427_v59 = vld [vmem:[#allocation2 + $0x5e8] sm:$0xf0] }
 0x73d   :  { %2866 = vmatmul.bf16.vlgmr.msra.gmra.mxu2 %v2438_v58  ;;  %2894 = vmatmul.bf16.vlgmr.msrb.gmra.mxu0 %v2436_v3 }
 0x73e   :  { %v2427_v23 = vmul.f32 0.5, %v2419_v60  ;;  %v8463_v60 = vld [vmem:[#allocation2 + $0x5b4] sm:$0xf0]  ;;  %3638 = vmatpush.bf16.msra.mxu2 %v7238_v54 }
 0x740   :  { %v2435_v2 = vmul.f32 %v2427_v23, %v2362_v0 }
 0x742   :  { %v2439_v5 = vpack.c.bf16 %v2435_v2, %v2431_v63  ;;  %v7402_v63 = vor.u32 %v8463_v60, %v7401_v53  ;;  %v8412_v2 = vld [vmem:[#allocation2 + $0x424] sm:$0xf]  ;;  %v7113_v60 = vld [vmem:[#allocation2 + $0x360] sm:$0xf] }
 0x744   :  { %2880 = vmatmul.bf16.vlgmr.msra.gmra.mxu3 %v2439_v5  ;;  %2908 = vmatmul.bf16.vlgmr.msrb.gmra.mxu1 %v2437_v47  ;;  %v7233_v47 = vld [vmem:[#allocation2 + $0x450] sm:$0xf] }
 0x745   :  { %v7234_v49 = vor.u32 %v8421_v61, %v7233_v47  ;;  %3625 = vmatpush.bf16.msra.mxu1 %v7402_v63  ;;  %v7305_v63 = vld [vmem:[#allocation2 + $0x4e0] sm:$0xf] }
 0x747   :  { %3610 = vmatpush.bf16.msra.mxu0 %v7234_v49 }
 0x74d   :  { %2922 = vmatmul.bf16.vlgmr.msrb.gmra.mxu2 %v2438_v58  ;;  %v7430_v58 = vor.u32 %v8466_v55, %v7427_v59 }
 0x74f   :  { %3652 = vmatpush.bf16.msra.mxu3 %v7430_v58 }
 0x754   :  { %2936 = vmatmul.bf16.vlgmr.msrb.gmra.mxu3 %v2439_v5  ;;  %v7211_v5 = vld [vmem:[#allocation2 + $0x438] sm:$0xf0] }
 0x7aa   :  { %v2839_v8 = vpop.f32.mrf.mxu0 }
 0x7ab   :  { %v2840_v17 = vadd.f32 %v2839_v8, %v2506_v56  ;;  %v8460_v8 = vld [vmem:[#allocation2 + $0x5a4] sm:$0xf] }
 0x7b1   :  { %v2853_v9 = vpop.f32.mrf.mxu1 }
 0x7b2   :  { %v2841_v10 = vpop.f32.mrf.mxu0  ;;  %v2854_v22 = vadd.f32 %v2853_v9, %v2840_v17  ;;  %v7214_v9 = vor.u32 %v8412_v2, %v7211_v5  ;;  %v8439_v5 = vld [vmem:[#allocation2 + $0x4f4] sm:$0xf0] }
 0x7b3   :  { %v2842_v25 = vadd.f32 %v2841_v10, %v2506_v56  ;;  %v7185_v10 = vld [vmem:[#allocation2 + $0x3f0] sm:$0xf]  ;;  %v8406_v56 = vld [vmem:[#allocation2 + $0x3f4] sm:$0xf] }
 0x7b4   :  { %3639 = vmatpush.bf16.msra.mxu2 %v7214_v9  ;;  %v7115_v9 = vld [vmem:[#allocation2 + $0x378] sm:$0xf0] }
 0x7b9   :  { %v2855_v28 = vpop.f32.mrf.mxu1 }
 0x7ba   :  { %v2895_v14 = vpop.f32.mrf.mxu0  ;;  %v2856_v33 = vadd.f32 %v2855_v28, %v2842_v25  ;;  %v8409_v28 = vld [vmem:[#allocation2 + $0x404] sm:$0xf0]  ;;  %v7355_v25 = vld [vmem:[#allocation2 + $0x558] sm:$0xf0] }
 0x7bb   :  { %v2896_v16 = vadd.f32 %v2895_v14, %v2507_v37  ;;  %v7186_v14 = vor.u32 %v8409_v28, %v7185_v10  ;;  %v8436_v10 = vld [vmem:[#allocation2 + $0x4e4] sm:$0xf] }
 0x7c0   :  { %v2867_v40 = vpop.f32.mrf.mxu2 }
 0x7c1   :  { %v2909_v15 = vpop.f32.mrf.mxu1  ;;  %v2868_v0 = vadd.f32 %v2867_v40, %v2854_v22  ;;  %v7403_v40 = vld [vmem:[#allocation2 + $0x5b8] sm:$0xf0]  ;;  %v7161_v22 = vld [vmem:[#allocation2 + $0x3c0] sm:$0xf] }
 0x7c2   :  { %v2910_v44 = vadd.f32 %v2909_v15, %v2896_v16  ;;  %v2897_v45 = vpop.f32.mrf.mxu0  ;;  %v8454_v15 = vld [vmem:[#allocation2 + $0x574] sm:$0xf]  ;;  %v8403_v16 = vld [vmem:[#allocation2 + $0x3d4] sm:$0xf0] }
 0x7c3   :  { %v2898_v32 = vadd.f32 %v2897_v45, %v2507_v37  ;;  %v7187_v37 = vld [vmem:[#allocation2 + $0x408] sm:$0xf0]  ;;  %v7163_v45 = vld [vmem:[#allocation2 + $0x3d8] sm:$0xf0] }
 0x7c7   :  { %v2881_v12 = vpop.f32.mrf.mxu3 }
 0x7c8   :  { %v2869_v1 = vpop.f32.mrf.mxu2  ;;  %v2882_v42 = vadd.f32 %v2881_v12, %v2868_v0  ;;  %v7406_v12 = vor.u32 %v8460_v8, %v7403_v40  ;;  %v7353_v0 = vld [vmem:[#allocation2 + $0x540] sm:$0xf]  ;;  %v8388_v8 = vld [vmem:[#allocation2 + $0x364] sm:$0xf] }
 0x7c9   :  { %v2911_v36 = vpop.f32.mrf.mxu1  ;;  %v2870_v20 = vadd.f32 %v2869_v1, %v2856_v33  ;;  %v7377_v1 = vld [vmem:[#allocation2 + $0x570] sm:$0xf]  ;;  %v7118_v40 = vor.u32 %v8388_v8, %v7115_v9  ;;  %v7385_v8 = vld [vmem:[#allocation2 + $0x578] sm:$0xf] }
 0x7ca   :  { %v9399_v18 = vadd.f32 %v2882_v42, %v9306_v29  ;;  %v2912_v34 = vadd.f32 %v2911_v36, %v2898_v32  ;;  %v7378_v17 = vor.u32 %v8457_v13, %v7377_v1  ;;  %3653 = vmatpush.bf16.msra.mxu3 %v7406_v12  ;;  %v8451_v42 = vld [vmem:[#allocation2 + $0x554] sm:$0xf0]  ;;  %v7137_v32 = vld [vmem:[#allocation2 + $0x390] sm:$0xf]  ;;  %v8385_v1 = vld [vmem:[#allocation2 + $0x344] sm:$0xf0] }
 0x7cb   :  { %v7354_v36 = vor.u32 %v8451_v42, %v7353_v0  ;;  %v7089_v12 = vld [vmem:[#allocation2 + $0x330] sm:$0xf]  ;;  %v7065_v0 = vld [vmem:[#allocation2 + $0x300] sm:$0xf] }
 0x7cc   :  { %3626 = vmatpush.bf16.msra.mxu1 %v7378_v17  ;;  %v7281_v13 = vld [vmem:[#allocation2 + $0x4b0] sm:$0xf]  ;;  %v7257_v42 = vld [vmem:[#allocation2 + $0x480] sm:$0xf] }
 0x7cf   :  { %v2883_v7 = vpop.f32.mrf.mxu3 }
 0x7d0   :  { %v2923_v21 = vpop.f32.mrf.mxu2  ;;  %v2884_v38 = vadd.f32 %v2883_v7, %v2870_v20  ;;  %v7379_v7 = vld [vmem:[#allocation2 + $0x588] sm:$0xf0]  ;;  %v7329_v20 = vld [vmem:[#allocation2 + $0x510] sm:$0xf]  ;;  %3627 = vmatpush.bf16.msra.mxu1 %v7354_v36 }
 0x7d1   :  { %v2924_v35 = vadd.f32 %v2923_v21, %v2910_v44  ;;  %v7190_v21 = vor.u32 %v8406_v56, %v7187_v37  ;;  %v7382_v44 = vor.u32 %v8454_v15, %v7379_v7  ;;  %v7090_v56 = vor.u32 %v8385_v1, %v7089_v12  ;;  %v8382_v37 = vld [vmem:[#allocation2 + $0x334] sm:$0xf]  ;;  %v7091_v15 = vld [vmem:[#allocation2 + $0x348] sm:$0xf0]  ;;  %v8455_v12 = vld [vmem:[#allocation2 + $0x57c] sm:$0xf] }
 0x7d2   :  { %v9404_v46 = vadd.f32 %v2884_v38, %v9308_v30  ;;  %v7209_v30 = vld [vmem:[#allocation2 + $0x420] sm:$0xf]  ;;  %v8394_v38 = vld [vmem:[#allocation2 + $0x394] sm:$0xf]  ;;  %v7094_v17 = vor.u32 %v8382_v37, %v7091_v15  ;;  %v7361_v37 = vld [vmem:[#allocation2 + $0x548] sm:$0xf] }
 0x7d3   :  { %3640 = vmatpush.bf16.msra.mxu2 %v7190_v21  ;;  %3654 = vmatpush.bf16.msra.mxu3 %v7382_v44  ;;  %v8430_v21 = vld [vmem:[#allocation2 + $0x4b4] sm:$0xf]  ;;  %v8379_v44 = vld [vmem:[#allocation2 + $0x314] sm:$0xf0] }
 0x7d4   :  { %v7387_v1 = vld [vmem:[#allocation2 + $0x590] sm:$0xf0] }
 0x7d7   :  { %v2937_v24 = vpop.f32.mrf.mxu3 }
 0x7d8   :  { %v2938_v3 = vadd.f32 %v2937_v24, %v2924_v35  ;;  %v2925_v4 = vpop.f32.mrf.mxu2  ;;  %v8400_v35 = vld [vmem:[#allocation2 + $0x3c4] sm:$0xf] }
 0x7d9   :  { %v2926_v39 = vadd.f32 %v2925_v4, %v2912_v34  ;;  %v8448_v24 = vld [vmem:[#allocation2 + $0x544] sm:$0xf]  ;;  %v7166_v33 = vor.u32 %v8400_v35, %v7163_v45  ;;  %v8397_v4 = vld [vmem:[#allocation2 + $0x3a4] sm:$0xf0]  ;;  %v7066_v35 = vor.u32 %v8379_v44, %v7065_v0  ;;  %v8427_v45 = vld [vmem:[#allocation2 + $0x494] sm:$0xf0] }
 0x7da   :  { %v9396_v19 = vadd.f32 %v2938_v3, %v9310_v31  ;;  %v7162_v3 = vor.u32 %v8403_v16, %v7161_v22  ;;  %v7358_v34 = vor.u32 %v8448_v24, %v7355_v25  ;;  %v7138_v47 = vor.u32 %v8397_v4, %v7137_v32  ;;  %v7283_v22 = vld [vmem:[#allocation2 + $0x4c8] sm:$0xf0]  ;;  %v8376_v24 = vld [vmem:[#allocation2 + $0x304] sm:$0xf]  ;;  %v7067_v25 = vld [vmem:[#allocation2 + $0x318] sm:$0xf0] }
 0x7db   :  { %3641 = vmatpush.bf16.msra.mxu2 %v7166_v33  ;;  %v7286_v16 = vor.u32 %v8430_v21, %v7283_v22  ;;  %v7070_v36 = vor.u32 %v8376_v24, %v7067_v25  ;;  %v8424_v33 = vld [vmem:[#allocation2 + $0x484] sm:$0xf]  ;;  %v7259_v32 = vld [vmem:[#allocation2 + $0x498] sm:$0xf0]  ;;  %v7241_v4 = vld [vmem:[#allocation2 + $0x458] sm:$0xf] }
 0x7dc   :  { %v2948_v6 = vadd.f32 %v9396_v19, %v9399_v18  ;;  %3655 = vmatpush.bf16.msra.mxu3 %v7358_v34  ;;  %v8422_v34 = vld [vmem:[#allocation2 + $0x46c] sm:$0xf0]  ;;  %v7171_v21 = vld [vmem:[#allocation2 + $0x3e0] sm:$0xf0]  ;;  %v8449_v0 = vld [vmem:[#allocation2 + $0x54c] sm:$0xf] }
 0x7dd   :  { %v7363_v44 = vld [vmem:[#allocation2 + $0x560] sm:$0xf0]  ;;  %v7337_v24 = vld [vmem:[#allocation2 + $0x518] sm:$0xf] }
 0x7de   :  { %2949 = vadd.xlane.f32.xlu0 %v2948_v6  ;;  %v8445_v6 = vld [vmem:[#allocation2 + $0x524] sm:$0xf0] }
 0x7df   :  { %v2939_v41 = vpop.f32.mrf.mxu3  ;;  %v7330_v48 = vor.u32 %v8445_v6, %v7329_v20  ;;  %v7262_v20 = vor.u32 %v8424_v33, %v7259_v32  ;;  %v7433_v6 = vld [vmem:[#allocation2 + $0x5d8] sm:$0xf]  ;;  %v7147_v33 = vld [vmem:[#allocation2 + $0x3b0] sm:$0xf0] }
 0x7e0   :  { %v2940_v43 = vadd.f32 %v2939_v41, %v2926_v39  ;;  %v7139_v39 = vld [vmem:[#allocation2 + $0x3a8] sm:$0xf0]  ;;  %v8442_v41 = vld [vmem:[#allocation2 + $0x514] sm:$0xf] }
 0x7e1   :  { %v7142_v49 = vor.u32 %v8394_v38, %v7139_v39  ;;  %3628 = vmatpush.bf16.msra.mxu1 %v7330_v48  ;;  %v8470_v38 = vld [vmem:[#allocation2 + $0x5ec] sm:$0xf0]  ;;  %v7242_v39 = vor.u32 %v8422_v34, %v7241_v4  ;;  %v7435_v48 = vld [vmem:[#allocation2 + $0x5f0] sm:$0xf0] }
 0x7e2   :  { %v9407_v31 = vadd.f32 %v2940_v43, %v9312_v27  ;;  %v8415_v27 = vld [vmem:[#allocation2 + $0x434] sm:$0xf0]  ;;  %v7331_v43 = vld [vmem:[#allocation2 + $0x528] sm:$0xf0]  ;;  %v7339_v34 = vld [vmem:[#allocation2 + $0x530] sm:$0xf0] }
 0x7e3   :  { %v7210_v23 = vor.u32 %v8415_v27, %v7209_v30  ;;  %v7334_v26 = vor.u32 %v8442_v41, %v7331_v43  ;;  %3642 = vmatpush.bf16.msra.mxu2 %v7142_v49  ;;  %v7434_v41 = vor.u32 %v8470_v38, %v7433_v6  ;;  %v8419_v43 = vld [vmem:[#allocation2 + $0x45c] sm:$0xf]  ;;  %v7217_v49 = vld [vmem:[#allocation2 + $0x428] sm:$0xf] }
 0x7e4   :  { %v2951_v29 = vadd.f32 %v9407_v31, %v9404_v46  ;;  %v7121_v38 = vld [vmem:[#allocation2 + $0x368] sm:$0xf] }
 0x7e5   :  { %3611 = vmatpush.bf16.msra.mxu0 %v7210_v23  ;;  %3656 = vmatpush.bf16.msra.mxu3 %v7334_v26  ;;  %v8391_v23 = vld [vmem:[#allocation2 + $0x374] sm:$0xf0]  ;;  %v8416_v26 = vld [vmem:[#allocation2 + $0x43c] sm:$0xf0] }
 0x7e6   :  { %2952 = vadd.xlane.f32.xlu2 %v2951_v29  ;;  %v7114_v2 = vor.u32 %v8391_v23, %v7113_v60  ;;  %v7411_v60 = vld [vmem:[#allocation2 + $0x5c0] sm:$0xf0] }
 0x7e7   :  { %3643 = vmatpush.bf16.msra.mxu2 %v7118_v40  ;;  %v8407_v40 = vld [vmem:[#allocation2 + $0x3fc] sm:$0xf] }
 0x7e9   :  { %3612 = vmatpush.bf16.msra.mxu0 %v7186_v14  ;;  %v8433_v14 = vld [vmem:[#allocation2 + $0x4c4] sm:$0xf0] }
 0x7ea   :  { %v7282_v7 = vor.u32 %v8433_v14, %v7281_v13  ;;  %v7390_v13 = vor.u32 %v8455_v12, %v7387_v1  ;;  %v8404_v14 = vld [vmem:[#allocation2 + $0x3dc] sm:$0xf0] }
 0x7eb   :  { %3644 = vmatpush.bf16.msra.mxu2 %v7094_v17  ;;  %v8401_v17 = vld [vmem:[#allocation2 + $0x3cc] sm:$0xf]  ;;  %v8428_v1 = vld [vmem:[#allocation2 + $0x49c] sm:$0xf0] }
 0x7ed   :  { %3613 = vmatpush.bf16.msra.mxu0 %v7162_v3  ;;  %v7258_v3 = vor.u32 %v8427_v45, %v7257_v42  ;;  %v7366_v42 = vor.u32 %v8449_v0, %v7363_v44  ;;  %v8398_v45 = vld [vmem:[#allocation2 + $0x3ac] sm:$0xf0] }
 0x7ef   :  { %3645 = vmatpush.bf16.msra.mxu2 %v7070_v36  ;;  %v8395_v36 = vld [vmem:[#allocation2 + $0x39c] sm:$0xf] }
 0x7f0   :  { %v7150_v4 = vor.u32 %v8395_v36, %v7147_v33  ;;  %v2946_v33 = vld [vmem:[%s9949_s15] sm:$0x3] }
 0x7f1   :  { %3614 = vmatpush.bf16.msra.mxu0 %v7138_v47  ;;  %v8467_v47 = vld [vmem:[#allocation2 + $0x5dc] sm:$0xf] }
 0x7f5   :  { %3615 = vmatpush.bf16.msra.mxu0 %v7114_v2  ;;  %v7193_v2 = vld [vmem:[#allocation2 + $0x3f8] sm:$0xf] }
 0x7f9   :  { %3616 = vmatpush.bf16.msra.mxu0 %v7090_v56  ;;  %v7169_v56 = vld [vmem:[#allocation2 + $0x3c8] sm:$0xf] }
 0x7fa   :  { %v7170_v15 = vor.u32 %v8404_v14, %v7169_v56  ;;  %v7075_v56 = vld [vmem:[#allocation2 + $0x320] sm:$0xf0] }
 0x7fd   :  { %3617 = vmatpush.bf16.msra.mxu0 %v7066_v35  ;;  %v7145_v35 = vld [vmem:[#allocation2 + $0x398] sm:$0xf] }
 0x7fe   :  { %v7146_v25 = vor.u32 %v8398_v45, %v7145_v35 }
 0x801   :  { %3666 = vmatpush.bf16.msrb.mxu0 %v7242_v39  ;;  %v8392_v39 = vld [vmem:[#allocation2 + $0x37c] sm:$0xf0] }
 0x851   :  { %v2950_v29 = vpop.xlane.xlu0 %2949 }
 0x852   :  { %v2954_v61 = vmul.f32 %v2950_v29, %v9077_v62  ;;  %v7243_v29 = vld [vmem:[#allocation2 + $0x470] sm:$0xf0] }
 0x854   :  { %v9413_v50 = vsub.f32 %v9399_v18, %v2954_v61  ;;  %v9416_v51 = vsub.f32 %v9396_v19, %v2954_v61  ;;  %v7246_v61 = vor.u32 %v8419_v43, %v7243_v29  ;;  %v7122_v43 = vor.u32 %v8392_v39, %v7121_v38  ;;  %v8440_v29 = vld [vmem:[#allocation2 + $0x4fc] sm:$0xf0] }
 0x855   :  { %v3000_v38 = vperm.slane %v2946_v33, 1 }
 0x856   :  { %v2960_v52 = vmul.f32 %v9413_v50, %v9413_v50  ;;  %v2961_v54 = vmul.f32 %v9416_v51, %v9416_v51  ;;  %3694 = vmatpush.bf16.msrb.mxu2 %v7246_v61  ;;  %v7123_v61 = vld [vmem:[#allocation2 + $0x380] sm:$0xf0] }
 0x858   :  { %v2964_v55 = vadd.f32 %v2961_v54, %v2960_v52  ;;  %v7438_v52 = vor.u32 %v8467_v47, %v7435_v48  ;;  %v7218_v54 = vor.u32 %v8416_v26, %v7217_v49  ;;  %v8389_v47 = vld [vmem:[#allocation2 + $0x36c] sm:$0xf] }
 0x859   :  { %v2953_v59 = vpop.xlane.xlu2 %2952  ;;  %v7126_v49 = vor.u32 %v8389_v47, %v7123_v61  ;;  %v8437_v26 = vld [vmem:[#allocation2 + $0x4ec] sm:$0xf] }
 0x85a   :  { %v2955_v30 = vmul.f32 %v2953_v59, %v9077_v62  ;;  %2965 = vadd.xlane.f32.xlu0 %v2964_v55  ;;  %v7409_v55 = vld [vmem:[#allocation2 + $0x5a8] sm:$0xf]  ;;  %v8464_v59 = vld [vmem:[#allocation2 + $0x5bc] sm:$0xf0]  ;;  %3667 = vmatpush.bf16.msrb.mxu0 %v7218_v54 }
 0x85c   :  { %v9424_v18 = vsub.f32 %v9404_v46, %v2955_v30  ;;  %v9427_v19 = vsub.f32 %v9407_v31, %v2955_v30  ;;  %v7306_v46 = vor.u32 %v8439_v5, %v7305_v63  ;;  %v7307_v31 = vld [vmem:[#allocation2 + $0x4f8] sm:$0xf0]  ;;  %v8413_v30 = vld [vmem:[#allocation2 + $0x42c] sm:$0xf]  ;;  %v8410_v5 = vld [vmem:[#allocation2 + $0x40c] sm:$0xf0] }
 0x85d   :  { %v7310_v28 = vor.u32 %v8436_v10, %v7307_v31  ;;  %v7194_v9 = vor.u32 %v8410_v5, %v7193_v2  ;;  %v7195_v10 = vld [vmem:[#allocation2 + $0x410] sm:$0xf0] }
 0x85e   :  { %v2962_v58 = vmul.f32 %v9424_v18, %v9424_v18  ;;  %v2963_v27 = vmul.f32 %v9427_v19, %v9427_v19  ;;  %3629 = vmatpush.bf16.msra.mxu1 %v7306_v46  ;;  %v8458_v46 = vld [vmem:[#allocation2 + $0x58c] sm:$0xf0] }
 0x85f   :  { %3657 = vmatpush.bf16.msra.mxu3 %v7310_v28  ;;  %v7386_v31 = vor.u32 %v8458_v46, %v7385_v8  ;;  %v7198_v28 = vor.u32 %v8407_v40, %v7195_v10  ;;  %3668 = vmatpush.bf16.msrb.mxu0 %v7194_v9  ;;  %v8431_v8 = vld [vmem:[#allocation2 + $0x4bc] sm:$0xf]  ;;  %v7291_v9 = vld [vmem:[#allocation2 + $0x4d0] sm:$0xf0]  ;;  %v7073_v10 = vld [vmem:[#allocation2 + $0x308] sm:$0xf] }
 0x860   :  { %v2967_v53 = vadd.f32 %v2963_v27, %v2962_v58  ;;  %v7410_v58 = vor.u32 %v8464_v59, %v7409_v55  ;;  %v7219_v27 = vld [vmem:[#allocation2 + $0x440] sm:$0xf0]  ;;  %v7097_v59 = vld [vmem:[#allocation2 + $0x338] sm:$0xf]  ;;  %v7294_v40 = vor.u32 %v8431_v8, %v7291_v9 }
 0x861   :  { %v7222_v23 = vor.u32 %v8413_v30, %v7219_v27  ;;  %v8386_v30 = vld [vmem:[#allocation2 + $0x34c] sm:$0xf0] }
 0x862   :  { %2968 = vadd.xlane.f32.xlu2 %v2967_v53  ;;  %3630 = vmatpush.bf16.msra.mxu1 %v7282_v7  ;;  %v8461_v53 = vld [vmem:[#allocation2 + $0x5ac] sm:$0xf]  ;;  %v8452_v7 = vld [vmem:[#allocation2 + $0x55c] sm:$0xf0] }
 0x863   :  { %3658 = vmatpush.bf16.msra.mxu3 %v7286_v16  ;;  %v7414_v63 = vor.u32 %v8461_v53, %v7411_v60  ;;  %3695 = vmatpush.bf16.msrb.mxu2 %v7222_v23  ;;  %v7362_v22 = vor.u32 %v8452_v7, %v7361_v37  ;;  %v7174_v16 = vor.u32 %v8401_v17, %v7171_v21  ;;  %v8434_v60 = vld [vmem:[#allocation2 + $0x4cc] sm:$0xf0]  ;;  %v8383_v23 = vld [vmem:[#allocation2 + $0x33c] sm:$0xf]  ;;  %v7267_v7 = vld [vmem:[#allocation2 + $0x4a0] sm:$0xf0] }
 0x864   :  { %3669 = vmatpush.bf16.msrb.mxu0 %v7170_v15  ;;  %v7098_v53 = vor.u32 %v8386_v30, %v7097_v59  ;;  %v8425_v15 = vld [vmem:[#allocation2 + $0x48c] sm:$0xf]  ;;  %v7249_v59 = vld [vmem:[#allocation2 + $0x460] sm:$0xf]  ;;  %v8423_v30 = vld [vmem:[#allocation2 + $0x474] sm:$0xf0] }
 0x865   :  { %v7270_v21 = vor.u32 %v8425_v15, %v7267_v7  ;;  %v7250_v8 = vor.u32 %v8423_v30, %v7249_v59  ;;  %v7201_v7 = vld [vmem:[#allocation2 + $0x400] sm:$0xf]  ;;  %v7347_v59 = vld [vmem:[#allocation2 + $0x538] sm:$0xf0] }
 0x866   :  { %3631 = vmatpush.bf16.msra.mxu1 %v7258_v3  ;;  %v8446_v3 = vld [vmem:[#allocation2 + $0x52c] sm:$0xf0] }
 0x867   :  { %3659 = vmatpush.bf16.msra.mxu3 %v7262_v20  ;;  %3696 = vmatpush.bf16.msrb.mxu2 %v7198_v28  ;;  %v7338_v32 = vor.u32 %v8446_v3, %v7337_v24  ;;  %v8443_v20 = vld [vmem:[#allocation2 + $0x51c] sm:$0xf]  ;;  %v7265_v28 = vld [vmem:[#allocation2 + $0x488] sm:$0xf] }
 0x868   :  { %v7342_v6 = vor.u32 %v8443_v20, %v7339_v34  ;;  %3670 = vmatpush.bf16.msrb.mxu0 %v7146_v25  ;;  %v7266_v14 = vor.u32 %v8428_v1, %v7265_v28  ;;  %v2947_v34 = vld [vmem:[%s9950_s16] sm:$0x3]  ;;  %v7417_v28 = vld [vmem:[#allocation2 + $0x5b0] sm:$0xf]  ;;  %v8414_v1 = vld [vmem:[#allocation2 + $0x434] sm:$0xf] }
 0x869   :  { %v3009_v47 = vperm.slane %v2947_v34, 1 }
 0x86a   :  { %3680 = vmatpush.bf16.msrb.mxu1 %v7434_v41  ;;  %v7313_v41 = vld [vmem:[#allocation2 + $0x4e8] sm:$0xf] }
 0x86b   :  { %3708 = vmatpush.bf16.msrb.mxu3 %v7438_v52  ;;  %3697 = vmatpush.bf16.msrb.mxu2 %v7174_v16  ;;  %v7314_v48 = vor.u32 %v8440_v29, %v7313_v41  ;;  %v7315_v52 = vld [vmem:[#allocation2 + $0x500] sm:$0xf0]  ;;  %v3008_v29 = vperm.slane %v2947_v34, 0  ;;  %v8402_v34 = vld [vmem:[#allocation2 + $0x3d4] sm:$0xf] }
 0x86c   :  { %v7318_v54 = vor.u32 %v8437_v26, %v7315_v52  ;;  %3671 = vmatpush.bf16.msrb.mxu0 %v7122_v43 }
 0x86e   :  { %3681 = vmatpush.bf16.msrb.mxu1 %v7410_v58  ;;  %v7289_v58 = vld [vmem:[#allocation2 + $0x4b8] sm:$0xf] }
 0x86f   :  { %3709 = vmatpush.bf16.msrb.mxu3 %v7414_v63  ;;  %3698 = vmatpush.bf16.msrb.mxu2 %v7150_v4  ;;  %v7099_v63 = vld [vmem:[#allocation2 + $0x350] sm:$0xf0]  ;;  %v7290_v2 = vor.u32 %v8434_v60, %v7289_v58  ;;  %v7441_v58 = vld [vmem:[#allocation2 + $0x5e0] sm:$0xf] }
 0x870   :  { %v7102_v5 = vor.u32 %v8383_v23, %v7099_v63  ;;  %3672 = vmatpush.bf16.msrb.mxu0 %v7098_v53  ;;  %v7251_v63 = vld [vmem:[#allocation2 + $0x478] sm:$0xf0] }
 0x872   :  { %3682 = vmatpush.bf16.msrb.mxu1 %v7386_v31  ;;  %v8380_v31 = vld [vmem:[#allocation2 + $0x31c] sm:$0xf0] }
 0x873   :  { %3710 = vmatpush.bf16.msrb.mxu3 %v7390_v13  ;;  %3699 = vmatpush.bf16.msrb.mxu2 %v7126_v49  ;;  %v7074_v12 = vor.u32 %v8380_v31, %v7073_v10  ;;  %v8377_v13 = vld [vmem:[#allocation2 + $0x30c] sm:$0xf] }
 0x874   :  { %v7078_v37 = vor.u32 %v8377_v13, %v7075_v56  ;;  %v7227_v13 = vld [vmem:[#allocation2 + $0x448] sm:$0xf0]  ;;  %v8462_v56 = vld [vmem:[#allocation2 + $0x5b4] sm:$0xf] }
 0x875   :  { %3673 = vmatpush.bf16.msrb.mxu0 %v7074_v12  ;;  %v8465_v12 = vld [vmem:[#allocation2 + $0x5c4] sm:$0xf0] }
 0x876   :  { %3683 = vmatpush.bf16.msrb.mxu1 %v7362_v22  ;;  %v7418_v15 = vor.u32 %v8465_v12, %v7417_v28  ;;  %v7105_v12 = vld [vmem:[#allocation2 + $0x340] sm:$0xf] }
 0x877   :  { %3711 = vmatpush.bf16.msrb.mxu3 %v7366_v42  ;;  %3700 = vmatpush.bf16.msrb.mxu2 %v7102_v5 }
 0x87a   :  { %3684 = vmatpush.bf16.msrb.mxu1 %v7338_v32 }
 0x87b   :  { %3712 = vmatpush.bf16.msrb.mxu3 %v7342_v6  ;;  %3701 = vmatpush.bf16.msrb.mxu2 %v7078_v37  ;;  %v2999_v6 = vperm.slane %v2946_v33, 0 }
 0x87e   :  { %3685 = vmatpush.bf16.msrb.mxu1 %v7314_v48 }
 0x87f   :  { %3713 = vmatpush.bf16.msrb.mxu3 %v7318_v54 }
 0x882   :  { %3686 = vmatpush.bf16.msrb.mxu1 %v7290_v2  ;;  %v8468_v2 = vld [vmem:[#allocation2 + $0x5e4] sm:$0xf] }
 0x883   :  { %3714 = vmatpush.bf16.msrb.mxu3 %v7294_v40  ;;  %v8417_v40 = vld [vmem:[#allocation2 + $0x444] sm:$0xf0] }
 0x886   :  { %3687 = vmatpush.bf16.msrb.mxu1 %v7266_v14  ;;  %v7419_v14 = vld [vmem:[#allocation2 + $0x5c8] sm:$0xf0] }
 0x887   :  { %3715 = vmatpush.bf16.msrb.mxu3 %v7270_v21  ;;  %v7230_v21 = vor.u32 %v8414_v1, %v7227_v13  ;;  %v8387_v1 = vld [vmem:[#allocation2 + $0x354] sm:$0xf0] }
 0x8cd   :  { %v2966_v55 = vpop.xlane.xlu0 %2965 }
 0x8ce   :  { %v2970_v27 = vmul.f32 %v2966_v55, %v9077_v62 }
 0x8d0   :  { %v2972_v46 = vadd.f32 1e-12, %v2970_v27  ;;  %v8420_v27 = vld [vmem:[#allocation2 + $0x464] sm:$0xf] }
 0x8d1   :  { %v7254_v10 = vor.u32 %v8420_v27, %v7251_v63  ;;  %v8393_v27 = vld [vmem:[#allocation2 + $0x384] sm:$0xf0] }
 0x8d2   :  { %8735 = vrsqrt.f32 %v2972_v46  ;;  %vm2980_vm0 = vweird.f32 %v2972_v46 }
 0x8d5   :  { %v2969_v17 = vpop.xlane.xlu2 %2968 }
 0x8d6   :  { %v2971_v22 = vmul.f32 %v2969_v17, %v9077_v62  ;;  %v8411_v17 = vld [vmem:[#allocation2 + $0x414] sm:$0xf0] }
 0x8d8   :  { %v8736_v16 = vpop.eup %8735  ;;  %v2973_v0 = vadd.f32 1e-12, %v2971_v22  ;;  %v7422_v22 = vor.u32 %v8462_v56, %v7419_v14  ;;  %v7297_v14 = vld [vmem:[#allocation2 + $0x4c0] sm:$0xf] }
 0x8d9   :  { %v2975_v44 = vmul.f32 %v8736_v16, %v2972_v46  ;;  %vm2981_vm15 = vweird.f32 %v8736_v16  ;;  %v7225_v46 = vld [vmem:[#allocation2 + $0x430] sm:$0xf] }
 0x8da   :  { %8737 = vrsqrt.f32 %v2973_v0  ;;  %vm2982_vm1 = vmor %vm2980_vm0, %vm2981_vm15  ;;  %vm2990_vm3 = vweird.f32 %v2973_v0  ;;  %v7226_v37 = vor.u32 %v8417_v40, %v7225_v46  ;;  %v7131_v46 = vld [vmem:[#allocation2 + $0x388] sm:$0xf0]  ;;  %v8438_v40 = vld [vmem:[#allocation2 + $0x4f4] sm:$0xf] }
 0x8db   :  { %v2976_v42 = vmul.f32 %v8736_v16, %v2975_v44  ;;  %v8408_v44 = vld [vmem:[#allocation2 + $0x404] sm:$0xf] }
 0x8dd   :  { %v2977_v35 = vmul.f32 0.5, %v2976_v42  ;;  %v7203_v42 = vld [vmem:[#allocation2 + $0x418] sm:$0xf0] }
 0x8de   :  { %v7206_v33 = vor.u32 %v8408_v44, %v7203_v42  ;;  %v8381_v44 = vld [vmem:[#allocation2 + $0x324] sm:$0xf0] }
 0x8df   :  { %v2978_v45 = vsub.f32 1.5, %v2977_v35  ;;  %v8456_v35 = vld [vmem:[#allocation2 + $0x584] sm:$0xf] }
 0x8e0   :  { %v8738_v24 = vpop.eup %8737 }
 0x8e1   :  { %v2979_v25 = vmul.f32 %v8736_v16, %v2978_v45  ;;  %v2985_v3 = vmul.f32 %v8738_v24, %v2973_v0  ;;  %vm2991_vm2 = vweird.f32 %v8738_v24  ;;  %v8459_v0 = vld [vmem:[#allocation2 + $0x594] sm:$0xf0]  ;;  %v7395_v45 = vld [vmem:[#allocation2 + $0x598] sm:$0xf0] }
 0x8e2   :  { %vm2992_vm4 = vmor %vm2990_vm3, %vm2991_vm2  ;;  %vm5824_vm3 = vcmask 1040384  }
 0x8e3   :  { %v2986_v36 = vmul.f32 %v8738_v24, %v2985_v3  ;;  %v2983_v32 = vsel %vm2982_vm1, %v8736_v16, %v2979_v25  ;;  %v7393_v16 = vld [vmem:[#allocation2 + $0x580] sm:$0xf]  ;;  %v7177_v3 = vld [vmem:[#allocation2 + $0x3d0] sm:$0xf] }
 0x8e4   :  { %v2994_v39 = vmul.f32 %v2983_v32, %v9413_v50  ;;  %v2995_v41 = vmul.f32 %v2983_v32, %v9416_v51  ;;  %v8471_v50 = vld [vmem:[#allocation2 + $0x5f4] sm:$0xf0]  ;;  %v7394_v25 = vor.u32 %v8459_v0, %v7393_v16  ;;  %v7398_v32 = vor.u32 %v8456_v35, %v7395_v45  ;;  %v7081_v0 = vld [vmem:[#allocation2 + $0x310] sm:$0xf] }
 0x8e5   :  { %v2987_v4 = vmul.f32 0.5, %v2986_v36  ;;  %v7442_v9 = vor.u32 %v8471_v50, %v7441_v58  ;;  %v8405_v36 = vld [vmem:[#allocation2 + $0x3e4] sm:$0xf0]  ;;  %v7129_v50 = vld [vmem:[#allocation2 + $0x370] sm:$0xf] }
 0x8e6   :  { %v3003_v48 = vmul.f32 %v2999_v6, %v2994_v39  ;;  %v3004_v49 = vmul.f32 %v3000_v38, %v2995_v41  ;;  %v7371_v39 = vld [vmem:[#allocation2 + $0x568] sm:$0xf0]  ;;  %v7178_v41 = vor.u32 %v8405_v36, %v7177_v3  ;;  %v7273_v45 = vld [vmem:[#allocation2 + $0x490] sm:$0xf]  ;;  %v8426_v36 = vld [vmem:[#allocation2 + $0x494] sm:$0xf] }
 0x8e7   :  { %v2988_v20 = vsub.f32 1.5, %v2987_v4  ;;  %v7369_v4 = vld [vmem:[#allocation2 + $0x550] sm:$0xf]  ;;  %v7083_v3 = vld [vmem:[#allocation2 + $0x328] sm:$0xf0] }
 0x8e8   :  { %v9445_v51 = vadd.f32 %v3008_v29, %v3003_v48  ;;  %v9447_v53 = vadd.f32 %v3009_v47, %v3004_v49  ;;  %v7345_v49 = vld [vmem:[#allocation2 + $0x520] sm:$0xf] }
 0x8e9   :  { %v2989_v43 = vmul.f32 %v8738_v24, %v2988_v20  ;;  %v8453_v20 = vld [vmem:[#allocation2 + $0x564] sm:$0xf0] }
 0x8eb   :  { %v2993_v61 = vsel %vm2992_vm4, %v8738_v24, %v2989_v43  ;;  %v7202_v24 = vor.u32 %v8411_v17, %v7201_v7  ;;  %v7370_v43 = vor.u32 %v8453_v20, %v7369_v4  ;;  %v7107_v7 = vld [vmem:[#allocation2 + $0x358] sm:$0xf0]  ;;  %v8432_v17 = vld [vmem:[#allocation2 + $0x4c4] sm:$0xf] }
 0x8ec   :  { %v2996_v26 = vmul.f32 %v2993_v61, %v9424_v18  ;;  %v2997_v52 = vmul.f32 %v2993_v61, %v9427_v19  ;;  %v7443_v18 = vld [vmem:[#allocation2 + $0x5f8] sm:$0xf0] }
 0x8ed   :  { %v7446_v31 = vor.u32 %v8468_v2, %v7443_v18  ;;  %v7321_v18 = vld [vmem:[#allocation2 + $0x4f0] sm:$0xf] }
 0x8ee   :  { %v3005_v54 = vmul.f32 %v2999_v6, %v2996_v26  ;;  %v3006_v55 = vmul.f32 %v3000_v38, %v2997_v52  ;;  %v7179_v6 = vld [vmem:[#allocation2 + $0x3e8] sm:$0xf0]  ;;  %v8450_v38 = vld [vmem:[#allocation2 + $0x554] sm:$0xf]  ;;  %v8447_v26 = vld [vmem:[#allocation2 + $0x534] sm:$0xf0] }
 0x8ef   :  { %v7182_v61 = vor.u32 %v8402_v34, %v7179_v6  ;;  %v7374_v48 = vor.u32 %v8450_v38, %v7371_v39  ;;  %v8396_v52 = vld [vmem:[#allocation2 + $0x3a4] sm:$0xf]  ;;  %v7346_v58 = vor.u32 %v8447_v26, %v7345_v49 }
 0x8f0   :  { %v9449_v60 = vadd.f32 %v3008_v29, %v3005_v54  ;;  %v9451_v23 = vadd.f32 %v3009_v47, %v3006_v55  ;;  %v7153_v29 = vld [vmem:[#allocation2 + $0x3a0] sm:$0xf]  ;;  %v8399_v47 = vld [vmem:[#allocation2 + $0x3b4] sm:$0xf0]  ;;  %v7155_v54 = vld [vmem:[#allocation2 + $0x3b8] sm:$0xf0] }
 0x8f1   :  { %v8444_v55 = vld [vmem:[#allocation2 + $0x524] sm:$0xf]  ;;  %v7154_v30 = vor.u32 %v8399_v47, %v7153_v29  ;;  %v7158_v63 = vor.u32 %v8396_v52, %v7155_v54 }
 0x8f2   :  { %v9455_v19 = vpack.c.bf16 %v9449_v60, %v9445_v51  ;;  %v9459_v5 = vpack.c.bf16 %v9451_v23, %v9447_v53  ;;  %v7350_v2 = vor.u32 %v8444_v55, %v7347_v59  ;;  %v9476_v6 = vld [vmem:[%s9979_s28 + $0x6] sm:$0x3f] }
 0x8f3   :  { %v3118_v38 = vperm.slane %v9476_v6, 0 }
 0x8f4   :  { %3618 = vmatmul.bf16.vlgmr.msra.gmra.mxu0 %v9455_v19  ;;  %3632 = vmatmul.bf16.vlgmr.msra.gmra.mxu1 %v9459_v5 }
 0x8f5   :  { %3646 = vmatmul.bf16.vlgmr.msra.gmra.mxu2 %v9455_v19  ;;  %3660 = vmatmul.bf16.vlgmr.msra.gmra.mxu3 %v9459_v5 }
 0x8f6   :  { %3722 = vmatpush.bf16.msra.mxu0 %v7250_v8  ;;  %3736 = vmatpush.bf16.msra.mxu1 %v7442_v9  ;;  %v8441_v8 = vld [vmem:[#allocation2 + $0x504] sm:$0xf0]  ;;  %v8390_v9 = vld [vmem:[#allocation2 + $0x374] sm:$0xf] }
 0x8f7   :  { %3750 = vmatpush.bf16.msra.mxu2 %v7254_v10  ;;  %3764 = vmatpush.bf16.msra.mxu3 %v7446_v31  ;;  %v7323_v10 = vld [vmem:[#allocation2 + $0x508] sm:$0xf0]  ;;  %v7130_v31 = vor.u32 %v8393_v27, %v7129_v50  ;;  %v7322_v28 = vor.u32 %v8441_v8, %v7321_v18  ;;  %v7134_v13 = vor.u32 %v8390_v9, %v7131_v46  ;;  %v3121_v27 = vperm.slane %v9476_v6, 3 }
 0x8f8   :  { %v7326_v56 = vor.u32 %v8438_v40, %v7323_v10 }
 0x8fa   :  { %3723 = vmatpush.bf16.msra.mxu0 %v7226_v37  ;;  %3737 = vmatpush.bf16.msra.mxu1 %v7418_v15  ;;  %v8435_v37 = vld [vmem:[#allocation2 + $0x4d4] sm:$0xf0]  ;;  %v8384_v15 = vld [vmem:[#allocation2 + $0x344] sm:$0xf] }
 0x8fb   :  { %3751 = vmatpush.bf16.msra.mxu2 %v7230_v21  ;;  %3765 = vmatpush.bf16.msra.mxu3 %v7422_v22  ;;  %v7299_v21 = vld [vmem:[#allocation2 + $0x4d8] sm:$0xf0]  ;;  %v7106_v22 = vor.u32 %v8387_v1, %v7105_v12  ;;  %v7298_v16 = vor.u32 %v8435_v37, %v7297_v14  ;;  %v7110_v42 = vor.u32 %v8384_v15, %v7107_v7  ;;  %v3122_v12 = vperm.slane %v9476_v6, 4 }
 0x8fc   :  { %v7302_v35 = vor.u32 %v8432_v17, %v7299_v21  ;;  %v3123_v21 = vperm.slane %v9476_v6, 5 }
 0x8fe   :  { %3724 = vmatpush.bf16.msra.mxu0 %v7202_v24  ;;  %3738 = vmatpush.bf16.msra.mxu1 %v7394_v25  ;;  %v8429_v24 = vld [vmem:[#allocation2 + $0x4a4] sm:$0xf0]  ;;  %v8378_v25 = vld [vmem:[#allocation2 + $0x314] sm:$0xf] }
 0x8ff   :  { %3752 = vmatpush.bf16.msra.mxu2 %v7206_v33  ;;  %3766 = vmatpush.bf16.msra.mxu3 %v7398_v32  ;;  %v7275_v33 = vld [vmem:[#allocation2 + $0x4a8] sm:$0xf0]  ;;  %v7082_v32 = vor.u32 %v8381_v44, %v7081_v0  ;;  %v7274_v4 = vor.u32 %v8429_v24, %v7273_v45  ;;  %v7086_v20 = vor.u32 %v8378_v25, %v7083_v3 }
 0x900   :  { %v7278_v34 = vor.u32 %v8426_v36, %v7275_v33 }
 0x902   :  { %3725 = vmatpush.bf16.msra.mxu0 %v7178_v41  ;;  %3739 = vmatpush.bf16.msra.mxu1 %v7370_v43 }
 0x903   :  { %3753 = vmatpush.bf16.msra.mxu2 %v7182_v61  ;;  %3767 = vmatpush.bf16.msra.mxu3 %v7374_v48 }
 0x904   :  { %3674 = vmatmul.bf16.vlgmr.msrb.gmra.mxu0 %v9455_v19  ;;  %3688 = vmatmul.bf16.vlgmr.msrb.gmra.mxu1 %v9459_v5 }
 0x905   :  { %3702 = vmatmul.bf16.vlgmr.msrb.gmra.mxu2 %v9455_v19  ;;  %3716 = vmatmul.bf16.vlgmr.msrb.gmra.mxu3 %v9459_v5 }
 0x906   :  { %3726 = vmatpush.bf16.msra.mxu0 %v7154_v30  ;;  %3740 = vmatpush.bf16.msra.mxu1 %v7346_v58  ;;  %v3119_v58 = vperm.slane %v9476_v6, 1 }
 0x907   :  { %3754 = vmatpush.bf16.msra.mxu2 %v7158_v63  ;;  %3768 = vmatpush.bf16.msra.mxu3 %v7350_v2 }
 0x90a   :  { %3727 = vmatpush.bf16.msra.mxu0 %v7130_v31  ;;  %3741 = vmatpush.bf16.msra.mxu1 %v7322_v28 }
 0x90b   :  { %3755 = vmatpush.bf16.msra.mxu2 %v7134_v13  ;;  %3769 = vmatpush.bf16.msra.mxu3 %v7326_v56 }
 0x90e   :  { %3728 = vmatpush.bf16.msra.mxu0 %v7106_v22  ;;  %3742 = vmatpush.bf16.msra.mxu1 %v7298_v16 }
 0x90f   :  { %3756 = vmatpush.bf16.msra.mxu2 %v7110_v42  ;;  %3770 = vmatpush.bf16.msra.mxu3 %v7302_v35 }
 0x912   :  { %3729 = vmatpush.bf16.msra.mxu0 %v7082_v32  ;;  %3743 = vmatpush.bf16.msra.mxu1 %v7274_v4 }
 0x913   :  { %3757 = vmatpush.bf16.msra.mxu2 %v7086_v20  ;;  %3771 = vmatpush.bf16.msra.mxu3 %v7278_v34 }
 0x915   :  { %3730 = vmatmul.bf16.vlgmr.msra.gmra.mxu0 %v9455_v19  ;;  %3744 = vmatmul.bf16.vlgmr.msra.gmra.mxu1 %v9459_v5 }
 0x916   :  { %3758 = vmatmul.bf16.vlgmr.msra.gmra.mxu2 %v9455_v19  ;;  %3772 = vmatmul.bf16.vlgmr.msra.gmra.mxu3 %v9459_v5  ;;  %v3120_v5 = vperm.slane %v9476_v6, 2 }
 0x971   :  { %v3619_v39 = vpop.f32.mrf.mxu0  ;;  %v3633_v41 = vpop.f32.mrf.mxu1 }
 0x972   :  { %v3620_v43 = vadd.f32 %v3619_v39, %v3118_v38 }
 0x974   :  { %v3634_v29 = vadd.f32 %v3633_v41, %v3620_v43 }
 0x976   :  { %3840 = vrot.lane.b32.xlu2 %v3634_v29, %s8908_s2 }
 0x978   :  { %v3647_v47 = vpop.f32.mrf.mxu2  ;;  %v3661_v61 = vpop.f32.mrf.mxu3 }
 0x979   :  { %v3621_v48 = vpop.f32.mrf.mxu0  ;;  %v3635_v49 = vpop.f32.mrf.mxu1  ;;  %v3648_v63 = vadd.f32 %v3647_v47, %v3119_v58 }
 0x97a   :  { %v3622_v19 = vadd.f32 %v3621_v48, %v3118_v38 }
 0x97b   :  { %v3662_v31 = vadd.f32 %v3661_v61, %v3648_v63 }
 0x97c   :  { %v3636_v26 = vadd.f32 %v3635_v49, %v3622_v19 }
 0x97e   :  { %4110 = vrot.lane.b32.xlu2 %v3636_v26, %s8908_s2 }
 0x980   :  { %v3649_v52 = vpop.f32.mrf.mxu2  ;;  %v3663_v54 = vpop.f32.mrf.mxu3 }
 0x981   :  { %v3675_v55 = vpop.f32.mrf.mxu0  ;;  %v3689_v59 = vpop.f32.mrf.mxu1  ;;  %v3650_v22 = vadd.f32 %v3649_v52, %v3119_v58 }
 0x982   :  { %v3676_v30 = vadd.f32 %v3675_v55, %v3120_v5 }
 0x983   :  { %v3664_v42 = vadd.f32 %v3663_v54, %v3650_v22 }
 0x984   :  { %v3690_v50 = vadd.f32 %v3689_v59, %v3676_v30 }
 0x986   :  { %3842 = vrot.lane.b32.xlu0 %v3690_v50, %s8908_s2  ;;  %7447 = vmatpush.xpose.msk.msrb.mxu0 %vm982_vm7, %v3690_v50 }
 0x988   :  { %v3703_v2 = vpop.f32.mrf.mxu2  ;;  %v3717_v18 = vpop.f32.mrf.mxu3 }
 0x989   :  { %v3704_v8 = vadd.f32 %v3703_v2, %v3121_v27  ;;  %v3677_v9 = vpop.f32.mrf.mxu0  ;;  %7448 = vmatmul.msk.f32.vlgmr.msrb.gmra.mxu0 %vm982_vm7, %v3634_v29  ;;  %v3691_v40 = vpop.f32.mrf.mxu1 }
 0x98a   :  { %v3678_v46 = vadd.f32 %v3677_v9, %v3120_v5 }
 0x98b   :  { %v3718_v10 = vadd.f32 %v3717_v18, %v3704_v8 }
 0x98c   :  { %v3692_v28 = vadd.f32 %v3691_v40, %v3678_v46 }
 0x98d   :  { %3972 = vrot.lane.b32.xlu1 %v3718_v10, %s8908_s2  ;;  %7453 = vmatpush.xpose.msk.msra.mxu0 %vm982_vm7, %v3718_v10 }
 0x98e   :  { %3970 = vrot.lane.b32.xlu0 %v3662_v31, %s8908_s2 }
 0x990   :  { %v3705_v1 = vpop.f32.mrf.mxu2  ;;  %v3719_v56 = vpop.f32.mrf.mxu3 }
 0x991   :  { %7459 = vmatpush.xpose.msk.msrb.mxu0 %vm982_vm7, %v3692_v28  ;;  %v3706_v13 = vadd.f32 %v3705_v1, %v3121_v27 }
 0x992   :  { %7454 = vmatmul.msk.f32.vlgmr.msra.gmra.mxu0 %vm982_vm7, %v3662_v31  ;;  %v3731_v14 = vpop.f32.mrf.mxu0  ;;  %v3745_v7 = vpop.f32.mrf.mxu1 }
 0x993   :  { %v3720_v37 = vadd.f32 %v3719_v56, %v3706_v13  ;;  %v3732_v15 = vadd.f32 %v3731_v14, %v3122_v12 }
 0x995   :  { %v9495_v17 = vadd.f32 %v3745_v7, %v3732_v15  ;;  %4242 = vrot.lane.b32.xlu1 %v3720_v37, %s8908_s2  ;;  %7465 = vmatpush.xpose.msk.msra.mxu0 %vm982_vm7, %v3720_v37 }
 0x996   :  { %4112 = vrot.lane.b32.xlu0 %v3692_v28, %s8908_s2 }
 0x997   :  { %3835 = vmatpush.msrb.mxu1 %v9495_v17 }
 0x999   :  { %v3759_v16 = vpop.f32.mrf.mxu2  ;;  %v3773_v44 = vpop.f32.mrf.mxu3 }
 0x99a   :  { %7460 = vmatmul.msk.f32.vlgmr.msrb.gmra.mxu0 %vm982_vm7, %v3636_v26  ;;  %v3760_v0 = vadd.f32 %v3759_v16, %v3123_v21  ;;  %v3733_v34 = vpop.f32.mrf.mxu0  ;;  %v3747_v14 = vpop.f32.mrf.mxu1 }
 0x99b   :  { %v3734_v56 = vadd.f32 %v3733_v34, %v3122_v12 }
 0x99c   :  { %v3774_v35 = vadd.f32 %v3773_v44, %v3760_v0 }
 0x99d   :  { %v9540_v37 = vadd.f32 %v3747_v14, %v3734_v56 }
 0x99e   :  { %v8659_v45 = vpack.i.bf16 %v3774_v35, %v9495_v17  ;;  %3965 = vmatpush.msra.mxu1 %v3774_v35  ;;  %4240 = vrot.lane.b32.xlu0 %v3664_v42, %s8908_s2 }
 0x9a1   :  { %v9516_v38 = vpop.f32.mrf.mxu2 }
 0x9a2   :  { %7466 = vmatmul.msk.f32.vlgmr.msra.gmra.mxu0 %vm982_vm7, %v3664_v42 }
 0x9d0   :  { %v3841_v25 = vpop.permute.xlu2 %3840 }
 0x9d8   :  { %v4111_v4 = vpop.permute.xlu2 %4110 }
 0x9f8   :  { %v3843_v24 = vpop.permute.xlu0 %3842 }
 0x9f9   :  { %7450 = vmatpush.xpose.msk.msrb.mxu2 %vm982_vm7, %v3843_v24 }
 0x9fc   :  { %7451 = vmatmul.msk.f32.vlgmr.msrb.gmra.mxu2 %vm982_vm7, %v3841_v25 }
 0x9ff   :  { %v3973_v3 = vpop.permute.xlu1 %3972 }
 0xa00   :  { %7456 = vmatpush.xpose.msk.msra.mxu2 %vm982_vm7, %v3973_v3  ;;  %v3971_v36 = vpop.permute.xlu0 %3970 }
 0xa04   :  { %7457 = vmatmul.msk.f32.vlgmr.msra.gmra.mxu2 %vm982_vm7, %v3971_v36 }
 0xa06   :  { %v3801_v39 = vpop.f32.mrf.mxu0 }
 0xa07   :  { %v4243_v32 = vpop.permute.xlu1 %4242  ;;  %v3804_v52 = vmul.f32 0.125, %v3801_v39 }
 0xa08   :  { %v4113_v33 = vpop.permute.xlu0 %4112 }
 0xa09   :  { %7462 = vmatpush.xpose.msk.msrb.mxu2 %vm982_vm7, %v4113_v33  ;;  %v3805_v58 = vadd.f32 %v3804_v52, %v9191_v57 }
 0xa0b   :  { %v3806_v63 = vsel %vm1012_vm8, %v3805_v58, -inf }
 0xa0c   :  { %7463 = vmatmul.msk.f32.vlgmr.msrb.gmra.mxu2 %vm982_vm7, %v4111_v4  ;;  %v3762_v4 = vadd.f32 %v9516_v38, %v3123_v21 }
 0xa0d   :  { %7468 = vmatpush.xpose.msk.msra.mxu2 %vm982_vm7, %v4243_v32 }
 0xa0f   :  { %v3931_v29 = vpop.f32.mrf.mxu0 }
 0xa10   :  { %v4241_v20 = vpop.permute.xlu0 %4240  ;;  %v3934_v61 = vmul.f32 0.125, %v3931_v29 }
 0xa12   :  { %v9521_v26 = vadd.f32 %v3934_v61, %v9191_v57 }
 0xa14   :  { %7469 = vmatmul.msk.f32.vlgmr.msra.gmra.mxu2 %vm982_vm7, %v4241_v20  ;;  %v3936_v55 = vsel %vm1012_vm8, %v9521_v26, -inf }
 0xa17   :  { %v4071_v2 = vpop.f32.mrf.mxu0 }
 0xa18   :  { %v4074_v46 = vmul.f32 0.125, %v4071_v2 }
 0xa1a   :  { %v4075_v10 = vadd.f32 %v4074_v46, %v9202_v11 }
 0xa1c   :  { %v4076_v28 = vsel %vm1012_vm8, %v4075_v10, -inf }
 0xa7f   :  { %v3865_v41 = vpop.f32.mrf.mxu2 }
 0xa80   :  { %v3868_v43 = vmul.f32 0.125, %v3865_v41  ;;  %v3775_v41 = vpop.f32.mrf.mxu3 }
 0xa82   :  { %v3869_v47 = vadd.f32 %v3868_v43, %v9191_v57  ;;  %v9550_v43 = vadd.f32 %v3775_v41, %v3762_v4 }
 0xa84   :  { %v3870_v48 = vsel %vm1012_vm8, %v3869_v47, -inf }
 0xa85   :  { %3871 = vmax.xlane.f32.xlu2 %v3870_v48 }
 0xa87   :  { %v3995_v49 = vpop.f32.mrf.mxu2 }
 0xa88   :  { %v3998_v19 = vmul.f32 0.125, %v3995_v49 }
 0xa8a   :  { %v3999_v5 = vadd.f32 %v3998_v19, %v9191_v57  ;;  %v4201_v57 = vpop.f32.mrf.mxu0 }
 0xa8b   :  { %v4204_v31 = vmul.f32 0.125, %v4201_v57 }
 0xa8c   :  { %v4000_v54 = vsel %vm1012_vm8, %v3999_v5, -inf }
 0xa8d   :  { %4001 = vmax.xlane.f32.xlu1 %v4000_v54  ;;  %3937 = vmax.xlane.f32.xlu2 %v3936_v55  ;;  %v4205_v1 = vadd.f32 %v4204_v31, %v9202_v11 }
 0xa8f   :  { %v4135_v59 = vpop.f32.mrf.mxu2  ;;  %v4206_v13 = vsel %vm1012_vm8, %v4205_v1, -inf }
 0xa90   :  { %v4138_v30 = vmul.f32 0.125, %v4135_v59 }
 0xa92   :  { %v4139_v50 = vadd.f32 %v4138_v30, %v9202_v11 }
 0xa94   :  { %v4140_v27 = vsel %vm1012_vm8, %v4139_v50, -inf }
 0xa95   :  { %4141 = vmax.xlane.f32.xlu0 %v4140_v27  ;;  %3807 = vmax.xlane.f32.xlu1 %v3806_v63 }
 0xa97   :  { %v4265_v18 = vpop.f32.mrf.mxu2 }
 0xa98   :  { %v4268_v8 = vmul.f32 0.125, %v4265_v18 }
 0xa9a   :  { %v4269_v9 = vadd.f32 %v4268_v8, %v9202_v11 }
 0xa9c   :  { %v4270_v40 = vsel %vm1012_vm8, %v4269_v9, -inf }
 0xa9d   :  { %4271 = vmax.xlane.f32.xlu2 %v4270_v40 }
 0xaa5   :  { %4077 = vmax.xlane.f32.xlu2 %v4076_v28 }
 0xaa9   :  { %8660 = vrot.lane.b32.xlu0 %v8659_v45, %s8908_s2 }
 0xaad   :  { %4207 = vmax.xlane.f32.xlu2 %v4206_v13 }
 0xac5   :  { %4152 = vrot.lane.b32.xlu2 %v9540_v37, %s8908_s2 }
 0xaf8   :  { %v3872_v15 = vpop.xlane.xlu2 %3871 }
 0xaf9   :  { %v3873_v7 = vsub.f32 %v3869_v47, %v3872_v15 }
 0xafb   :  { %v3874_v17 = vmul.f32 1.442695, %v3873_v7 }
 0xafd   :  { %8739 = vpow2.f32 %v3874_v17 }
 0xb00   :  { %v4002_v22 = vpop.xlane.xlu1 %4001  ;;  %v3938_v42 = vpop.xlane.xlu2 %3937 }
 0xb01   :  { %v4003_v11 = vsub.f32 %v3999_v5, %v4002_v22  ;;  %v3939_v27 = vsub.f32 %v9521_v26, %v3938_v42 }
 0xb03   :  { %v8740_v16 = vpop.eup %8739  ;;  %v4004_v0 = vmul.f32 1.442695, %v4003_v11  ;;  %v3940_v2 = vmul.f32 1.442695, %v3939_v27 }
 0xb04   :  { %v3876_v44 = vsel %vm1012_vm8, %v8740_v16, 0.0 }
 0xb05   :  { %8741 = vpow2.f32 %v4004_v0  ;;  %3877 = vadd.xlane.f32.xlu0 %v3876_v44 }
 0xb08   :  { %v4142_v12 = vpop.xlane.xlu0 %4141  ;;  %v3808_v3 = vpop.xlane.xlu1 %3807 }
 0xb09   :  { %v4143_v35 = vsub.f32 %v4139_v50, %v4142_v12  ;;  %v3809_v20 = vsub.f32 %v3805_v58, %v3808_v3 }
 0xb0b   :  { %v8742_v45 = vpop.eup %8741  ;;  %v4144_v24 = vmul.f32 1.442695, %v4143_v35  ;;  %v3810_v29 = vmul.f32 1.442695, %v3809_v20  ;;  %v7530_v20 = vld [vmem:[#allocation4 + $0x170] sm:$0xf] }
 0xb0c   :  { %v4006_v25 = vsel %vm1012_vm8, %v8742_v45, 0.0 }
 0xb0d   :  { %8743 = vpow2.f32 %v4144_v24  ;;  %4007 = vadd.xlane.f32.xlu1 %v4006_v25 }
 0xb10   :  { %v4272_v36 = vpop.xlane.xlu2 %4271 }
 0xb11   :  { %v4273_v33 = vsub.f32 %v4269_v9, %v4272_v36 }
 0xb13   :  { %v8744_v32 = vpop.eup %8743  ;;  %v4274_v34 = vmul.f32 1.442695, %v4273_v33 }
 0xb14   :  { %v4146_v39 = vsel %vm1012_vm8, %v8744_v32, 0.0 }
 0xb15   :  { %8745 = vpow2.f32 %v4274_v34  ;;  %4147 = vadd.xlane.f32.xlu1 %v4146_v39  ;;  %v8487_v34 = vld [vmem:[#allocation4 + $0x174] sm:$0xf0]  ;;  %v8486_v39 = vld [vmem:[#allocation4 + $0x174] sm:$0xf] }
 0xb16   :  { %8747 = vpow2.f32 %v3810_v29  ;;  %v7531_v41 = vor.u32 %v8487_v34, %v7530_v20  ;;  %v7522_v29 = vld [vmem:[#allocation4 + $0x160] sm:$0xf]  ;;  %v7578_v34 = vld [vmem:[#allocation4 + $0x1d0] sm:$0xf] }
 0xb18   :  { %v4078_v47 = vpop.xlane.xlu2 %4077  ;;  %4520 = vmatpush.bf16.msrb.mxu0 %v7531_v41  ;;  %v8498_v41 = vld [vmem:[#allocation4 + $0x1d4] sm:$0xf] }
 0xb19   :  { %4282 = vrot.lane.b32.xlu0 %v9550_v43, %s8908_s2  ;;  %v4079_v48 = vsub.f32 %v4075_v10, %v4078_v47  ;;  %v8485_v47 = vld [vmem:[#allocation4 + $0x164] sm:$0xf0] }
 0xb1b   :  { %v8746_v61 = vpop.eup %8745  ;;  %v8661_v6 = vpop.permute.xlu0 %8660  ;;  %v4080_v19 = vmul.f32 1.442695, %v4079_v48  ;;  %v8484_v48 = vld [vmem:[#allocation4 + $0x164] sm:$0xf] }
 0xb1c   :  { %v8663_v49 = vunpack.i.h.bf16 %v8661_v6  ;;  %v8662_v21 = vunpack.i.l.bf16 %v8661_v6  ;;  %v4276_v38 = vsel %vm1012_vm8, %v8746_v61, 0.0  ;;  %v8748_v52 = vpop.eup %8747  ;;  %v7524_v6 = vld [vmem:[#allocation4 + $0x168] sm:$0xf0] }
 0xb1d   :  { %4277 = vadd.xlane.f32.xlu1 %v4276_v38  ;;  %8749 = vpow2.f32 %v4080_v19  ;;  %v3812_v55 = vsel %vm1012_vm8, %v8748_v52, 0.0  ;;  %v7514_v38 = vld [vmem:[#allocation4 + $0x150] sm:$0xf]  ;;  %v8483_v19 = vld [vmem:[#allocation4 + $0x154] sm:$0xf0] }
 0xb1e   :  { %3903 = vmatpush.msrb.mxu3 %v8662_v21  ;;  %v7527_v21 = vor.u32 %v8484_v48, %v7524_v6  ;;  %v8497_v48 = vld [vmem:[#allocation4 + $0x1c4] sm:$0xf0]  ;;  %v8496_v6 = vld [vmem:[#allocation4 + $0x1c4] sm:$0xf] }
 0xb20   :  { %4033 = vmatpush.msra.mxu3 %v8663_v49  ;;  %v4208_v5 = vpop.xlane.xlu2 %4207  ;;  %v7523_v49 = vor.u32 %v8485_v47, %v7522_v29 }
 0xb21   :  { %v4209_v54 = vsub.f32 %v4205_v1, %v4208_v5  ;;  %v8482_v5 = vld [vmem:[#allocation4 + $0x154] sm:$0xf] }
 0xb22   :  { %4521 = vmatpush.bf16.msrb.mxu0 %v7523_v49  ;;  %v7572_v49 = vld [vmem:[#allocation4 + $0x1c8] sm:$0xf0] }
 0xb23   :  { %v4210_v59 = vmul.f32 1.442695, %v4209_v54  ;;  %v8750_v30 = vpop.eup %8749  ;;  %v7515_v54 = vor.u32 %v8483_v19, %v7514_v38  ;;  %v7575_v19 = vor.u32 %v8496_v6, %v7572_v49 }
 0xb24   :  { %v4082_v58 = vsel %vm1012_vm8, %v8750_v30, 0.0 }
 0xb25   :  { %3813 = vadd.xlane.f32.xlu1 %v3812_v55  ;;  %8751 = vpow2.f32 %v4210_v59  ;;  %v7506_v59 = vld [vmem:[#allocation4 + $0x140] sm:$0xf] }
 0xb26   :  { %8753 = vpow2.f32 %v3940_v2  ;;  %4522 = vmatpush.bf16.msrb.mxu0 %v7515_v54  ;;  %v7498_v2 = vld [vmem:[#allocation4 + $0x130] sm:$0xf]  ;;  %v8494_v54 = vld [vmem:[#allocation4 + $0x1b4] sm:$0xf] }
 0xb28   :  { %v4153_v57 = vpop.permute.xlu2 %4152 }
 0xb2b   :  { %v8752_v50 = vpop.eup %8751 }
 0xb2c   :  { %v4212_v63 = vsel %vm1012_vm8, %v8752_v50, 0.0  ;;  %v8754_v18 = vpop.eup %8753 }
 0xb2d   :  { %4083 = vadd.xlane.f32.xlu1 %v4082_v58  ;;  %v3942_v8 = vsel %vm1012_vm8, %v8754_v18, 0.0  ;;  %v8480_v58 = vld [vmem:[#allocation4 + $0x144] sm:$0xf] }
 0xb35   :  { %4213 = vadd.xlane.f32.xlu1 %v4212_v63 }
 0xb43   :  { %3943 = vadd.xlane.f32.xlu0 %v3942_v8  ;;  %v8478_v8 = vld [vmem:[#allocation4 + $0x134] sm:$0xf] }
 0xb78   :  { %v3878_v9 = vpop.xlane.xlu0 %3877 }
 0xb79   :  { %8755 = vrcp.f32 %v3878_v9  ;;  %v7500_v9 = vld [vmem:[#allocation4 + $0x138] sm:$0xf0] }
 0xb7f   :  { %v8756_v46 = vpop.eup %8755 }
 0xb80   :  { %v3880_v40 = vmul.f32 %v8756_v46, %v8740_v16  ;;  %v4008_v10 = vpop.xlane.xlu1 %4007 }
 0xb81   :  { %8757 = vrcp.f32 %v4008_v10  ;;  %v7490_v10 = vld [vmem:[#allocation4 + $0x120] sm:$0xf] }
 0xb82   :  { %7452 = vmatmul.msk.f32.vlgmr.msrb.gmra.mxu3 %vm1012_vm8, %v3880_v40  ;;  %v7503_v40 = vor.u32 %v8478_v8, %v7500_v9  ;;  %v7546_v9 = vld [vmem:[#allocation4 + $0x190] sm:$0xf] }
 0xb83   :  { %4173 = vmatpush.msrb.mxu3 %v4153_v57  ;;  %v8477_v57 = vld [vmem:[#allocation4 + $0x124] sm:$0xf0] }
 0xb87   :  { %v8758_v26 = vpop.eup %8757 }
 0xb88   :  { %v4010_v31 = vmul.f32 %v8758_v26, %v8742_v45  ;;  %v4148_v28 = vpop.xlane.xlu1 %4147  ;;  %v8476_v26 = vld [vmem:[#allocation4 + $0x124] sm:$0xf] }
 0xb89   :  { %8759 = vrcp.f32 %v4148_v28  ;;  %v7491_v28 = vor.u32 %v8477_v57, %v7490_v10  ;;  %v7548_v10 = vld [vmem:[#allocation4 + $0x198] sm:$0xf0] }
 0xb8a   :  { %7458 = vmatmul.msk.f32.vlgmr.msra.gmra.mxu3 %vm1012_vm8, %v4010_v31  ;;  %v7492_v31 = vld [vmem:[#allocation4 + $0x128] sm:$0xf0] }
 0xb8b   :  { %v4283_v1 = vpop.permute.xlu0 %4282 }
 0xb8c   :  { %4303 = vmatpush.msra.mxu3 %v4283_v1  ;;  %v7495_v1 = vor.u32 %v8476_v26, %v7492_v31 }
 0xb8f   :  { %v8760_v13 = vpop.eup %8759 }
 0xb90   :  { %v4150_v56 = vmul.f32 %v8760_v13, %v8744_v32  ;;  %v4278_v14 = vpop.xlane.xlu1 %4277  ;;  %v7482_v13 = vld [vmem:[#allocation4 + $0x110] sm:$0xf] }
 0xb91   :  { %8761 = vrcp.f32 %v4278_v14  ;;  %v8474_v14 = vld [vmem:[#allocation4 + $0x114] sm:$0xf] }
 0xb92   :  { %7464 = vmatmul.msk.f32.vlgmr.msrb.gmra.mxu3 %vm1012_vm8, %v4150_v56  ;;  %v8475_v56 = vld [vmem:[#allocation4 + $0x114] sm:$0xf0] }
 0xb97   :  { %v8762_v15 = vpop.eup %8761 }
 0xb98   :  { %v4280_v7 = vmul.f32 %v8762_v15, %v8746_v61  ;;  %v3814_v17 = vpop.xlane.xlu1 %3813  ;;  %v7484_v15 = vld [vmem:[#allocation4 + $0x118] sm:$0xf0] }
 0xb99   :  { %8763 = vrcp.f32 %v3814_v17  ;;  %v7487_v17 = vor.u32 %v8474_v14, %v7484_v15  ;;  %v8489_v14 = vld [vmem:[#allocation4 + $0x184] sm:$0xf0]  ;;  %v8488_v15 = vld [vmem:[#allocation4 + $0x184] sm:$0xf] }
 0xb9a   :  { %7470 = vmatmul.msk.f32.vlgmr.msra.gmra.mxu3 %vm1012_vm8, %v4280_v7  ;;  %v7483_v7 = vor.u32 %v8475_v56, %v7482_v13  ;;  %v7538_v56 = vld [vmem:[#allocation4 + $0x180] sm:$0xf] }
 0xb9f   :  { %v8764_v22 = vpop.eup %8763 }
 0xba0   :  { %v3816_v11 = vmul.f32 %v8764_v22, %v8748_v52  ;;  %v4084_v0 = vpop.xlane.xlu1 %4083  ;;  %v7516_v52 = vld [vmem:[#allocation4 + $0x158] sm:$0xf0]  ;;  %v7474_v22 = vld [vmem:[#allocation4 + $0x100] sm:$0xf] }
 0xba1   :  { %v7519_v55 = vor.u32 %v8482_v5, %v7516_v52  ;;  %v7562_v5 = vld [vmem:[#allocation4 + $0x1b0] sm:$0xf]  ;;  %v8495_v52 = vld [vmem:[#allocation4 + $0x1b4] sm:$0xf0] }
 0xba2   :  { %7449 = vmatmul.msk.f32.vlgmr.msrb.gmra.mxu1 %vm1012_vm8, %v3816_v11  ;;  %v8473_v11 = vld [vmem:[#allocation4 + $0x104] sm:$0xf0] }
 0xba3   :  { %4105 = vmatpush.msrb.mxu1 %v9540_v37 }
 0xba8   :  { %v4214_v12 = vpop.xlane.xlu1 %4213 }
 0xbb6   :  { %v3944_v16 = vpop.xlane.xlu0 %3943 }
 0xbb7   :  { %8765 = vrcp.f32 %v3944_v16  ;;  %v8472_v16 = vld [vmem:[#allocation4 + $0x104] sm:$0xf] }
 0xbb8   :  { %8767 = vrcp.f32 %v4084_v0  ;;  %v7475_v0 = vor.u32 %v8473_v11, %v7474_v22  ;;  %v7539_v22 = vor.u32 %v8489_v14, %v7538_v56  ;;  %v7540_v11 = vld [vmem:[#allocation4 + $0x188] sm:$0xf0]  ;;  %v7831_v56 = vld [vmem:[#allocation6 + $0x3d0] sm:$0xf0] }
 0xbb9   :  { %8769 = vrcp.f32 %v4214_v12  ;;  %v7594_v12 = vld [vmem:[#allocation4 + $0x1f0] sm:$0xf] }
 0xbbd   :  { %v8766_v44 = vpop.eup %8765 }
 0xbbe   :  { %v3946_v42 = vmul.f32 %v8766_v44, %v8754_v18  ;;  %v8768_v35 = vpop.eup %8767  ;;  %v8479_v18 = vld [vmem:[#allocation4 + $0x134] sm:$0xf0]  ;;  %v7476_v44 = vld [vmem:[#allocation4 + $0x108] sm:$0xf0] }
 0xbbf   :  { %v4086_v45 = vmul.f32 %v8768_v35, %v8750_v30  ;;  %v8770_v24 = vpop.eup %8769  ;;  %v8481_v30 = vld [vmem:[#allocation4 + $0x144] sm:$0xf0]  ;;  %v7499_v46 = vor.u32 %v8479_v18, %v7498_v2  ;;  %v8503_v35 = vld [vmem:[#allocation4 + $0x1f4] sm:$0xf0] }
 0xbc0   :  { %7455 = vmatmul.msk.f32.vlgmr.msra.gmra.mxu1 %vm1012_vm8, %v3946_v42  ;;  %v4216_v25 = vmul.f32 %v8770_v24, %v8752_v50  ;;  %v7508_v50 = vld [vmem:[#allocation4 + $0x148] sm:$0xf0]  ;;  %v7507_v27 = vor.u32 %v8481_v30, %v7506_v59  ;;  %v7479_v42 = vor.u32 %v8472_v16, %v7476_v44  ;;  %v7595_v24 = vor.u32 %v8503_v35, %v7594_v12 }
 0xbc1   :  { %4235 = vmatpush.msra.mxu1 %v9550_v43  ;;  %v7532_v43 = vld [vmem:[#allocation4 + $0x178] sm:$0xf0]  ;;  %v7511_v63 = vor.u32 %v8480_v58, %v7508_v50  ;;  %v7563_v59 = vor.u32 %v8495_v52, %v7562_v5  ;;  %v7554_v58 = vld [vmem:[#allocation4 + $0x1a0] sm:$0xf]  ;;  %v8493_v50 = vld [vmem:[#allocation4 + $0x1a4] sm:$0xf0] }
 0xbc2   :  { %v7535_v61 = vor.u32 %v8486_v39, %v7532_v43  ;;  %4523 = vmatpush.bf16.msrb.mxu0 %v7507_v27  ;;  %v8499_v39 = vld [vmem:[#allocation4 + $0x1d4] sm:$0xf0]  ;;  %v7580_v43 = vld [vmem:[#allocation4 + $0x1d8] sm:$0xf0]  ;;  %v8492_v27 = vld [vmem:[#allocation4 + $0x1a4] sm:$0xf]  ;;  %v7555_v18 = vor.u32 %v8493_v50, %v7554_v58 }
 0xbc3   :  { %v7579_v29 = vor.u32 %v8499_v39, %v7578_v34  ;;  %v7583_v47 = vor.u32 %v8498_v41, %v7580_v43  ;;  %v8534_v58 = vld [vmem:[#allocation6 + $0x2ec] sm:$0xf0] }
 0xbc4   :  { %4548 = vmatpush.bf16.msrb.mxu2 %v7535_v61  ;;  %v7570_v61 = vld [vmem:[#allocation4 + $0x1c0] sm:$0xf] }
 0xbc5   :  { %v7571_v38 = vor.u32 %v8497_v48, %v7570_v61 }
 0xbc6   :  { %4524 = vmatpush.bf16.msrb.mxu0 %v7499_v46  ;;  %v8491_v46 = vld [vmem:[#allocation4 + $0x194] sm:$0xf0] }
 0xbc7   :  { %v7547_v57 = vor.u32 %v8491_v46, %v7546_v9  ;;  %v7847_v9 = vld [vmem:[#allocation6 + $0x3f0] sm:$0xf0]  ;;  %v7701_v46 = vld [vmem:[#allocation6 + $0x2c0] sm:$0xf] }
 0xbc8   :  { %7461 = vmatmul.msk.f32.vlgmr.msrb.gmra.mxu1 %vm1012_vm8, %v4086_v45  ;;  %4549 = vmatpush.bf16.msrb.mxu2 %v7527_v21  ;;  %v8502_v45 = vld [vmem:[#allocation4 + $0x1f4] sm:$0xf] }
 0xbc9   :  { %4534 = vmatpush.bf16.msrb.mxu1 %v7595_v24 }
 0xbca   :  { %4525 = vmatpush.bf16.msrb.mxu0 %v7491_v28 }
 0xbcc   :  { %4550 = vmatpush.bf16.msrb.mxu2 %v7519_v55  ;;  %v7564_v55 = vld [vmem:[#allocation4 + $0x1b8] sm:$0xf0] }
 0xbcd   :  { %v7567_v30 = vor.u32 %v8494_v54, %v7564_v55 }
 0xbce   :  { %4526 = vmatpush.bf16.msrb.mxu0 %v7483_v7 }
 0xbd0   :  { %7467 = vmatmul.msk.f32.vlgmr.msra.gmra.mxu1 %vm1012_vm8, %v4216_v25  ;;  %4551 = vmatpush.bf16.msrb.mxu2 %v7511_v63  ;;  %v7596_v25 = vld [vmem:[#allocation4 + $0x1f8] sm:$0xf0]  ;;  %v7556_v63 = vld [vmem:[#allocation4 + $0x1a8] sm:$0xf0] }
 0xbd1   :  { %v7559_v8 = vor.u32 %v8492_v27, %v7556_v63  ;;  %v8532_v27 = vld [vmem:[#allocation6 + $0x2e4] sm:$0xf]  ;;  %v7719_v63 = vld [vmem:[#allocation6 + $0x2f0] sm:$0xf0] }
 0xbd2   :  { %4527 = vmatpush.bf16.msrb.mxu0 %v7475_v0  ;;  %v7543_v0 = vor.u32 %v8488_v15, %v7540_v11 }
 0xbd4   :  { %4552 = vmatpush.bf16.msrb.mxu2 %v7503_v40  ;;  %v8490_v40 = vld [vmem:[#allocation4 + $0x194] sm:$0xf] }
 0xbd5   :  { %v7551_v26 = vor.u32 %v8490_v40, %v7548_v10  ;;  %v8530_v10 = vld [vmem:[#allocation6 + $0x2cc] sm:$0xf0] }
 0xbd8   :  { %4553 = vmatpush.bf16.msrb.mxu2 %v7495_v1 }
 0xbdc   :  { %4554 = vmatpush.bf16.msrb.mxu2 %v7487_v17 }
 0xbe0   :  { %4555 = vmatpush.bf16.msrb.mxu2 %v7479_v42 }
 0xc05   :  { %v3905_v37 = vpop.f32.mrf.mxu3 }
 0xc0d   :  { %v4035_v3 = vpop.f32.mrf.mxu3 }
 0xc15   :  { %v4175_v36 = vpop.f32.mrf.mxu3 }
 0xc16   :  { %v8664_v33 = vpack.i.bf16 %v4175_v36, %v3905_v37  ;;  %v7586_v37 = vld [vmem:[#allocation4 + $0x1e0] sm:$0xf]  ;;  %v7599_v36 = vor.u32 %v8502_v45, %v7596_v25 }
 0xc18   :  { %8665 = vrot.lane.b32.xlu2 %v8664_v33, %s8908_s2  ;;  %v8500_v33 = vld [vmem:[#allocation4 + $0x1e4] sm:$0xf]  ;;  %4562 = vmatpush.bf16.msrb.mxu3 %v7599_v36 }
 0xc1d   :  { %v4305_v32 = vpop.f32.mrf.mxu3 }
 0xc1e   :  { %v8669_v4 = vpack.i.bf16 %v4305_v32, %v4035_v3  ;;  %v8501_v3 = vld [vmem:[#allocation4 + $0x1e4] sm:$0xf0]  ;;  %v7588_v32 = vld [vmem:[#allocation4 + $0x1e8] sm:$0xf0] }
 0xc1f   :  { %v7591_v20 = vor.u32 %v8500_v33, %v7588_v32  ;;  %v3837_v21 = vpop.f32.mrf.mxu1 }
 0xc20   :  { %8670 = vrot.lane.b32.xlu1 %v8669_v4, %s8908_s2  ;;  %v7587_v4 = vor.u32 %v8501_v3, %v7586_v37  ;;  %v7471_v37 = vld [vmem:[%s9981_s4 + $0x2] sm:$0x3] }
 0xc21   :  { %4563 = vmatpush.bf16.msrb.mxu3 %v7591_v20  ;;  %v4356_v36 = vperm.slane %v7471_v37, 0 }
 0xc22   :  { %4535 = vmatpush.bf16.msrb.mxu1 %v7587_v4  ;;  %v4357_v4 = vperm.slane %v7471_v37, 1  ;;  %v7685_v37 = vld [vmem:[#allocation6 + $0x2a0] sm:$0xf] }
 0xc25   :  { %4564 = vmatpush.bf16.msrb.mxu3 %v7583_v47 }
 0xc26   :  { %4536 = vmatpush.bf16.msrb.mxu1 %v7579_v29 }
 0xc29   :  { %4565 = vmatpush.bf16.msrb.mxu3 %v7575_v19 }
 0xc2a   :  { %4537 = vmatpush.bf16.msrb.mxu1 %v7571_v38 }
 0xc2d   :  { %4566 = vmatpush.bf16.msrb.mxu3 %v7567_v30  ;;  %v7717_v30 = vld [vmem:[#allocation6 + $0x2e0] sm:$0xf] }
 0xc2e   :  { %4538 = vmatpush.bf16.msrb.mxu1 %v7563_v59  ;;  %v7718_v50 = vor.u32 %v8534_v58, %v7717_v30  ;;  %v8518_v30 = vld [vmem:[#allocation6 + $0x26c] sm:$0xf0]  ;;  %v7781_v58 = vld [vmem:[#allocation6 + $0x360] sm:$0xf] }
 0xc30   :  { %5050 = vmatpush.bf16.msra.mxu0 %v7718_v50  ;;  %v8550_v50 = vld [vmem:[#allocation6 + $0x36c] sm:$0xf0] }
 0xc31   :  { %4567 = vmatpush.bf16.msrb.mxu3 %v7559_v8  ;;  %v8564_v8 = vld [vmem:[#allocation6 + $0x3e4] sm:$0xf] }
 0xc32   :  { %4539 = vmatpush.bf16.msrb.mxu1 %v7555_v18  ;;  %v7722_v18 = vor.u32 %v8532_v27, %v7719_v63  ;;  %v7850_v40 = vor.u32 %v8564_v8, %v7847_v9  ;;  %v7655_v27 = vld [vmem:[#allocation6 + $0x270] sm:$0xf0]  ;;  %v7782_v63 = vor.u32 %v8550_v50, %v7781_v58  ;;  %v7837_v50 = vld [vmem:[#allocation6 + $0x3c8] sm:$0xf] }
 0xc33   :  { %v7783_v8 = vld [vmem:[#allocation6 + $0x370] sm:$0xf0] }
 0xc34   :  { %5078 = vmatpush.bf16.msra.mxu2 %v7722_v18  ;;  %v8548_v18 = vld [vmem:[#allocation6 + $0x364] sm:$0xf] }
 0xc35   :  { %4568 = vmatpush.bf16.msrb.mxu3 %v7551_v26  ;;  %v7786_v9 = vor.u32 %v8548_v18, %v7783_v8  ;;  %v8561_v18 = vld [vmem:[#allocation6 + $0x3cc] sm:$0xf]  ;;  %v7839_v8 = vld [vmem:[#allocation6 + $0x3d8] sm:$0xf0] }
 0xc36   :  { %4540 = vmatpush.bf16.msrb.mxu1 %v7547_v57  ;;  %v8562_v57 = vld [vmem:[#allocation6 + $0x3cc] sm:$0xf0] }
 0xc39   :  { %4569 = vmatpush.bf16.msrb.mxu3 %v7543_v0 }
 0xc3a   :  { %4541 = vmatpush.bf16.msrb.mxu1 %v7539_v22 }
 0xc3d   :  { %v3967_v2 = vpop.f32.mrf.mxu1  ;;  %5092 = vmatpush.bf16.msra.mxu3 %v7850_v40  ;;  %v8514_v40 = vld [vmem:[#allocation6 + $0x24c] sm:$0xf0] }
 0xc45   :  { %v4107_v13 = vpop.f32.mrf.mxu1 }
 0xc4d   :  { %v4237_v35 = vpop.f32.mrf.mxu1 }
 0xc72   :  { %v8666_v31 = vpop.permute.xlu2 %8665 }
 0xc73   :  { %v8668_v28 = vunpack.i.h.bf16 %v8666_v31  ;;  %v8667_v1 = vunpack.i.l.bf16 %v8666_v31  ;;  %v8528_v31 = vld [vmem:[#allocation6 + $0x2c4] sm:$0xf] }
 0xc75   :  { %v4046_v7 = vsel %vm982_vm7, %v3837_v21, %v8667_v1  ;;  %v4316_v17 = vsel %vm982_vm7, %v4107_v13, %v8668_v28  ;;  %v7703_v28 = vld [vmem:[#allocation6 + $0x2d0] sm:$0xf0]  ;;  %v8560_v1 = vld [vmem:[#allocation6 + $0x3c4] sm:$0xf] }
 0xc76   :  { %v4318_v16 = vpack.c.bf16 %v4316_v17, %v4046_v7  ;;  %v7706_v13 = vor.u32 %v8528_v31, %v7703_v28  ;;  %v7834_v14 = vor.u32 %v8560_v1, %v7831_v56  ;;  %v8544_v1 = vld [vmem:[#allocation6 + $0x344] sm:$0xf] }
 0xc78   :  { %4528 = vmatmul.bf16.vlgmr.msrb.gmra.mxu0 %v4318_v16  ;;  %4556 = vmatmul.bf16.vlgmr.msrb.gmra.mxu2 %v4318_v16 }
 0xc79   :  { %5079 = vmatpush.bf16.msra.mxu2 %v7706_v13  ;;  %5093 = vmatpush.bf16.msra.mxu3 %v7834_v14  ;;  %v7767_v13 = vld [vmem:[#allocation6 + $0x350] sm:$0xf0]  ;;  %v7621_v14 = vld [vmem:[#allocation6 + $0x220] sm:$0xf] }
 0xc7a   :  { %v7770_v56 = vor.u32 %v8544_v1, %v7767_v13 }
 0xc92   :  { %v8671_v44 = vpop.permute.xlu1 %8670 }
 0xc93   :  { %v8673_v42 = vunpack.i.h.bf16 %v8671_v44  ;;  %v8672_v12 = vunpack.i.l.bf16 %v8671_v44 }
 0xc95   :  { %v4317_v45 = vsel %vm982_vm7, %v4237_v35, %v8673_v42  ;;  %v4047_v24 = vsel %vm982_vm7, %v3967_v2, %v8672_v12 }
 0xc96   :  { %v4319_v25 = vpack.c.bf16 %v4317_v45, %v4047_v24 }
 0xc98   :  { %4542 = vmatmul.bf16.vlgmr.msrb.gmra.mxu1 %v4319_v25  ;;  %4570 = vmatmul.bf16.vlgmr.msrb.gmra.mxu3 %v4319_v25 }
 0xcf5   :  { %v4529_v3 = vpop.f32.mrf.mxu0 }
 0xcf6   :  { %v4530_v20 = vadd.f32 %v4529_v3, %v4356_v36  ;;  %v8526_v3 = vld [vmem:[#allocation6 + $0x2ac] sm:$0xf0] }
 0xcfb   :  { %v4557_v33 = vpop.f32.mrf.mxu2 }
 0xcfc   :  { %v4558_v34 = vadd.f32 %v4557_v33, %v4357_v4  ;;  %v7686_v33 = vor.u32 %v8526_v3, %v7685_v37  ;;  %v7605_v3 = vld [vmem:[#allocation6 + $0x200] sm:$0xf] }
 0xcfd   :  { %v4531_v29 = vpop.f32.mrf.mxu0 }
 0xcfe   :  { %v4532_v49 = vadd.f32 %v4531_v29, %v4356_v36  ;;  %v7813_v36 = vld [vmem:[#allocation6 + $0x3a0] sm:$0xf] }
 0xd03   :  { %v4559_v48 = vpop.f32.mrf.mxu2 }
 0xd04   :  { %v4560_v38 = vadd.f32 %v4559_v48, %v4357_v4  ;;  %v8524_v4 = vld [vmem:[#allocation6 + $0x2a4] sm:$0xf]  ;;  %v7797_v48 = vld [vmem:[#allocation6 + $0x380] sm:$0xf] }
 0xd15   :  { %v4543_v32 = vpop.f32.mrf.mxu1 }
 0xd16   :  { %v4544_v39 = vadd.f32 %v4543_v32, %v4530_v20  ;;  %v8558_v32 = vld [vmem:[#allocation6 + $0x3ac] sm:$0xf0]  ;;  %v7687_v20 = vld [vmem:[#allocation6 + $0x2b0] sm:$0xf0] }
 0xd18   :  { %v4576_v47 = vadd.f32 %v4544_v39, %v9445_v51  ;;  %v7845_v51 = vld [vmem:[#allocation6 + $0x3e0] sm:$0xf]  ;;  %v7690_v39 = vor.u32 %v8524_v4, %v7687_v20  ;;  %v8538_v4 = vld [vmem:[#allocation6 + $0x30c] sm:$0xf0]  ;;  %v8504_v20 = vld [vmem:[#allocation6 + $0x204] sm:$0xf] }
 0xd1a   :  { %5080 = vmatpush.bf16.msra.mxu2 %v7690_v39 }
 0xd1b   :  { %v4571_v41 = vpop.f32.mrf.mxu3 }
 0xd1c   :  { %v4572_v43 = vadd.f32 %v4571_v41, %v4558_v34  ;;  %v7814_v34 = vor.u32 %v8558_v32, %v7813_v36  ;;  %v8556_v41 = vld [vmem:[#allocation6 + $0x3a4] sm:$0xf]  ;;  %v8506_v36 = vld [vmem:[#allocation6 + $0x20c] sm:$0xf0] }
 0xd1d   :  { %v4545_v6 = vpop.f32.mrf.mxu1  ;;  %v7606_v32 = vor.u32 %v8506_v36, %v7605_v3  ;;  %v8553_v3 = vld [vmem:[#allocation6 + $0x38c] sm:$0xf]  ;;  %v7807_v36 = vld [vmem:[#allocation6 + $0x398] sm:$0xf0] }
 0xd1e   :  { %v4577_v61 = vadd.f32 %v4572_v43, %v9447_v53  ;;  %v4546_v19 = vadd.f32 %v4545_v6, %v4532_v49  ;;  %v8566_v53 = vld [vmem:[#allocation6 + $0x3ec] sm:$0xf0]  ;;  %v7815_v43 = vld [vmem:[#allocation6 + $0x3b0] sm:$0xf0] }
 0xd1f   :  { %v7846_v2 = vor.u32 %v8566_v53, %v7845_v51  ;;  %v7818_v29 = vor.u32 %v8556_v41, %v7815_v43  ;;  %v8554_v49 = vld [vmem:[#allocation6 + $0x38c] sm:$0xf0]  ;;  %v8516_v53 = vld [vmem:[#allocation6 + $0x264] sm:$0xf] }
 0xd20   :  { %v4584_v21 = vadd.f32 %v4577_v61, %v4576_v47  ;;  %v4578_v54 = vadd.f32 %v4546_v19, %v9449_v60  ;;  %v7829_v60 = vld [vmem:[#allocation6 + $0x3c0] sm:$0xf]  ;;  %v7798_v19 = vor.u32 %v8554_v49, %v7797_v48  ;;  %v8536_v43 = vld [vmem:[#allocation6 + $0x304] sm:$0xf]  ;;  %v8535_v48 = vld [vmem:[#allocation6 + $0x2f4] sm:$0xf0] }
 0xd21   :  { %5064 = vmatpush.bf16.msra.mxu1 %v7846_v2  ;;  %v7830_v26 = vor.u32 %v8562_v57, %v7829_v60  ;;  %5094 = vmatpush.bf16.msra.mxu3 %v7818_v29  ;;  %v7658_v2 = vor.u32 %v8516_v53, %v7655_v27  ;;  %v8546_v57 = vld [vmem:[#allocation6 + $0x34c] sm:$0xf0]  ;;  %v7735_v29 = vld [vmem:[#allocation6 + $0x310] sm:$0xf0]  ;;  %v8567_v49 = vld [vmem:[#allocation6 + $0x3f4] sm:$0xf0] }
 0xd22   :  { %4585 = vadd.xlane.f32.xlu2 %v4584_v21  ;;  %v8520_v21 = vld [vmem:[#allocation6 + $0x284] sm:$0xf]  ;;  %v8563_v53 = vld [vmem:[#allocation6 + $0x3d4] sm:$0xf0]  ;;  %v8529_v27 = vld [vmem:[#allocation6 + $0x2cc] sm:$0xf] }
 0xd23   :  { %v4573_v5 = vpop.f32.mrf.mxu3 }
 0xd24   :  { %v4574_v52 = vadd.f32 %v4573_v5, %v4560_v38  ;;  %v7671_v38 = vld [vmem:[#allocation6 + $0x290] sm:$0xf0] }
 0xd25   :  { %5065 = vmatpush.bf16.msra.mxu1 %v7830_v26  ;;  %v7674_v5 = vor.u32 %v8520_v21, %v7671_v38  ;;  %v7639_v26 = vld [vmem:[#allocation6 + $0x250] sm:$0xf0] }
 0xd26   :  { %v4579_v55 = vadd.f32 %v4574_v52, %v9451_v23  ;;  %v7702_v23 = vor.u32 %v8530_v10, %v7701_v46  ;;  %v8552_v52 = vld [vmem:[#allocation6 + $0x384] sm:$0xf]  ;;  %v7637_v46 = vld [vmem:[#allocation6 + $0x240] sm:$0xf] }
 0xd27   :  { %5081 = vmatpush.bf16.msra.mxu2 %v7674_v5  ;;  %v7765_v10 = vld [vmem:[#allocation6 + $0x340] sm:$0xf]  ;;  %v7638_v60 = vor.u32 %v8514_v40, %v7637_v46  ;;  %v7727_v5 = vld [vmem:[#allocation6 + $0x2f8] sm:$0xf0]  ;;  %v7842_v46 = vor.u32 %v8561_v18, %v7839_v8  ;;  %v7693_v40 = vld [vmem:[#allocation6 + $0x2a8] sm:$0xf] }
 0xd28   :  { %v4587_v59 = vadd.f32 %v4579_v55, %v4578_v54  ;;  %5051 = vmatpush.bf16.msra.mxu0 %v7702_v23  ;;  %v8512_v23 = vld [vmem:[#allocation6 + $0x244] sm:$0xf]  ;;  %v7766_v31 = vor.u32 %v8546_v57, %v7765_v10  ;;  %v8527_v10 = vld [vmem:[#allocation6 + $0x2b4] sm:$0xf0]  ;;  %v7629_v18 = vld [vmem:[#allocation6 + $0x228] sm:$0xf] }
 0xd29   :  { %5066 = vmatpush.bf16.msra.mxu1 %v7814_v34  ;;  %v7642_v28 = vor.u32 %v8512_v23, %v7639_v26  ;;  %v7607_v34 = vld [vmem:[#allocation6 + $0x210] sm:$0xf0]  ;;  %v7694_v23 = vor.u32 %v8527_v10, %v7693_v40  ;;  %v8559_v26 = vld [vmem:[#allocation6 + $0x3b4] sm:$0xf0] }
 0xd2a   :  { %4588 = vadd.xlane.f32.xlu0 %v4587_v59  ;;  %v7653_v59 = vld [vmem:[#allocation6 + $0x260] sm:$0xf]  ;;  %v7610_v41 = vor.u32 %v8504_v20, %v7607_v34  ;;  %v8519_v20 = vld [vmem:[#allocation6 + $0x274] sm:$0xf0]  ;;  %v7789_v34 = vld [vmem:[#allocation6 + $0x368] sm:$0xf] }
 0xd2b   :  { %v7654_v51 = vor.u32 %v8518_v30, %v7653_v59  ;;  %5082 = vmatpush.bf16.msra.mxu2 %v7658_v2  ;;  %v7709_v59 = vld [vmem:[#allocation6 + $0x2c8] sm:$0xf]  ;;  %v8531_v30 = vld [vmem:[#allocation6 + $0x2d4] sm:$0xf0]  ;;  %v7711_v2 = vld [vmem:[#allocation6 + $0x2d8] sm:$0xf0] }
 0xd2c   :  { %5052 = vmatpush.bf16.msra.mxu0 %v7686_v33  ;;  %v7733_v33 = vld [vmem:[#allocation6 + $0x300] sm:$0xf]  ;;  %v8511_v8 = vld [vmem:[#allocation6 + $0x234] sm:$0xf0] }
 0xd2d   :  { %5067 = vmatpush.bf16.msra.mxu1 %v7798_v19  ;;  %v7734_v39 = vor.u32 %v8538_v4, %v7733_v33  ;;  %v8533_v19 = vld [vmem:[#allocation6 + $0x2ec] sm:$0xf]  ;;  %v7661_v4 = vld [vmem:[#allocation6 + $0x268] sm:$0xf]  ;;  %v8543_v10 = vld [vmem:[#allocation6 + $0x334] sm:$0xf0] }
 0xd2f   :  { %5083 = vmatpush.bf16.msra.mxu2 %v7642_v28  ;;  %v7695_v28 = vld [vmem:[#allocation6 + $0x2b8] sm:$0xf0] }
 0xd31   :  { %5068 = vmatpush.bf16.msra.mxu1 %v7782_v63  ;;  %v7838_v63 = vor.u32 %v8563_v53, %v7837_v50 }
 0xd35   :  { %5069 = vmatpush.bf16.msra.mxu1 %v7766_v31  ;;  %v8525_v31 = vld [vmem:[#allocation6 + $0x2ac] sm:$0xf] }
 0xd95   :  { %v4586_v15 = vpop.xlane.xlu2 %4585 }
 0xd96   :  { %v4590_v7 = vmul.f32 %v4586_v15, %v9077_v62  ;;  %v8510_v15 = vld [vmem:[#allocation6 + $0x22c] sm:$0xf0] }
 0xd98   :  { %v9584_v17 = vsub.f32 %v4576_v47, %v4590_v7  ;;  %v9586_v22 = vsub.f32 %v4577_v61, %v4590_v7  ;;  %v7669_v47 = vld [vmem:[#allocation6 + $0x280] sm:$0xf]  ;;  %v8522_v61 = vld [vmem:[#allocation6 + $0x28c] sm:$0xf0] }
 0xd99   :  { %v7670_v6 = vor.u32 %v8522_v61, %v7669_v47  ;;  %v7749_v7 = vld [vmem:[#allocation6 + $0x320] sm:$0xf]  ;;  %v7725_v47 = vld [vmem:[#allocation6 + $0x2e8] sm:$0xf]  ;;  %v7738_v61 = vor.u32 %v8536_v43, %v7735_v29  ;;  %v8551_v43 = vld [vmem:[#allocation6 + $0x374] sm:$0xf0] }
 0xd9a   :  { %v4596_v11 = vmul.f32 %v9584_v17, %v9584_v17  ;;  %v4597_v16 = vmul.f32 %v9586_v22, %v9586_v22  ;;  %v7726_v21 = vor.u32 %v8535_v48, %v7725_v47  ;;  %v8517_v29 = vld [vmem:[#allocation6 + $0x26c] sm:$0xf]  ;;  %v7663_v47 = vld [vmem:[#allocation6 + $0x278] sm:$0xf0]  ;;  %v7790_v48 = vor.u32 %v8551_v43, %v7789_v34  ;;  %v7600_v34 = vld [vmem:[%s9943_s9 + $0x2] sm:$0x3] }
 0xd9b   :  { %5053 = vmatpush.bf16.msra.mxu0 %v7670_v6  ;;  %v7853_v6 = vld [vmem:[#allocation6 + $0x3e8] sm:$0xf]  ;;  %s9983_s9 = sld [smem:[#allocation21_spill]] }
 0xd9c   :  { %v4600_v0 = vadd.f32 %v4597_v16, %v4596_v11  ;;  %v7622_v11 = vor.u32 %v8510_v15, %v7621_v14  ;;  %v8542_v16 = vld [vmem:[#allocation6 + $0x32c] sm:$0xf0]  ;;  %v7854_v38 = vor.u32 %v8567_v49, %v7853_v6  ;;  %v8557_v14 = vld [vmem:[#allocation6 + $0x3ac] sm:$0xf]  ;;  %v7823_v15 = vld [vmem:[#allocation6 + $0x3b8] sm:$0xf0]  ;;  %v7666_v6 = vor.u32 %v8517_v29, %v7663_v47 }
 0xd9d   :  { %v4589_v44 = vpop.xlane.xlu0 %4588  ;;  %v8549_v49 = vld [vmem:[#allocation6 + $0x36c] sm:$0xf]  ;;  %v4635_v29 = vperm.slane %v7600_v34, 0  ;;  %v4636_v47 = vperm.slane %v7600_v34, 1  ;;  %v8110_v34 = vld [vmem:[#allocation7 + $0x3f0] sm:$0xf] }
 0xd9e   :  { %v4591_v42 = vmul.f32 %v4589_v44, %v9077_v62  ;;  %4601 = vadd.xlane.f32.xlu1 %v4600_v0  ;;  %v8508_v0 = vld [vmem:[#allocation6 + $0x224] sm:$0xf]  ;;  %v7623_v44 = vld [vmem:[#allocation6 + $0x230] sm:$0xf0] }
 0xd9f   :  { %5054 = vmatpush.bf16.msra.mxu0 %v7654_v51  ;;  %v7710_v51 = vor.u32 %v8531_v30, %v7709_v59  ;;  %v8513_v30 = vld [vmem:[#allocation6 + $0x24c] sm:$0xf] }
 0xda0   :  { %v9593_v12 = vsub.f32 %v4578_v54, %v4591_v42  ;;  %v9595_v35 = vsub.f32 %v4579_v55, %v4591_v42  ;;  %v7799_v54 = vld [vmem:[#allocation6 + $0x390] sm:$0xf0]  ;;  %v7750_v42 = vor.u32 %v8542_v16, %v7749_v7  ;;  %v7826_v7 = vor.u32 %v8557_v14, %v7823_v15  ;;  %v7677_v16 = vld [vmem:[#allocation6 + $0x288] sm:$0xf] }
 0xda1   :  { %v7802_v55 = vor.u32 %v8552_v52, %v7799_v54  ;;  %v8565_v52 = vld [vmem:[#allocation6 + $0x3ec] sm:$0xf]  ;;  %v7730_v54 = vor.u32 %v8533_v19, %v7727_v5  ;;  %v8515_v5 = vld [vmem:[#allocation6 + $0x254] sm:$0xf0]  ;;  %v7741_v15 = vld [vmem:[#allocation6 + $0x308] sm:$0xf] }
 0xda2   :  { %v4598_v45 = vmul.f32 %v9593_v12, %v9593_v12  ;;  %v4599_v24 = vmul.f32 %v9595_v35, %v9595_v35  ;;  %5070 = vmatpush.bf16.msra.mxu1 %v7750_v42  ;;  %v7805_v42 = vld [vmem:[#allocation6 + $0x388] sm:$0xf] }
 0xda3   :  { %5095 = vmatpush.bf16.msra.mxu3 %v7802_v55  ;;  %5055 = vmatpush.bf16.msra.mxu0 %v7638_v60  ;;  %v7855_v55 = vld [vmem:[#allocation6 + $0x3f8] sm:$0xf0]  ;;  %v7821_v60 = vld [vmem:[#allocation6 + $0x3a8] sm:$0xf] }
 0xda4   :  { %v4603_v25 = vadd.f32 %v4599_v24, %v4598_v45  ;;  %v7626_v45 = vor.u32 %v8508_v0, %v7623_v44  ;;  %v8540_v24 = vld [vmem:[#allocation6 + $0x324] sm:$0xf]  ;;  %v7858_v58 = vor.u32 %v8565_v52, %v7855_v55  ;;  %v7822_v13 = vor.u32 %v8559_v26, %v7821_v60  ;;  %v8523_v0 = vld [vmem:[#allocation6 + $0x294] sm:$0xf0]  ;;  %v7773_v52 = vld [vmem:[#allocation6 + $0x348] sm:$0xf] }
 0xda5   :  { %v7678_v44 = vor.u32 %v8523_v0, %v7677_v16  ;;  %v8509_v60 = vld [vmem:[#allocation6 + $0x22c] sm:$0xf]  ;;  %v7759_v26 = vld [vmem:[#allocation6 + $0x338] sm:$0xf0] }
 0xda6   :  { %4604 = vadd.xlane.f32.xlu0 %v4603_v25  ;;  %v7751_v25 = vld [vmem:[#allocation6 + $0x330] sm:$0xf0]  ;;  %5084 = vmatpush.bf16.msra.mxu2 %v7626_v45  ;;  %v8555_v45 = vld [vmem:[#allocation6 + $0x394] sm:$0xf0] }
 0xda7   :  { %5096 = vmatpush.bf16.msra.mxu3 %v7786_v9  ;;  %5056 = vmatpush.bf16.msra.mxu0 %v7622_v11  ;;  %v7754_v37 = vor.u32 %v8540_v24, %v7751_v25  ;;  %v7714_v9 = vor.u32 %v8529_v27, %v7711_v2  ;;  %v8521_v24 = vld [vmem:[#allocation6 + $0x28c] sm:$0xf]  ;;  %v7806_v25 = vor.u32 %v8555_v45, %v7805_v42  ;;  %v7615_v42 = vld [vmem:[#allocation6 + $0x218] sm:$0xf0] }
 0xda8   :  { %5071 = vmatpush.bf16.msra.mxu1 %v7734_v39  ;;  %v8545_v27 = vld [vmem:[#allocation6 + $0x34c] sm:$0xf] }
 0xdaa   :  { %5085 = vmatpush.bf16.msra.mxu2 %v7610_v41  ;;  %v7662_v41 = vor.u32 %v8519_v20, %v7661_v4 }
 0xdab   :  { %5097 = vmatpush.bf16.msra.mxu3 %v7770_v56  ;;  %5057 = vmatpush.bf16.msra.mxu0 %v7606_v32  ;;  %v7698_v56 = vor.u32 %v8525_v31, %v7695_v28  ;;  %v7810_v32 = vor.u32 %v8553_v3, %v7807_v36  ;;  %v7630_v28 = vor.u32 %v8511_v8, %v7629_v18  ;;  %v7982_v18 = vld [vmem:[#allocation7 + $0x2f0] sm:$0xf]  ;;  %v8599_v8 = vld [vmem:[#allocation7 + $0x2f4] sm:$0xf0] }
 0xdac   :  { %5120 = vmatpush.bf16.msrb.mxu1 %v7854_v38  ;;  %v7645_v38 = vld [vmem:[#allocation6 + $0x248] sm:$0xf] }
 0xdad   :  { %v7646_v50 = vor.u32 %v8515_v5, %v7645_v38 }
 0xdae   :  { %5134 = vmatpush.bf16.msrb.mxu2 %v7730_v54  ;;  %v8547_v54 = vld [vmem:[#allocation6 + $0x354] sm:$0xf0] }
 0xdaf   :  { %5098 = vmatpush.bf16.msra.mxu3 %v7754_v37  ;;  %5106 = vmatpush.bf16.msrb.mxu0 %v7726_v21  ;;  %v7679_v37 = vld [vmem:[#allocation6 + $0x298] sm:$0xf0]  ;;  %v7774_v53 = vor.u32 %v8547_v54, %v7773_v52 }
 0xdb0   :  { %5121 = vmatpush.bf16.msrb.mxu1 %v7838_v63  ;;  %v7682_v33 = vor.u32 %v8521_v24, %v7679_v37  ;;  %v7791_v21 = vld [vmem:[#allocation6 + $0x378] sm:$0xf0] }
 0xdb1   :  { %v7794_v19 = vor.u32 %v8549_v49, %v7791_v21  ;;  %v7775_v63 = vld [vmem:[#allocation6 + $0x358] sm:$0xf0] }
 0xdb2   :  { %5135 = vmatpush.bf16.msrb.mxu2 %v7714_v9  ;;  %v7757_v9 = vld [vmem:[#allocation6 + $0x328] sm:$0xf]  ;;  %v7778_v40 = vor.u32 %v8545_v27, %v7775_v63  ;;  %v7743_v37 = vld [vmem:[#allocation6 + $0x318] sm:$0xf0] }
 0xdb3   :  { %5099 = vmatpush.bf16.msra.mxu3 %v7738_v61  ;;  %5107 = vmatpush.bf16.msrb.mxu0 %v7710_v51  ;;  %v8581_v63 = vld [vmem:[#allocation7 + $0x264] sm:$0xf0] }
 0xdb4   :  { %5122 = vmatpush.bf16.msrb.mxu1 %v7822_v13  ;;  %v7613_v13 = vld [vmem:[#allocation6 + $0x208] sm:$0xf] }
 0xdb6   :  { %5136 = vmatpush.bf16.msrb.mxu2 %v7698_v56  ;;  %v8507_v56 = vld [vmem:[#allocation6 + $0x214] sm:$0xf0] }
 0xdb7   :  { %5148 = vmatpush.bf16.msrb.mxu3 %v7858_v58  ;;  %5108 = vmatpush.bf16.msrb.mxu0 %v7694_v23  ;;  %v7647_v58 = vld [vmem:[#allocation6 + $0x258] sm:$0xf0]  ;;  %v8541_v23 = vld [vmem:[#allocation6 + $0x32c] sm:$0xf]  ;;  %v7614_v24 = vor.u32 %v8507_v56, %v7613_v13  ;;  %v8595_v13 = vld [vmem:[#allocation7 + $0x2d4] sm:$0xf0] }
 0xdb8   :  { %5123 = vmatpush.bf16.msrb.mxu1 %v7806_v25  ;;  %v7650_v2 = vor.u32 %v8513_v30, %v7647_v58  ;;  %v7762_v0 = vor.u32 %v8541_v23, %v7759_v26  ;;  %v8537_v25 = vld [vmem:[#allocation6 + $0x30c] sm:$0xf]  ;;  %v7918_v58 = vld [vmem:[#allocation7 + $0x270] sm:$0xf]  ;;  %v7894_v26 = vld [vmem:[#allocation7 + $0x240] sm:$0xf] }
 0xdb9   :  { %v7746_v20 = vor.u32 %v8537_v25, %v7743_v37  ;;  %v7878_v25 = vld [vmem:[#allocation7 + $0x220] sm:$0xf]  ;;  %v8573_v37 = vld [vmem:[#allocation7 + $0x224] sm:$0xf0] }
 0xdba   :  { %5137 = vmatpush.bf16.msrb.mxu2 %v7682_v33 }
 0xdbb   :  { %5149 = vmatpush.bf16.msrb.mxu3 %v7842_v46  ;;  %5109 = vmatpush.bf16.msrb.mxu0 %v7678_v44  ;;  %v8505_v44 = vld [vmem:[#allocation6 + $0x20c] sm:$0xf] }
 0xdbc   :  { %5124 = vmatpush.bf16.msrb.mxu1 %v7790_v48 }
 0xdbe   :  { %5138 = vmatpush.bf16.msrb.mxu2 %v7666_v6 }
 0xdbf   :  { %5150 = vmatpush.bf16.msrb.mxu3 %v7826_v7  ;;  %5110 = vmatpush.bf16.msrb.mxu0 %v7662_v41  ;;  %v8539_v7 = vld [vmem:[#allocation6 + $0x314] sm:$0xf0] }
 0xdc0   :  { %5125 = vmatpush.bf16.msrb.mxu1 %v7774_v53  ;;  %v7742_v33 = vor.u32 %v8539_v7, %v7741_v15  ;;  %v8575_v15 = vld [vmem:[#allocation7 + $0x234] sm:$0xf0]  ;;  %v8046_v7 = vld [vmem:[#allocation7 + $0x370] sm:$0xf] }
 0xdc2   :  { %5139 = vmatpush.bf16.msrb.mxu2 %v7650_v2 }
 0xdc3   :  { %5151 = vmatpush.bf16.msrb.mxu3 %v7810_v32  ;;  %5111 = vmatpush.bf16.msrb.mxu0 %v7646_v50  ;;  %v7618_v32 = vor.u32 %v8505_v44, %v7615_v42  ;;  %v7958_v42 = vld [vmem:[#allocation7 + $0x2c0] sm:$0xf] }
 0xdc7   :  { %5152 = vmatpush.bf16.msrb.mxu3 %v7794_v19  ;;  %5112 = vmatpush.bf16.msrb.mxu0 %v7630_v28 }
 0xdcb   :  { %5153 = vmatpush.bf16.msrb.mxu3 %v7778_v40  ;;  %5113 = vmatpush.bf16.msrb.mxu0 %v7614_v24  ;;  %v8579_v40 = vld [vmem:[#allocation7 + $0x254] sm:$0xf0] }
 0xdcf   :  { %5154 = vmatpush.bf16.msrb.mxu3 %v7762_v0  ;;  %v8615_v0 = vld [vmem:[#allocation7 + $0x374] sm:$0xf0] }
 0xdd0   :  { %v8047_v44 = vor.u32 %v8615_v0, %v8046_v7  ;;  %v7984_v7 = vld [vmem:[#allocation7 + $0x2f8] sm:$0xf0] }
 0xdd3   :  { %5155 = vmatpush.bf16.msrb.mxu3 %v7746_v20  ;;  %v8591_v20 = vld [vmem:[#allocation7 + $0x2b4] sm:$0xf0] }
 0xe11   :  { %v4602_v57 = vpop.xlane.xlu1 %4601 }
 0xe12   :  { %v4606_v1 = vmul.f32 %v4602_v57, %v9077_v62  ;;  %v7631_v57 = vld [vmem:[#allocation6 + $0x238] sm:$0xf0] }
 0xe13   :  { %v7634_v14 = vor.u32 %v8509_v60, %v7631_v57  ;;  %v7974_v60 = vld [vmem:[#allocation7 + $0x2e0] sm:$0xf]  ;;  %v8597_v57 = vld [vmem:[#allocation7 + $0x2e4] sm:$0xf0] }
 0xe14   :  { %v9602_v11 = vadd.f32 1e-12, %v4606_v1  ;;  %v7758_v1 = vor.u32 %v8543_v10, %v7757_v9  ;;  %v7983_v9 = vor.u32 %v8599_v8, %v7982_v18  ;;  %v7975_v23 = vor.u32 %v8597_v57, %v7974_v60  ;;  %v8094_v8 = vld [vmem:[#allocation7 + $0x3d0] sm:$0xf]  ;;  %v9638_v60 = vld [vmem:[%s9946_s12 + $0x4] sm:$0xf] }
 0xe15   :  { %5140 = vmatpush.bf16.msrb.mxu2 %v7634_v14  ;;  %v7886_v14 = vld [vmem:[#allocation7 + $0x230] sm:$0xf]  ;;  %s9984_s12 = sld [smem:[#allocation22_spill]] }
 0xe16   :  { %8771 = vrsqrt.f32 %v9602_v11  ;;  %5126 = vmatpush.bf16.msrb.mxu1 %v7758_v1  ;;  %vm4616_vm6 = vweird.f32 %v9602_v11  ;;  %v7966_v1 = vld [vmem:[#allocation7 + $0x2d0] sm:$0xf] }
 0xe17   :  { %v7967_v56 = vor.u32 %v8595_v13, %v7966_v1  ;;  %v8585_v1 = vld [vmem:[#allocation7 + $0x284] sm:$0xf0]  ;;  %v8086_v13 = vld [vmem:[#allocation7 + $0x3c0] sm:$0xf] }
 0xe19   :  { %v4605_v39 = vpop.xlane.xlu0 %4604  ;;  %5141 = vmatpush.bf16.msrb.mxu2 %v7618_v32 }
 0xe1a   :  { %v4607_v61 = vmul.f32 %v4605_v39, %v9077_v62  ;;  %5127 = vmatpush.bf16.msrb.mxu1 %v7742_v33  ;;  %v8613_v33 = vld [vmem:[#allocation7 + $0x364] sm:$0xf0] }
 0xe1c   :  { %v8772_v55 = vpop.eup %8771  ;;  %v9606_v59 = vadd.f32 1e-12, %v4607_v61 }
 0xe1d   :  { %v4611_v51 = vmul.f32 %v8772_v55, %v9602_v11  ;;  %vm4617_vm5 = vweird.f32 %v8772_v55  ;;  %v7601_v11 = vld [vmem:[%s9944_s10 + $0x2] sm:$0x3] }
 0xe1e   :  { %8773 = vrsqrt.f32 %v9606_v59  ;;  %vm4618_vm9 = vmor %vm4616_vm6, %vm4617_vm5  ;;  %vm4626_vm11 = vweird.f32 %v9606_v59  ;;  %v4644_v49 = vperm.slane %v7601_v11, 0  ;;  %v4645_v21 = vperm.slane %v7601_v11, 1  ;;  %v7870_v11 = vld [vmem:[#allocation7 + $0x210] sm:$0xf] }
 0xe1f   :  { %v4612_v46 = vmul.f32 %v8772_v55, %v4611_v51  ;;  %v8583_v51 = vld [vmem:[#allocation7 + $0x274] sm:$0xf0] }
 0xe20   :  { %v7919_v27 = vor.u32 %v8583_v51, %v7918_v58  ;;  %v8609_v51 = vld [vmem:[#allocation7 + $0x344] sm:$0xf0] }
 0xe21   :  { %v4613_v31 = vmul.f32 0.5, %v4612_v46  ;;  %v7902_v46 = vld [vmem:[#allocation7 + $0x250] sm:$0xf] }
 0xe22   :  { %v7903_v10 = vor.u32 %v8579_v40, %v7902_v46  ;;  %v8014_v40 = vld [vmem:[#allocation7 + $0x330] sm:$0xf] }
 0xe23   :  { %v4614_v16 = vsub.f32 1.5, %v4613_v31  ;;  %v8577_v31 = vld [vmem:[#allocation7 + $0x244] sm:$0xf0] }
 0xe24   :  { %v8774_v45 = vpop.eup %8773  ;;  %v7895_v28 = vor.u32 %v8577_v31, %v7894_v26  ;;  %v7912_v26 = vld [vmem:[#allocation7 + $0x268] sm:$0xf0] }
 0xe25   :  { %v4615_v3 = vmul.f32 %v8772_v55, %v4614_v16  ;;  %v4621_v36 = vmul.f32 %v8774_v45, %v9606_v59  ;;  %vm4627_vm10 = vweird.f32 %v8774_v45  ;;  %v7887_v16 = vor.u32 %v8575_v15, %v7886_v14  ;;  %v8625_v14 = vld [vmem:[#allocation7 + $0x3c4] sm:$0xf0]  ;;  %v8598_v15 = vld [vmem:[#allocation7 + $0x2f4] sm:$0xf] }
 0xe26   :  { %vm4628_vm12 = vmor %vm4626_vm11, %vm4627_vm10  ;;  %v8087_v0 = vor.u32 %v8625_v14, %v8086_v13 }
 0xe27   :  { %v4622_v4 = vmul.f32 %v8774_v45, %v4621_v36  ;;  %v4619_v39 = vsel %vm4618_vm9, %v8772_v55, %v4615_v3  ;;  %v8038_v3 = vld [vmem:[#allocation7 + $0x360] sm:$0xf]  ;;  %v7879_v36 = vor.u32 %v8573_v37, %v7878_v25  ;;  %v8578_v25 = vld [vmem:[#allocation7 + $0x254] sm:$0xf]  ;;  %v7904_v37 = vld [vmem:[#allocation7 + $0x258] sm:$0xf0] }
 0xe28   :  { %v4630_v61 = vmul.f32 %v4619_v39, %v9584_v17  ;;  %v4631_v48 = vmul.f32 %v4619_v39, %v9586_v22  ;;  %v8039_v32 = vor.u32 %v8613_v33, %v8038_v3  ;;  %v7907_v3 = vor.u32 %v8578_v25, %v7904_v37  ;;  %v8623_v33 = vld [vmem:[#allocation7 + $0x3b4] sm:$0xf0]  ;;  %v8040_v25 = vld [vmem:[#allocation7 + $0x368] sm:$0xf0]  ;;  %v8054_v37 = vld [vmem:[#allocation7 + $0x380] sm:$0xf] }
 0xe29   :  { %v4623_v41 = vmul.f32 0.5, %v4622_v4  ;;  %v7950_v4 = vld [vmem:[#allocation7 + $0x2b0] sm:$0xf] }
 0xe2a   :  { %v4639_v19 = vmul.f32 %v4635_v29, %v4630_v61  ;;  %v4640_v5 = vmul.f32 %v4636_v47, %v4631_v48  ;;  %v7951_v39 = vor.u32 %v8591_v20, %v7950_v4  ;;  %v8030_v61 = vld [vmem:[#allocation7 + $0x350] sm:$0xf]  ;;  %v8611_v48 = vld [vmem:[#allocation7 + $0x354] sm:$0xf0] }
 0xe2b   :  { %v4624_v43 = vsub.f32 1.5, %v4623_v41  ;;  %v8631_v41 = vld [vmem:[#allocation7 + $0x3f4] sm:$0xf0] }
 0xe2c   :  { %v9623_v17 = vadd.f32 %v4644_v49, %v4639_v19  ;;  %v9625_v22 = vadd.f32 %v4645_v21, %v4640_v5  ;;  %v8629_v5 = vld [vmem:[#allocation7 + $0x3e4] sm:$0xf0] }
 0xe2d   :  { %v4625_v6 = vmul.f32 %v8774_v45, %v4624_v43  ;;  %v8111_v43 = vor.u32 %v8631_v41, %v8110_v34  ;;  %v8596_v34 = vld [vmem:[#allocation7 + $0x2e4] sm:$0xf] }
 0xe2f   :  { %v4629_v38 = vsel %vm4628_vm12, %v8774_v45, %v4625_v6  ;;  %v8593_v45 = vld [vmem:[#allocation7 + $0x2c4] sm:$0xf0]  ;;  %v8031_v6 = vor.u32 %v8611_v48, %v8030_v61  ;;  %v8576_v61 = vld [vmem:[#allocation7 + $0x244] sm:$0xf]  ;;  %v7896_v48 = vld [vmem:[#allocation7 + $0x248] sm:$0xf0] }
 0xe30   :  { %v4632_v52 = vmul.f32 %v4629_v38, %v9593_v12  ;;  %v4633_v54 = vmul.f32 %v4629_v38, %v9595_v35  ;;  %v7910_v35 = vld [vmem:[#allocation7 + $0x260] sm:$0xf]  ;;  %v7959_v24 = vor.u32 %v8593_v45, %v7958_v42  ;;  %v8605_v45 = vld [vmem:[#allocation7 + $0x324] sm:$0xf0] }
 0xe31   :  { %v7911_v2 = vor.u32 %v8581_v63, %v7910_v35  ;;  %v8102_v38 = vld [vmem:[#allocation7 + $0x3e0] sm:$0xf]  ;;  %v7934_v63 = vld [vmem:[#allocation7 + $0x290] sm:$0xf] }
 0xe32   :  { %v4641_v55 = vmul.f32 %v4635_v29, %v4632_v52  ;;  %v4642_v30 = vmul.f32 %v4636_v47, %v4633_v54  ;;  %v8571_v29 = vld [vmem:[#allocation7 + $0x214] sm:$0xf0]  ;;  %v8103_v52 = vor.u32 %v8629_v5, %v8102_v38  ;;  %v7862_v54 = vld [vmem:[#allocation7 + $0x200] sm:$0xf]  ;;  %v8621_v38 = vld [vmem:[#allocation7 + $0x3a4] sm:$0xf0] }
 0xe33   :  { %v7871_v47 = vor.u32 %v8571_v29, %v7870_v11  ;;  %v8006_v42 = vld [vmem:[#allocation7 + $0x320] sm:$0xf]  ;;  %v7998_v11 = vld [vmem:[#allocation7 + $0x310] sm:$0xf]  ;;  %v8603_v29 = vld [vmem:[#allocation7 + $0x314] sm:$0xf0] }
 0xe34   :  { %v9627_v50 = vadd.f32 %v4644_v49, %v4641_v55  ;;  %v9629_v59 = vadd.f32 %v4645_v21, %v4642_v30  ;;  %v7942_v49 = vld [vmem:[#allocation7 + $0x2a0] sm:$0xf]  ;;  %v8589_v21 = vld [vmem:[#allocation7 + $0x2a4] sm:$0xf0] }
 0xe35   :  { %v7943_v19 = vor.u32 %v8589_v21, %v7942_v49  ;;  %v8569_v55 = vld [vmem:[#allocation7 + $0x204] sm:$0xf0]  ;;  %v8022_v30 = vld [vmem:[#allocation7 + $0x340] sm:$0xf]  ;;  %v7899_v49 = vor.u32 %v8576_v61, %v7896_v48  ;;  %v8570_v61 = vld [vmem:[#allocation7 + $0x214] sm:$0xf] }
 0xe36   :  { %v4652_v53 = vpack.c.bf16 %v9627_v50, %v9623_v17  ;;  %v4653_v12 = vpack.c.bf16 %v9629_v59, %v9625_v22  ;;  %v7863_v58 = vor.u32 %v8569_v55, %v7862_v54  ;;  %v8070_v21 = vld [vmem:[#allocation7 + $0x3a0] sm:$0xf]  ;;  %v7968_v54 = vld [vmem:[#allocation7 + $0x2d8] sm:$0xf0] }
 0xe37   :  { %v8071_v5 = vor.u32 %v8621_v38, %v8070_v21  ;;  %v7872_v48 = vld [vmem:[#allocation7 + $0x218] sm:$0xf0] }
 0xe38   :  { %5058 = vmatmul.bf16.vlgmr.msra.gmra.mxu0 %v4652_v53  ;;  %5072 = vmatmul.bf16.vlgmr.msra.gmra.mxu1 %v4653_v12 }
 0xe39   :  { %5086 = vmatmul.bf16.vlgmr.msra.gmra.mxu2 %v4652_v53  ;;  %5100 = vmatmul.bf16.vlgmr.msra.gmra.mxu3 %v4653_v12 }
 0xe3a   :  { %5630 = vmatpush.bf16.msra.mxu0 %v7919_v27  ;;  %5644 = vmatpush.bf16.msra.mxu1 %v7983_v9  ;;  %v8023_v27 = vor.u32 %v8609_v51, %v8022_v30  ;;  %v8627_v9 = vld [vmem:[#allocation7 + $0x3d4] sm:$0xf0]  ;;  %v8601_v51 = vld [vmem:[#allocation7 + $0x304] sm:$0xf0] }
 0xe3b   :  { %5658 = vmatpush.bf16.msra.mxu2 %v8047_v44  ;;  %5672 = vmatpush.bf16.msra.mxu3 %v8111_v43  ;;  %v8095_v46 = vor.u32 %v8627_v9, %v8094_v8  ;;  %v7987_v44 = vor.u32 %v8598_v15, %v7984_v7  ;;  %v8048_v9 = vld [vmem:[#allocation7 + $0x378] sm:$0xf0]  ;;  %v8572_v7 = vld [vmem:[#allocation7 + $0x224] sm:$0xf] }
 0xe3e   :  { %5631 = vmatpush.bf16.msra.mxu0 %v7911_v2  ;;  %5645 = vmatpush.bf16.msra.mxu1 %v7975_v23  ;;  %v8587_v2 = vld [vmem:[#allocation7 + $0x294] sm:$0xf0]  ;;  %v8580_v23 = vld [vmem:[#allocation7 + $0x264] sm:$0xf] }
 0xe3f   :  { %5659 = vmatpush.bf16.msra.mxu2 %v8039_v32  ;;  %5673 = vmatpush.bf16.msra.mxu3 %v8103_v52  ;;  %v7935_v18 = vor.u32 %v8587_v2, %v7934_v63  ;;  %v7915_v31 = vor.u32 %v8580_v23, %v7912_v26  ;;  %v8594_v52 = vld [vmem:[#allocation7 + $0x2d4] sm:$0xf] }
 0xe40   :  { %v7971_v30 = vor.u32 %v8594_v52, %v7968_v54  ;;  %v7875_v52 = vor.u32 %v8570_v61, %v7872_v48  ;;  %v8032_v54 = vld [vmem:[#allocation7 + $0x358] sm:$0xf0]  ;;  %v8584_v48 = vld [vmem:[#allocation7 + $0x284] sm:$0xf] }
 0xe42   :  { %5632 = vmatpush.bf16.msra.mxu0 %v7903_v10  ;;  %5646 = vmatpush.bf16.msra.mxu1 %v7967_v56  ;;  %v8607_v10 = vld [vmem:[#allocation7 + $0x334] sm:$0xf0] }
 0xe43   :  { %5660 = vmatpush.bf16.msra.mxu2 %v8031_v6  ;;  %v8015_v57 = vor.u32 %v8607_v10, %v8014_v40  ;;  %5674 = vmatpush.bf16.msra.mxu3 %v8095_v46  ;;  %v8062_v46 = vld [vmem:[#allocation7 + $0x390] sm:$0xf]  ;;  %v8619_v40 = vld [vmem:[#allocation7 + $0x394] sm:$0xf0] }
 0xe46   :  { %5633 = vmatpush.bf16.msra.mxu0 %v7895_v28  ;;  %5647 = vmatpush.bf16.msra.mxu1 %v7959_v24  ;;  %v7926_v28 = vld [vmem:[#allocation7 + $0x280] sm:$0xf]  ;;  %v8007_v24 = vor.u32 %v8605_v45, %v8006_v42 }
 0xe47   :  { %5661 = vmatpush.bf16.msra.mxu2 %v8023_v27  ;;  %v7927_v56 = vor.u32 %v8585_v1, %v7926_v28  ;;  %5675 = vmatpush.bf16.msra.mxu3 %v8087_v0  ;;  %v7888_v27 = vld [vmem:[#allocation7 + $0x238] sm:$0xf0]  ;;  %v8592_v28 = vld [vmem:[#allocation7 + $0x2c4] sm:$0xf]  ;;  %v7960_v1 = vld [vmem:[#allocation7 + $0x2c8] sm:$0xf0] }
 0xe48   :  { %5114 = vmatmul.bf16.vlgmr.msrb.gmra.mxu0 %v4652_v53  ;;  %5128 = vmatmul.bf16.vlgmr.msrb.gmra.mxu1 %v4653_v12  ;;  %v7963_v14 = vor.u32 %v8592_v28, %v7960_v1  ;;  %v7880_v0 = vld [vmem:[#allocation7 + $0x228] sm:$0xf0] }
 0xe49   :  { %5142 = vmatmul.bf16.vlgmr.msrb.gmra.mxu2 %v4652_v53  ;;  %5156 = vmatmul.bf16.vlgmr.msrb.gmra.mxu3 %v4653_v12  ;;  %v8582_v53 = vld [vmem:[#allocation7 + $0x274] sm:$0xf]  ;;  %v7920_v12 = vld [vmem:[#allocation7 + $0x278] sm:$0xf0]  ;;  %v8024_v1 = vld [vmem:[#allocation7 + $0x348] sm:$0xf0] }
 0xe4a   :  { %5634 = vmatpush.bf16.msra.mxu0 %v7887_v16  ;;  %5648 = vmatpush.bf16.msra.mxu1 %v7951_v39  ;;  %v7923_v35 = vor.u32 %v8582_v53, %v7920_v12  ;;  %v4722_v16 = vperm.slane %v9638_v60, 0  ;;  %v7976_v39 = vld [vmem:[#allocation7 + $0x2e8] sm:$0xf0]  ;;  %v8574_v12 = vld [vmem:[#allocation7 + $0x234] sm:$0xf] }
 0xe4b   :  { %5662 = vmatpush.bf16.msra.mxu2 %v8015_v57  ;;  %v7979_v43 = vor.u32 %v8596_v34, %v7976_v39  ;;  %v7891_v8 = vor.u32 %v8574_v12, %v7888_v27  ;;  %v8588_v12 = vld [vmem:[#allocation7 + $0x2a4] sm:$0xf]  ;;  %v7944_v27 = vld [vmem:[#allocation7 + $0x2a8] sm:$0xf0] }
 0xe4e   :  { %5635 = vmatpush.bf16.msra.mxu0 %v7879_v36  ;;  %5649 = vmatpush.bf16.msra.mxu1 %v7943_v19  ;;  %v8078_v36 = vld [vmem:[#allocation7 + $0x3b0] sm:$0xf]  ;;  %v4723_v19 = vperm.slane %v9638_v60, 1 }
 0xe4f   :  { %v8079_v20 = vor.u32 %v8623_v33, %v8078_v36  ;;  %5663 = vmatpush.bf16.msra.mxu2 %v8007_v24  ;;  %v7883_v24 = vor.u32 %v8572_v7, %v7880_v0  ;;  %v8586_v7 = vld [vmem:[#allocation7 + $0x294] sm:$0xf]  ;;  %v7936_v0 = vld [vmem:[#allocation7 + $0x298] sm:$0xf0] }
 0xe51   :  { %5676 = vmatpush.bf16.msra.mxu3 %v8079_v20  ;;  %v8630_v20 = vld [vmem:[#allocation7 + $0x3f4] sm:$0xf] }
 0xe52   :  { %5636 = vmatpush.bf16.msra.mxu0 %v7871_v47  ;;  %5650 = vmatpush.bf16.msra.mxu1 %v7935_v18  ;;  %v7999_v47 = vor.u32 %v8603_v29, %v7998_v11  ;;  %v8112_v11 = vld [vmem:[#allocation7 + $0x3f8] sm:$0xf0] }
 0xe54   :  { %5664 = vmatpush.bf16.msra.mxu2 %v7999_v47  ;;  %v8115_v47 = vor.u32 %v8630_v20, %v8112_v11 }
 0xe55   :  { %5677 = vmatpush.bf16.msra.mxu3 %v8071_v5 }
 0xe56   :  { %5637 = vmatpush.bf16.msra.mxu0 %v7863_v58  ;;  %5651 = vmatpush.bf16.msra.mxu1 %v7927_v56  ;;  %v7990_v58 = vld [vmem:[#allocation7 + $0x300] sm:$0xf] }
 0xe57   :  { %v7991_v53 = vor.u32 %v8601_v51, %v7990_v58 }
 0xe59   :  { %5665 = vmatpush.bf16.msra.mxu2 %v7991_v53 }
 0xe5a   :  { %5686 = vmatpush.bf16.msrb.mxu0 %v7923_v35  ;;  %5700 = vmatpush.bf16.msrb.mxu1 %v7987_v44  ;;  %v8614_v35 = vld [vmem:[#allocation7 + $0x374] sm:$0xf]  ;;  %v8612_v44 = vld [vmem:[#allocation7 + $0x364] sm:$0xf] }
 0xe5b   :  { %v8051_v26 = vor.u32 %v8614_v35, %v8048_v9  ;;  %v8043_v36 = vor.u32 %v8612_v44, %v8040_v25  ;;  %v7939_v25 = vor.u32 %v8586_v7, %v7936_v0 }
 0xe5d   :  { %5714 = vmatpush.bf16.msrb.mxu2 %v8051_v26 }
 0xe5e   :  { %5687 = vmatpush.bf16.msrb.mxu0 %v7915_v31  ;;  %5701 = vmatpush.bf16.msrb.mxu1 %v7979_v43  ;;  %v8063_v31 = vor.u32 %v8619_v40, %v8062_v46  ;;  %v8568_v40 = vld [vmem:[#allocation7 + $0x204] sm:$0xf] }
 0xe60   :  { %5678 = vmatpush.bf16.msra.mxu3 %v8063_v31  ;;  %v4725_v31 = vperm.slane %v9638_v60, 3 }
 0xe61   :  { %5715 = vmatpush.bf16.msrb.mxu2 %v8043_v36 }
 0xe62   :  { %5688 = vmatpush.bf16.msrb.mxu0 %v7907_v3  ;;  %5702 = vmatpush.bf16.msrb.mxu1 %v7971_v30  ;;  %v8617_v3 = vld [vmem:[#allocation7 + $0x384] sm:$0xf0] }
 0xe63   :  { %v8055_v33 = vor.u32 %v8617_v3, %v8054_v37  ;;  %v8626_v37 = vld [vmem:[#allocation7 + $0x3d4] sm:$0xf]  ;;  %v8096_v3 = vld [vmem:[#allocation7 + $0x3d8] sm:$0xf0] }
 0xe65   :  { %5679 = vmatpush.bf16.msra.mxu3 %v8055_v33  ;;  %v8099_v33 = vor.u32 %v8626_v37, %v8096_v3 }
 0xe66   :  { %5689 = vmatpush.bf16.msrb.mxu0 %v7899_v49  ;;  %5703 = vmatpush.bf16.msrb.mxu1 %v7963_v14  ;;  %v8610_v49 = vld [vmem:[#allocation7 + $0x354] sm:$0xf] }
 0xe67   :  { %v8035_v53 = vor.u32 %v8610_v49, %v8032_v54 }
 0xe69   :  { %5728 = vmatpush.bf16.msrb.mxu3 %v8115_v47  ;;  %5716 = vmatpush.bf16.msrb.mxu2 %v8035_v53  ;;  %v8008_v53 = vld [vmem:[#allocation7 + $0x328] sm:$0xf0] }
 0xe6a   :  { %5690 = vmatpush.bf16.msrb.mxu0 %v7891_v8  ;;  %v8104_v8 = vld [vmem:[#allocation7 + $0x3e8] sm:$0xf0] }
 0xe6e   :  { %5691 = vmatpush.bf16.msrb.mxu0 %v7883_v24 }
 0xe72   :  { %5692 = vmatpush.bf16.msrb.mxu0 %v7875_v52 }
 0xeb5   :  { %v5059_v32 = vpop.f32.mrf.mxu0  ;;  %v5073_v4 = vpop.f32.mrf.mxu1 }
 0xeb6   :  { %v5060_v41 = vadd.f32 %v5059_v32, %v4722_v16  ;;  %v8590_v32 = vld [vmem:[#allocation7 + $0x2b4] sm:$0xf] }
 0xeb8   :  { %v9643_v6 = vadd.f32 %v5073_v4, %v5060_v41  ;;  %v7952_v4 = vld [vmem:[#allocation7 + $0x2b8] sm:$0xf0]  ;;  %v4724_v41 = vperm.slane %v9638_v60, 2 }
 0xeb9   :  { %v7955_v43 = vor.u32 %v8590_v32, %v7952_v4  ;;  %v8606_v32 = vld [vmem:[#allocation7 + $0x334] sm:$0xf]  ;;  %v8016_v4 = vld [vmem:[#allocation7 + $0x338] sm:$0xf0] }
 0xeba   :  { %v5162_v55 = vmul.f32 %v9643_v6, %v9643_v6 }
 0xebb   :  { %5704 = vmatpush.bf16.msrb.mxu1 %v7955_v43  ;;  %v8019_v43 = vor.u32 %v8606_v32, %v8016_v4 }
 0xebc   :  { %v5170_v63 = vmul.f32 %v5162_v55, %v9643_v6  ;;  %v5087_v2 = vpop.f32.mrf.mxu2  ;;  %v5101_v18 = vpop.f32.mrf.mxu3 }
 0xebd   :  { %v5088_v10 = vadd.f32 %v5087_v2, %v4723_v19  ;;  %v5061_v57 = vpop.f32.mrf.mxu0  ;;  %v5075_v23 = vpop.f32.mrf.mxu1  ;;  %v7947_v2 = vor.u32 %v8588_v12, %v7944_v27 }
 0xebe   :  { %v5178_v13 = vmul.f32 0.044715, %v5170_v63  ;;  %v5062_v56 = vadd.f32 %v5061_v57, %v4722_v16  ;;  %v8608_v57 = vld [vmem:[#allocation7 + $0x344] sm:$0xf] }
 0xebf   :  { %v9653_v15 = vadd.f32 %v5101_v18, %v5088_v10  ;;  %v8628_v18 = vld [vmem:[#allocation7 + $0x3e4] sm:$0xf]  ;;  %v7864_v10 = vld [vmem:[#allocation7 + $0x208] sm:$0xf0]  ;;  %5705 = vmatpush.bf16.msrb.mxu1 %v7947_v2  ;;  %v8027_v14 = vor.u32 %v8608_v57, %v8024_v1  ;;  %v8602_v57 = vld [vmem:[#allocation7 + $0x314] sm:$0xf] }
 0xec0   :  { %v5186_v42 = vadd.f32 %v5178_v13, %v9643_v6  ;;  %v9656_v45 = vadd.f32 %v5075_v23, %v5062_v56  ;;  %v7867_v28 = vor.u32 %v8568_v40, %v7864_v10 }
 0xec1   :  { %v5163_v16 = vmul.f32 %v9653_v15, %v9653_v15  ;;  %5717 = vmatpush.bf16.msrb.mxu2 %v8027_v14 }
 0xec2   :  { %v5194_v34 = vmul.f32 0.7978846, %v5186_v42  ;;  %v5166_v39 = vmul.f32 %v9656_v45, %v9656_v45  ;;  %5693 = vmatpush.bf16.msrb.mxu0 %v7867_v28 }
 0xec3   :  { %v5171_v29 = vmul.f32 %v5163_v16, %v9653_v15  ;;  %5706 = vmatpush.bf16.msrb.mxu1 %v7939_v25 }
 0xec4   :  { %8775 = vtanh.f32 %v5194_v34  ;;  %v5174_v21 = vmul.f32 %v5166_v39, %v9656_v45  ;;  %v5089_v38 = vpop.f32.mrf.mxu2  ;;  %v5103_v5 = vpop.f32.mrf.mxu3 }
 0xec5   :  { %v5179_v55 = vmul.f32 0.044715, %v5171_v29  ;;  %v5090_v30 = vadd.f32 %v5089_v38, %v4723_v19  ;;  %v5115_v58 = vpop.f32.mrf.mxu0  ;;  %v5129_v51 = vpop.f32.mrf.mxu1  ;;  %v8107_v19 = vor.u32 %v8628_v18, %v8104_v8  ;;  %v7928_v38 = vld [vmem:[#allocation7 + $0x288] sm:$0xf0]  ;;  %5718 = vmatpush.bf16.msrb.mxu2 %v8019_v43  ;;  %v8622_v18 = vld [vmem:[#allocation7 + $0x3b4] sm:$0xf] }
 0xec6   :  { %v5182_v35 = vmul.f32 0.044715, %v5174_v21  ;;  %v5116_v63 = vadd.f32 %v5115_v58, %v4724_v41  ;;  %v8088_v58 = vld [vmem:[#allocation7 + $0x3c8] sm:$0xf0]  ;;  %v8080_v8 = vld [vmem:[#allocation7 + $0x3b8] sm:$0xf0] }
 0xec7   :  { %v5187_v9 = vadd.f32 %v5179_v55, %v9653_v15  ;;  %v9670_v46 = vadd.f32 %v5103_v5, %v5090_v30  ;;  %5729 = vmatpush.bf16.msrb.mxu3 %v8107_v19  ;;  %v8624_v5 = vld [vmem:[#allocation7 + $0x3c4] sm:$0xf]  ;;  %v7931_v30 = vor.u32 %v8584_v48, %v7928_v38  ;;  %v8083_v10 = vor.u32 %v8622_v18, %v8080_v8 }
 0xec8   :  { %v5190_v23 = vadd.f32 %v5182_v35, %v9656_v45  ;;  %v9673_v26 = vadd.f32 %v5129_v51, %v5116_v63  ;;  %v8604_v51 = vld [vmem:[#allocation7 + $0x324] sm:$0xf]  ;;  %v8091_v35 = vor.u32 %v8624_v5, %v8088_v58 }
 0xec9   :  { %v5195_v13 = vmul.f32 0.7978846, %v5187_v9  ;;  %v5167_v56 = vmul.f32 %v9670_v46, %v9670_v46  ;;  %v8011_v63 = vor.u32 %v8604_v51, %v8008_v53  ;;  %5707 = vmatpush.bf16.msrb.mxu1 %v7931_v30 }
 0xeca   :  { %v8776_v44 = vpop.eup %8775  ;;  %v5198_v42 = vmul.f32 0.7978846, %v5190_v23  ;;  %v5164_v24 = vmul.f32 %v9673_v26, %v9673_v26 }
 0xecb   :  { %v5210_v16 = vadd.f32 1.0, %v8776_v44  ;;  %v5175_v36 = vmul.f32 %v5167_v56, %v9670_v46  ;;  %5730 = vmatpush.bf16.msrb.mxu3 %v8099_v33  ;;  %5719 = vmatpush.bf16.msrb.mxu2 %v8011_v63  ;;  %v8620_v56 = vld [vmem:[#allocation7 + $0x3a4] sm:$0xf]  ;;  %v8072_v44 = vld [vmem:[#allocation7 + $0x3a8] sm:$0xf0] }
 0xecc   :  { %8777 = vtanh.f32 %v5198_v42  ;;  %v5172_v20 = vmul.f32 %v5164_v24, %v9673_v26  ;;  %v5143_v34 = vpop.f32.mrf.mxu2  ;;  %v5157_v39 = vpop.f32.mrf.mxu3  ;;  %v8600_v42 = vld [vmem:[#allocation7 + $0x304] sm:$0xf]  ;;  %v8075_v4 = vor.u32 %v8620_v56, %v8072_v44 }
 0xecd   :  { %v5218_v11 = vmul.f32 0.5, %v5210_v16  ;;  %8779 = vtanh.f32 %v5195_v13  ;;  %v5183_v29 = vmul.f32 0.044715, %v5175_v36  ;;  %v5144_v47 = vadd.f32 %v5143_v34, %v4725_v31  ;;  %v5117_v61 = vpop.f32.mrf.mxu0  ;;  %v5131_v55 = vpop.f32.mrf.mxu1  ;;  %v8000_v13 = vld [vmem:[#allocation7 + $0x318] sm:$0xf0] }
 0xece   :  { %v5180_v49 = vmul.f32 0.044715, %v5172_v20  ;;  %v5118_v21 = vadd.f32 %v5117_v61, %v4724_v41  ;;  %v8003_v0 = vor.u32 %v8602_v57, %v8000_v13  ;;  %v7992_v16 = vld [vmem:[#allocation7 + $0x308] sm:$0xf0] }
 0xecf   :  { %v5191_v52 = vadd.f32 %v5183_v29, %v9670_v46  ;;  %v9687_v54 = vadd.f32 %v5157_v39, %v5144_v47  ;;  %5731 = vmatpush.bf16.msrb.mxu3 %v8091_v35  ;;  %v5226_v24 = vmul.f32 %v5218_v11, %v9643_v6  ;;  %v7995_v43 = vor.u32 %v8600_v42, %v7992_v16  ;;  %v8618_v6 = vld [vmem:[#allocation7 + $0x394] sm:$0xf]  ;;  %v8064_v11 = vld [vmem:[#allocation7 + $0x398] sm:$0xf0] }
 0xed0   :  { %v5188_v12 = vadd.f32 %v5180_v49, %v9673_v26  ;;  %v9690_v27 = vadd.f32 %v5131_v55, %v5118_v21  ;;  %5720 = vmatpush.bf16.msrb.mxu2 %v8003_v0  ;;  %v8067_v38 = vor.u32 %v8618_v6, %v8064_v11 }
 0xed1   :  { %v5199_v2 = vmul.f32 0.7978846, %v5191_v52  ;;  %v5165_v41 = vmul.f32 %v9687_v54, %v9687_v54  ;;  %v8056_v52 = vld [vmem:[#allocation7 + $0x388] sm:$0xf0] }
 0xed2   :  { %v8778_v9 = vpop.eup %8777  ;;  %v5196_v19 = vmul.f32 0.7978846, %v5188_v12  ;;  %v5168_v40 = vmul.f32 %v9690_v27, %v9690_v27 }
 0xed3   :  { %v8780_v23 = vpop.eup %8779  ;;  %v5214_v28 = vadd.f32 1.0, %v8778_v9  ;;  %8781 = vtanh.f32 %v5199_v2  ;;  %v5173_v1 = vmul.f32 %v5165_v41, %v9687_v54  ;;  %5732 = vmatpush.bf16.msrb.mxu3 %v8083_v10 }
 0xed4   :  { %v5176_v14 = vmul.f32 %v5168_v40, %v9690_v27  ;;  %v5145_v7 = vpop.f32.mrf.mxu2  ;;  %v5211_v36 = vadd.f32 1.0, %v8780_v23  ;;  %8783 = vtanh.f32 %v5196_v19  ;;  %v5159_v32 = vpop.f32.mrf.mxu3  ;;  %5721 = vmatpush.bf16.msrb.mxu2 %v7995_v43 }
 0xed5   :  { %v5222_v25 = vmul.f32 0.5, %v5214_v28  ;;  %v5181_v37 = vmul.f32 0.044715, %v5173_v1  ;;  %v5146_v3 = vadd.f32 %v5145_v7, %v4725_v31 }
 0xed6   :  { %v5184_v33 = vmul.f32 0.044715, %v5176_v14  ;;  %v5219_v48 = vmul.f32 0.5, %v5211_v36 }
 0xed7   :  { %v5230_v20 = vmul.f32 %v5222_v25, %v9656_v45  ;;  %v5189_v34 = vadd.f32 %v5181_v37, %v9687_v54  ;;  %v5160_v39 = vadd.f32 %v5159_v32, %v5146_v3  ;;  %5733 = vmatpush.bf16.msrb.mxu3 %v8075_v4  ;;  %v8616_v45 = vld [vmem:[#allocation7 + $0x384] sm:$0xf]  ;;  %v7859_v37 = vld [vmem:[%s9948_s14 + $0x2] sm:$0x3]  ;;  %s9985_s14 = sld [smem:[#allocation23_spill]] }
 0xed8   :  { %v5192_v29 = vadd.f32 %v5184_v33, %v9690_v27  ;;  %v5227_v51 = vmul.f32 %v5219_v48, %v9653_v15  ;;  %v8059_v12 = vor.u32 %v8616_v45, %v8056_v52  ;;  %v5306_v3 = vperm.slane %v7859_v37, 0 }
 0xed9   :  { %v8782_v60 = vpop.eup %8781  ;;  %v5234_v31 = vpack.c.bf16 %v5230_v20, %v5226_v24  ;;  %v5197_v47 = vmul.f32 0.7978846, %v5189_v34  ;;  %v5169_v61 = vmul.f32 %v5160_v39, %v5160_v39 }
 0xeda   :  { %v5215_v49 = vadd.f32 1.0, %v8782_v60  ;;  %v5200_v21 = vmul.f32 0.7978846, %v5192_v29  ;;  %v8784_v55 = vpop.eup %8783 }
 0xedb   :  { %v5177_v5 = vmul.f32 %v5169_v61, %v5160_v39  ;;  %5638 = vmatmul.bf16.vlgmr.msra.gmra.mxu0 %v5234_v31  ;;  %5734 = vmatpush.bf16.msrb.mxu3 %v8067_v38  ;;  %v5212_v35 = vadd.f32 1.0, %v8784_v55 }
 0xedc   :  { %v5223_v30 = vmul.f32 0.5, %v5215_v49  ;;  %8785 = vtanh.f32 %v5200_v21 }
 0xedd   :  { %8787 = vtanh.f32 %v5197_v47  ;;  %v5185_v58 = vmul.f32 0.044715, %v5177_v5  ;;  %v5220_v9 = vmul.f32 0.5, %v5212_v35 }
 0xede   :  { %v5231_v53 = vmul.f32 %v5223_v30, %v9670_v46 }
 0xedf   :  { %v5193_v63 = vadd.f32 %v5185_v58, %v5160_v39  ;;  %5735 = vmatpush.bf16.msrb.mxu3 %v8059_v12  ;;  %v5228_v57 = vmul.f32 %v5220_v9, %v9673_v26 }
 0xee0   :  { %v5235_v2 = vpack.c.bf16 %v5231_v53, %v5227_v51 }
 0xee1   :  { %v5201_v41 = vmul.f32 0.7978846, %v5193_v63 }
 0xee2   :  { %v8786_v18 = vpop.eup %8785  ;;  %5652 = vmatmul.bf16.vlgmr.msra.gmra.mxu1 %v5235_v2 }
 0xee3   :  { %v8788_v8 = vpop.eup %8787  ;;  %v5216_v19 = vadd.f32 1.0, %v8786_v18  ;;  %8789 = vtanh.f32 %v5201_v41 }
 0xee4   :  { %v5213_v10 = vadd.f32 1.0, %v8788_v8 }
 0xee5   :  { %v5224_v40 = vmul.f32 0.5, %v5216_v19 }
 0xee6   :  { %v5221_v28 = vmul.f32 0.5, %v5213_v10 }
 0xee7   :  { %v5232_v15 = vmul.f32 %v5224_v40, %v9690_v27 }
 0xee8   :  { %v5229_v56 = vmul.f32 %v5221_v28, %v9687_v54  ;;  %v5307_v54 = vperm.slane %v7859_v37, 1  ;;  %v5841_v28 = vld [vmem:[%s9951_s17 + $0x70] sm:$0xff]  ;;  %v5851_v37 = vld [vmem:[%s9951_s17 + $0xc0] sm:$0xff] }
 0xee9   :  { %v8790_v46 = vpop.eup %8789  ;;  %v5236_v23 = vpack.c.bf16 %v5232_v15, %v5228_v57 }
 0xeea   :  { %v5217_v1 = vadd.f32 1.0, %v8790_v46  ;;  %v5842_v46 = vld [vmem:[%s9951_s17 + $0x78] sm:$0xff] }
 0xeeb   :  { %5666 = vmatmul.bf16.vlgmr.msra.gmra.mxu2 %v5236_v23  ;;  %5694 = vmatmul.bf16.vlgmr.msrb.gmra.mxu0 %v5234_v31 }
 0xeec   :  { %v5225_v13 = vmul.f32 0.5, %v5217_v1  ;;  %5863 = vmatpush.msra.mxu0 %v5842_v46  ;;  %v5857_v1 = vld [vmem:[%s9951_s17 + $0xf0] sm:$0xff] }
 0xeee   :  { %v5233_v14 = vmul.f32 %v5225_v13, %v5160_v39  ;;  %5864 = vmatpush.msra.mxu0 %v5841_v28  ;;  %v5840_v13 = vld [vmem:[%s9951_s17 + $0x68] sm:$0xff] }
 0xef0   :  { %v5237_v7 = vpack.c.bf16 %v5233_v14, %v5229_v56  ;;  %v5856_v56 = vld [vmem:[%s9951_s17 + $0xe8] sm:$0xff]  ;;  %5865 = vmatpush.msra.mxu0 %v5840_v13  ;;  %v5839_v14 = vld [vmem:[%s9951_s17 + $0x60] sm:$0xff] }
 0xef2   :  { %5680 = vmatmul.bf16.vlgmr.msra.gmra.mxu3 %v5237_v7  ;;  %5708 = vmatmul.bf16.vlgmr.msrb.gmra.mxu1 %v5235_v2 }
 0xef3   :  { %5866 = vmatpush.msra.mxu0 %v5839_v14 }
 0xefb   :  { %5722 = vmatmul.bf16.vlgmr.msrb.gmra.mxu2 %v5236_v23  ;;  %v5858_v23 = vld [vmem:[%s9951_s17 + $0xf8] sm:$0xff] }
 0xefc   :  { %5883 = vmatpush.msra.mxu1 %v5858_v23  ;;  %v5909_v23 = vld [vmem:[%s9953_s19 + $0x28] sm:$0xff] }
 0xefe   :  { %5884 = vmatpush.msra.mxu1 %v5857_v1  ;;  %v5908_v1 = vld [vmem:[%s9953_s19 + $0x20] sm:$0xff] }
 0xf00   :  { %5885 = vmatpush.msra.mxu1 %v5856_v56 }
 0xf02   :  { %5736 = vmatmul.bf16.vlgmr.msrb.gmra.mxu3 %v5237_v7  ;;  %v5855_v7 = vld [vmem:[%s9951_s17 + $0xe0] sm:$0xff] }
 0xf03   :  { %5886 = vmatpush.msra.mxu1 %v5855_v7 }
 0xf58   :  { %v5639_v0 = vpop.f32.mrf.mxu0 }
 0xf59   :  { %v5640_v32 = vadd.f32 %v5639_v0, %v5306_v3  ;;  %v5838_v0 = vld [vmem:[%s9951_s17 + $0x58] sm:$0xff] }
 0xf5a   :  { %5867 = vmatpush.msra.mxu0 %v5838_v0  ;;  %v8117_v0 = vld [vmem:[%s9950_s16 + $0x2] sm:$0x3] }
 0xf5f   :  { %v5653_v44 = vpop.f32.mrf.mxu1 }
 0xf60   :  { %v5641_v42 = vpop.f32.mrf.mxu0  ;;  %v5654_v20 = vadd.f32 %v5653_v44, %v5640_v32  ;;  %v5854_v44 = vld [vmem:[%s9951_s17 + $0xd8] sm:$0xff]  ;;  %v5848_v32 = vld [vmem:[%s9951_s17 + $0xa8] sm:$0xff] }
 0xf61   :  { %v5642_v31 = vadd.f32 %v5641_v42, %v5306_v3  ;;  %5887 = vmatpush.msra.mxu1 %v5854_v44  ;;  %v5853_v42 = vld [vmem:[%s9951_s17 + $0xd0] sm:$0xff]  ;;  %v5834_v3 = vld [vmem:[%s9951_s17 + $0x38] sm:$0xff] }
 0xf63   :  { %5888 = vmatpush.msra.mxu1 %v5853_v42 }
 0xf67   :  { %v5655_v27 = vpop.f32.mrf.mxu1 }
 0xf68   :  { %v5695_v16 = vpop.f32.mrf.mxu0  ;;  %v5656_v48 = vadd.f32 %v5655_v27, %v5642_v31  ;;  %v5836_v27 = vld [vmem:[%s9951_s17 + $0x48] sm:$0xff] }
 0xf69   :  { %v5696_v34 = vadd.f32 %v5695_v16, %v5307_v54  ;;  %v5850_v16 = vld [vmem:[%s9951_s17 + $0xb8] sm:$0xff]  ;;  %v5828_v31 = vld [vmem:[%s9951_s17 + $0x8] sm:$0xff] }
 0xf6e   :  { %v5667_v26 = vpop.f32.mrf.mxu2 }
 0xf6f   :  { %v5709_v36 = vpop.f32.mrf.mxu1  ;;  %v5668_v39 = vadd.f32 %v5667_v26, %v5654_v20  ;;  %v5837_v26 = vld [vmem:[%s9951_s17 + $0x50] sm:$0xff]  ;;  %v5847_v20 = vld [vmem:[%s9951_s17 + $0xa0] sm:$0xff] }
 0xf70   :  { %v5710_v43 = vadd.f32 %v5709_v36, %v5696_v34  ;;  %v5697_v29 = vpop.f32.mrf.mxu0  ;;  %5868 = vmatpush.msra.mxu0 %v5837_v26  ;;  %v5849_v36 = vld [vmem:[%s9951_s17 + $0xb0] sm:$0xff] }
 0xf71   :  { %v5698_v49 = vadd.f32 %v5697_v29, %v5307_v54  ;;  %v5833_v54 = vld [vmem:[%s9951_s17 + $0x30] sm:$0xff] }
 0xf72   :  { %5869 = vmatpush.msra.mxu0 %v5836_v27  ;;  %v5845_v29 = vld [vmem:[%s9951_s17 + $0x90] sm:$0xff]  ;;  %v5810_v27 = vperm.slane %v8117_v0, 0 }
 0xf75   :  { %v5681_v24 = vpop.f32.mrf.mxu3 }
 0xf76   :  { %v5669_v25 = vpop.f32.mrf.mxu2  ;;  %v5682_v6 = vadd.f32 %v5681_v24, %v5668_v39  ;;  %v5852_v24 = vld [vmem:[%s9951_s17 + $0xc8] sm:$0xff] }
 0xf77   :  { %v5711_v61 = vpop.f32.mrf.mxu1  ;;  %v5670_v45 = vadd.f32 %v5669_v25, %v5656_v48  ;;  %5889 = vmatpush.msra.mxu1 %v5852_v24  ;;  %v5835_v25 = vld [vmem:[%s9951_s17 + $0x40] sm:$0xff]  ;;  %v5811_v24 = vperm.slane %v8117_v0, 1 }
 0xf78   :  { %v5742_v21 = vadd.f32 %v5682_v6, %v9623_v17  ;;  %v5712_v52 = vadd.f32 %v5711_v61, %v5698_v49  ;;  %5870 = vmatpush.msra.mxu0 %v5835_v25  ;;  %v5846_v6 = vld [vmem:[%s9951_s17 + $0x98] sm:$0xff]  ;;  %v5827_v61 = vld [vmem:[%s9951_s17] sm:$0xff] }
 0xf79   :  { %5890 = vmatpush.msra.mxu1 %v5851_v37  ;;  %v5843_v48 = vld [vmem:[%s9951_s17 + $0x80] sm:$0xff] }
 0xf7a   :  { %5871 = vmatpush.msra.mxu0 %v5834_v3 }
 0xf7b   :  { %5891 = vmatpush.msra.mxu1 %v5850_v16 }
 0xf7c   :  { %5872 = vmatpush.msra.mxu0 %v5833_v54 }
 0xf7d   :  { %v5683_v33 = vpop.f32.mrf.mxu3  ;;  %5892 = vmatpush.msra.mxu1 %v5849_v36 }
 0xf7e   :  { %v5723_v4 = vpop.f32.mrf.mxu2  ;;  %v5684_v30 = vadd.f32 %v5683_v33, %v5670_v45  ;;  %v5832_v33 = vld [vmem:[%s9951_s17 + $0x28] sm:$0xff] }
 0xf7f   :  { %v5724_v11 = vadd.f32 %v5723_v4, %v5710_v43  ;;  %5873 = vmatpush.msra.mxu0 %v5832_v33  ;;  %5893 = vmatpush.msra.mxu1 %v5848_v32  ;;  %v5831_v4 = vld [vmem:[%s9951_s17 + $0x20] sm:$0xff]  ;;  %v5830_v43 = vld [vmem:[%s9951_s17 + $0x18] sm:$0xff]  ;;  %v5917_v45 = vld [vmem:[%s9953_s19 + $0x68] sm:$0xff] }
 0xf80   :  { %v5744_v12 = vadd.f32 %v5684_v30, %v9627_v50 }
 0xf81   :  { %5874 = vmatpush.msra.mxu0 %v5831_v4  ;;  %5894 = vmatpush.msra.mxu1 %v5847_v20 }
 0xf83   :  { %5875 = vmatpush.msra.mxu0 %v5830_v43  ;;  %5895 = vmatpush.msra.mxu1 %v5846_v6  ;;  %v5904_v43 = vld [vmem:[%s9953_s19] sm:$0xff] }
 0xf84   :  { %v5920_v6 = vld [vmem:[%s9982_s1] sm:$0x3] }
 0xf85   :  { %v5737_v60 = vpop.f32.mrf.mxu3  ;;  %5896 = vmatpush.msra.mxu1 %v5845_v29  ;;  %v5977_v29 = vld [vmem:[%s9956_s22 + $0x30] sm:$0xff] }
 0xf86   :  { %v5738_v47 = vadd.f32 %v5737_v60, %v5724_v11  ;;  %v5725_v5 = vpop.f32.mrf.mxu2  ;;  %v5829_v11 = vld [vmem:[%s9951_s17 + $0x10] sm:$0xff] }
 0xf87   :  { %v5726_v58 = vadd.f32 %v5725_v5, %v5712_v52  ;;  %5876 = vmatpush.msra.mxu0 %v5829_v11  ;;  %v5978_v11 = vld [vmem:[%s9956_s22 + $0x38] sm:$0xff] }
 0xf88   :  { %v5743_v38 = vadd.f32 %v5738_v47, %v9625_v22  ;;  %v5844_v47 = vld [vmem:[%s9951_s17 + $0x88] sm:$0xff] }
 0xf89   :  { %5877 = vmatpush.msra.mxu0 %v5828_v31  ;;  %5897 = vmatpush.msra.mxu1 %v5844_v47  ;;  %v5975_v31 = vld [vmem:[%s9956_s22 + $0x20] sm:$0xff] }
 0xf8a   :  { %v5750_v55 = vadd.f32 %v5743_v38, %v5742_v21  ;;  %v8674_v47 = vld [vmem:[%s9952_s18] ss:$0 sm:$0xff] }
 0xf8b   :  { %5878 = vmatpush.msra.mxu0 %v5827_v61  ;;  %5898 = vmatpush.msra.mxu1 %v5843_v48 }
 0xf8c   :  { %5751 = vadd.xlane.f32.xlu2 %v5750_v55 }
 0xf8d   :  { %v5739_v51 = vpop.f32.mrf.mxu3 }
 0xf8e   :  { %v5740_v53 = vadd.f32 %v5739_v51, %v5726_v58  ;;  %v5916_v58 = vld [vmem:[%s9953_s19 + $0x60] sm:$0xff] }
 0xf90   :  { %v5745_v35 = vadd.f32 %v5740_v53, %v9629_v59 }
 0xf92   :  { %v5753_v63 = vadd.f32 %v5745_v35, %v5744_v12 }
 0xf94   :  { %5754 = vadd.xlane.f32.xlu0 %v5753_v63  ;;  %v5913_v63 = vld [vmem:[%s9953_s19 + $0x48] sm:$0xff] }
 0xfff   :  { %v5752_v2 = vpop.xlane.xlu2 %5751 }
0x1000   :  { %v5756_v17 = vmul.f32 %v5752_v2, %v9077_v62 }
0x1002   :  { %v9717_v41 = vsub.f32 %v5742_v21, %v5756_v17  ;;  %v9719_v22 = vsub.f32 %v5743_v38, %v5756_v17  ;;  %v5919_v21 = vld [vmem:[%s9953_s19 + $0x78] sm:$0xff]  ;;  %v5918_v38 = vld [vmem:[%s9953_s19 + $0x70] sm:$0xff] }
0x1003   :  { %5945 = vmatpush.msra.mxu3 %v5919_v21 }
0x1004   :  { %v5762_v18 = vmul.f32 %v9717_v41, %v9717_v41  ;;  %v5763_v8 = vmul.f32 %v9719_v22, %v9719_v22 }
0x1005   :  { %5946 = vmatpush.msra.mxu3 %v5918_v38 }
0x1006   :  { %v5766_v9 = vadd.f32 %v5763_v8, %v5762_v18  ;;  %v5912_v18 = vld [vmem:[%s9953_s19 + $0x40] sm:$0xff] }
0x1007   :  { %v5755_v19 = vpop.xlane.xlu0 %5754  ;;  %5947 = vmatpush.msra.mxu3 %v5917_v45  ;;  %v5973_v45 = vld [vmem:[%s9956_s22 + $0x10] sm:$0xff] }
0x1008   :  { %v5757_v50 = vmul.f32 %v5755_v19, %v9077_v62  ;;  %5767 = vadd.xlane.f32.xlu2 %v5766_v9  ;;  %v5911_v19 = vld [vmem:[%s9953_s19 + $0x38] sm:$0xff] }
0x1009   :  { %5948 = vmatpush.msra.mxu3 %v5916_v58  ;;  %v8675_v58 = vld [vmem:[%s9983_s9] ss:$0 sm:$0xff] }
0x100a   :  { %v9726_v59 = vsub.f32 %v5744_v12, %v5757_v50  ;;  %v9728_v40 = vsub.f32 %v5745_v35, %v5757_v50  ;;  %v5914_v12 = vld [vmem:[%s9953_s19 + $0x50] sm:$0xff] }
0x100c   :  { %v5764_v10 = vmul.f32 %v9726_v59, %v9726_v59  ;;  %v5765_v57 = vmul.f32 %v9728_v40, %v9728_v40 }
0x100e   :  { %v5769_v15 = vadd.f32 %v5765_v57, %v5764_v10  ;;  %v5910_v10 = vld [vmem:[%s9953_s19 + $0x30] sm:$0xff]  ;;  %v8116_v57 = vld [vmem:[%s9949_s15 + $0x2] sm:$0x3] }
0x100f   :  { %v5801_v13 = vperm.slane %v8116_v57, 0  ;;  %v5802_v56 = vperm.slane %v8116_v57, 1 }
0x1010   :  { %5770 = vadd.xlane.f32.xlu0 %v5769_v15 }
0x107b   :  { %v5768_v34 = vpop.xlane.xlu2 %5767 }
0x107c   :  { %v5772_v39 = vmul.f32 %v5768_v34, %v9077_v62  ;;  %v5905_v34 = vld [vmem:[%s9953_s19 + $0x8] sm:$0xff] }
0x107e   :  { %v5774_v60 = vadd.f32 1e-12, %v5772_v39  ;;  %v5921_v39 = vld [vmem:[%s9954_s20] sm:$0xff] }
0x107f   :  { %5940 = vmatpush.msra.mxu2 %v5921_v39 }
0x1080   :  { %8791 = vrsqrt.f32 %v5774_v60  ;;  %vm5782_vm14 = vweird.f32 %v5774_v60  ;;  %8118 = vmatmul.msk.f32.vlgmr.msra.gmra.mxu2 %vm1012_vm8, %v5920_v6 }
0x1081   :  { %5994 = vmatpush.msrb.mxu2 %v5978_v11 }
0x1083   :  { %v5771_v49 = vpop.xlane.xlu0 %5770  ;;  %5995 = vmatpush.msrb.mxu2 %v5977_v29 }
0x1084   :  { %v5773_v5 = vmul.f32 %v5771_v49, %v9077_v62  ;;  %v5915_v62 = vld [vmem:[%s9953_s19 + $0x58] sm:$0xff] }
0x1085   :  { %5949 = vmatpush.msra.mxu3 %v5915_v62 }
0x1086   :  { %v8792_v52 = vpop.eup %8791  ;;  %v5775_v55 = vadd.f32 1e-12, %v5773_v5  ;;  %v5974_v5 = vld [vmem:[%s9956_s22 + $0x18] sm:$0xff] }
0x1087   :  { %v5777_v30 = vmul.f32 %v8792_v52, %v5774_v60  ;;  %5950 = vmatpush.msra.mxu3 %v5914_v12  ;;  %vm5783_vm13 = vweird.f32 %v8792_v52  ;;  %v5976_v60 = vld [vmem:[%s9956_s22 + $0x28] sm:$0xff] }
0x1088   :  { %8793 = vrsqrt.f32 %v5775_v55  ;;  %vm5784_vm15 = vmor %vm5782_vm14, %vm5783_vm13  ;;  %vm5792_vm1 = vweird.f32 %v5775_v55  ;;  %5996 = vmatpush.msrb.mxu2 %v5976_v60 }
0x1089   :  { %v5778_v51 = vmul.f32 %v8792_v52, %v5777_v30  ;;  %5951 = vmatpush.msra.mxu3 %v5913_v63 }
0x108a   :  { %5997 = vmatpush.msrb.mxu2 %v5975_v31 }
0x108b   :  { %v5779_v53 = vmul.f32 0.5, %v5778_v51  ;;  %5952 = vmatpush.msra.mxu3 %v5912_v18 }
0x108c   :  { %5998 = vmatpush.msrb.mxu2 %v5974_v5 }
0x108d   :  { %v5780_v35 = vsub.f32 1.5, %v5779_v53  ;;  %5953 = vmatpush.msra.mxu3 %v5911_v19 }
0x108e   :  { %v8794_v2 = vpop.eup %8793  ;;  %5999 = vmatpush.msrb.mxu2 %v5973_v45 }
0x108f   :  { %v5787_v17 = vmul.f32 %v8794_v2, %v5775_v55  ;;  %v5781_v8 = vmul.f32 %v8792_v52, %v5780_v35  ;;  %vm5793_vm0 = vweird.f32 %v8794_v2  ;;  %5954 = vmatpush.msra.mxu3 %v5910_v10  ;;  %v5971_v55 = vld [vmem:[%s9956_s22] sm:$0xff] }
0x1090   :  { %vm5794_vm2 = vmor %vm5792_vm1, %vm5793_vm0  ;;  %v8676_v35 = vld [vmem:[%s9984_s12] ss:$0 sm:$0xff] }
0x1091   :  { %v5788_v9 = vmul.f32 %v8794_v2, %v5787_v17  ;;  %v5785_v15 = vsel %vm5784_vm15, %v8792_v52, %v5781_v8  ;;  %5955 = vmatpush.msra.mxu3 %v5909_v23  ;;  %v5972_v52 = vld [vmem:[%s9956_s22 + $0x8] sm:$0xff] }
0x1092   :  { %v5796_v14 = vmul.f32 %v5785_v15, %v9717_v41  ;;  %v5797_v7 = vmul.f32 %v5785_v15, %v9719_v22  ;;  %6000 = vmatpush.msrb.mxu2 %v5972_v52 }
0x1093   :  { %v5789_v50 = vmul.f32 0.5, %v5788_v9  ;;  %5956 = vmatpush.msra.mxu3 %v5908_v1 }
0x1094   :  { %v5805_v25 = vmul.f32 %v5801_v13, %v5796_v14  ;;  %v5806_v37 = vmul.f32 %v5802_v56, %v5797_v7  ;;  %6001 = vmatpush.msrb.mxu2 %v5971_v55 }
0x1095   :  { %v5790_v46 = vsub.f32 1.5, %v5789_v50 }
0x1096   :  { %v5814_v54 = vadd.f32 %v5810_v27, %v5805_v25  ;;  %v5815_v33 = vadd.f32 %v5811_v24, %v5806_v37 }
0x1097   :  { %v5791_v28 = vmul.f32 %v8794_v2, %v5790_v46 }
0x1099   :  { %v5795_v44 = vsel %vm5794_vm2, %v8794_v2, %v5791_v28 }
0x109a   :  { %v5798_v26 = vmul.f32 %v5795_v44, %v9726_v59  ;;  %v5799_v42 = vmul.f32 %v5795_v44, %v9728_v40  ;;  %v5907_v59 = vld [vmem:[%s9953_s19 + $0x18] sm:$0xff]  ;;  %v5906_v40 = vld [vmem:[%s9953_s19 + $0x10] sm:$0xff] }
0x109b   :  { %5957 = vmatpush.msra.mxu3 %v5907_v59 }
0x109c   :  { %v5807_v3 = vmul.f32 %v5801_v13, %v5798_v26  ;;  %v5808_v41 = vmul.f32 %v5802_v56, %v5799_v42 }
0x109d   :  { %5958 = vmatpush.msra.mxu3 %v5906_v40 }
0x109e   :  { %v5816_v16 = vadd.f32 %v5810_v27, %v5807_v3  ;;  %v5817_v22 = vadd.f32 %v5811_v24, %v5808_v41 }
0x109f   :  { %5959 = vmatpush.msra.mxu3 %v5905_v34 }
0x10a0   :  { %v5820_v36 = vrot.slane %v5816_v16, 7  ;;  %v5821_v32 = vrot.slane %v5817_v22, 7 }
0x10a1   :  { %5960 = vmatpush.msra.mxu3 %v5904_v43 }
0x10a2   :  { %v5825_v4 = vsel %vm5824_vm3, %v5814_v54, %v5820_v36  ;;  %v5826_v20 = vsel %vm5824_vm3, %v5815_v33, %v5821_v32 }
0x10a3   :  { %5879 = vmatmul.f32.vlgmr.msra.gmra.mxu0 %v5825_v4  ;;  %5899 = vmatmul.f32.vlgmr.msra.gmra.mxu1 %v5826_v20 }
0x1103   :  { %v5942_v30 = vpop.f32.mrf.mxu2 }
0x1120   :  { %v5880_v61 = vpop.f32.mrf.mxu0  ;;  %v5900_v49 = vpop.f32.mrf.mxu1 }
0x1121   :  { %v5881_v48 = vadd.f32 %v8674_v47, %v5880_v61 }
0x1123   :  { %v5901_v21 = vadd.f32 %v5900_v49, %v5881_v48 }
0x1125   :  { %v5903_v38 = vmax.f32 %v5901_v21, 0.0 }
0x1127   :  { %5961 = vmatmul.f32.vlgmr.msra.gmra.mxu3 %v5903_v38 }
0x11aa   :  { %v5962_v51 = vpop.f32.mrf.mxu3 }
0x11ab   :  { %v5963_v62 = vadd.f32 %v5962_v51, %v5942_v30 }
0x11ad   :  { %v5969_v53 = vadd.f32 %v8675_v58, %v5963_v62 }
0x11af   :  { %v5970_v12 = vmax.f32 %v5969_v53, 0.0 }
0x11b1   :  { %8119 = vmatmul.msk.f32.vlgmr.msrb.gmra.mxu2 %vm982_vm7, %v5970_v12 }
0x1234   :  { %v6003_v63 = vpop.f32.mrf.mxu2 }
0x1235   :  { %v6004_v2 = vadd.f32 %v8676_v35, %v6003_v63 }
0x1237   :  { %6006 = vst [vmem:[%s9985_s14] sm:$0x3] %v6004_v2 }
0x1238   :  { %6011 = vsyncpa [#allocation3], 1 }
0x1239   :  { %6012 = vsyncpa [#allocation5], 1 }
0x123a   :  { %6013 = vsyncpa [#allocation8], 1 }

</bundles_post_ra>
